<compile_context>
chip_gen: v7x
topology: tpu7x:2x2x1
jax: 0.10.0
libtpu: 0.0.40
codegen_flags: <defaults>
</compile_context>

<pallas_src>
import jax
import jax.numpy as jnp
from jax.experimental import pallas as pl
from jax.experimental.pallas import tpu as pltpu

NEG_SLOPE = 0.01  # PyTorch nn.LeakyReLU default negative_slope


# ----------------------------------------------------------------------------
# In-kernel building blocks (operate on VMEM-resident values / scratch refs).
# ----------------------------------------------------------------------------
def _conv3x3_bn_lrelu(x, w_ref, scale_ref, bias_ref, pad_ref):
    """3x3 conv (padding=1) + folded BN affine + LeakyReLU on a VMEM batch tile.

    x:                 (NB, H, W, Cin) f32 value
    w_ref:             (3, 3, Cin, Cout) HWIO weights
    scale_ref/bias_ref:(1, Cout) folded BN scale / bias (incl. conv bias)
    pad_ref:           (NB, H+2, W+2, Cin) VMEM scratch for the zero-padded input
    returns:           (NB, H, W, Cout) f32 value
    """
    NB, H, W, Cin = x.shape
    Cout = w_ref.shape[-1]

    # Zero-pad in VMEM: borders stay zero, interior overwritten each step.
    pad_ref[...] = jnp.zeros_like(pad_ref)
    pad_ref[:, 1:H + 1, 1:W + 1, :] = x
    xp = pad_ref[...]                                        # (NB, H+2, W+2, Cin)

    M = NB * H * W
    acc = jnp.zeros((M, Cout), jnp.float32)
    for dh in range(3):
        for dw in range(3):
            patch = xp[:, dh:dh + H, dw:dw + W, :].reshape(M, Cin)
            wk = w_ref[dh, dw]                               # (Cin, Cout)
            if Cin == 1:
                acc = acc + patch * wk                       # VPU outer product
            else:
                acc = acc + jnp.dot(patch, wk,
                                    preferred_element_type=jnp.float32)

    y = acc * scale_ref[...] + bias_ref[...]                 # folded BN (+ conv bias)
    y = jnp.where(y > 0, y, NEG_SLOPE * y)                   # LeakyReLU(0.01)
    return y.reshape(NB, H, W, Cout)


def _maxpool2x2(y, out_ref):
    """2x2 / stride-2 max pool of a VMEM-resident value.

    y: (NB, H, W, C) value; out_ref: (NB, H//2, W//2, C) VMEM scratch.
    """
    NB, H, W, C = y.shape
    Hp, Wp = H // 2, W // 2
    # Pool along H: splitting the outer H axis is a free view; elementwise max.
    yh = jnp.max(y.reshape(NB, Hp, 2, W, C), axis=2)         # (NB, Hp, W, C)
    # Pool along W: max of adjacent sublane pairs, static slices only.
    for wp in range(Wp):
        out_ref[:, :, wp:wp + 1, :] = jnp.max(
            yh[:, :, 2 * wp:2 * wp + 2, :], axis=2, keepdims=True)
    return out_ref[...]                                      # (NB, Hp, Wp, C)


# ----------------------------------------------------------------------------
# Fused kernel: conv1 -> conv2 -> pool -> conv3 -> conv4 -> pool -> GAP -> FC.
# One grid step handles one batch tile; all intermediates stay in VMEM.
# ----------------------------------------------------------------------------
def _modelb_fused_kernel(x_ref,
                         w1_ref, s1_ref, b1_ref,
                         w2_ref, s2_ref, b2_ref,
                         w3_ref, s3_ref, b3_ref,
                         w4_ref, s4_ref, b4_ref,
                         fcw_ref, fcb_ref,
                         o_ref,
                         p1, p2, r1, p3, p4, r2):
    x = x_ref[...]                                            # (NB, 16, 16, 1)
    y = _conv3x3_bn_lrelu(x, w1_ref, s1_ref, b1_ref, p1)      # (NB, 16, 16, 16)
    y = _conv3x3_bn_lrelu(y, w2_ref, s2_ref, b2_ref, p2)      # (NB, 16, 16, 32)
    y = _maxpool2x2(y, r1)                                    # (NB,  8,  8, 32)
    y = _conv3x3_bn_lrelu(y, w3_ref, s3_ref, b3_ref, p3)      # (NB,  8,  8, 64)
    y = _conv3x3_bn_lrelu(y, w4_ref, s4_ref, b4_ref, p4)      # (NB,  8,  8,128)
    y = _maxpool2x2(y, r2)                                    # (NB,  4,  4,128)

    NB, Hp, Wp, C = y.shape
    g = jnp.sum(y, axis=(1, 2)) * (1.0 / (Hp * Wp))           # GAP -> (NB, 128)
    logits = jnp.dot(g, fcw_ref[...],
                     preferred_element_type=jnp.float32) + fcb_ref[...]
    o_ref[0] = logits                                         # (NB, 10)


def model_b_forward(x_nchw, conv_params, fc_w, fc_b, *, batch_block=None):
    x = jnp.transpose(x_nchw, (0, 2, 3, 1)).astype(jnp.float32)  # NCHW -> NHWC
    N, H, W, Cin = x.shape

    # Batch tile size: amortize per-step overhead, but keep >=2 grid iterations
    # when possible so v7x's two TensorCores both get work.
    if batch_block is None:
        batch_block = max(1, min(8, N // 2))
    nb = max(1, min(batch_block, N))
    while N % nb:
        nb -= 1
    grid_n = N // nb

    (w1, s1, b1), (w2, s2, b2), (w3, s3, b3), (w4, s4, b4) = conv_params
    weights = (w1, s1, b1, w2, s2, b2, w3, s3, b3, w4, s4, b4, fc_w, fc_b)

    def full_spec(a):
        nd = a.ndim
        return pl.BlockSpec(a.shape, lambda n, _nd=nd: (0,) * _nd)

    Hp, Wp = H // 2, W // 2
    c1, c2, c3, c4 = w1.shape[2], w2.shape[2], w3.shape[2], w4.shape[2]

    out = pl.pallas_call(
        _modelb_fused_kernel,
        out_shape=jax.ShapeDtypeStruct((grid_n, nb, 10), jnp.float32),
        grid=(grid_n,),
        in_specs=[pl.BlockSpec((nb, H, W, Cin), lambda n: (n, 0, 0, 0))]
                 + [full_spec(a) for a in weights],
        out_specs=pl.BlockSpec((1, nb, 10), lambda n: (n, 0, 0)),
        scratch_shapes=[
            pltpu.VMEM((nb, H + 2, W + 2, c1), jnp.float32),            # pad conv1
            pltpu.VMEM((nb, H + 2, W + 2, c2), jnp.float32),            # pad conv2
            pltpu.VMEM((nb, Hp, Wp, w2.shape[3]), jnp.float32),         # pool1 out
            pltpu.VMEM((nb, Hp + 2, Wp + 2, c3), jnp.float32),          # pad conv3
            pltpu.VMEM((nb, Hp + 2, Wp + 2, c4), jnp.float32),          # pad conv4
            pltpu.VMEM((nb, H // 4, W // 4, w4.shape[3]), jnp.float32), # pool2 out
        ],
        compiler_params=pltpu.CompilerParams(
            dimension_semantics=("parallel",)),
    )(x, *weights)
    return out.reshape(N, 10)


# ----------------------------------------------------------------------------
# Parameter construction (deterministic, synthetic).
# ----------------------------------------------------------------------------
def init_params(key):
    eps = 1e-5
    chans = [(1, 16), (16, 32), (32, 64), (64, 128)]
    conv_params = []
    for i, (cin, cout) in enumerate(chans):
        k = jax.random.fold_in(key, i)
        kw, kb, kg, kbe, km, kv = jax.random.split(k, 6)
        w = 0.1 * jax.random.normal(kw, (3, 3, cin, cout), jnp.float32)  # HWIO
        conv_b = 0.1 * jax.random.normal(kb, (cout,), jnp.float32)
        gamma = 1.0 + 0.1 * jax.random.normal(kg, (cout,), jnp.float32)
        beta = 0.1 * jax.random.normal(kbe, (cout,), jnp.float32)
        rmean = 0.1 * jax.random.normal(km, (cout,), jnp.float32)
        rvar = jax.random.uniform(kv, (cout,), jnp.float32, 0.5, 1.5)
        scale = gamma / jnp.sqrt(rvar + eps)                 # BN eval-mode fold
        bias = (conv_b - rmean) * scale + beta
        conv_params.append((w, scale.reshape(1, cout), bias.reshape(1, cout)))
    kfc = jax.random.fold_in(key, 100)
    kw, kb = jax.random.split(kfc)
    fc_w = 0.1 * jax.random.normal(kw, (128, 10), jnp.float32)
    fc_b = 0.1 * jax.random.normal(kb, (10,), jnp.float32).reshape(1, 10)
    return conv_params, fc_w, fc_b


# Pure-JAX reference (for a correctness sanity check).
def reference_forward(x_nchw, conv_params, fc_w, fc_b):
    x = jnp.transpose(x_nchw, (0, 2, 3, 1))

    def conv(x, w, s, b):
        y = jax.lax.conv_general_dilated(
            x, w, window_strides=(1, 1), padding="SAME",
            dimension_numbers=("NHWC", "HWIO", "NHWC"))
        y = y * s.reshape(1, 1, 1, -1) + b.reshape(1, 1, 1, -1)
        return jnp.where(y > 0, y, NEG_SLOPE * y)

    def pool(x):
        N, H, W, C = x.shape
        return jnp.max(x.reshape(N, H // 2, 2, W // 2, 2, C), axis=(2, 4))

    (w1, s1, b1), (w2, s2, b2), (w3, s3, b3), (w4, s4, b4) = conv_params
    x = conv(x, w1, s1, b1); x = conv(x, w2, s2, b2); x = pool(x)
    x = conv(x, w3, s3, b3); x = conv(x, w4, s4, b4); x = pool(x)
    g = jnp.mean(x, axis=(1, 2))
    return g @ fc_w + fc_b.reshape(10)


if __name__ == "__main__":
    key = jax.random.PRNGKey(0)
    kx, kp = jax.random.split(key)
    # PyTorch input convention: NCHW with 1 input channel (Conv2d(1, 16, ...)).
    x = jax.random.normal(kx, (2, 1, 16, 16), jnp.float32)
    conv_params, fc_w, fc_b = init_params(kp)

    out = jax.block_until_ready(model_b_forward(x, conv_params, fc_w, fc_b))
    assert out.shape == (2, 10), out.shape

    ref = jax.block_until_ready(reference_forward(x, conv_params, fc_w, fc_b))
    err = float(jnp.max(jnp.abs(out - ref)))
    assert err < 5e-2, f"mismatch vs reference: max abs err = {err}"

    print("KERNEL_OK")
</pallas_src>

<mosaic_0001>
module attributes {stable_mosaic.version = 11 : i64} {
  func.func @_modelb_fused_kernel(%arg0: i32, %arg1: memref<1x16x16x1xf32, #tpu.memory_space<vmem>>, %arg2: memref<3x3x1x16xf32, #tpu.memory_space<vmem>>, %arg3: memref<1x16xf32, #tpu.memory_space<vmem>>, %arg4: memref<1x16xf32, #tpu.memory_space<vmem>>, %arg5: memref<3x3x16x32xf32, #tpu.memory_space<vmem>>, %arg6: memref<1x32xf32, #tpu.memory_space<vmem>>, %arg7: memref<1x32xf32, #tpu.memory_space<vmem>>, %arg8: memref<3x3x32x64xf32, #tpu.memory_space<vmem>>, %arg9: memref<1x64xf32, #tpu.memory_space<vmem>>, %arg10: memref<1x64xf32, #tpu.memory_space<vmem>>, %arg11: memref<3x3x64x128xf32, #tpu.memory_space<vmem>>, %arg12: memref<1x128xf32, #tpu.memory_space<vmem>>, %arg13: memref<1x128xf32, #tpu.memory_space<vmem>>, %arg14: memref<128x10xf32, #tpu.memory_space<vmem>>, %arg15: memref<1x10xf32, #tpu.memory_space<vmem>>, %arg16: memref<1x1x10xf32, #tpu.memory_space<vmem>>, %arg17: memref<1x18x18x1xf32, #tpu.memory_space<vmem>>, %arg18: memref<1x18x18x16xf32, #tpu.memory_space<vmem>>, %arg19: memref<1x8x8x32xf32, #tpu.memory_space<vmem>>, %arg20: memref<1x10x10x32xf32, #tpu.memory_space<vmem>>, %arg21: memref<1x10x10x64xf32, #tpu.memory_space<vmem>>, %arg22: memref<1x4x4x128xf32, #tpu.memory_space<vmem>>) attributes {dimension_semantics = [#tpu.dimension_semantics<parallel>], iteration_bounds = array<i64: 2>, scalar_prefetch = 0 : i64, scratch_operands = 6 : i64, tpu.core_type = #tpu.core_type<tc>, window_params = [{transform_indices = @transform_0, window_bounds = array<i64: 1, 16, 16, 1>}, {pipeline_mode = #tpu.pipeline_mode<synchronous>, transform_indices = @transform_1, window_bounds = array<i64: 3, 3, 1, 16>}, {pipeline_mode = #tpu.pipeline_mode<synchronous>, transform_indices = @transform_2, window_bounds = array<i64: 1, 16>}, {pipeline_mode = #tpu.pipeline_mode<synchronous>, transform_indices = @transform_3, window_bounds = array<i64: 1, 16>}, {pipeline_mode = #tpu.pipeline_mode<synchronous>, transform_indices = @transform_4, window_bounds = array<i64: 3, 3, 16, 32>}, {pipeline_mode = #tpu.pipeline_mode<synchronous>, transform_indices = @transform_5, window_bounds = array<i64: 1, 32>}, {pipeline_mode = #tpu.pipeline_mode<synchronous>, transform_indices = @transform_6, window_bounds = array<i64: 1, 32>}, {pipeline_mode = #tpu.pipeline_mode<synchronous>, transform_indices = @transform_7, window_bounds = array<i64: 3, 3, 32, 64>}, {pipeline_mode = #tpu.pipeline_mode<synchronous>, transform_indices = @transform_8, window_bounds = array<i64: 1, 64>}, {pipeline_mode = #tpu.pipeline_mode<synchronous>, transform_indices = @transform_9, window_bounds = array<i64: 1, 64>}, {pipeline_mode = #tpu.pipeline_mode<synchronous>, transform_indices = @transform_10, window_bounds = array<i64: 3, 3, 64, 128>}, {pipeline_mode = #tpu.pipeline_mode<synchronous>, transform_indices = @transform_11, window_bounds = array<i64: 1, 128>}, {pipeline_mode = #tpu.pipeline_mode<synchronous>, transform_indices = @transform_12, window_bounds = array<i64: 1, 128>}, {pipeline_mode = #tpu.pipeline_mode<synchronous>, transform_indices = @transform_13, window_bounds = array<i64: 128, 10>}, {pipeline_mode = #tpu.pipeline_mode<synchronous>, transform_indices = @transform_14, window_bounds = array<i64: 1, 10>}, {transform_indices = @transform_15, window_bounds = array<i64: 1, 1, 10>}]} {
    %c0 = arith.constant 0 : index
    %c0_0 = arith.constant 0 : index
    %c0_1 = arith.constant 0 : index
    %c0_2 = arith.constant 0 : index
    %0 = vector.load %arg1[%c0, %c0_0, %c0_1, %c0_2] : memref<1x16x16x1xf32, #tpu.memory_space<vmem>>, vector<1x16x16x1xf32>
    %cst = arith.constant 0.000000e+00 : f32
    %1 = vector.broadcast %cst : f32 to vector<1x18x18x1xf32>
    %c0_3 = arith.constant 0 : index
    %c0_4 = arith.constant 0 : index
    %c0_5 = arith.constant 0 : index
    %c0_6 = arith.constant 0 : index
    %2 = vector.load %arg17[%c0_3, %c0_4, %c0_5, %c0_6] : memref<1x18x18x1xf32, #tpu.memory_space<vmem>>, vector<1x18x18x1xf32>
    tpu.vector_store %arg17[%c0_3, %c0_4, %c0_5, %c0_6], %1 {strides = array<i32>} : memref<1x18x18x1xf32, #tpu.memory_space<vmem>>, vector<1x18x18x1xf32>,
    %c0_7 = arith.constant 0 : index
    %c1 = arith.constant 1 : index
    %c1_8 = arith.constant 1 : index
    %c0_9 = arith.constant 0 : index
    %3 = vector.load %arg17[%c0_7, %c1, %c1_8, %c0_9] : memref<1x18x18x1xf32, #tpu.memory_space<vmem>>, vector<1x16x16x1xf32>
    tpu.vector_store %arg17[%c0_7, %c1, %c1_8, %c0_9], %0 {strides = array<i32>} : memref<1x18x18x1xf32, #tpu.memory_space<vmem>>, vector<1x16x16x1xf32>,
    %c0_10 = arith.constant 0 : index
    %c0_11 = arith.constant 0 : index
    %c0_12 = arith.constant 0 : index
    %c0_13 = arith.constant 0 : index
    %4 = vector.load %arg17[%c0_10, %c0_11, %c0_12, %c0_13] : memref<1x18x18x1xf32, #tpu.memory_space<vmem>>, vector<1x18x18x1xf32>
    %cst_14 = arith.constant 0.000000e+00 : f32
    %5 = vector.broadcast %cst_14 : f32 to vector<256x16xf32>
    %6 = vector.extract_strided_slice %4 {offsets = [0, 0, 0, 0], sizes = [1, 16, 16, 1], strides = [1, 1, 1, 1]} : vector<1x18x18x1xf32> to vector<1x16x16x1xf32>
    %7 = vector.shape_cast %6 : vector<1x16x16x1xf32> to vector<256x1xf32>
    %c0_15 = arith.constant 0 : index
    %c0_16 = arith.constant 0 : index
    %c0_17 = arith.constant 0 : index
    %c0_18 = arith.constant 0 : index
    %8 = vector.load %arg2[%c0_15, %c0_16, %c0_17, %c0_18] : memref<3x3x1x16xf32, #tpu.memory_space<vmem>>, vector<1x1x1x16xf32>
    %9 = vector.shape_cast %8 : vector<1x1x1x16xf32> to vector<1x16xf32>
    %10 = vector.broadcast %7 : vector<256x1xf32> to vector<256x16xf32>
    %11 = vector.broadcast %9 : vector<1x16xf32> to vector<256x16xf32>
    %12 = arith.mulf %10, %11 : vector<256x16xf32>
    %13 = arith.addf %5, %12 : vector<256x16xf32>
    %14 = vector.extract_strided_slice %4 {offsets = [0, 0, 1, 0], sizes = [1, 16, 16, 1], strides = [1, 1, 1, 1]} : vector<1x18x18x1xf32> to vector<1x16x16x1xf32>
    %15 = vector.shape_cast %14 : vector<1x16x16x1xf32> to vector<256x1xf32>
    %c0_19 = arith.constant 0 : index
    %c1_20 = arith.constant 1 : index
    %c0_21 = arith.constant 0 : index
    %c0_22 = arith.constant 0 : index
    %16 = vector.load %arg2[%c0_19, %c1_20, %c0_21, %c0_22] : memref<3x3x1x16xf32, #tpu.memory_space<vmem>>, vector<1x1x1x16xf32>
    %17 = vector.shape_cast %16 : vector<1x1x1x16xf32> to vector<1x16xf32>
    %18 = vector.broadcast %15 : vector<256x1xf32> to vector<256x16xf32>
    %19 = vector.broadcast %17 : vector<1x16xf32> to vector<256x16xf32>
    %20 = arith.mulf %18, %19 : vector<256x16xf32>
    %21 = arith.addf %13, %20 : vector<256x16xf32>
    %22 = vector.extract_strided_slice %4 {offsets = [0, 0, 2, 0], sizes = [1, 16, 16, 1], strides = [1, 1, 1, 1]} : vector<1x18x18x1xf32> to vector<1x16x16x1xf32>
    %23 = vector.shape_cast %22 : vector<1x16x16x1xf32> to vector<256x1xf32>
    %c0_23 = arith.constant 0 : index
    %c2 = arith.constant 2 : index
    %c0_24 = arith.constant 0 : index
    %c0_25 = arith.constant 0 : index
    %24 = vector.load %arg2[%c0_23, %c2, %c0_24, %c0_25] : memref<3x3x1x16xf32, #tpu.memory_space<vmem>>, vector<1x1x1x16xf32>
    %25 = vector.shape_cast %24 : vector<1x1x1x16xf32> to vector<1x16xf32>
    %26 = vector.broadcast %23 : vector<256x1xf32> to vector<256x16xf32>
    %27 = vector.broadcast %25 : vector<1x16xf32> to vector<256x16xf32>
    %28 = arith.mulf %26, %27 : vector<256x16xf32>
    %29 = arith.addf %21, %28 : vector<256x16xf32>
    %30 = vector.extract_strided_slice %4 {offsets = [0, 1, 0, 0], sizes = [1, 16, 16, 1], strides = [1, 1, 1, 1]} : vector<1x18x18x1xf32> to vector<1x16x16x1xf32>
    %31 = vector.shape_cast %30 : vector<1x16x16x1xf32> to vector<256x1xf32>
    %c1_26 = arith.constant 1 : index
    %c0_27 = arith.constant 0 : index
    %c0_28 = arith.constant 0 : index
    %c0_29 = arith.constant 0 : index
    %32 = vector.load %arg2[%c1_26, %c0_27, %c0_28, %c0_29] : memref<3x3x1x16xf32, #tpu.memory_space<vmem>>, vector<1x1x1x16xf32>
    %33 = vector.shape_cast %32 : vector<1x1x1x16xf32> to vector<1x16xf32>
    %34 = vector.broadcast %31 : vector<256x1xf32> to vector<256x16xf32>
    %35 = vector.broadcast %33 : vector<1x16xf32> to vector<256x16xf32>
    %36 = arith.mulf %34, %35 : vector<256x16xf32>
    %37 = arith.addf %29, %36 : vector<256x16xf32>
    %38 = vector.extract_strided_slice %4 {offsets = [0, 1, 1, 0], sizes = [1, 16, 16, 1], strides = [1, 1, 1, 1]} : vector<1x18x18x1xf32> to vector<1x16x16x1xf32>
    %39 = vector.shape_cast %38 : vector<1x16x16x1xf32> to vector<256x1xf32>
    %c1_30 = arith.constant 1 : index
    %c1_31 = arith.constant 1 : index
    %c0_32 = arith.constant 0 : index
    %c0_33 = arith.constant 0 : index
    %40 = vector.load %arg2[%c1_30, %c1_31, %c0_32, %c0_33] : memref<3x3x1x16xf32, #tpu.memory_space<vmem>>, vector<1x1x1x16xf32>
    %41 = vector.shape_cast %40 : vector<1x1x1x16xf32> to vector<1x16xf32>
    %42 = vector.broadcast %39 : vector<256x1xf32> to vector<256x16xf32>
    %43 = vector.broadcast %41 : vector<1x16xf32> to vector<256x16xf32>
    %44 = arith.mulf %42, %43 : vector<256x16xf32>
    %45 = arith.addf %37, %44 : vector<256x16xf32>
    %46 = vector.extract_strided_slice %4 {offsets = [0, 1, 2, 0], sizes = [1, 16, 16, 1], strides = [1, 1, 1, 1]} : vector<1x18x18x1xf32> to vector<1x16x16x1xf32>
    %47 = vector.shape_cast %46 : vector<1x16x16x1xf32> to vector<256x1xf32>
    %c1_34 = arith.constant 1 : index
    %c2_35 = arith.constant 2 : index
    %c0_36 = arith.constant 0 : index
    %c0_37 = arith.constant 0 : index
    %48 = vector.load %arg2[%c1_34, %c2_35, %c0_36, %c0_37] : memref<3x3x1x16xf32, #tpu.memory_space<vmem>>, vector<1x1x1x16xf32>
    %49 = vector.shape_cast %48 : vector<1x1x1x16xf32> to vector<1x16xf32>
    %50 = vector.broadcast %47 : vector<256x1xf32> to vector<256x16xf32>
    %51 = vector.broadcast %49 : vector<1x16xf32> to vector<256x16xf32>
    %52 = arith.mulf %50, %51 : vector<256x16xf32>
    %53 = arith.addf %45, %52 : vector<256x16xf32>
    %54 = vector.extract_strided_slice %4 {offsets = [0, 2, 0, 0], sizes = [1, 16, 16, 1], strides = [1, 1, 1, 1]} : vector<1x18x18x1xf32> to vector<1x16x16x1xf32>
    %55 = vector.shape_cast %54 : vector<1x16x16x1xf32> to vector<256x1xf32>
    %c2_38 = arith.constant 2 : index
    %c0_39 = arith.constant 0 : index
    %c0_40 = arith.constant 0 : index
    %c0_41 = arith.constant 0 : index
    %56 = vector.load %arg2[%c2_38, %c0_39, %c0_40, %c0_41] : memref<3x3x1x16xf32, #tpu.memory_space<vmem>>, vector<1x1x1x16xf32>
    %57 = vector.shape_cast %56 : vector<1x1x1x16xf32> to vector<1x16xf32>
    %58 = vector.broadcast %55 : vector<256x1xf32> to vector<256x16xf32>
    %59 = vector.broadcast %57 : vector<1x16xf32> to vector<256x16xf32>
    %60 = arith.mulf %58, %59 : vector<256x16xf32>
    %61 = arith.addf %53, %60 : vector<256x16xf32>
    %62 = vector.extract_strided_slice %4 {offsets = [0, 2, 1, 0], sizes = [1, 16, 16, 1], strides = [1, 1, 1, 1]} : vector<1x18x18x1xf32> to vector<1x16x16x1xf32>
    %63 = vector.shape_cast %62 : vector<1x16x16x1xf32> to vector<256x1xf32>
    %c2_42 = arith.constant 2 : index
    %c1_43 = arith.constant 1 : index
    %c0_44 = arith.constant 0 : index
    %c0_45 = arith.constant 0 : index
    %64 = vector.load %arg2[%c2_42, %c1_43, %c0_44, %c0_45] : memref<3x3x1x16xf32, #tpu.memory_space<vmem>>, vector<1x1x1x16xf32>
    %65 = vector.shape_cast %64 : vector<1x1x1x16xf32> to vector<1x16xf32>
    %66 = vector.broadcast %63 : vector<256x1xf32> to vector<256x16xf32>
    %67 = vector.broadcast %65 : vector<1x16xf32> to vector<256x16xf32>
    %68 = arith.mulf %66, %67 : vector<256x16xf32>
    %69 = arith.addf %61, %68 : vector<256x16xf32>
    %70 = vector.extract_strided_slice %4 {offsets = [0, 2, 2, 0], sizes = [1, 16, 16, 1], strides = [1, 1, 1, 1]} : vector<1x18x18x1xf32> to vector<1x16x16x1xf32>
    %71 = vector.shape_cast %70 : vector<1x16x16x1xf32> to vector<256x1xf32>
    %c2_46 = arith.constant 2 : index
    %c2_47 = arith.constant 2 : index
    %c0_48 = arith.constant 0 : index
    %c0_49 = arith.constant 0 : index
    %72 = vector.load %arg2[%c2_46, %c2_47, %c0_48, %c0_49] : memref<3x3x1x16xf32, #tpu.memory_space<vmem>>, vector<1x1x1x16xf32>
    %73 = vector.shape_cast %72 : vector<1x1x1x16xf32> to vector<1x16xf32>
    %74 = vector.broadcast %71 : vector<256x1xf32> to vector<256x16xf32>
    %75 = vector.broadcast %73 : vector<1x16xf32> to vector<256x16xf32>
    %76 = arith.mulf %74, %75 : vector<256x16xf32>
    %77 = arith.addf %69, %76 : vector<256x16xf32>
    %c0_50 = arith.constant 0 : index
    %c0_51 = arith.constant 0 : index
    %78 = vector.load %arg3[%c0_50, %c0_51] : memref<1x16xf32, #tpu.memory_space<vmem>>, vector<1x16xf32>
    %79 = vector.broadcast %78 : vector<1x16xf32> to vector<256x16xf32>
    %80 = arith.mulf %77, %79 : vector<256x16xf32>
    %c0_52 = arith.constant 0 : index
    %c0_53 = arith.constant 0 : index
    %81 = vector.load %arg4[%c0_52, %c0_53] : memref<1x16xf32, #tpu.memory_space<vmem>>, vector<1x16xf32>
    %82 = vector.broadcast %81 : vector<1x16xf32> to vector<256x16xf32>
    %83 = arith.addf %80, %82 : vector<256x16xf32>
    %cst_54 = arith.constant 0.000000e+00 : f32
    %84 = vector.broadcast %cst_54 : f32 to vector<256x16xf32>
    %85 = arith.cmpf ogt, %83, %84 : vector<256x16xf32>
    %cst_55 = arith.constant 0.00999999977 : f32
    %86 = vector.broadcast %cst_55 : f32 to vector<256x16xf32>
    %87 = arith.mulf %86, %83 : vector<256x16xf32>
    %88 = arith.select %85, %83, %87 : vector<256x16xi1>, vector<256x16xf32>
    %89 = vector.shape_cast %88 : vector<256x16xf32> to vector<1x16x16x16xf32>
    %cst_56 = arith.constant 0.000000e+00 : f32
    %90 = vector.broadcast %cst_56 : f32 to vector<1x18x18x16xf32>
    %c0_57 = arith.constant 0 : index
    %c0_58 = arith.constant 0 : index
    %c0_59 = arith.constant 0 : index
    %c0_60 = arith.constant 0 : index
    %91 = vector.load %arg18[%c0_57, %c0_58, %c0_59, %c0_60] : memref<1x18x18x16xf32, #tpu.memory_space<vmem>>, vector<1x18x18x16xf32>
    tpu.vector_store %arg18[%c0_57, %c0_58, %c0_59, %c0_60], %90 {strides = array<i32>} : memref<1x18x18x16xf32, #tpu.memory_space<vmem>>, vector<1x18x18x16xf32>,
    %c0_61 = arith.constant 0 : index
    %c1_62 = arith.constant 1 : index
    %c1_63 = arith.constant 1 : index
    %c0_64 = arith.constant 0 : index
    %92 = vector.load %arg18[%c0_61, %c1_62, %c1_63, %c0_64] : memref<1x18x18x16xf32, #tpu.memory_space<vmem>>, vector<1x16x16x16xf32>
    tpu.vector_store %arg18[%c0_61, %c1_62, %c1_63, %c0_64], %89 {strides = array<i32>} : memref<1x18x18x16xf32, #tpu.memory_space<vmem>>, vector<1x16x16x16xf32>,
    %c0_65 = arith.constant 0 : index
    %c0_66 = arith.constant 0 : index
    %c0_67 = arith.constant 0 : index
    %c0_68 = arith.constant 0 : index
    %93 = vector.load %arg18[%c0_65, %c0_66, %c0_67, %c0_68] : memref<1x18x18x16xf32, #tpu.memory_space<vmem>>, vector<1x18x18x16xf32>
    %cst_69 = arith.constant 0.000000e+00 : f32
    %94 = vector.broadcast %cst_69 : f32 to vector<256x32xf32>
    %95 = vector.extract_strided_slice %93 {offsets = [0, 0, 0, 0], sizes = [1, 16, 16, 16], strides = [1, 1, 1, 1]} : vector<1x18x18x16xf32> to vector<1x16x16x16xf32>
    %96 = vector.shape_cast %95 : vector<1x16x16x16xf32> to vector<256x16xf32>
    %c0_70 = arith.constant 0 : index
    %c0_71 = arith.constant 0 : index
    %c0_72 = arith.constant 0 : index
    %c0_73 = arith.constant 0 : index
    %97 = vector.load %arg5[%c0_70, %c0_71, %c0_72, %c0_73] : memref<3x3x16x32xf32, #tpu.memory_space<vmem>>, vector<1x1x16x32xf32>
    %98 = vector.shape_cast %97 : vector<1x1x16x32xf32> to vector<16x32xf32>
    %cst_74 = arith.constant dense<0.000000e+00> : vector<256x32xf32>
    %99 = tpu.matmul %96, %98, %cst_74 {dimension_numbers = #tpu.dot_dimension_numbers<[1], [0], [0], [1], [0, 0, 1, 1], [], []>} : vector<256x16xf32>, vector<16x32xf32>, vector<256x32xf32> -> vector<256x32xf32>
    %100 = arith.addf %94, %99 : vector<256x32xf32>
    %101 = vector.extract_strided_slice %93 {offsets = [0, 0, 1, 0], sizes = [1, 16, 16, 16], strides = [1, 1, 1, 1]} : vector<1x18x18x16xf32> to vector<1x16x16x16xf32>
    %102 = vector.shape_cast %101 : vector<1x16x16x16xf32> to vector<256x16xf32>
    %c0_75 = arith.constant 0 : index
    %c1_76 = arith.constant 1 : index
    %c0_77 = arith.constant 0 : index
    %c0_78 = arith.constant 0 : index
    %103 = vector.load %arg5[%c0_75, %c1_76, %c0_77, %c0_78] : memref<3x3x16x32xf32, #tpu.memory_space<vmem>>, vector<1x1x16x32xf32>
    %104 = vector.shape_cast %103 : vector<1x1x16x32xf32> to vector<16x32xf32>
    %cst_79 = arith.constant dense<0.000000e+00> : vector<256x32xf32>
    %105 = tpu.matmul %102, %104, %cst_79 {dimension_numbers = #tpu.dot_dimension_numbers<[1], [0], [0], [1], [0, 0, 1, 1], [], []>} : vector<256x16xf32>, vector<16x32xf32>, vector<256x32xf32> -> vector<256x32xf32>
    %106 = arith.addf %100, %105 : vector<256x32xf32>
    %107 = vector.extract_strided_slice %93 {offsets = [0, 0, 2, 0], sizes = [1, 16, 16, 16], strides = [1, 1, 1, 1]} : vector<1x18x18x16xf32> to vector<1x16x16x16xf32>
    %108 = vector.shape_cast %107 : vector<1x16x16x16xf32> to vector<256x16xf32>
    %c0_80 = arith.constant 0 : index
    %c2_81 = arith.constant 2 : index
    %c0_82 = arith.constant 0 : index
    %c0_83 = arith.constant 0 : index
    %109 = vector.load %arg5[%c0_80, %c2_81, %c0_82, %c0_83] : memref<3x3x16x32xf32, #tpu.memory_space<vmem>>, vector<1x1x16x32xf32>
    %110 = vector.shape_cast %109 : vector<1x1x16x32xf32> to vector<16x32xf32>
    %cst_84 = arith.constant dense<0.000000e+00> : vector<256x32xf32>
    %111 = tpu.matmul %108, %110, %cst_84 {dimension_numbers = #tpu.dot_dimension_numbers<[1], [0], [0], [1], [0, 0, 1, 1], [], []>} : vector<256x16xf32>, vector<16x32xf32>, vector<256x32xf32> -> vector<256x32xf32>
    %112 = arith.addf %106, %111 : vector<256x32xf32>
    %113 = vector.extract_strided_slice %93 {offsets = [0, 1, 0, 0], sizes = [1, 16, 16, 16], strides = [1, 1, 1, 1]} : vector<1x18x18x16xf32> to vector<1x16x16x16xf32>
    %114 = vector.shape_cast %113 : vector<1x16x16x16xf32> to vector<256x16xf32>
    %c1_85 = arith.constant 1 : index
    %c0_86 = arith.constant 0 : index
    %c0_87 = arith.constant 0 : index
    %c0_88 = arith.constant 0 : index
    %115 = vector.load %arg5[%c1_85, %c0_86, %c0_87, %c0_88] : memref<3x3x16x32xf32, #tpu.memory_space<vmem>>, vector<1x1x16x32xf32>
    %116 = vector.shape_cast %115 : vector<1x1x16x32xf32> to vector<16x32xf32>
    %cst_89 = arith.constant dense<0.000000e+00> : vector<256x32xf32>
    %117 = tpu.matmul %114, %116, %cst_89 {dimension_numbers = #tpu.dot_dimension_numbers<[1], [0], [0], [1], [0, 0, 1, 1], [], []>} : vector<256x16xf32>, vector<16x32xf32>, vector<256x32xf32> -> vector<256x32xf32>
    %118 = arith.addf %112, %117 : vector<256x32xf32>
    %119 = vector.extract_strided_slice %93 {offsets = [0, 1, 1, 0], sizes = [1, 16, 16, 16], strides = [1, 1, 1, 1]} : vector<1x18x18x16xf32> to vector<1x16x16x16xf32>
    %120 = vector.shape_cast %119 : vector<1x16x16x16xf32> to vector<256x16xf32>
    %c1_90 = arith.constant 1 : index
    %c1_91 = arith.constant 1 : index
    %c0_92 = arith.constant 0 : index
    %c0_93 = arith.constant 0 : index
    %121 = vector.load %arg5[%c1_90, %c1_91, %c0_92, %c0_93] : memref<3x3x16x32xf32, #tpu.memory_space<vmem>>, vector<1x1x16x32xf32>
    %122 = vector.shape_cast %121 : vector<1x1x16x32xf32> to vector<16x32xf32>
    %cst_94 = arith.constant dense<0.000000e+00> : vector<256x32xf32>
    %123 = tpu.matmul %120, %122, %cst_94 {dimension_numbers = #tpu.dot_dimension_numbers<[1], [0], [0], [1], [0, 0, 1, 1], [], []>} : vector<256x16xf32>, vector<16x32xf32>, vector<256x32xf32> -> vector<256x32xf32>
    %124 = arith.addf %118, %123 : vector<256x32xf32>
    %125 = vector.extract_strided_slice %93 {offsets = [0, 1, 2, 0], sizes = [1, 16, 16, 16], strides = [1, 1, 1, 1]} : vector<1x18x18x16xf32> to vector<1x16x16x16xf32>
    %126 = vector.shape_cast %125 : vector<1x16x16x16xf32> to vector<256x16xf32>
    %c1_95 = arith.constant 1 : index
    %c2_96 = arith.constant 2 : index
    %c0_97 = arith.constant 0 : index
    %c0_98 = arith.constant 0 : index
    %127 = vector.load %arg5[%c1_95, %c2_96, %c0_97, %c0_98] : memref<3x3x16x32xf32, #tpu.memory_space<vmem>>, vector<1x1x16x32xf32>
    %128 = vector.shape_cast %127 : vector<1x1x16x32xf32> to vector<16x32xf32>
    %cst_99 = arith.constant dense<0.000000e+00> : vector<256x32xf32>
    %129 = tpu.matmul %126, %128, %cst_99 {dimension_numbers = #tpu.dot_dimension_numbers<[1], [0], [0], [1], [0, 0, 1, 1], [], []>} : vector<256x16xf32>, vector<16x32xf32>, vector<256x32xf32> -> vector<256x32xf32>
    %130 = arith.addf %124, %129 : vector<256x32xf32>
    %131 = vector.extract_strided_slice %93 {offsets = [0, 2, 0, 0], sizes = [1, 16, 16, 16], strides = [1, 1, 1, 1]} : vector<1x18x18x16xf32> to vector<1x16x16x16xf32>
    %132 = vector.shape_cast %131 : vector<1x16x16x16xf32> to vector<256x16xf32>
    %c2_100 = arith.constant 2 : index
    %c0_101 = arith.constant 0 : index
    %c0_102 = arith.constant 0 : index
    %c0_103 = arith.constant 0 : index
    %133 = vector.load %arg5[%c2_100, %c0_101, %c0_102, %c0_103] : memref<3x3x16x32xf32, #tpu.memory_space<vmem>>, vector<1x1x16x32xf32>
    %134 = vector.shape_cast %133 : vector<1x1x16x32xf32> to vector<16x32xf32>
    %cst_104 = arith.constant dense<0.000000e+00> : vector<256x32xf32>
    %135 = tpu.matmul %132, %134, %cst_104 {dimension_numbers = #tpu.dot_dimension_numbers<[1], [0], [0], [1], [0, 0, 1, 1], [], []>} : vector<256x16xf32>, vector<16x32xf32>, vector<256x32xf32> -> vector<256x32xf32>
    %136 = arith.addf %130, %135 : vector<256x32xf32>
    %137 = vector.extract_strided_slice %93 {offsets = [0, 2, 1, 0], sizes = [1, 16, 16, 16], strides = [1, 1, 1, 1]} : vector<1x18x18x16xf32> to vector<1x16x16x16xf32>
    %138 = vector.shape_cast %137 : vector<1x16x16x16xf32> to vector<256x16xf32>
    %c2_105 = arith.constant 2 : index
    %c1_106 = arith.constant 1 : index
    %c0_107 = arith.constant 0 : index
    %c0_108 = arith.constant 0 : index
    %139 = vector.load %arg5[%c2_105, %c1_106, %c0_107, %c0_108] : memref<3x3x16x32xf32, #tpu.memory_space<vmem>>, vector<1x1x16x32xf32>
    %140 = vector.shape_cast %139 : vector<1x1x16x32xf32> to vector<16x32xf32>
    %cst_109 = arith.constant dense<0.000000e+00> : vector<256x32xf32>
    %141 = tpu.matmul %138, %140, %cst_109 {dimension_numbers = #tpu.dot_dimension_numbers<[1], [0], [0], [1], [0, 0, 1, 1], [], []>} : vector<256x16xf32>, vector<16x32xf32>, vector<256x32xf32> -> vector<256x32xf32>
    %142 = arith.addf %136, %141 : vector<256x32xf32>
    %143 = vector.extract_strided_slice %93 {offsets = [0, 2, 2, 0], sizes = [1, 16, 16, 16], strides = [1, 1, 1, 1]} : vector<1x18x18x16xf32> to vector<1x16x16x16xf32>
    %144 = vector.shape_cast %143 : vector<1x16x16x16xf32> to vector<256x16xf32>
    %c2_110 = arith.constant 2 : index
    %c2_111 = arith.constant 2 : index
    %c0_112 = arith.constant 0 : index
    %c0_113 = arith.constant 0 : index
    %145 = vector.load %arg5[%c2_110, %c2_111, %c0_112, %c0_113] : memref<3x3x16x32xf32, #tpu.memory_space<vmem>>, vector<1x1x16x32xf32>
    %146 = vector.shape_cast %145 : vector<1x1x16x32xf32> to vector<16x32xf32>
    %cst_114 = arith.constant dense<0.000000e+00> : vector<256x32xf32>
    %147 = tpu.matmul %144, %146, %cst_114 {dimension_numbers = #tpu.dot_dimension_numbers<[1], [0], [0], [1], [0, 0, 1, 1], [], []>} : vector<256x16xf32>, vector<16x32xf32>, vector<256x32xf32> -> vector<256x32xf32>
    %148 = arith.addf %142, %147 : vector<256x32xf32>
    %c0_115 = arith.constant 0 : index
    %c0_116 = arith.constant 0 : index
    %149 = vector.load %arg6[%c0_115, %c0_116] : memref<1x32xf32, #tpu.memory_space<vmem>>, vector<1x32xf32>
    %150 = vector.broadcast %149 : vector<1x32xf32> to vector<256x32xf32>
    %151 = arith.mulf %148, %150 : vector<256x32xf32>
    %c0_117 = arith.constant 0 : index
    %c0_118 = arith.constant 0 : index
    %152 = vector.load %arg7[%c0_117, %c0_118] : memref<1x32xf32, #tpu.memory_space<vmem>>, vector<1x32xf32>
    %153 = vector.broadcast %152 : vector<1x32xf32> to vector<256x32xf32>
    %154 = arith.addf %151, %153 : vector<256x32xf32>
    %cst_119 = arith.constant 0.000000e+00 : f32
    %155 = vector.broadcast %cst_119 : f32 to vector<256x32xf32>
    %156 = arith.cmpf ogt, %154, %155 : vector<256x32xf32>
    %cst_120 = arith.constant 0.00999999977 : f32
    %157 = vector.broadcast %cst_120 : f32 to vector<256x32xf32>
    %158 = arith.mulf %157, %154 : vector<256x32xf32>
    %159 = arith.select %156, %154, %158 : vector<256x32xi1>, vector<256x32xf32>
    %160 = vector.shape_cast %159 : vector<256x32xf32> to vector<1x16x16x32xf32>
    %161 = vector.shape_cast %160 : vector<1x16x16x32xf32> to vector<1x8x2x16x32xf32>
    %cst_121 = arith.constant dense<0xFF800000> : vector<1x8x16x32xf32>
    %162 = vector.multi_reduction <maximumf>, %161, %cst_121 [2] : vector<1x8x2x16x32xf32> to vector<1x8x16x32xf32>
    %163 = vector.extract_strided_slice %162 {offsets = [0, 0, 0, 0], sizes = [1, 8, 2, 32], strides = [1, 1, 1, 1]} : vector<1x8x16x32xf32> to vector<1x8x2x32xf32>
    %cst_122 = arith.constant dense<0xFF800000> : vector<1x8x32xf32>
    %164 = vector.multi_reduction <maximumf>, %163, %cst_122 [2] : vector<1x8x2x32xf32> to vector<1x8x32xf32>
    %165 = vector.shape_cast %164 : vector<1x8x32xf32> to vector<1x8x1x32xf32>
    %c0_123 = arith.constant 0 : index
    %c0_124 = arith.constant 0 : index
    %c0_125 = arith.constant 0 : index
    %c0_126 = arith.constant 0 : index
    %166 = vector.load %arg19[%c0_123, %c0_124, %c0_125, %c0_126] : memref<1x8x8x32xf32, #tpu.memory_space<vmem>>, vector<1x8x1x32xf32>
    tpu.vector_store %arg19[%c0_123, %c0_124, %c0_125, %c0_126], %165 {strides = array<i32>} : memref<1x8x8x32xf32, #tpu.memory_space<vmem>>, vector<1x8x1x32xf32>,
    %167 = vector.extract_strided_slice %162 {offsets = [0, 0, 2, 0], sizes = [1, 8, 2, 32], strides = [1, 1, 1, 1]} : vector<1x8x16x32xf32> to vector<1x8x2x32xf32>
    %cst_127 = arith.constant dense<0xFF800000> : vector<1x8x32xf32>
    %168 = vector.multi_reduction <maximumf>, %167, %cst_127 [2] : vector<1x8x2x32xf32> to vector<1x8x32xf32>
    %169 = vector.shape_cast %168 : vector<1x8x32xf32> to vector<1x8x1x32xf32>
    %c0_128 = arith.constant 0 : index
    %c0_129 = arith.constant 0 : index
    %c1_130 = arith.constant 1 : index
    %c0_131 = arith.constant 0 : index
    %170 = vector.load %arg19[%c0_128, %c0_129, %c1_130, %c0_131] : memref<1x8x8x32xf32, #tpu.memory_space<vmem>>, vector<1x8x1x32xf32>
    tpu.vector_store %arg19[%c0_128, %c0_129, %c1_130, %c0_131], %169 {strides = array<i32>} : memref<1x8x8x32xf32, #tpu.memory_space<vmem>>, vector<1x8x1x32xf32>,
    %171 = vector.extract_strided_slice %162 {offsets = [0, 0, 4, 0], sizes = [1, 8, 2, 32], strides = [1, 1, 1, 1]} : vector<1x8x16x32xf32> to vector<1x8x2x32xf32>
    %cst_132 = arith.constant dense<0xFF800000> : vector<1x8x32xf32>
    %172 = vector.multi_reduction <maximumf>, %171, %cst_132 [2] : vector<1x8x2x32xf32> to vector<1x8x32xf32>
    %173 = vector.shape_cast %172 : vector<1x8x32xf32> to vector<1x8x1x32xf32>
    %c0_133 = arith.constant 0 : index
    %c0_134 = arith.constant 0 : index
    %c2_135 = arith.constant 2 : index
    %c0_136 = arith.constant 0 : index
    %174 = vector.load %arg19[%c0_133, %c0_134, %c2_135, %c0_136] : memref<1x8x8x32xf32, #tpu.memory_space<vmem>>, vector<1x8x1x32xf32>
    tpu.vector_store %arg19[%c0_133, %c0_134, %c2_135, %c0_136], %173 {strides = array<i32>} : memref<1x8x8x32xf32, #tpu.memory_space<vmem>>, vector<1x8x1x32xf32>,
    %175 = vector.extract_strided_slice %162 {offsets = [0, 0, 6, 0], sizes = [1, 8, 2, 32], strides = [1, 1, 1, 1]} : vector<1x8x16x32xf32> to vector<1x8x2x32xf32>
    %cst_137 = arith.constant dense<0xFF800000> : vector<1x8x32xf32>
    %176 = vector.multi_reduction <maximumf>, %175, %cst_137 [2] : vector<1x8x2x32xf32> to vector<1x8x32xf32>
    %177 = vector.shape_cast %176 : vector<1x8x32xf32> to vector<1x8x1x32xf32>
    %c0_138 = arith.constant 0 : index
    %c0_139 = arith.constant 0 : index
    %c3 = arith.constant 3 : index
    %c0_140 = arith.constant 0 : index
    %178 = vector.load %arg19[%c0_138, %c0_139, %c3, %c0_140] : memref<1x8x8x32xf32, #tpu.memory_space<vmem>>, vector<1x8x1x32xf32>
    tpu.vector_store %arg19[%c0_138, %c0_139, %c3, %c0_140], %177 {strides = array<i32>} : memref<1x8x8x32xf32, #tpu.memory_space<vmem>>, vector<1x8x1x32xf32>,
    %179 = vector.extract_strided_slice %162 {offsets = [0, 0, 8, 0], sizes = [1, 8, 2, 32], strides = [1, 1, 1, 1]} : vector<1x8x16x32xf32> to vector<1x8x2x32xf32>
    %cst_141 = arith.constant dense<0xFF800000> : vector<1x8x32xf32>
    %180 = vector.multi_reduction <maximumf>, %179, %cst_141 [2] : vector<1x8x2x32xf32> to vector<1x8x32xf32>
    %181 = vector.shape_cast %180 : vector<1x8x32xf32> to vector<1x8x1x32xf32>
    %c0_142 = arith.constant 0 : index
    %c0_143 = arith.constant 0 : index
    %c4 = arith.constant 4 : index
    %c0_144 = arith.constant 0 : index
    %182 = vector.load %arg19[%c0_142, %c0_143, %c4, %c0_144] : memref<1x8x8x32xf32, #tpu.memory_space<vmem>>, vector<1x8x1x32xf32>
    tpu.vector_store %arg19[%c0_142, %c0_143, %c4, %c0_144], %181 {strides = array<i32>} : memref<1x8x8x32xf32, #tpu.memory_space<vmem>>, vector<1x8x1x32xf32>,
    %183 = vector.extract_strided_slice %162 {offsets = [0, 0, 10, 0], sizes = [1, 8, 2, 32], strides = [1, 1, 1, 1]} : vector<1x8x16x32xf32> to vector<1x8x2x32xf32>
    %cst_145 = arith.constant dense<0xFF800000> : vector<1x8x32xf32>
    %184 = vector.multi_reduction <maximumf>, %183, %cst_145 [2] : vector<1x8x2x32xf32> to vector<1x8x32xf32>
    %185 = vector.shape_cast %184 : vector<1x8x32xf32> to vector<1x8x1x32xf32>
    %c0_146 = arith.constant 0 : index
    %c0_147 = arith.constant 0 : index
    %c5 = arith.constant 5 : index
    %c0_148 = arith.constant 0 : index
    %186 = vector.load %arg19[%c0_146, %c0_147, %c5, %c0_148] : memref<1x8x8x32xf32, #tpu.memory_space<vmem>>, vector<1x8x1x32xf32>
    tpu.vector_store %arg19[%c0_146, %c0_147, %c5, %c0_148], %185 {strides = array<i32>} : memref<1x8x8x32xf32, #tpu.memory_space<vmem>>, vector<1x8x1x32xf32>,
    %187 = vector.extract_strided_slice %162 {offsets = [0, 0, 12, 0], sizes = [1, 8, 2, 32], strides = [1, 1, 1, 1]} : vector<1x8x16x32xf32> to vector<1x8x2x32xf32>
    %cst_149 = arith.constant dense<0xFF800000> : vector<1x8x32xf32>
    %188 = vector.multi_reduction <maximumf>, %187, %cst_149 [2] : vector<1x8x2x32xf32> to vector<1x8x32xf32>
    %189 = vector.shape_cast %188 : vector<1x8x32xf32> to vector<1x8x1x32xf32>
    %c0_150 = arith.constant 0 : index
    %c0_151 = arith.constant 0 : index
    %c6 = arith.constant 6 : index
    %c0_152 = arith.constant 0 : index
    %190 = vector.load %arg19[%c0_150, %c0_151, %c6, %c0_152] : memref<1x8x8x32xf32, #tpu.memory_space<vmem>>, vector<1x8x1x32xf32>
    tpu.vector_store %arg19[%c0_150, %c0_151, %c6, %c0_152], %189 {strides = array<i32>} : memref<1x8x8x32xf32, #tpu.memory_space<vmem>>, vector<1x8x1x32xf32>,
    %191 = vector.extract_strided_slice %162 {offsets = [0, 0, 14, 0], sizes = [1, 8, 2, 32], strides = [1, 1, 1, 1]} : vector<1x8x16x32xf32> to vector<1x8x2x32xf32>
    %cst_153 = arith.constant dense<0xFF800000> : vector<1x8x32xf32>
    %192 = vector.multi_reduction <maximumf>, %191, %cst_153 [2] : vector<1x8x2x32xf32> to vector<1x8x32xf32>
    %193 = vector.shape_cast %192 : vector<1x8x32xf32> to vector<1x8x1x32xf32>
    %c0_154 = arith.constant 0 : index
    %c0_155 = arith.constant 0 : index
    %c7 = arith.constant 7 : index
    %c0_156 = arith.constant 0 : index
    %194 = vector.load %arg19[%c0_154, %c0_155, %c7, %c0_156] : memref<1x8x8x32xf32, #tpu.memory_space<vmem>>, vector<1x8x1x32xf32>
    tpu.vector_store %arg19[%c0_154, %c0_155, %c7, %c0_156], %193 {strides = array<i32>} : memref<1x8x8x32xf32, #tpu.memory_space<vmem>>, vector<1x8x1x32xf32>,
    %c0_157 = arith.constant 0 : index
    %c0_158 = arith.constant 0 : index
    %c0_159 = arith.constant 0 : index
    %c0_160 = arith.constant 0 : index
    %195 = vector.load %arg19[%c0_157, %c0_158, %c0_159, %c0_160] : memref<1x8x8x32xf32, #tpu.memory_space<vmem>>, vector<1x8x8x32xf32>
    %cst_161 = arith.constant 0.000000e+00 : f32
    %196 = vector.broadcast %cst_161 : f32 to vector<1x10x10x32xf32>
    %c0_162 = arith.constant 0 : index
    %c0_163 = arith.constant 0 : index
    %c0_164 = arith.constant 0 : index
    %c0_165 = arith.constant 0 : index
    %197 = vector.load %arg20[%c0_162, %c0_163, %c0_164, %c0_165] : memref<1x10x10x32xf32, #tpu.memory_space<vmem>>, vector<1x10x10x32xf32>
    tpu.vector_store %arg20[%c0_162, %c0_163, %c0_164, %c0_165], %196 {strides = array<i32>} : memref<1x10x10x32xf32, #tpu.memory_space<vmem>>, vector<1x10x10x32xf32>,
    %c0_166 = arith.constant 0 : index
    %c1_167 = arith.constant 1 : index
    %c1_168 = arith.constant 1 : index
    %c0_169 = arith.constant 0 : index
    %198 = vector.load %arg20[%c0_166, %c1_167, %c1_168, %c0_169] : memref<1x10x10x32xf32, #tpu.memory_space<vmem>>, vector<1x8x8x32xf32>
    tpu.vector_store %arg20[%c0_166, %c1_167, %c1_168, %c0_169], %195 {strides = array<i32>} : memref<1x10x10x32xf32, #tpu.memory_space<vmem>>, vector<1x8x8x32xf32>,
    %c0_170 = arith.constant 0 : index
    %c0_171 = arith.constant 0 : index
    %c0_172 = arith.constant 0 : index
    %c0_173 = arith.constant 0 : index
    %199 = vector.load %arg20[%c0_170, %c0_171, %c0_172, %c0_173] : memref<1x10x10x32xf32, #tpu.memory_space<vmem>>, vector<1x10x10x32xf32>
    %cst_174 = arith.constant 0.000000e+00 : f32
    %200 = vector.broadcast %cst_174 : f32 to vector<64x64xf32>
    %201 = vector.extract_strided_slice %199 {offsets = [0, 0, 0, 0], sizes = [1, 8, 8, 32], strides = [1, 1, 1, 1]} : vector<1x10x10x32xf32> to vector<1x8x8x32xf32>
    %202 = vector.shape_cast %201 : vector<1x8x8x32xf32> to vector<64x32xf32>
    %c0_175 = arith.constant 0 : index
    %c0_176 = arith.constant 0 : index
    %c0_177 = arith.constant 0 : index
    %c0_178 = arith.constant 0 : index
    %203 = vector.load %arg8[%c0_175, %c0_176, %c0_177, %c0_178] : memref<3x3x32x64xf32, #tpu.memory_space<vmem>>, vector<1x1x32x64xf32>
    %204 = vector.shape_cast %203 : vector<1x1x32x64xf32> to vector<32x64xf32>
    %cst_179 = arith.constant dense<0.000000e+00> : vector<64x64xf32>
    %205 = tpu.matmul %202, %204, %cst_179 {dimension_numbers = #tpu.dot_dimension_numbers<[1], [0], [0], [1], [0, 0, 1, 1], [], []>} : vector<64x32xf32>, vector<32x64xf32>, vector<64x64xf32> -> vector<64x64xf32>
    %206 = arith.addf %200, %205 : vector<64x64xf32>
    %207 = vector.extract_strided_slice %199 {offsets = [0, 0, 1, 0], sizes = [1, 8, 8, 32], strides = [1, 1, 1, 1]} : vector<1x10x10x32xf32> to vector<1x8x8x32xf32>
    %208 = vector.shape_cast %207 : vector<1x8x8x32xf32> to vector<64x32xf32>
    %c0_180 = arith.constant 0 : index
    %c1_181 = arith.constant 1 : index
    %c0_182 = arith.constant 0 : index
    %c0_183 = arith.constant 0 : index
    %209 = vector.load %arg8[%c0_180, %c1_181, %c0_182, %c0_183] : memref<3x3x32x64xf32, #tpu.memory_space<vmem>>, vector<1x1x32x64xf32>
    %210 = vector.shape_cast %209 : vector<1x1x32x64xf32> to vector<32x64xf32>
    %cst_184 = arith.constant dense<0.000000e+00> : vector<64x64xf32>
    %211 = tpu.matmul %208, %210, %cst_184 {dimension_numbers = #tpu.dot_dimension_numbers<[1], [0], [0], [1], [0, 0, 1, 1], [], []>} : vector<64x32xf32>, vector<32x64xf32>, vector<64x64xf32> -> vector<64x64xf32>
    %212 = arith.addf %206, %211 : vector<64x64xf32>
    %213 = vector.extract_strided_slice %199 {offsets = [0, 0, 2, 0], sizes = [1, 8, 8, 32], strides = [1, 1, 1, 1]} : vector<1x10x10x32xf32> to vector<1x8x8x32xf32>
    %214 = vector.shape_cast %213 : vector<1x8x8x32xf32> to vector<64x32xf32>
    %c0_185 = arith.constant 0 : index
    %c2_186 = arith.constant 2 : index
    %c0_187 = arith.constant 0 : index
    %c0_188 = arith.constant 0 : index
    %215 = vector.load %arg8[%c0_185, %c2_186, %c0_187, %c0_188] : memref<3x3x32x64xf32, #tpu.memory_space<vmem>>, vector<1x1x32x64xf32>
    %216 = vector.shape_cast %215 : vector<1x1x32x64xf32> to vector<32x64xf32>
    %cst_189 = arith.constant dense<0.000000e+00> : vector<64x64xf32>
    %217 = tpu.matmul %214, %216, %cst_189 {dimension_numbers = #tpu.dot_dimension_numbers<[1], [0], [0], [1], [0, 0, 1, 1], [], []>} : vector<64x32xf32>, vector<32x64xf32>, vector<64x64xf32> -> vector<64x64xf32>
    %218 = arith.addf %212, %217 : vector<64x64xf32>
    %219 = vector.extract_strided_slice %199 {offsets = [0, 1, 0, 0], sizes = [1, 8, 8, 32], strides = [1, 1, 1, 1]} : vector<1x10x10x32xf32> to vector<1x8x8x32xf32>
    %220 = vector.shape_cast %219 : vector<1x8x8x32xf32> to vector<64x32xf32>
    %c1_190 = arith.constant 1 : index
    %c0_191 = arith.constant 0 : index
    %c0_192 = arith.constant 0 : index
    %c0_193 = arith.constant 0 : index
    %221 = vector.load %arg8[%c1_190, %c0_191, %c0_192, %c0_193] : memref<3x3x32x64xf32, #tpu.memory_space<vmem>>, vector<1x1x32x64xf32>
    %222 = vector.shape_cast %221 : vector<1x1x32x64xf32> to vector<32x64xf32>
    %cst_194 = arith.constant dense<0.000000e+00> : vector<64x64xf32>
    %223 = tpu.matmul %220, %222, %cst_194 {dimension_numbers = #tpu.dot_dimension_numbers<[1], [0], [0], [1], [0, 0, 1, 1], [], []>} : vector<64x32xf32>, vector<32x64xf32>, vector<64x64xf32> -> vector<64x64xf32>
    %224 = arith.addf %218, %223 : vector<64x64xf32>
    %225 = vector.extract_strided_slice %199 {offsets = [0, 1, 1, 0], sizes = [1, 8, 8, 32], strides = [1, 1, 1, 1]} : vector<1x10x10x32xf32> to vector<1x8x8x32xf32>
    %226 = vector.shape_cast %225 : vector<1x8x8x32xf32> to vector<64x32xf32>
    %c1_195 = arith.constant 1 : index
    %c1_196 = arith.constant 1 : index
    %c0_197 = arith.constant 0 : index
    %c0_198 = arith.constant 0 : index
    %227 = vector.load %arg8[%c1_195, %c1_196, %c0_197, %c0_198] : memref<3x3x32x64xf32, #tpu.memory_space<vmem>>, vector<1x1x32x64xf32>
    %228 = vector.shape_cast %227 : vector<1x1x32x64xf32> to vector<32x64xf32>
    %cst_199 = arith.constant dense<0.000000e+00> : vector<64x64xf32>
    %229 = tpu.matmul %226, %228, %cst_199 {dimension_numbers = #tpu.dot_dimension_numbers<[1], [0], [0], [1], [0, 0, 1, 1], [], []>} : vector<64x32xf32>, vector<32x64xf32>, vector<64x64xf32> -> vector<64x64xf32>
    %230 = arith.addf %224, %229 : vector<64x64xf32>
    %231 = vector.extract_strided_slice %199 {offsets = [0, 1, 2, 0], sizes = [1, 8, 8, 32], strides = [1, 1, 1, 1]} : vector<1x10x10x32xf32> to vector<1x8x8x32xf32>
    %232 = vector.shape_cast %231 : vector<1x8x8x32xf32> to vector<64x32xf32>
    %c1_200 = arith.constant 1 : index
    %c2_201 = arith.constant 2 : index
    %c0_202 = arith.constant 0 : index
    %c0_203 = arith.constant 0 : index
    %233 = vector.load %arg8[%c1_200, %c2_201, %c0_202, %c0_203] : memref<3x3x32x64xf32, #tpu.memory_space<vmem>>, vector<1x1x32x64xf32>
    %234 = vector.shape_cast %233 : vector<1x1x32x64xf32> to vector<32x64xf32>
    %cst_204 = arith.constant dense<0.000000e+00> : vector<64x64xf32>
    %235 = tpu.matmul %232, %234, %cst_204 {dimension_numbers = #tpu.dot_dimension_numbers<[1], [0], [0], [1], [0, 0, 1, 1], [], []>} : vector<64x32xf32>, vector<32x64xf32>, vector<64x64xf32> -> vector<64x64xf32>
    %236 = arith.addf %230, %235 : vector<64x64xf32>
    %237 = vector.extract_strided_slice %199 {offsets = [0, 2, 0, 0], sizes = [1, 8, 8, 32], strides = [1, 1, 1, 1]} : vector<1x10x10x32xf32> to vector<1x8x8x32xf32>
    %238 = vector.shape_cast %237 : vector<1x8x8x32xf32> to vector<64x32xf32>
    %c2_205 = arith.constant 2 : index
    %c0_206 = arith.constant 0 : index
    %c0_207 = arith.constant 0 : index
    %c0_208 = arith.constant 0 : index
    %239 = vector.load %arg8[%c2_205, %c0_206, %c0_207, %c0_208] : memref<3x3x32x64xf32, #tpu.memory_space<vmem>>, vector<1x1x32x64xf32>
    %240 = vector.shape_cast %239 : vector<1x1x32x64xf32> to vector<32x64xf32>
    %cst_209 = arith.constant dense<0.000000e+00> : vector<64x64xf32>
    %241 = tpu.matmul %238, %240, %cst_209 {dimension_numbers = #tpu.dot_dimension_numbers<[1], [0], [0], [1], [0, 0, 1, 1], [], []>} : vector<64x32xf32>, vector<32x64xf32>, vector<64x64xf32> -> vector<64x64xf32>
    %242 = arith.addf %236, %241 : vector<64x64xf32>
    %243 = vector.extract_strided_slice %199 {offsets = [0, 2, 1, 0], sizes = [1, 8, 8, 32], strides = [1, 1, 1, 1]} : vector<1x10x10x32xf32> to vector<1x8x8x32xf32>
    %244 = vector.shape_cast %243 : vector<1x8x8x32xf32> to vector<64x32xf32>
    %c2_210 = arith.constant 2 : index
    %c1_211 = arith.constant 1 : index
    %c0_212 = arith.constant 0 : index
    %c0_213 = arith.constant 0 : index
    %245 = vector.load %arg8[%c2_210, %c1_211, %c0_212, %c0_213] : memref<3x3x32x64xf32, #tpu.memory_space<vmem>>, vector<1x1x32x64xf32>
    %246 = vector.shape_cast %245 : vector<1x1x32x64xf32> to vector<32x64xf32>
    %cst_214 = arith.constant dense<0.000000e+00> : vector<64x64xf32>
    %247 = tpu.matmul %244, %246, %cst_214 {dimension_numbers = #tpu.dot_dimension_numbers<[1], [0], [0], [1], [0, 0, 1, 1], [], []>} : vector<64x32xf32>, vector<32x64xf32>, vector<64x64xf32> -> vector<64x64xf32>
    %248 = arith.addf %242, %247 : vector<64x64xf32>
    %249 = vector.extract_strided_slice %199 {offsets = [0, 2, 2, 0], sizes = [1, 8, 8, 32], strides = [1, 1, 1, 1]} : vector<1x10x10x32xf32> to vector<1x8x8x32xf32>
    %250 = vector.shape_cast %249 : vector<1x8x8x32xf32> to vector<64x32xf32>
    %c2_215 = arith.constant 2 : index
    %c2_216 = arith.constant 2 : index
    %c0_217 = arith.constant 0 : index
    %c0_218 = arith.constant 0 : index
    %251 = vector.load %arg8[%c2_215, %c2_216, %c0_217, %c0_218] : memref<3x3x32x64xf32, #tpu.memory_space<vmem>>, vector<1x1x32x64xf32>
    %252 = vector.shape_cast %251 : vector<1x1x32x64xf32> to vector<32x64xf32>
    %cst_219 = arith.constant dense<0.000000e+00> : vector<64x64xf32>
    %253 = tpu.matmul %250, %252, %cst_219 {dimension_numbers = #tpu.dot_dimension_numbers<[1], [0], [0], [1], [0, 0, 1, 1], [], []>} : vector<64x32xf32>, vector<32x64xf32>, vector<64x64xf32> -> vector<64x64xf32>
    %254 = arith.addf %248, %253 : vector<64x64xf32>
    %c0_220 = arith.constant 0 : index
    %c0_221 = arith.constant 0 : index
    %255 = vector.load %arg9[%c0_220, %c0_221] : memref<1x64xf32, #tpu.memory_space<vmem>>, vector<1x64xf32>
    %256 = vector.broadcast %255 : vector<1x64xf32> to vector<64x64xf32>
    %257 = arith.mulf %254, %256 : vector<64x64xf32>
    %c0_222 = arith.constant 0 : index
    %c0_223 = arith.constant 0 : index
    %258 = vector.load %arg10[%c0_222, %c0_223] : memref<1x64xf32, #tpu.memory_space<vmem>>, vector<1x64xf32>
    %259 = vector.broadcast %258 : vector<1x64xf32> to vector<64x64xf32>
    %260 = arith.addf %257, %259 : vector<64x64xf32>
    %cst_224 = arith.constant 0.000000e+00 : f32
    %261 = vector.broadcast %cst_224 : f32 to vector<64x64xf32>
    %262 = arith.cmpf ogt, %260, %261 : vector<64x64xf32>
    %cst_225 = arith.constant 0.00999999977 : f32
    %263 = vector.broadcast %cst_225 : f32 to vector<64x64xf32>
    %264 = arith.mulf %263, %260 : vector<64x64xf32>
    %265 = arith.select %262, %260, %264 : vector<64x64xi1>, vector<64x64xf32>
    %266 = vector.shape_cast %265 : vector<64x64xf32> to vector<1x8x8x64xf32>
    %cst_226 = arith.constant 0.000000e+00 : f32
    %267 = vector.broadcast %cst_226 : f32 to vector<1x10x10x64xf32>
    %c0_227 = arith.constant 0 : index
    %c0_228 = arith.constant 0 : index
    %c0_229 = arith.constant 0 : index
    %c0_230 = arith.constant 0 : index
    %268 = vector.load %arg21[%c0_227, %c0_228, %c0_229, %c0_230] : memref<1x10x10x64xf32, #tpu.memory_space<vmem>>, vector<1x10x10x64xf32>
    tpu.vector_store %arg21[%c0_227, %c0_228, %c0_229, %c0_230], %267 {strides = array<i32>} : memref<1x10x10x64xf32, #tpu.memory_space<vmem>>, vector<1x10x10x64xf32>,
    %c0_231 = arith.constant 0 : index
    %c1_232 = arith.constant 1 : index
    %c1_233 = arith.constant 1 : index
    %c0_234 = arith.constant 0 : index
    %269 = vector.load %arg21[%c0_231, %c1_232, %c1_233, %c0_234] : memref<1x10x10x64xf32, #tpu.memory_space<vmem>>, vector<1x8x8x64xf32>
    tpu.vector_store %arg21[%c0_231, %c1_232, %c1_233, %c0_234], %266 {strides = array<i32>} : memref<1x10x10x64xf32, #tpu.memory_space<vmem>>, vector<1x8x8x64xf32>,
    %c0_235 = arith.constant 0 : index
    %c0_236 = arith.constant 0 : index
    %c0_237 = arith.constant 0 : index
    %c0_238 = arith.constant 0 : index
    %270 = vector.load %arg21[%c0_235, %c0_236, %c0_237, %c0_238] : memref<1x10x10x64xf32, #tpu.memory_space<vmem>>, vector<1x10x10x64xf32>
    %cst_239 = arith.constant 0.000000e+00 : f32
    %271 = vector.broadcast %cst_239 : f32 to vector<64x128xf32>
    %272 = vector.extract_strided_slice %270 {offsets = [0, 0, 0, 0], sizes = [1, 8, 8, 64], strides = [1, 1, 1, 1]} : vector<1x10x10x64xf32> to vector<1x8x8x64xf32>
    %273 = vector.shape_cast %272 : vector<1x8x8x64xf32> to vector<64x64xf32>
    %c0_240 = arith.constant 0 : index
    %c0_241 = arith.constant 0 : index
    %c0_242 = arith.constant 0 : index
    %c0_243 = arith.constant 0 : index
    %274 = vector.load %arg11[%c0_240, %c0_241, %c0_242, %c0_243] : memref<3x3x64x128xf32, #tpu.memory_space<vmem>>, vector<1x1x64x128xf32>
    %275 = vector.shape_cast %274 : vector<1x1x64x128xf32> to vector<64x128xf32>
    %cst_244 = arith.constant dense<0.000000e+00> : vector<64x128xf32>
    %276 = tpu.matmul %273, %275, %cst_244 {dimension_numbers = #tpu.dot_dimension_numbers<[1], [0], [0], [1], [0, 0, 1, 1], [], []>} : vector<64x64xf32>, vector<64x128xf32>, vector<64x128xf32> -> vector<64x128xf32>
    %277 = arith.addf %271, %276 : vector<64x128xf32>
    %278 = vector.extract_strided_slice %270 {offsets = [0, 0, 1, 0], sizes = [1, 8, 8, 64], strides = [1, 1, 1, 1]} : vector<1x10x10x64xf32> to vector<1x8x8x64xf32>
    %279 = vector.shape_cast %278 : vector<1x8x8x64xf32> to vector<64x64xf32>
    %c0_245 = arith.constant 0 : index
    %c1_246 = arith.constant 1 : index
    %c0_247 = arith.constant 0 : index
    %c0_248 = arith.constant 0 : index
    %280 = vector.load %arg11[%c0_245, %c1_246, %c0_247, %c0_248] : memref<3x3x64x128xf32, #tpu.memory_space<vmem>>, vector<1x1x64x128xf32>
    %281 = vector.shape_cast %280 : vector<1x1x64x128xf32> to vector<64x128xf32>
    %cst_249 = arith.constant dense<0.000000e+00> : vector<64x128xf32>
    %282 = tpu.matmul %279, %281, %cst_249 {dimension_numbers = #tpu.dot_dimension_numbers<[1], [0], [0], [1], [0, 0, 1, 1], [], []>} : vector<64x64xf32>, vector<64x128xf32>, vector<64x128xf32> -> vector<64x128xf32>
    %283 = arith.addf %277, %282 : vector<64x128xf32>
    %284 = vector.extract_strided_slice %270 {offsets = [0, 0, 2, 0], sizes = [1, 8, 8, 64], strides = [1, 1, 1, 1]} : vector<1x10x10x64xf32> to vector<1x8x8x64xf32>
    %285 = vector.shape_cast %284 : vector<1x8x8x64xf32> to vector<64x64xf32>
    %c0_250 = arith.constant 0 : index
    %c2_251 = arith.constant 2 : index
    %c0_252 = arith.constant 0 : index
    %c0_253 = arith.constant 0 : index
    %286 = vector.load %arg11[%c0_250, %c2_251, %c0_252, %c0_253] : memref<3x3x64x128xf32, #tpu.memory_space<vmem>>, vector<1x1x64x128xf32>
    %287 = vector.shape_cast %286 : vector<1x1x64x128xf32> to vector<64x128xf32>
    %cst_254 = arith.constant dense<0.000000e+00> : vector<64x128xf32>
    %288 = tpu.matmul %285, %287, %cst_254 {dimension_numbers = #tpu.dot_dimension_numbers<[1], [0], [0], [1], [0, 0, 1, 1], [], []>} : vector<64x64xf32>, vector<64x128xf32>, vector<64x128xf32> -> vector<64x128xf32>
    %289 = arith.addf %283, %288 : vector<64x128xf32>
    %290 = vector.extract_strided_slice %270 {offsets = [0, 1, 0, 0], sizes = [1, 8, 8, 64], strides = [1, 1, 1, 1]} : vector<1x10x10x64xf32> to vector<1x8x8x64xf32>
    %291 = vector.shape_cast %290 : vector<1x8x8x64xf32> to vector<64x64xf32>
    %c1_255 = arith.constant 1 : index
    %c0_256 = arith.constant 0 : index
    %c0_257 = arith.constant 0 : index
    %c0_258 = arith.constant 0 : index
    %292 = vector.load %arg11[%c1_255, %c0_256, %c0_257, %c0_258] : memref<3x3x64x128xf32, #tpu.memory_space<vmem>>, vector<1x1x64x128xf32>
    %293 = vector.shape_cast %292 : vector<1x1x64x128xf32> to vector<64x128xf32>
    %cst_259 = arith.constant dense<0.000000e+00> : vector<64x128xf32>
    %294 = tpu.matmul %291, %293, %cst_259 {dimension_numbers = #tpu.dot_dimension_numbers<[1], [0], [0], [1], [0, 0, 1, 1], [], []>} : vector<64x64xf32>, vector<64x128xf32>, vector<64x128xf32> -> vector<64x128xf32>
    %295 = arith.addf %289, %294 : vector<64x128xf32>
    %296 = vector.extract_strided_slice %270 {offsets = [0, 1, 1, 0], sizes = [1, 8, 8, 64], strides = [1, 1, 1, 1]} : vector<1x10x10x64xf32> to vector<1x8x8x64xf32>
    %297 = vector.shape_cast %296 : vector<1x8x8x64xf32> to vector<64x64xf32>
    %c1_260 = arith.constant 1 : index
    %c1_261 = arith.constant 1 : index
    %c0_262 = arith.constant 0 : index
    %c0_263 = arith.constant 0 : index
    %298 = vector.load %arg11[%c1_260, %c1_261, %c0_262, %c0_263] : memref<3x3x64x128xf32, #tpu.memory_space<vmem>>, vector<1x1x64x128xf32>
    %299 = vector.shape_cast %298 : vector<1x1x64x128xf32> to vector<64x128xf32>
    %cst_264 = arith.constant dense<0.000000e+00> : vector<64x128xf32>
    %300 = tpu.matmul %297, %299, %cst_264 {dimension_numbers = #tpu.dot_dimension_numbers<[1], [0], [0], [1], [0, 0, 1, 1], [], []>} : vector<64x64xf32>, vector<64x128xf32>, vector<64x128xf32> -> vector<64x128xf32>
    %301 = arith.addf %295, %300 : vector<64x128xf32>
    %302 = vector.extract_strided_slice %270 {offsets = [0, 1, 2, 0], sizes = [1, 8, 8, 64], strides = [1, 1, 1, 1]} : vector<1x10x10x64xf32> to vector<1x8x8x64xf32>
    %303 = vector.shape_cast %302 : vector<1x8x8x64xf32> to vector<64x64xf32>
    %c1_265 = arith.constant 1 : index
    %c2_266 = arith.constant 2 : index
    %c0_267 = arith.constant 0 : index
    %c0_268 = arith.constant 0 : index
    %304 = vector.load %arg11[%c1_265, %c2_266, %c0_267, %c0_268] : memref<3x3x64x128xf32, #tpu.memory_space<vmem>>, vector<1x1x64x128xf32>
    %305 = vector.shape_cast %304 : vector<1x1x64x128xf32> to vector<64x128xf32>
    %cst_269 = arith.constant dense<0.000000e+00> : vector<64x128xf32>
    %306 = tpu.matmul %303, %305, %cst_269 {dimension_numbers = #tpu.dot_dimension_numbers<[1], [0], [0], [1], [0, 0, 1, 1], [], []>} : vector<64x64xf32>, vector<64x128xf32>, vector<64x128xf32> -> vector<64x128xf32>
    %307 = arith.addf %301, %306 : vector<64x128xf32>
    %308 = vector.extract_strided_slice %270 {offsets = [0, 2, 0, 0], sizes = [1, 8, 8, 64], strides = [1, 1, 1, 1]} : vector<1x10x10x64xf32> to vector<1x8x8x64xf32>
    %309 = vector.shape_cast %308 : vector<1x8x8x64xf32> to vector<64x64xf32>
    %c2_270 = arith.constant 2 : index
    %c0_271 = arith.constant 0 : index
    %c0_272 = arith.constant 0 : index
    %c0_273 = arith.constant 0 : index
    %310 = vector.load %arg11[%c2_270, %c0_271, %c0_272, %c0_273] : memref<3x3x64x128xf32, #tpu.memory_space<vmem>>, vector<1x1x64x128xf32>
    %311 = vector.shape_cast %310 : vector<1x1x64x128xf32> to vector<64x128xf32>
    %cst_274 = arith.constant dense<0.000000e+00> : vector<64x128xf32>
    %312 = tpu.matmul %309, %311, %cst_274 {dimension_numbers = #tpu.dot_dimension_numbers<[1], [0], [0], [1], [0, 0, 1, 1], [], []>} : vector<64x64xf32>, vector<64x128xf32>, vector<64x128xf32> -> vector<64x128xf32>
    %313 = arith.addf %307, %312 : vector<64x128xf32>
    %314 = vector.extract_strided_slice %270 {offsets = [0, 2, 1, 0], sizes = [1, 8, 8, 64], strides = [1, 1, 1, 1]} : vector<1x10x10x64xf32> to vector<1x8x8x64xf32>
    %315 = vector.shape_cast %314 : vector<1x8x8x64xf32> to vector<64x64xf32>
    %c2_275 = arith.constant 2 : index
    %c1_276 = arith.constant 1 : index
    %c0_277 = arith.constant 0 : index
    %c0_278 = arith.constant 0 : index
    %316 = vector.load %arg11[%c2_275, %c1_276, %c0_277, %c0_278] : memref<3x3x64x128xf32, #tpu.memory_space<vmem>>, vector<1x1x64x128xf32>
    %317 = vector.shape_cast %316 : vector<1x1x64x128xf32> to vector<64x128xf32>
    %cst_279 = arith.constant dense<0.000000e+00> : vector<64x128xf32>
    %318 = tpu.matmul %315, %317, %cst_279 {dimension_numbers = #tpu.dot_dimension_numbers<[1], [0], [0], [1], [0, 0, 1, 1], [], []>} : vector<64x64xf32>, vector<64x128xf32>, vector<64x128xf32> -> vector<64x128xf32>
    %319 = arith.addf %313, %318 : vector<64x128xf32>
    %320 = vector.extract_strided_slice %270 {offsets = [0, 2, 2, 0], sizes = [1, 8, 8, 64], strides = [1, 1, 1, 1]} : vector<1x10x10x64xf32> to vector<1x8x8x64xf32>
    %321 = vector.shape_cast %320 : vector<1x8x8x64xf32> to vector<64x64xf32>
    %c2_280 = arith.constant 2 : index
    %c2_281 = arith.constant 2 : index
    %c0_282 = arith.constant 0 : index
    %c0_283 = arith.constant 0 : index
    %322 = vector.load %arg11[%c2_280, %c2_281, %c0_282, %c0_283] : memref<3x3x64x128xf32, #tpu.memory_space<vmem>>, vector<1x1x64x128xf32>
    %323 = vector.shape_cast %322 : vector<1x1x64x128xf32> to vector<64x128xf32>
    %cst_284 = arith.constant dense<0.000000e+00> : vector<64x128xf32>
    %324 = tpu.matmul %321, %323, %cst_284 {dimension_numbers = #tpu.dot_dimension_numbers<[1], [0], [0], [1], [0, 0, 1, 1], [], []>} : vector<64x64xf32>, vector<64x128xf32>, vector<64x128xf32> -> vector<64x128xf32>
    %325 = arith.addf %319, %324 : vector<64x128xf32>
    %c0_285 = arith.constant 0 : index
    %c0_286 = arith.constant 0 : index
    %326 = vector.load %arg12[%c0_285, %c0_286] : memref<1x128xf32, #tpu.memory_space<vmem>>, vector<1x128xf32>
    %327 = vector.broadcast %326 : vector<1x128xf32> to vector<64x128xf32>
    %328 = arith.mulf %325, %327 : vector<64x128xf32>
    %c0_287 = arith.constant 0 : index
    %c0_288 = arith.constant 0 : index
    %329 = vector.load %arg13[%c0_287, %c0_288] : memref<1x128xf32, #tpu.memory_space<vmem>>, vector<1x128xf32>
    %330 = vector.broadcast %329 : vector<1x128xf32> to vector<64x128xf32>
    %331 = arith.addf %328, %330 : vector<64x128xf32>
    %cst_289 = arith.constant 0.000000e+00 : f32
    %332 = vector.broadcast %cst_289 : f32 to vector<64x128xf32>
    %333 = arith.cmpf ogt, %331, %332 : vector<64x128xf32>
    %cst_290 = arith.constant 0.00999999977 : f32
    %334 = vector.broadcast %cst_290 : f32 to vector<64x128xf32>
    %335 = arith.mulf %334, %331 : vector<64x128xf32>
    %336 = arith.select %333, %331, %335 : vector<64x128xi1>, vector<64x128xf32>
    %337 = vector.shape_cast %336 : vector<64x128xf32> to vector<1x8x8x128xf32>
    %338 = vector.shape_cast %337 : vector<1x8x8x128xf32> to vector<1x4x2x8x128xf32>
    %cst_291 = arith.constant dense<0xFF800000> : vector<1x4x8x128xf32>
    %339 = vector.multi_reduction <maximumf>, %338, %cst_291 [2] : vector<1x4x2x8x128xf32> to vector<1x4x8x128xf32>
    %340 = vector.extract_strided_slice %339 {offsets = [0, 0, 0, 0], sizes = [1, 4, 2, 128], strides = [1, 1, 1, 1]} : vector<1x4x8x128xf32> to vector<1x4x2x128xf32>
    %cst_292 = arith.constant dense<0xFF800000> : vector<1x4x128xf32>
    %341 = vector.multi_reduction <maximumf>, %340, %cst_292 [2] : vector<1x4x2x128xf32> to vector<1x4x128xf32>
    %342 = vector.shape_cast %341 : vector<1x4x128xf32> to vector<1x4x1x128xf32>
    %c0_293 = arith.constant 0 : index
    %c0_294 = arith.constant 0 : index
    %c0_295 = arith.constant 0 : index
    %c0_296 = arith.constant 0 : index
    %343 = vector.load %arg22[%c0_293, %c0_294, %c0_295, %c0_296] : memref<1x4x4x128xf32, #tpu.memory_space<vmem>>, vector<1x4x1x128xf32>
    tpu.vector_store %arg22[%c0_293, %c0_294, %c0_295, %c0_296], %342 {strides = array<i32>} : memref<1x4x4x128xf32, #tpu.memory_space<vmem>>, vector<1x4x1x128xf32>,
    %344 = vector.extract_strided_slice %339 {offsets = [0, 0, 2, 0], sizes = [1, 4, 2, 128], strides = [1, 1, 1, 1]} : vector<1x4x8x128xf32> to vector<1x4x2x128xf32>
    %cst_297 = arith.constant dense<0xFF800000> : vector<1x4x128xf32>
    %345 = vector.multi_reduction <maximumf>, %344, %cst_297 [2] : vector<1x4x2x128xf32> to vector<1x4x128xf32>
    %346 = vector.shape_cast %345 : vector<1x4x128xf32> to vector<1x4x1x128xf32>
    %c0_298 = arith.constant 0 : index
    %c0_299 = arith.constant 0 : index
    %c1_300 = arith.constant 1 : index
    %c0_301 = arith.constant 0 : index
    %347 = vector.load %arg22[%c0_298, %c0_299, %c1_300, %c0_301] : memref<1x4x4x128xf32, #tpu.memory_space<vmem>>, vector<1x4x1x128xf32>
    tpu.vector_store %arg22[%c0_298, %c0_299, %c1_300, %c0_301], %346 {strides = array<i32>} : memref<1x4x4x128xf32, #tpu.memory_space<vmem>>, vector<1x4x1x128xf32>,
    %348 = vector.extract_strided_slice %339 {offsets = [0, 0, 4, 0], sizes = [1, 4, 2, 128], strides = [1, 1, 1, 1]} : vector<1x4x8x128xf32> to vector<1x4x2x128xf32>
    %cst_302 = arith.constant dense<0xFF800000> : vector<1x4x128xf32>
    %349 = vector.multi_reduction <maximumf>, %348, %cst_302 [2] : vector<1x4x2x128xf32> to vector<1x4x128xf32>
    %350 = vector.shape_cast %349 : vector<1x4x128xf32> to vector<1x4x1x128xf32>
    %c0_303 = arith.constant 0 : index
    %c0_304 = arith.constant 0 : index
    %c2_305 = arith.constant 2 : index
    %c0_306 = arith.constant 0 : index
    %351 = vector.load %arg22[%c0_303, %c0_304, %c2_305, %c0_306] : memref<1x4x4x128xf32, #tpu.memory_space<vmem>>, vector<1x4x1x128xf32>
    tpu.vector_store %arg22[%c0_303, %c0_304, %c2_305, %c0_306], %350 {strides = array<i32>} : memref<1x4x4x128xf32, #tpu.memory_space<vmem>>, vector<1x4x1x128xf32>,
    %352 = vector.extract_strided_slice %339 {offsets = [0, 0, 6, 0], sizes = [1, 4, 2, 128], strides = [1, 1, 1, 1]} : vector<1x4x8x128xf32> to vector<1x4x2x128xf32>
    %cst_307 = arith.constant dense<0xFF800000> : vector<1x4x128xf32>
    %353 = vector.multi_reduction <maximumf>, %352, %cst_307 [2] : vector<1x4x2x128xf32> to vector<1x4x128xf32>
    %354 = vector.shape_cast %353 : vector<1x4x128xf32> to vector<1x4x1x128xf32>
    %c0_308 = arith.constant 0 : index
    %c0_309 = arith.constant 0 : index
    %c3_310 = arith.constant 3 : index
    %c0_311 = arith.constant 0 : index
    %355 = vector.load %arg22[%c0_308, %c0_309, %c3_310, %c0_311] : memref<1x4x4x128xf32, #tpu.memory_space<vmem>>, vector<1x4x1x128xf32>
    tpu.vector_store %arg22[%c0_308, %c0_309, %c3_310, %c0_311], %354 {strides = array<i32>} : memref<1x4x4x128xf32, #tpu.memory_space<vmem>>, vector<1x4x1x128xf32>,
    %c0_312 = arith.constant 0 : index
    %c0_313 = arith.constant 0 : index
    %c0_314 = arith.constant 0 : index
    %c0_315 = arith.constant 0 : index
    %356 = vector.load %arg22[%c0_312, %c0_313, %c0_314, %c0_315] : memref<1x4x4x128xf32, #tpu.memory_space<vmem>>, vector<1x4x4x128xf32>
    %cst_316 = arith.constant dense<0.000000e+00> : vector<1x128xf32>
    %357 = vector.multi_reduction <add>, %356, %cst_316 [1, 2] : vector<1x4x4x128xf32> to vector<1x128xf32>
    %cst_317 = arith.constant 6.250000e-02 : f32
    %358 = vector.broadcast %cst_317 : f32 to vector<1x128xf32>
    %359 = arith.mulf %357, %358 : vector<1x128xf32>
    %c0_318 = arith.constant 0 : index
    %c0_319 = arith.constant 0 : index
    %360 = vector.load %arg14[%c0_318, %c0_319] : memref<128x10xf32, #tpu.memory_space<vmem>>, vector<128x10xf32>
    %cst_320 = arith.constant dense<0.000000e+00> : vector<1x10xf32>
    %361 = tpu.matmul %359, %360, %cst_320 {dimension_numbers = #tpu.dot_dimension_numbers<[1], [0], [0], [1], [0, 0, 1, 1], [], []>} : vector<1x128xf32>, vector<128x10xf32>, vector<1x10xf32> -> vector<1x10xf32>
    %c0_321 = arith.constant 0 : index
    %c0_322 = arith.constant 0 : index
    %362 = vector.load %arg15[%c0_321, %c0_322] : memref<1x10xf32, #tpu.memory_space<vmem>>, vector<1x10xf32>
    %363 = arith.addf %361, %362 : vector<1x10xf32>
    %c0_323 = arith.constant 0 : index
    %c0_324 = arith.constant 0 : index
    %c0_325 = arith.constant 0 : index
    %364 = vector.load %arg16[%c0_323, %c0_324, %c0_325] : memref<1x1x10xf32, #tpu.memory_space<vmem>>, vector<1x1x10xf32>
    %365 = vector.shape_cast %364 : vector<1x1x10xf32> to vector<1x10xf32>
    %366 = vector.shape_cast %363 : vector<1x10xf32> to vector<1x1x10xf32>
    tpu.vector_store %arg16[%c0_323, %c0_324, %c0_325], %366 {strides = array<i32>} : memref<1x1x10xf32, #tpu.memory_space<vmem>>, vector<1x1x10xf32>,
    return
  }
  func.func @transform_0(%arg0: i32) -> (i32, i32, i32, i32) {
    %c0_i32 = arith.constant 0 : i32
    %c0_i32_0 = arith.constant 0 : i32
    %c0_i32_1 = arith.constant 0 : i32
    %c0_i32_2 = arith.constant 0 : i32
    return %arg0, %c0_i32, %c0_i32_0, %c0_i32_1 : i32, i32, i32, i32
  }
  func.func @transform_1(%arg0: i32) -> (i32, i32, i32, i32) {
    %c0_i32 = arith.constant 0 : i32
    %c0_i32_0 = arith.constant 0 : i32
    %c0_i32_1 = arith.constant 0 : i32
    %c0_i32_2 = arith.constant 0 : i32
    %c0_i32_3 = arith.constant 0 : i32
    return %c0_i32, %c0_i32_0, %c0_i32_1, %c0_i32_2 : i32, i32, i32, i32
  }
  func.func @transform_2(%arg0: i32) -> (i32, i32) {
    %c0_i32 = arith.constant 0 : i32
    %c0_i32_0 = arith.constant 0 : i32
    %c0_i32_1 = arith.constant 0 : i32
    return %c0_i32, %c0_i32_0 : i32, i32
  }
  func.func @transform_3(%arg0: i32) -> (i32, i32) {
    %c0_i32 = arith.constant 0 : i32
    %c0_i32_0 = arith.constant 0 : i32
    %c0_i32_1 = arith.constant 0 : i32
    return %c0_i32, %c0_i32_0 : i32, i32
  }
  func.func @transform_4(%arg0: i32) -> (i32, i32, i32, i32) {
    %c0_i32 = arith.constant 0 : i32
    %c0_i32_0 = arith.constant 0 : i32
    %c0_i32_1 = arith.constant 0 : i32
    %c0_i32_2 = arith.constant 0 : i32
    %c0_i32_3 = arith.constant 0 : i32
    return %c0_i32, %c0_i32_0, %c0_i32_1, %c0_i32_2 : i32, i32, i32, i32
  }
  func.func @transform_5(%arg0: i32) -> (i32, i32) {
    %c0_i32 = arith.constant 0 : i32
    %c0_i32_0 = arith.constant 0 : i32
    %c0_i32_1 = arith.constant 0 : i32
    return %c0_i32, %c0_i32_0 : i32, i32
  }
  func.func @transform_6(%arg0: i32) -> (i32, i32) {
    %c0_i32 = arith.constant 0 : i32
    %c0_i32_0 = arith.constant 0 : i32
    %c0_i32_1 = arith.constant 0 : i32
    return %c0_i32, %c0_i32_0 : i32, i32
  }
  func.func @transform_7(%arg0: i32) -> (i32, i32, i32, i32) {
    %c0_i32 = arith.constant 0 : i32
    %c0_i32_0 = arith.constant 0 : i32
    %c0_i32_1 = arith.constant 0 : i32
    %c0_i32_2 = arith.constant 0 : i32
    %c0_i32_3 = arith.constant 0 : i32
    return %c0_i32, %c0_i32_0, %c0_i32_1, %c0_i32_2 : i32, i32, i32, i32
  }
  func.func @transform_8(%arg0: i32) -> (i32, i32) {
    %c0_i32 = arith.constant 0 : i32
    %c0_i32_0 = arith.constant 0 : i32
    %c0_i32_1 = arith.constant 0 : i32
    return %c0_i32, %c0_i32_0 : i32, i32
  }
  func.func @transform_9(%arg0: i32) -> (i32, i32) {
    %c0_i32 = arith.constant 0 : i32
    %c0_i32_0 = arith.constant 0 : i32
    %c0_i32_1 = arith.constant 0 : i32
    return %c0_i32, %c0_i32_0 : i32, i32
  }
  func.func @transform_10(%arg0: i32) -> (i32, i32, i32, i32) {
    %c0_i32 = arith.constant 0 : i32
    %c0_i32_0 = arith.constant 0 : i32
    %c0_i32_1 = arith.constant 0 : i32
    %c0_i32_2 = arith.constant 0 : i32
    %c0_i32_3 = arith.constant 0 : i32
    return %c0_i32, %c0_i32_0, %c0_i32_1, %c0_i32_2 : i32, i32, i32, i32
  }
  func.func @transform_11(%arg0: i32) -> (i32, i32) {
    %c0_i32 = arith.constant 0 : i32
    %c0_i32_0 = arith.constant 0 : i32
    %c0_i32_1 = arith.constant 0 : i32
    return %c0_i32, %c0_i32_0 : i32, i32
  }
  func.func @transform_12(%arg0: i32) -> (i32, i32) {
    %c0_i32 = arith.constant 0 : i32
    %c0_i32_0 = arith.constant 0 : i32
    %c0_i32_1 = arith.constant 0 : i32
    return %c0_i32, %c0_i32_0 : i32, i32
  }
  func.func @transform_13(%arg0: i32) -> (i32, i32) {
    %c0_i32 = arith.constant 0 : i32
    %c0_i32_0 = arith.constant 0 : i32
    %c0_i32_1 = arith.constant 0 : i32
    return %c0_i32, %c0_i32_0 : i32, i32
  }
  func.func @transform_14(%arg0: i32) -> (i32, i32) {
    %c0_i32 = arith.constant 0 : i32
    %c0_i32_0 = arith.constant 0 : i32
    %c0_i32_1 = arith.constant 0 : i32
    return %c0_i32, %c0_i32_0 : i32, i32
  }
  func.func @transform_15(%arg0: i32) -> (i32, i32, i32) {
    %c0_i32 = arith.constant 0 : i32
    %c0_i32_0 = arith.constant 0 : i32
    %c0_i32_1 = arith.constant 0 : i32
    return %arg0, %c0_i32, %c0_i32_0 : i32, i32, i32
  }
}

</mosaic_0001>

<bundles_post_ra>
// kernel: tpu_custom_call.1
= control target key start
LH: loop header
LB: loop body
LE: loop exit
PB: predicated region body
PF: predicated region fallthrough
CT: control target
= control target key end

     0   :  { %s16078_s0 = inlined_call_operand.vmem [shape: f32[2,16,16,1], index: 0, kind: input, shape index: {}]   ;;  %s16079_s1 = inlined_call_operand.hbm [shape: f32[3,3,1,16], index: 1, kind: input, shape index: {}]   ;;  %s16080_s2 = inlined_call_operand.vmem [shape: f32[1,16], index: 2, kind: input, shape index: {}]   ;;  %s16081_s3 = inlined_call_operand.hbm [shape: f32[1,16], index: 3, kind: input, shape index: {}]   ;;  %s16082_s4 = inlined_call_operand.vmem [shape: f32[3,3,16,32], index: 4, kind: input, shape index: {}]   ;;  %s16083_s5 = inlined_call_operand.hbm [shape: f32[1,32], index: 5, kind: input, shape index: {}]   ;;  %s16084_s6 = inlined_call_operand.hbm [shape: f32[1,32], index: 6, kind: input, shape index: {}]   ;;  %s16085_s7 = inlined_call_operand.hbm [shape: f32[3,3,32,64], index: 7, kind: input, shape index: {}]   ;;  %s16086_s8 = inlined_call_operand.hbm [shape: f32[1,64], index: 8, kind: input, shape index: {}]   ;;  %s16087_s9 = inlined_call_operand.hbm [shape: f32[1,64], index: 9, kind: input, shape index: {}]   ;;  %s16088_s10 = inlined_call_operand.vmem [shape: f32[3,3,64,128], index: 10, kind: input, shape index: {}]   ;;  %s16089_s11 = inlined_call_operand.hbm [shape: f32[1,128], index: 11, kind: input, shape index: {}]   ;;  %s16090_s12 = inlined_call_operand.hbm [shape: f32[1,128], index: 12, kind: input, shape index: {}]   ;;  %s16091_s13 = inlined_call_operand.vmem [shape: f32[128,10], index: 13, kind: input, shape index: {}]   ;;  %s16092_s14 = inlined_call_operand.vmem [shape: f32[1,10], index: 14, kind: input, shape index: {}]   ;;  %s16093_s15 = inlined_call_operand.hbm [shape: f32[2,1,10], index: 15, kind: output, shape index: {}]  }
   0x1   :  { %16183 = sst [smem:[#allocation81_spill]] %s16081_s3 }
   0x2   :  { %16184 = sst [smem:[#allocation82_spill]] %s16084_s6 }
   0x3   :  { %16185 = sst [smem:[#allocation83_spill]] %s16086_s8 }
   0x4   :  { %16186 = sst [smem:[#allocation84_spill]] %s16089_s11 }
   0x5   :  { %16187 = sst [smem:[#allocation85_spill]] %s16092_s14 }
   0x6   :  { %16188 = sst [smem:[#allocation86_spill]] %s16093_s15 }
   0x7   :  { %20 = vsyncpa [#allocation9], 0 }
   0x8   :  { %21 = vsyncpa [#allocation12], 0 }
   0x9   :  { %22 = vsyncpa [#allocation15], 0 }
   0xa   :  { %23 = vsyncpa [#allocation18], 0 }
   0xb   :  { %24 = vsyncpa [#allocation21], 0 }
   0xc   :  { %25 = vsyncpa [#allocation10], 0 }
   0xd   :  { %27 = vsyncpa [#allocation10 + $0x1], 0  ;;  %s12245_s18 = smov 0   ;;  %s12247_s19 = smov 0  }
   0xe   :  { %s12249_s20 = smov 0   ;;  %s12251_s21 = smov 0  }
   0xf LB: > { %16189 = sst [smem:[#allocation30_spill]] %s12133_s18  ;;  %s12266_s22 = sadd.s32 4294967295, %s12145_s21   ;;  %s12145_s21 = sphi %s12251_s21, %s16355_s21   ;;  %s12141_s20 = sphi %s12249_s20, %s16357_s20   ;;  %s12137_s19 = sphi %s12247_s19, %s16359_s19   ;;  %s12133_s18 = sphi %s12245_s18, %s16358_s18  }
  0x10   : > { %16190 = sst [smem:[#allocation31_spill]] %s12141_s20  ;;  %s8903_s23 = sadd.s32 4294967294, %s12145_s21  }
  0x11   : > { %16191 = sst [smem:[#allocation32_spill]] %s12145_s21  ;;  %s12270_s24 = sadd.s32 1, %s12145_s21  }
  0x12   : > { %16192 = sst [smem:[#allocation33_spill]] %s12270_s24  ;;  %s360_s25 = sadd.s32 1, %s12141_s20 }
  0x13   : > { %s357_s26 = ssub.s32 %s12145_s21, %s12270_s24  ;;  %p370_p0 = scmp.ne.s32.totalorder %s12141_s20, %s12137_s19 }
  0x14   : > { %p358_p1 = scmp.eq.s32.totalorder %s357_s26, 0  ;;  %p371_p2 = scmp.eq.s32.totalorder %s12266_s22, 1 }
  0x15   : > { %p376_p3 = scmp.ne.s32.totalorder %s12137_s19, %s12133_s18  ;;  %p377_p4 = scmp.eq.s32.totalorder %s8903_s23, 1 }
  0x16   : > { %s12281_s27 = scalar_select %p358_p1, %s12141_s20, %s360_s25  }
  0x17   : > { %p12283_p5 = por %p371_p2, %p370_p0  ;;  %p12287_p6 = por %p377_p4, %p376_p3 }
  0x18   : > { %16193 = sst [smem:[#allocation34_spill]] %s12281_s27  ;;  %p8904_p7 = scmp.ge.s32.totalorder %s12145_s21, 1 }
  0x19   : > { %s16194_s28 = scalar_select %p12283_p5, 1, 0 }
  0x1a   : > { %s16196_s29 = scalar_select %p12287_p6, 1, 0 }
  0x1b   : > { %16195 = sst [smem:[#allocation35_spill]] %s16194_s28  ;;  %p384_p8 = scmp.lt.s32.totalorder %s12145_s21, 3 }
  0x1c   : > { %16197 = sst [smem:[#allocation36_spill]] %s16196_s29  ;;  %p16101_p9 = scmp.eq.s32.totalorder %s12266_s22, 0 }
  0x1d   : > { %p12294_p10 = pnand %p8904_p7, %p384_p8  ;;  %s12147_s16 = smov [#allocation11]  }
  0x1e   : > { %s413_s17 = sshll.u32 %s12147_s16, 4  ;;  %s12148_s23 = smov [#allocation14]   ;;  %s414_s17 = int_to_ptr.vmem [resolvable:$true] %s413_s17 }
  0x1f   : > { %s16198_s30 = scalar_select %p12294_p10, 1, 0 }
  0x20   : > { %p11668_p11 = pneg %p12294_p10  ;;  %s438_s25 = sshll.u32 %s12148_s23, 4  ;;  %s12306_s25 = int_to_ptr.vmem [resolvable:$true] %s438_s25 }
  0x21   : > { %s12149_s27 = smov [#allocation17]   ;;  %s16200_s3 = sld [smem:[#allocation81_spill]] }
  0x22   : > { %p12302_p12 = pnand %p16101_p9, %p11668_p11  ;;  %s462_s20 = sshll.u32 %s12149_s27, 4  ;;  %s12308_s20 = int_to_ptr.vmem [resolvable:$true] %s462_s20 }
  0x24   : > { %p12318_p0 = pneg %p12302_p12 }
  0x27   : > { %s11811_s16 = scalar_lea.hbm %s16200_s3, 16 }
  0x28   : > { %p11812_p13 = scmp.ne.s32.totalorder %s16200_s3, %s11811_s16  ;;  %p11818_p3 = scmp.lt.u32.totalorder %s11811_s16, %s16200_s3 }
  0x2a   : > { %p11814_p1 = pnand %p12318_p0, %p11812_p13 }
  0x2c   : > { %p11815_p2 = pneg %p11814_p1 }
  0x2e   : > { %p11820_p4 = pnand %p11818_p3, %p11815_p2 }
  0x30   : > { %11823 = shalt.err (!%p11820_p4)
}
  0x31   : > { %s11824_s24 = scalar_lea.vmem %s414_s17, 16  ;;  %s11831_s18 = scalar_lea.vmem %s414_s17, 32 }
  0x32   : > { %p11825_p7 = scmp.ne.s32.totalorder %s414_s17, %s11824_s24  ;;  %p11832_p9 = scmp.lt.s32.totalorder %s414_s17, %s414_s17 }
  0x33   : > { %p11833_p6 = scmp.lt.s32.totalorder %s11831_s18, %s11824_s24 }
  0x34   : > { %p11827_p8 = pnand %p11825_p7, %p12318_p0 }
  0x35   : > { %p11834_p5 = por %p11833_p6, %p11832_p9 }
  0x36   : > { %p11828_p11 = pneg %p11827_p8 }
  0x38   : > { %p11835_p10 = pnand %p11834_p5, %p11828_p11 }
  0x3a   : > { %11838 = shalt.err (!%p11835_p10)
}
  0x3b   : > { %11674 = dma.hbm_to_vmem [thread:$0]  (!%p12302_p12), %s16200_s3, 16, %s414_s17, [#allocation12]  }
  0x3c   : > { %s16202_s6 = sld [smem:[#allocation82_spill]] }
  0x42   : > { %s11839_s27 = scalar_lea.hbm %s16202_s6, 16 }
  0x43   : > { %p11840_p13 = scmp.ne.s32.totalorder %s16202_s6, %s11839_s27  ;;  %p11846_p5 = scmp.lt.u32.totalorder %s11839_s27, %s16202_s6 }
  0x45   : > { %p11842_p1 = pnand %p11840_p13, %p12318_p0 }
  0x47   : > { %p11843_p6 = pneg %p11842_p1 }
  0x49   : > { %p11848_p9 = pnand %p11846_p5, %p11843_p6 }
  0x4b   : > { %11851 = shalt.err (!%p11848_p9)
}
  0x4c   : > { %s11852_s17 = scalar_lea.vmem %s12306_s25, 16  ;;  %s11859_s14 = scalar_lea.vmem %s12306_s25, 32 }
  0x4d   : > { %p11853_p10 = scmp.ne.s32.totalorder %s12306_s25, %s11852_s17  ;;  %p11860_p4 = scmp.lt.s32.totalorder %s12306_s25, %s12306_s25 }
  0x4e   : > { %p11861_p7 = scmp.lt.s32.totalorder %s11859_s14, %s11852_s17 }
  0x4f   : > { %p11855_p2 = pnand %p11853_p10, %p12318_p0 }
  0x50   : > { %p11862_p8 = por %p11861_p7, %p11860_p4 }
  0x51   : > { %p11856_p3 = pneg %p11855_p2 }
  0x53   : > { %p11863_p11 = pnand %p11862_p8, %p11856_p3 }
  0x55   : > { %11866 = shalt.err (!%p11863_p11)
}
  0x56   : > { %11680 = dma.hbm_to_vmem [thread:$0]  (!%p12302_p12), %s16202_s6, 16, %s12306_s25, [#allocation15]  }
  0x57   : > { %s16203_s8 = sld [smem:[#allocation83_spill]] }
  0x5d   : > { %s11867_s16 = scalar_lea.hbm %s16203_s8, 16 }
  0x5e   : > { %p11868_p13 = scmp.ne.s32.totalorder %s16203_s8, %s11867_s16  ;;  %p11874_p5 = scmp.lt.u32.totalorder %s11867_s16, %s16203_s8 }
  0x60   : > { %p11870_p1 = pnand %p11868_p13, %p12318_p0 }
  0x62   : > { %p11871_p6 = pneg %p11870_p1 }
  0x64   : > { %p11876_p9 = pnand %p11874_p5, %p11871_p6 }
  0x66   : > { %11879 = shalt.err (!%p11876_p9)
}
  0x67   : > { %s11880_s25 = scalar_lea.vmem %s12308_s20, 16  ;;  %s11887_s14 = scalar_lea.vmem %s12308_s20, 32 }
  0x68   : > { %p11881_p10 = scmp.ne.s32.totalorder %s12308_s20, %s11880_s25  ;;  %p11888_p4 = scmp.lt.s32.totalorder %s12308_s20, %s12308_s20 }
  0x69   : > { %p11889_p7 = scmp.lt.s32.totalorder %s11887_s14, %s11880_s25 }
  0x6a   : > { %p11883_p2 = pnand %p11881_p10, %p12318_p0 }
  0x6b   : > { %p11890_p8 = por %p11889_p7, %p11888_p4 }
  0x6c   : > { %p11884_p3 = pneg %p11883_p2 }
  0x6e   : > { %p11891_p11 = pnand %p11890_p8, %p11884_p3 }
  0x70   : > { %11894 = shalt.err (!%p11891_p11)
}
  0x71   : > { %11686 = dma.hbm_to_vmem [thread:$0]  (!%p12302_p12), %s16203_s8, 16, %s12308_s20, [#allocation18]  }
  0x72   : > { %s12150_s29 = smov [#allocation20]   ;;  %s12151_s16 = smov [#allocation8]  }
  0x73   : > { %s487_s15 = sshll.u32 %s12150_s29, 4  ;;  %s396_s27 = sshll.u32 %s12151_s16, 4  ;;  %s488_s15 = int_to_ptr.vmem [resolvable:$true] %s487_s15  ;;  %s397_s27 = int_to_ptr.vmem [resolvable:$true] %s396_s27 }
  0x74   : > { %s16204_s11 = sld [smem:[#allocation84_spill]] }
  0x7a   : > { %s11895_s17 = scalar_lea.hbm %s16204_s11, 16 }
  0x7b   : > { %p11896_p13 = scmp.ne.s32.totalorder %s16204_s11, %s11895_s17  ;;  %p11902_p5 = scmp.lt.u32.totalorder %s11895_s17, %s16204_s11 }
  0x7d   : > { %p11898_p1 = pnand %p11896_p13, %p12318_p0 }
  0x7f   : > { %p11899_p6 = pneg %p11898_p1 }
  0x81   : > { %p11904_p9 = pnand %p11902_p5, %p11899_p6 }
  0x83   : > { %11907 = shalt.err (!%p11904_p9)
}
  0x84   : > { %s11908_s20 = scalar_lea.vmem %s488_s15, 16  ;;  %s11915_s21 = scalar_lea.vmem %s488_s15, 32 }
  0x85   : > { %p11909_p10 = scmp.ne.s32.totalorder %s488_s15, %s11908_s20  ;;  %p11916_p4 = scmp.lt.s32.totalorder %s488_s15, %s488_s15 }
  0x86   : > { %p11917_p7 = scmp.lt.s32.totalorder %s11915_s21, %s11908_s20 }
  0x87   : > { %p11911_p2 = pnand %p11909_p10, %p12318_p0 }
  0x88   : > { %p11918_p8 = por %p11917_p7, %p11916_p4 }
  0x89   : > { %p11912_p3 = pneg %p11911_p2 }
  0x8b   : > { %p11919_p11 = pnand %p11918_p8, %p11912_p3 }
  0x8d   : > { %11922 = shalt.err (!%p11919_p11)
}
  0x8e   : > { %11692 = dma.hbm_to_vmem [thread:$0]  (!%p12302_p12), %s16204_s11, 16, %s488_s15, [#allocation21]  }
  0x8f   : > { %s11923_s18 = scalar_lea.hbm %s16079_s1, 144 }
  0x90   : > { %p11924_p13 = scmp.ne.s32.totalorder %s16079_s1, %s11923_s18  ;;  %p11930_p5 = scmp.lt.u32.totalorder %s11923_s18, %s16079_s1 }
  0x92   : > { %p11926_p1 = pnand %p11924_p13, %p12318_p0 }
  0x94   : > { %p11927_p6 = pneg %p11926_p1 }
  0x96   : > { %p11932_p9 = pnand %p11930_p5, %p11927_p6 }
  0x98   : > { %11935 = shalt.err (!%p11932_p9)
}
  0x99   : > { %s11936_s20 = scalar_lea.vmem %s397_s27, 144  ;;  %s11943_s15 = scalar_lea.vmem %s397_s27, 160 }
  0x9a   : > { %p11937_p10 = scmp.ne.s32.totalorder %s397_s27, %s11936_s20  ;;  %p11944_p4 = scmp.lt.s32.totalorder %s397_s27, %s397_s27 }
  0x9b   : > { %p11945_p7 = scmp.lt.s32.totalorder %s11943_s15, %s11936_s20 }
  0x9c   : > { %p11939_p2 = pnand %p11937_p10, %p12318_p0 }
  0x9d   : > { %p11946_p8 = por %p11945_p7, %p11944_p4 }
  0x9e   : > { %p11940_p3 = pneg %p11939_p2 }
  0xa0   : > { %p11947_p11 = pnand %p11946_p8, %p11940_p3 }
  0xa2   : > { %11950 = shalt.err (!%p11947_p11)
}
  0xa3   : > { %s12152_s21 = smov 16   ;;  %s12153_s29 = smov 1  }
  0xa4   : > { %11671 = dma.hbm_to_vmem [thread:$0]  (!%p12302_p12), %s16079_s1, 144, %s397_s27, [#allocation9], %s12152_s21, %s12152_s21, %s12153_s29  }
  0xa5   : > { %s12154_s24 = smov [#allocation13]   ;;  %s12155_s17 = smov [#allocation16]  }
  0xa6   : > { %s427_s18 = sshll.u32 %s12154_s24, 4  ;;  %s448_s25 = sshll.u32 %s12155_s17, 4  ;;  %s428_s18 = int_to_ptr.vmem [resolvable:$true] %s427_s18  ;;  %s449_s25 = int_to_ptr.vmem [resolvable:$true] %s448_s25 }
  0xa7   : > { %s11951_s20 = scalar_lea.hbm %s16083_s5, 16 }
  0xa8   : > { %p11952_p13 = scmp.ne.s32.totalorder %s16083_s5, %s11951_s20  ;;  %p11958_p5 = scmp.lt.u32.totalorder %s11951_s20, %s16083_s5 }
  0xaa   : > { %p11954_p1 = pnand %p11952_p13, %p12318_p0 }
  0xac   : > { %p11955_p6 = pneg %p11954_p1 }
  0xae   : > { %p11960_p9 = pnand %p11958_p5, %p11955_p6 }
  0xb0   : > { %11963 = shalt.err (!%p11960_p9)
}
  0xb1   : > { %s11964_s27 = scalar_lea.vmem %s428_s18, 16  ;;  %s11971_s21 = scalar_lea.vmem %s428_s18, 32 }
  0xb2   : > { %p11965_p10 = scmp.ne.s32.totalorder %s428_s18, %s11964_s27  ;;  %p11972_p4 = scmp.lt.s32.totalorder %s428_s18, %s428_s18 }
  0xb3   : > { %p11973_p7 = scmp.lt.s32.totalorder %s11971_s21, %s11964_s27 }
  0xb4   : > { %p11967_p2 = pnand %p11965_p10, %p12318_p0 }
  0xb5   : > { %p11974_p8 = por %p11973_p7, %p11972_p4 }
  0xb6   : > { %p11968_p3 = pneg %p11967_p2 }
  0xb8   : > { %p11975_p11 = pnand %p11974_p8, %p11968_p3 }
  0xba   : > { %11978 = shalt.err (!%p11975_p11)
}
  0xbb   : > { %11677 = dma.hbm_to_vmem [thread:$0]  (!%p12302_p12), %s16083_s5, 16, %s428_s18, [#allocation12]  }
  0xbc   : > { %s11979_s16 = scalar_lea.hbm %s16085_s7, 4608 }
  0xbd   : > { %p11980_p13 = scmp.ne.s32.totalorder %s16085_s7, %s11979_s16  ;;  %p11986_p5 = scmp.lt.u32.totalorder %s11979_s16, %s16085_s7 }
  0xbf   : > { %p11982_p1 = pnand %p11980_p13, %p12318_p0 }
  0xc1   : > { %p11983_p6 = pneg %p11982_p1 }
  0xc3   : > { %p11988_p9 = pnand %p11986_p5, %p11983_p6 }
  0xc5   : > { %11991 = shalt.err (!%p11988_p9)
}
  0xc6   : > { %s11992_s28 = scalar_lea.vmem %s449_s25, 4608  ;;  %p12000_p4 = scmp.lt.s32.totalorder %s449_s25, %s449_s25 }
  0xc7   : > { %p11993_p10 = scmp.ne.s32.totalorder %s449_s25, %s11992_s28  ;;  %p12001_p7 = scmp.lt.s32.totalorder %s11992_s28, %s11992_s28 }
  0xc9   : > { %p11995_p2 = pnand %p11993_p10, %p12318_p0  ;;  %p12002_p8 = por %p12001_p7, %p12000_p4 }
  0xcb   : > { %p11996_p3 = pneg %p11995_p2 }
  0xcd   : > { %p12003_p11 = pnand %p12002_p8, %p11996_p3 }
  0xcf   : > { %12006 = shalt.err (!%p12003_p11)
}
  0xd0   : > { %s12156_s18 = smov 128   ;;  %s12157_s20 = smov 8  }
  0xd1   : > { %11683 = dma.hbm_to_vmem [thread:$0]  (!%p12302_p12), %s16085_s7, 4608, %s449_s25, [#allocation15], %s12156_s18, %s12156_s18, %s12157_s20  }
  0xd2   : > { %s12158_s21 = smov [#allocation19]   ;;  %s12159_s29 = smov [#allocation22]  }
  0xd3   : > { %s473_s6 = sshll.u32 %s12158_s21, 4  ;;  %s498_s8 = sshll.u32 %s12159_s29, 4  ;;  %s474_s6 = int_to_ptr.vmem [resolvable:$true] %s473_s6  ;;  %s499_s8 = int_to_ptr.vmem [resolvable:$true] %s498_s8 }
  0xd4   : > { %s12007_s3 = scalar_lea.hbm %s16087_s9, 16 }
  0xd5   : > { %p12008_p13 = scmp.ne.s32.totalorder %s16087_s9, %s12007_s3  ;;  %p12014_p5 = scmp.lt.u32.totalorder %s12007_s3, %s16087_s9 }
  0xd7   : > { %p12010_p1 = pnand %p12008_p13, %p12318_p0 }
  0xd9   : > { %p12011_p6 = pneg %p12010_p1 }
  0xdb   : > { %p12016_p9 = pnand %p12014_p5, %p12011_p6 }
  0xdd   : > { %12019 = shalt.err (!%p12016_p9)
}
  0xde   : > { %s12020_s25 = scalar_lea.vmem %s474_s6, 16  ;;  %s12027_s18 = scalar_lea.vmem %s474_s6, 32 }
  0xdf   : > { %p12021_p10 = scmp.ne.s32.totalorder %s474_s6, %s12020_s25  ;;  %p12028_p4 = scmp.lt.s32.totalorder %s474_s6, %s474_s6 }
  0xe0   : > { %p12029_p7 = scmp.lt.s32.totalorder %s12027_s18, %s12020_s25 }
  0xe1   : > { %p12023_p2 = pnand %p12021_p10, %p12318_p0 }
  0xe2   : > { %p12030_p8 = por %p12029_p7, %p12028_p4 }
  0xe3   : > { %p12024_p3 = pneg %p12023_p2 }
  0xe5   : > { %p12031_p11 = pnand %p12030_p8, %p12024_p3 }
  0xe7   : > { %12034 = shalt.err (!%p12031_p11)
}
  0xe8   : > { %11689 = dma.hbm_to_vmem [thread:$0]  (!%p12302_p12), %s16087_s9, 16, %s474_s6, [#allocation18]  }
  0xe9   : > { %s12035_s29 = scalar_lea.hbm %s16090_s12, 16 }
  0xea   : > { %p12036_p13 = scmp.ne.s32.totalorder %s16090_s12, %s12035_s29  ;;  %p12042_p5 = scmp.lt.u32.totalorder %s12035_s29, %s16090_s12 }
  0xec   : > { %p12038_p1 = pnand %p12036_p13, %p12318_p0 }
  0xee   : > { %p12039_p6 = pneg %p12038_p1 }
  0xf0   : > { %p12044_p9 = pnand %p12042_p5, %p12039_p6 }
  0xf2   : > { %12047 = shalt.err (!%p12044_p9)
}
  0xf3   : > { %s12048_s17 = scalar_lea.vmem %s499_s8, 16  ;;  %s12055_s6 = scalar_lea.vmem %s499_s8, 32 }
  0xf4   : > { %p12049_p10 = scmp.ne.s32.totalorder %s499_s8, %s12048_s17  ;;  %p12056_p4 = scmp.lt.s32.totalorder %s499_s8, %s499_s8 }
  0xf5   : > { %p12057_p7 = scmp.lt.s32.totalorder %s12055_s6, %s12048_s17 }
  0xf6   : > { %p12051_p2 = pnand %p12049_p10, %p12318_p0 }
  0xf7   : > { %p12058_p8 = por %p12057_p7, %p12056_p4 }
  0xf8   : > { %p12052_p3 = pneg %p12051_p2 }
  0xfa   : > { %p12059_p11 = pnand %p12058_p8, %p12052_p3 }
  0xfc   : > { %12062 = shalt.err (!%p12059_p11)
}
  0xfd   : > { %11695 = dma.hbm_to_vmem [thread:$0]  (!%p12302_p12), %s16090_s12, 16, %s499_s8, [#allocation21]  }
  0xfe   : > { %p16205_p13 = scmp.ne.s32.totalorder %s16198_s30, 0 }
 0x100   : > { %525 = sbr.rel (%p16205_p13) target bundleno = 2399 (0x95f), region = 80 }
 0x107   : > { %p16206_p1 = scmp.eq.s32.totalorder %s12266_s22, 0 }
 0x109   : > { %12108 = dma.done.wait (%p16206_p1), [#allocation9], 144   ;;  %p16207_p0 = pmov %p16206_p1 }
 0x10b   : > { %12110 = vsyncadd (%p16207_p0), [#allocation9], 4294967152  ;;  %p16208_p6 = pmov %p16207_p0 }
 0x10c   : > { %p16209_p5 = pmov %p16207_p0 }
 0x10d   : > { %12112 = dma.done.wait (%p16208_p6), [#allocation12], 32  }
 0x10e   : > { %12114 = vsyncadd (%p16209_p5), [#allocation12], 4294967264  ;;  %p16210_p9 = pmov %p16207_p0 }
 0x10f   : > { %p16211_p12 = pmov %p16207_p0 }
 0x110   : > { %12116 = dma.done.wait (%p16210_p9), [#allocation15], 4624  }
 0x111   : > { %12118 = vsyncadd (%p16211_p12), [#allocation15], 4294962672  ;;  %p16212_p10 = pmov %p16207_p0 }
 0x112   : > { %p16213_p2 = pmov %p16207_p0 }
 0x113   : > { %12120 = dma.done.wait (%p16212_p10), [#allocation18], 32  }
 0x114   : > { %12122 = vsyncadd (%p16213_p2), [#allocation18], 4294967264  ;;  %p16214_p3 = pmov %p16207_p0 }
 0x115   : > { %p16215_p4 = pmov %p16207_p0 }
 0x116   : > { %12124 = dma.done.wait (%p16214_p3), [#allocation21], 32  }
 0x117   : > { %12126 = vsyncadd (%p16215_p4), [#allocation21], 4294967264  ;;  %vm641_vm0 = vcmask 7168   ;;  %v12160_v0 = vmov 0   ;;  %v16106_v1 = vmov 0.0   ;;  %vm644_vm1 = vcmask 1024  }
 0x118   : > { %11768 = vset.pattern.permute.xlu0 %v12160_v0  ;;  %642 = vst.msk [vmem:[#allocation2] sm:$0xff] %vm641_vm0, %v16106_v1  ;;  %643 = vst.msk [vmem:[#allocation2 + $0x8] sm:$0xff] %vm641_vm0, %v16106_v1  ;;  %11769 = vset.pattern.permute.xlu1 %v12160_v0  ;;  %p604_p7 = scmp.lt.s32.totalorder %s12266_s22, 1  ;;  %vm1031_vm2 = vcmask 1046528   ;;  %vm1312_vm3 = vcmask 1045504   ;;  %vm2273_vm4 = vcmask 130048  }
 0x119   : > { %646 = vst.msk [vmem:[#allocation2 + $0x18] sm:$0xff] %vm641_vm0, %v16106_v1  ;;  %647 = vst.msk [vmem:[#allocation2 + $0x20] sm:$0xff] %vm641_vm0, %v16106_v1  ;;  %vm2276_vm5 = vcmask 123904   ;;  %s16346_s24 = sld [smem:[#allocation35_spill]]  ;;  %s602_s17 = sand.u32 1, %s12137_s19  }
 0x11a   : > { %649 = vst.msk [vmem:[#allocation2 + $0x30] sm:$0xff] %vm641_vm0, %v16106_v1  ;;  %650 = vst.msk [vmem:[#allocation2 + $0x38] sm:$0xff] %vm641_vm0, %v16106_v1  ;;  %s605_s30 = scalar_select %p604_p7, %s12266_s22, 1 }
 0x11b   : > { %652 = vst.msk [vmem:[#allocation2 + $0x48] sm:$0xff] %vm641_vm0, %v16106_v1  ;;  %653 = vst.msk [vmem:[#allocation2 + $0x50] sm:$0xff] %vm641_vm0, %v16106_v1  ;;  %s16347_s28 = sld [smem:[#allocation85_spill]]  ;;  %s16348_s18 = sld [smem:[#allocation86_spill]] }
 0x11c   : > { %655 = vst.msk [vmem:[#allocation2 + $0x60] sm:$0xff] %vm641_vm0, %v16106_v1  ;;  %656 = vst.msk [vmem:[#allocation2 + $0x68] sm:$0xff] %vm641_vm0, %v16106_v1  ;;  %s9459_s26 = sshll.u32 %s605_s30, 8  ;;  %s9456_s30 = sshll.u32 %s12266_s22, 4 }
 0x11d   : > { %658 = vst.msk [vmem:[#allocation2 + $0x78] sm:$0xff] %vm641_vm0, %v16106_v1  ;;  %659 = vst.msk [vmem:[#allocation2 + $0x80] sm:$0xff] %vm641_vm0, %v16106_v1  ;;  %s12627_s25 = scalar_lea.vmem %s16078_s0, %s9459_s26  ;;  %s603_s26 = scalar_lea.vmem [#allocation23], %s602_s17 }
 0x11e   : > { %661 = vst.msk [vmem:[#allocation2 + $0x90] sm:$0xff] %vm641_vm0, %v16106_v1  ;;  %662 = vst.msk [vmem:[#allocation2 + $0x98] sm:$0xff] %vm641_vm0, %v16106_v1  ;;  %v609_v2 = vld [vmem:[%s12627_s25] sm:$0xff]  ;;  %v610_v3 = vld [vmem:[%s12627_s25 + $0x8] sm:$0xff]  ;;  %s8760_s23 = sshll.u32 %s603_s26, 4  ;;  %s8748_s27 = scalar_lea.sflag [#allocation10], %s602_s17  ;;  %s16038_s23 = int_to_ptr.vmem [resolvable:$true] %s8760_s23 }
 0x11f   : > { %664 = vst.msk [vmem:[#allocation2 + $0xa8] sm:$0xff] %vm641_vm0, %v16106_v1  ;;  %665 = vst.msk [vmem:[#allocation2 + $0xb0] sm:$0xff] %vm641_vm0, %v16106_v1  ;;  %v611_v4 = vld [vmem:[%s12627_s25 + $0x10] sm:$0xff]  ;;  %v730_v5 = vld [vmem:[#allocation2] sm:$0xff]  ;;  %s12063_s21 = scalar_lea.vmem %s16038_s23, 16  ;;  %p16350_p11 = scmp.ne.s32.totalorder %s16346_s24, 0 }
 0x120   : > { %667 = vst.msk [vmem:[#allocation2 + $0xc0] sm:$0xff] %vm641_vm0, %v16106_v1  ;;  %668 = vst.msk [vmem:[#allocation2 + $0xc8] sm:$0xff] %vm641_vm0, %v16106_v1  ;;  %v731_v6 = vld [vmem:[#allocation2 + $0x8] sm:$0xff]  ;;  %v612_v7 = vld [vmem:[%s12627_s25 + $0x18] sm:$0xff]  ;;  %787 = vperm.xlu0 %11768, %v730_v5   ;;  %v1032_v8 = vrot.slane %v730_v5, 1  ;;  %v1313_v11 = vrot.slane %v730_v5, 2  ;;  %p12064_p8 = scmp.ne.s32.totalorder %s16038_s23, %s12063_s21 }
 0x121   : > { %670 = vst.msk [vmem:[#allocation2 + $0xd8] sm:$0xff] %vm641_vm0, %v16106_v1  ;;  %671 = vst.msk [vmem:[#allocation2 + $0xe0] sm:$0xff] %vm641_vm0, %v16106_v1  ;;  %v1033_v9 = vrot.slane %v731_v6, 1  ;;  %v1314_v13 = vrot.slane %v731_v6, 2  ;;  %v613_v14 = vld [vmem:[%s12627_s25 + $0x20] sm:$0xff]  ;;  %v614_v15 = vld [vmem:[%s12627_s25 + $0x28] sm:$0xff]  ;;  %s16349_s15 = smov %s16348_s18  ;;  %s16036_s20 = scalar_lea.hbm %s16348_s18, %s9456_s30 }
 0x122   : > { %673 = vst.msk [vmem:[#allocation2 + $0xf0] sm:$0xff] %vm641_vm0, %v16106_v1  ;;  %674 = vst.msk [vmem:[#allocation2 + $0xf8] sm:$0xff] %vm641_vm0, %v16106_v1  ;;  %v615_v16 = vld [vmem:[%s12627_s25 + $0x30] sm:$0xff]  ;;  %v616_v18 = vld [vmem:[%s12627_s25 + $0x38] sm:$0xff]  ;;  %p12065_p13 = pnand %p12064_p8, %p16350_p11  ;;  %s12164_s22 = smov [#allocation23]  }
 0x123   : > { %676 = vst.msk [vmem:[#allocation2 + $0x108] sm:$0xff] %vm641_vm0, %v16106_v1  ;;  %677 = vst.msk [vmem:[#allocation2 + $0x110] sm:$0xff] %vm641_vm0, %v16106_v1  ;;  %v1034_v17 = vsel %vm1031_vm2, %v1032_v8, %v1033_v9  ;;  %v617_v19 = vld [vmem:[%s12627_s25 + $0x40] sm:$0xff]  ;;  %v618_v20 = vld [vmem:[%s12627_s25 + $0x48] sm:$0xff]  ;;  %v1315_v29 = vsel %vm1312_vm3, %v1313_v11, %v1314_v13  ;;  %s12067_s29 = sshll.u32 %s12164_s22, 4  ;;  %s12068_s29 = int_to_ptr.vmem [resolvable:$false] %s12067_s29 }
 0x124   : > { %679 = vst.msk [vmem:[#allocation2 + $0x120] sm:$0xff] %vm641_vm0, %v16106_v1  ;;  %680 = vst.msk [vmem:[#allocation2 + $0x128] sm:$0xff] %vm641_vm0, %v16106_v1  ;;  %1115 = vperm.xlu1 %11769, %v1034_v17   ;;  %v619_v21 = vld [vmem:[%s12627_s25 + $0x50] sm:$0xff]  ;;  %v620_v22 = vld [vmem:[%s12627_s25 + $0x58] sm:$0xff]  ;;  %792 = vperm.xlu0 %11768, %v731_v6   ;;  %p12066_p1 = pneg %p12065_p13  ;;  %s12069_s11 = scalar_lea.vmem %s12068_s29, 32 }
 0x125   : > { %682 = vst.msk [vmem:[#allocation2 + $0x138] sm:$0xff] %vm641_vm0, %v16106_v1  ;;  %683 = vst.msk [vmem:[#allocation2 + $0x140] sm:$0xff] %vm641_vm0, %v16106_v1  ;;  %v621_v23 = vld [vmem:[%s12627_s25 + $0x60] sm:$0xff]  ;;  %v622_v26 = vld [vmem:[%s12627_s25 + $0x68] sm:$0xff]  ;;  %p12070_p0 = scmp.lt.s32.totalorder %s16038_s23, %s12068_s29  ;;  %p12071_p6 = scmp.lt.s32.totalorder %s12069_s11, %s12063_s21 }
 0x126   : > { %685 = vst.msk [vmem:[#allocation2 + $0x150] sm:$0xff] %vm641_vm0, %v16106_v1  ;;  %686 = vst.msk [vmem:[#allocation2 + $0x158] sm:$0xff] %vm641_vm0, %v16106_v1  ;;  %v623_v27 = vld [vmem:[%s12627_s25 + $0x70] sm:$0xff]  ;;  %v624_v28 = vld [vmem:[%s12627_s25 + $0x78] sm:$0xff] }
 0x127   : > { %688 = vst.msk [vmem:[#allocation2 + $0x168] sm:$0xff] %vm641_vm0, %v16106_v1  ;;  %689 = vst.msk [vmem:[#allocation2 + $0x170] sm:$0xff] %vm641_vm0, %v16106_v1  ;;  %v625_v30 = vld [vmem:[%s12627_s25 + $0x80] sm:$0xff]  ;;  %v626_v31 = vld [vmem:[%s12627_s25 + $0x88] sm:$0xff]  ;;  %p12072_p5 = por %p12071_p6, %p12070_p0 }
 0x128   : > { %691 = vst.msk [vmem:[#allocation2 + $0x180] sm:$0xff] %vm641_vm0, %v16106_v1  ;;  %692 = vst.msk [vmem:[#allocation2 + $0x188] sm:$0xff] %vm641_vm0, %v16106_v1  ;;  %v627_v32 = vld [vmem:[%s12627_s25 + $0x90] sm:$0xff]  ;;  %1396 = vperm.xlu0 %11768, %v1315_v29   ;;  %v628_v45 = vld [vmem:[%s12627_s25 + $0x98] sm:$0xff] }
 0x129   : > { %694 = vst.msk [vmem:[#allocation2 + $0x198] sm:$0xff] %vm641_vm0, %v16106_v1  ;;  %695 = vst.msk [vmem:[#allocation2 + $0x1a0] sm:$0xff] %vm641_vm0, %v16106_v1  ;;  %v629_v49 = vld [vmem:[%s12627_s25 + $0xa0] sm:$0xff]  ;;  %v630_v50 = vld [vmem:[%s12627_s25 + $0xa8] sm:$0xff]  ;;  %p12073_p9 = pnand %p12072_p5, %p12066_p1 }
 0x12a   : > { %645 = vst.msk [vmem:[#allocation2 + $0x10] sm:$0x3] %vm644_vm1, %v16106_v1  ;;  %648 = vst.msk [vmem:[#allocation2 + $0x28] sm:$0x3] %vm644_vm1, %v16106_v1  ;;  %v631_v52 = vld [vmem:[%s12627_s25 + $0xb0] sm:$0xff]  ;;  %v632_v53 = vld [vmem:[%s12627_s25 + $0xb8] sm:$0xff] }
 0x12b   : > { %651 = vst.msk [vmem:[#allocation2 + $0x40] sm:$0x3] %vm644_vm1, %v16106_v1  ;;  %654 = vst.msk [vmem:[#allocation2 + $0x58] sm:$0x3] %vm644_vm1, %v16106_v1  ;;  %v633_v57 = vld [vmem:[%s12627_s25 + $0xc0] sm:$0xff]  ;;  %v634_v58 = vld [vmem:[%s12627_s25 + $0xc8] sm:$0xff] }
 0x12c   : > { %657 = vst.msk [vmem:[#allocation2 + $0x70] sm:$0x3] %vm644_vm1, %v16106_v1  ;;  %660 = vst.msk [vmem:[#allocation2 + $0x88] sm:$0x3] %vm644_vm1, %v16106_v1  ;;  %v635_v6 = vld [vmem:[%s12627_s25 + $0xd0] sm:$0xff]  ;;  %v9004_v29 = vld [vmem:[%s16082_s4 + $0x20] sm:$0xff] }
 0x12d   : > { %663 = vst.msk [vmem:[#allocation2 + $0xa0] sm:$0x3] %vm644_vm1, %v16106_v1  ;;  %666 = vst.msk [vmem:[#allocation2 + $0xb8] sm:$0x3] %vm644_vm1, %v16106_v1 }
 0x12e   : > { %669 = vst.msk [vmem:[#allocation2 + $0xd0] sm:$0x3] %vm644_vm1, %v16106_v1  ;;  %672 = vst.msk [vmem:[#allocation2 + $0xe8] sm:$0x3] %vm644_vm1, %v16106_v1 }
 0x12f   : > { %675 = vst.msk [vmem:[#allocation2 + $0x100] sm:$0x3] %vm644_vm1, %v16106_v1  ;;  %678 = vst.msk [vmem:[#allocation2 + $0x118] sm:$0x3] %vm644_vm1, %v16106_v1 }
 0x130   : > { %681 = vst.msk [vmem:[#allocation2 + $0x130] sm:$0x3] %vm644_vm1, %v16106_v1  ;;  %684 = vst.msk [vmem:[#allocation2 + $0x148] sm:$0x3] %vm644_vm1, %v16106_v1 }
 0x131   : > { %687 = vst.msk [vmem:[#allocation2 + $0x160] sm:$0x3] %vm644_vm1, %v16106_v1  ;;  %690 = vst.msk [vmem:[#allocation2 + $0x178] sm:$0x3] %vm644_vm1, %v16106_v1  ;;  %v732_v10 = vld [vmem:[#allocation2 + $0x10] sm:$0x3] }
 0x132   : > { %693 = vst.msk [vmem:[#allocation2 + $0x190] sm:$0x3] %vm644_vm1, %v16106_v1  ;;  %696 = vst.msk [vmem:[#allocation2 + $0x1a8] sm:$0x3] %vm644_vm1, %v16106_v1  ;;  %v1035_v12 = vrot.slane %v732_v10, 1  ;;  %v1316_v25 = vrot.slane %v732_v10, 2 }
 0x133   : > { %698 = vst.msk [vmem:[#allocation2 + $0x19] sm:$0xff] %vm641_vm0, %v609_v2  ;;  %699 = vst.msk [vmem:[#allocation2 + $0x21] sm:$0xff] %vm641_vm0, %v610_v3  ;;  %v636_v10 = vld [vmem:[%s12627_s25 + $0xd8] sm:$0xff] }
 0x134   : > { %700 = vst.msk [vmem:[#allocation2 + $0x31] sm:$0xff] %vm641_vm0, %v611_v4  ;;  %701 = vst.msk [vmem:[#allocation2 + $0x39] sm:$0xff] %vm641_vm0, %v612_v7  ;;  %v1036_v24 = vsel %vm1031_vm2, %v1033_v9, %v1035_v12  ;;  %v1317_v35 = vsel %vm1312_vm3, %v1314_v13, %v1316_v25  ;;  %v638_v25 = vld [vmem:[%s12627_s25 + $0xe8] sm:$0xff] }
 0x135   : > { %702 = vst.msk [vmem:[#allocation2 + $0x49] sm:$0xff] %vm641_vm0, %v613_v14  ;;  %703 = vst.msk [vmem:[#allocation2 + $0x51] sm:$0xff] %vm641_vm0, %v614_v15  ;;  %1119 = vperm.xlu1 %11769, %v1036_v24  }
 0x136   : > { %704 = vst.msk [vmem:[#allocation2 + $0x61] sm:$0xff] %vm641_vm0, %v615_v16  ;;  %705 = vst.msk [vmem:[#allocation2 + $0x69] sm:$0xff] %vm641_vm0, %v616_v18 }
 0x137   : > { %706 = vst.msk [vmem:[#allocation2 + $0x79] sm:$0xff] %vm641_vm0, %v617_v19  ;;  %707 = vst.msk [vmem:[#allocation2 + $0x81] sm:$0xff] %vm641_vm0, %v618_v20 }
 0x138   : > { %708 = vst.msk [vmem:[#allocation2 + $0x91] sm:$0xff] %vm641_vm0, %v619_v21  ;;  %709 = vst.msk [vmem:[#allocation2 + $0x99] sm:$0xff] %vm641_vm0, %v620_v22  ;;  %v637_v21 = vld [vmem:[%s12627_s25 + $0xe0] sm:$0xff] }
 0x139   : > { %710 = vst.msk [vmem:[#allocation2 + $0xa9] sm:$0xff] %vm641_vm0, %v621_v23  ;;  %711 = vst.msk [vmem:[#allocation2 + $0xb1] sm:$0xff] %vm641_vm0, %v622_v26  ;;  %1400 = vperm.xlu1 %11769, %v1317_v35  }
 0x13a   : > { %712 = vst.msk [vmem:[#allocation2 + $0xc1] sm:$0xff] %vm641_vm0, %v623_v27  ;;  %713 = vst.msk [vmem:[#allocation2 + $0xc9] sm:$0xff] %vm641_vm0, %v624_v28  ;;  %v733_v33 = vld [vmem:[#allocation2 + $0x18] sm:$0xff]  ;;  %v734_v34 = vld [vmem:[#allocation2 + $0x20] sm:$0xff] }
 0x13b   : > { %714 = vst.msk [vmem:[#allocation2 + $0xd9] sm:$0xff] %vm641_vm0, %v625_v30  ;;  %715 = vst.msk [vmem:[#allocation2 + $0xe1] sm:$0xff] %vm641_vm0, %v626_v31  ;;  %v1037_v36 = vrot.slane %v733_v33, 1  ;;  %v1038_v37 = vrot.slane %v734_v34, 1  ;;  %v735_v38 = vld [vmem:[#allocation2 + $0x28] sm:$0x3]  ;;  %797 = vperm.xlu0 %11768, %v733_v33  }
 0x13c   : > { %716 = vst.msk [vmem:[#allocation2 + $0xf1] sm:$0xff] %vm641_vm0, %v627_v32  ;;  %v1040_v39 = vrot.slane %v735_v38, 1  ;;  %v1318_v40 = vrot.slane %v733_v33, 2  ;;  %v1319_v41 = vrot.slane %v734_v34, 2  ;;  %v1321_v44 = vrot.slane %v735_v38, 2  ;;  %v736_v47 = vld [vmem:[#allocation2 + $0x30] sm:$0xff] }
 0x13d   : > { %v1039_v42 = vsel %vm1031_vm2, %v1037_v36, %v1038_v37  ;;  %802 = vperm.xlu1 %11769, %v734_v34   ;;  %717 = vst.msk [vmem:[#allocation2 + $0xf9] sm:$0xff] %vm641_vm0, %v628_v45  ;;  %v737_v48 = vld [vmem:[#allocation2 + $0x38] sm:$0xff]  ;;  %718 = vst.msk [vmem:[#allocation2 + $0x109] sm:$0xff] %vm641_vm0, %v629_v49  ;;  %v1042_v54 = vrot.slane %v736_v47, 1  ;;  %v738_v56 = vld [vmem:[#allocation2 + $0x40] sm:$0x3] }
 0x13e   : > { %v1041_v43 = vsel %vm1031_vm2, %v1038_v37, %v1040_v39  ;;  %v1320_v46 = vsel %vm1312_vm3, %v1318_v40, %v1319_v41  ;;  %719 = vst.msk [vmem:[#allocation2 + $0x111] sm:$0xff] %vm641_vm0, %v630_v50  ;;  %v1322_v51 = vsel %vm1312_vm3, %v1319_v41, %v1321_v44  ;;  %v1043_v55 = vrot.slane %v737_v48, 1  ;;  %720 = vst.msk [vmem:[#allocation2 + $0x121] sm:$0xff] %vm641_vm0, %v631_v52  ;;  %v739_v3 = vld [vmem:[#allocation2 + $0x48] sm:$0xff]  ;;  %v12692_v4 = vld [vmem:[#allocation2 + $0x50] sm:$0xff] }
 0x13f   : > { %1123 = vperm.xlu0 %11768, %v1039_v42   ;;  %721 = vst.msk [vmem:[#allocation2 + $0x129] sm:$0xff] %vm641_vm0, %v632_v53  ;;  %722 = vst.msk [vmem:[#allocation2 + $0x139] sm:$0xff] %vm641_vm0, %v633_v57  ;;  %v1045_v59 = vrot.slane %v738_v56, 1  ;;  %v1323_v60 = vrot.slane %v736_v47, 2  ;;  %v1324_v61 = vrot.slane %v737_v48, 2  ;;  %v1326_v0 = vrot.slane %v738_v56, 2 }
 0x140   : > { %723 = vst.msk [vmem:[#allocation2 + $0x141] sm:$0xff] %vm641_vm0, %v634_v58  ;;  %v1044_v62 = vsel %vm1031_vm2, %v1042_v54, %v1043_v55  ;;  %v1047_v7 = vrot.slane %v739_v3, 1  ;;  %v1048_v8 = vrot.slane %v12692_v4, 1  ;;  %v12697_v9 = vld [vmem:[#allocation2 + $0x58] sm:$0x3]  ;;  %724 = vst.msk [vmem:[#allocation2 + $0x151] sm:$0xff] %vm641_vm0, %v635_v6 }
 0x141   : > { %1127 = vperm.xlu1 %11769, %v1041_v43   ;;  %v1046_v63 = vsel %vm1031_vm2, %v1043_v55, %v1045_v59  ;;  %v1325_v2 = vsel %vm1312_vm3, %v1323_v60, %v1324_v61  ;;  %v1327_v5 = vsel %vm1312_vm3, %v1324_v61, %v1326_v0  ;;  %725 = vst.msk [vmem:[#allocation2 + $0x159] sm:$0xff] %vm641_vm0, %v636_v10  ;;  %v1050_v11 = vrot.slane %v12697_v9, 1  ;;  %v742_v18 = vld [vmem:[#allocation2 + $0x60] sm:$0xff]  ;;  %v12783_v19 = vld [vmem:[#allocation2 + $0x68] sm:$0xff]  ;;  %v744_v24 = vld [vmem:[#allocation2 + $0x70] sm:$0x3] }
 0x142   : > { %v1328_v12 = vrot.slane %v739_v3, 2  ;;  %v1329_v13 = vrot.slane %v12692_v4, 2  ;;  %v1049_v14 = vsel %vm1031_vm2, %v1047_v7, %v1048_v8  ;;  %2278 = vst.msk [vmem:[#allocation3 + $0x18] sm:$0xff] %vm2273_vm4, %v16106_v1  ;;  %2279 = vst.msk [vmem:[#allocation3 + $0x20] sm:$0xff] %vm2273_vm4, %v16106_v1  ;;  %v1331_v16 = vrot.slane %v12697_v9, 2  ;;  %v8938_v27 = vld [vmem:[%s16082_s4 + $0x10] sm:$0xff] }
 0x143   : > { %1404 = vperm.xlu0 %11768, %v1320_v46   ;;  %2274 = vst.msk [vmem:[#allocation3] sm:$0xff] %vm2273_vm4, %v16106_v1  ;;  %2275 = vst.msk [vmem:[#allocation3 + $0x8] sm:$0xff] %vm2273_vm4, %v16106_v1  ;;  %v1051_v15 = vsel %vm1031_vm2, %v1048_v8, %v1050_v11  ;;  %v1052_v22 = vrot.slane %v742_v18, 1  ;;  %v1053_v23 = vrot.slane %v12783_v19, 1  ;;  %v1055_v26 = vrot.slane %v744_v24, 1  ;;  %v8939_v28 = vld [vmem:[%s16082_s4 + $0x18] sm:$0xff] }
 0x144   : > { %2281 = vst.msk [vmem:[#allocation3 + $0x30] sm:$0xff] %vm2273_vm4, %v16106_v1  ;;  %2282 = vst.msk [vmem:[#allocation3 + $0x38] sm:$0xff] %vm2273_vm4, %v16106_v1  ;;  %v1330_v17 = vsel %vm1312_vm3, %v1328_v12, %v1329_v13  ;;  %v1332_v20 = vsel %vm1312_vm3, %v1329_v13, %v1331_v16  ;;  %v1333_v30 = vrot.slane %v742_v18, 2  ;;  %v1334_v31 = vrot.slane %v12783_v19, 2  ;;  %v9005_v34 = vld [vmem:[%s16082_s4 + $0x28] sm:$0xff]  ;;  %v745_v49 = vld [vmem:[#allocation2 + $0x78] sm:$0xff] }
 0x145   : > { %1408 = vperm.xlu1 %11769, %v1322_v51   ;;  %2284 = vst.msk [vmem:[#allocation3 + $0x48] sm:$0xff] %vm2273_vm4, %v16106_v1  ;;  %2285 = vst.msk [vmem:[#allocation3 + $0x50] sm:$0xff] %vm2273_vm4, %v16106_v1  ;;  %v1054_v32 = vsel %vm1031_vm2, %v1052_v22, %v1053_v23  ;;  %v10970_v33 = vpack.c.bf16 %v8939_v28, %v8938_v27  ;;  %v10978_v35 = vpack.c.bf16 %v9005_v34, %v9004_v29  ;;  %v746_v50 = vld [vmem:[#allocation2 + $0x80] sm:$0xff]  ;;  %v747_v57 = vld [vmem:[#allocation2 + $0x88] sm:$0x3] }
 0x146   : > { %2287 = vst.msk [vmem:[#allocation3 + $0x60] sm:$0xff] %vm2273_vm4, %v16106_v1  ;;  %2288 = vst.msk [vmem:[#allocation3 + $0x68] sm:$0xff] %vm2273_vm4, %v16106_v1  ;;  %v1336_v38 = vrot.slane %v744_v24, 2  ;;  %v1056_v43 = vsel %vm1031_vm2, %v1053_v23, %v1055_v26  ;;  %v1057_v55 = vrot.slane %v745_v49, 1  ;;  %v1058_v56 = vrot.slane %v746_v50, 1 }
 0x147   : > { %807 = vperm.xlu0 %11768, %v736_v47   ;;  %2290 = vst.msk [vmem:[#allocation3 + $0x78] sm:$0xff] %vm2273_vm4, %v16106_v1  ;;  %2291 = vst.msk [vmem:[#allocation3 + $0x80] sm:$0xff] %vm2273_vm4, %v16106_v1  ;;  %10971 = vmatprep.subr.bf16.mxu1 %v10970_v33  ;;  %v1335_v47 = vsel %vm1312_vm3, %v1333_v30, %v1334_v31  ;;  %v1060_v58 = vrot.slane %v747_v57, 1  ;;  %v1338_v59 = vrot.slane %v745_v49, 2  ;;  %v1339_v60 = vrot.slane %v746_v50, 2  ;;  %v754_v30 = vld [vmem:[#allocation2 + $0xc0] sm:$0xff] }
 0x148   : > { %2293 = vst.msk [vmem:[#allocation3 + $0x90] sm:$0xff] %vm2273_vm4, %v16106_v1  ;;  %2294 = vst.msk [vmem:[#allocation3 + $0x98] sm:$0xff] %vm2273_vm4, %v16106_v1  ;;  %10979 = vmatprep.subr.bf16.mxu0 %v10978_v35  ;;  %10973 = vmatpush3.bf16.msra.mxu1 %v10970_v33  ;;  %v1337_v54 = vsel %vm1312_vm3, %v1334_v31, %v1336_v38  ;;  %v1059_v61 = vsel %vm1031_vm2, %v1057_v55, %v1058_v56  ;;  %v1341_v0 = vrot.slane %v747_v57, 2  ;;  %v750_v9 = vld [vmem:[#allocation2 + $0xa0] sm:$0x3]  ;;  %v755_v31 = vld [vmem:[#allocation2 + $0xc8] sm:$0xff] }
 0x149   : > { %812 = vperm.xlu1 %11769, %v737_v48   ;;  %2296 = vst.msk [vmem:[#allocation3 + $0xa8] sm:$0xff] %vm2273_vm4, %v16106_v1  ;;  %2297 = vst.msk [vmem:[#allocation3 + $0xb0] sm:$0xff] %vm2273_vm4, %v16106_v1  ;;  %10981 = vmatpush3.bf16.msra.mxu0 %v10978_v35  ;;  %v1065_v10 = vrot.slane %v750_v9, 1  ;;  %v753_v22 = vld [vmem:[#allocation2 + $0xb8] sm:$0x3]  ;;  %v1072_v33 = vrot.slane %v754_v30, 1 }
 0x14a   : > { %2299 = vst.msk [vmem:[#allocation3 + $0xc0] sm:$0xff] %vm2273_vm4, %v16106_v1  ;;  %2300 = vst.msk [vmem:[#allocation3 + $0xc8] sm:$0xff] %vm2273_vm4, %v16106_v1  ;;  %v2362_v36 = vld [vmem:[#allocation3] sm:$0xff]  ;;  %v2363_v37 = vld [vmem:[#allocation3 + $0x8] sm:$0xff]  ;;  %v1342_v6 = vsel %vm1312_vm3, %v1339_v60, %v1341_v0  ;;  %v1070_v23 = vrot.slane %v753_v22, 1  ;;  %v1351_v28 = vrot.slane %v753_v22, 2 }
 0x14b   : > { %1131 = vperm.xlu0 %11768, %v1044_v62   ;;  %2302 = vst.msk [vmem:[#allocation3 + $0xd8] sm:$0xff] %vm2273_vm4, %v16106_v1  ;;  %2303 = vst.msk [vmem:[#allocation3 + $0xe0] sm:$0xff] %vm2273_vm4, %v16106_v1  ;;  %v2466_v39 = vrot.slane %v2362_v36, 1  ;;  %v2467_v40 = vrot.slane %v2363_v37, 1  ;;  %v3127_v41 = vrot.slane %v2362_v36, 2  ;;  %v3128_v44 = vrot.slane %v2363_v37, 2 }
 0x14c   : > { %2305 = vst.msk [vmem:[#allocation3 + $0xf0] sm:$0xff] %vm2273_vm4, %v16106_v1  ;;  %2306 = vst.msk [vmem:[#allocation3 + $0xf8] sm:$0xff] %vm2273_vm4, %v16106_v1  ;;  %v639_v62 = vld [vmem:[%s12627_s25 + $0xf0] sm:$0xff]  ;;  %v1073_v34 = vrot.slane %v755_v31, 1  ;;  %v1353_v37 = vrot.slane %v754_v30, 2  ;;  %v1354_v38 = vrot.slane %v755_v31, 2 }
 0x14d   : > { %1135 = vperm.xlu1 %11769, %v1046_v63   ;;  %2308 = vst.msk [vmem:[#allocation3 + $0x108] sm:$0xff] %vm2273_vm4, %v16106_v1  ;;  %2309 = vst.msk [vmem:[#allocation3 + $0x110] sm:$0xff] %vm2273_vm4, %v16106_v1  ;;  %v2468_v48 = vsel %vm1031_vm2, %v2466_v39, %v2467_v40  ;;  %v3129_v51 = vsel %vm1312_vm3, %v3127_v41, %v3128_v44  ;;  %v1061_v63 = vsel %vm1031_vm2, %v1058_v56, %v1060_v58  ;;  %v756_v35 = vld [vmem:[#allocation2 + $0xd0] sm:$0x3]  ;;  %v761_v57 = vld [vmem:[#allocation2 + $0xf8] sm:$0xff] }
 0x14e   : > { %2311 = vst.msk [vmem:[#allocation3 + $0x120] sm:$0xff] %vm2273_vm4, %v16106_v1  ;;  %2312 = vst.msk [vmem:[#allocation3 + $0x128] sm:$0xff] %vm2273_vm4, %v16106_v1  ;;  %10039 = vmatprep.mubr.msk.f32.mxu1 %vm2273_vm4, %v2468_v48  ;;  %10143 = vmatprep.mubr.msk.f32.mxu0 %vm2273_vm4, %v3129_v51  ;;  %v1075_v36 = vrot.slane %v756_v35, 1  ;;  %v1074_v39 = vsel %vm1031_vm2, %v1072_v33, %v1073_v34  ;;  %v1356_v41 = vrot.slane %v756_v35, 2  ;;  %v759_v48 = vld [vmem:[#allocation2 + $0xe8] sm:$0x3] }
 0x14f   : > { %1412 = vperm.xlu0 %11768, %v1325_v2   ;;  %2314 = vst.msk [vmem:[#allocation3 + $0x138] sm:$0xff] %vm2273_vm4, %v16106_v1  ;;  %2315 = vst.msk [vmem:[#allocation3 + $0x140] sm:$0xff] %vm2273_vm4, %v16106_v1  ;;  %v640_v2 = vld [vmem:[%s12627_s25 + $0xf8] sm:$0xff]  ;;  %v760_v56 = vld [vmem:[#allocation2 + $0xf0] sm:$0xff]  ;;  %v1364_v0 = vrot.slane %v761_v57, 2 }
 0x150   : > { %2317 = vst.msk [vmem:[#allocation3 + $0x150] sm:$0xff] %vm2273_vm4, %v16106_v1  ;;  %2318 = vst.msk [vmem:[#allocation3 + $0x158] sm:$0xff] %vm2273_vm4, %v16106_v1  ;;  %v12909_v35 = vld [vmem:[#allocation2 + $0x150] sm:$0xff] }
 0x151   : > { %1416 = vperm.xlu1 %11769, %v1327_v5   ;;  %2320 = vst.msk [vmem:[#allocation3 + $0x168] sm:$0xff] %vm2273_vm4, %v16106_v1  ;;  %2321 = vst.msk [vmem:[#allocation3 + $0x170] sm:$0xff] %vm2273_vm4, %v16106_v1  ;;  %v749_v5 = vld [vmem:[#allocation2 + $0x98] sm:$0xff] }
 0x152   : > { %2323 = vst.msk [vmem:[#allocation3 + $0x180] sm:$0xff] %vm2273_vm4, %v16106_v1  ;;  %2324 = vst.msk [vmem:[#allocation3 + $0x188] sm:$0xff] %vm2273_vm4, %v16106_v1  ;;  %v1063_v8 = vrot.slane %v749_v5, 1  ;;  %v1344_v12 = vrot.slane %v749_v5, 2 }
 0x153   : > { %817 = vperm.xlu0 %11768, %v739_v3   ;;  %2326 = vst.msk [vmem:[#allocation3 + $0x198] sm:$0xff] %vm2273_vm4, %v16106_v1  ;;  %2327 = vst.msk [vmem:[#allocation3 + $0x1a0] sm:$0xff] %vm2273_vm4, %v16106_v1  ;;  %v1340_v3 = vsel %vm1312_vm3, %v1338_v59, %v1339_v60  ;;  %v1082_v59 = vrot.slane %v760_v56, 1  ;;  %v1083_v60 = vrot.slane %v761_v57, 1 }
 0x154   : > { %2280 = vst.msk [vmem:[#allocation3 + $0x28] sm:$0x3] %vm2276_vm5, %v16106_v1  ;;  %2277 = vst.msk [vmem:[#allocation3 + $0x10] sm:$0x3] %vm2276_vm5, %v16106_v1 }
 0x155   : > { %822 = vperm.xlu1 %11769, %v12692_v4   ;;  %2283 = vst.msk [vmem:[#allocation3 + $0x40] sm:$0x3] %vm2276_vm5, %v16106_v1  ;;  %2286 = vst.msk [vmem:[#allocation3 + $0x58] sm:$0x3] %vm2276_vm5, %v16106_v1  ;;  %v748_v4 = vld [vmem:[#allocation2 + $0x90] sm:$0xff] }
 0x156   : > { %2289 = vst.msk [vmem:[#allocation3 + $0x70] sm:$0x3] %vm2276_vm5, %v16106_v1  ;;  %2292 = vst.msk [vmem:[#allocation3 + $0x88] sm:$0x3] %vm2276_vm5, %v16106_v1  ;;  %v1062_v7 = vrot.slane %v748_v4, 1  ;;  %v1343_v11 = vrot.slane %v748_v4, 2 }
 0x157   : > { %1139 = vperm.xlu0 %11768, %v1049_v14   ;;  %2295 = vst.msk [vmem:[#allocation3 + $0xa0] sm:$0x3] %vm2276_vm5, %v16106_v1  ;;  %2298 = vst.msk [vmem:[#allocation3 + $0xb8] sm:$0x3] %vm2276_vm5, %v16106_v1  ;;  %v1066_v14 = vsel %vm1031_vm2, %v1063_v8, %v1065_v10  ;;  %v765_v10 = vld [vmem:[#allocation2 + $0x118] sm:$0x3] }
 0x158   : > { %2301 = vst.msk [vmem:[#allocation3 + $0xd0] sm:$0x3] %vm2276_vm5, %v16106_v1  ;;  %2304 = vst.msk [vmem:[#allocation3 + $0xe8] sm:$0x3] %vm2276_vm5, %v16106_v1  ;;  %v1064_v13 = vsel %vm1031_vm2, %v1062_v7, %v1063_v8  ;;  %v1345_v16 = vsel %vm1312_vm3, %v1343_v11, %v1344_v12  ;;  %v764_v7 = vld [vmem:[#allocation2 + $0x110] sm:$0xff] }
 0x159   : > { %1143 = vperm.xlu1 %11769, %v1051_v15   ;;  %2307 = vst.msk [vmem:[#allocation3 + $0x100] sm:$0x3] %vm2276_vm5, %v16106_v1  ;;  %2310 = vst.msk [vmem:[#allocation3 + $0x118] sm:$0x3] %vm2276_vm5, %v16106_v1  ;;  %v1346_v15 = vrot.slane %v750_v9, 2 }
 0x15a   : > { %2313 = vst.msk [vmem:[#allocation3 + $0x130] sm:$0x3] %vm2276_vm5, %v16106_v1  ;;  %2316 = vst.msk [vmem:[#allocation3 + $0x148] sm:$0x3] %vm2276_vm5, %v16106_v1 }
 0x15b   : > { %2319 = vst.msk [vmem:[#allocation3 + $0x160] sm:$0x3] %vm2276_vm5, %v16106_v1  ;;  %2322 = vst.msk [vmem:[#allocation3 + $0x178] sm:$0x3] %vm2276_vm5, %v16106_v1  ;;  %1420 = vperm.xlu0 %11768, %v1330_v17   ;;  %v2364_v42 = vld [vmem:[#allocation3 + $0x10] sm:$0x3] }
 0x15c   : > { %2325 = vst.msk [vmem:[#allocation3 + $0x190] sm:$0x3] %vm2276_vm5, %v16106_v1  ;;  %2328 = vst.msk [vmem:[#allocation3 + $0x1a8] sm:$0x3] %vm2276_vm5, %v16106_v1  ;;  %v2469_v45 = vrot.slane %v2364_v42, 1  ;;  %v3130_v46 = vrot.slane %v2364_v42, 2  ;;  %v1355_v42 = vsel %vm1312_vm3, %v1353_v37, %v1354_v38 }
 0x15d   : > { %726 = vst.msk [vmem:[#allocation2 + $0x169] sm:$0xff] %vm641_vm0, %v637_v21  ;;  %727 = vst.msk [vmem:[#allocation2 + $0x171] sm:$0xff] %vm641_vm0, %v638_v25  ;;  %1424 = vperm.xlu1 %11769, %v1332_v20   ;;  %v751_v17 = vld [vmem:[#allocation2 + $0xa8] sm:$0xff] }
 0x15e   : > { %v2470_v52 = vsel %vm1031_vm2, %v2467_v40, %v2469_v45  ;;  %v3131_v53 = vsel %vm1312_vm3, %v3128_v44, %v3130_v46  ;;  %728 = vst.msk [vmem:[#allocation2 + $0x181] sm:$0xff] %vm641_vm0, %v639_v62  ;;  %729 = vst.msk [vmem:[#allocation2 + $0x189] sm:$0xff] %vm641_vm0, %v640_v2  ;;  %v1067_v20 = vrot.slane %v751_v17, 1  ;;  %v1348_v24 = vrot.slane %v751_v17, 2  ;;  %v758_v44 = vld [vmem:[#allocation2 + $0xe0] sm:$0xff] }
 0x15f   : > { %827 = vperm.xlu0 %11768, %v742_v18   ;;  %10040 = vmatmul.mubr.msk.f32.vlgmr.msra.gmra.mrb[0].mxu1 %vm2273_vm4, %v2470_v52  ;;  %v752_v18 = vld [vmem:[#allocation2 + $0xb0] sm:$0xff]  ;;  %v1076_v40 = vsel %vm1031_vm2, %v1073_v34, %v1075_v36  ;;  %v1357_v45 = vsel %vm1312_vm3, %v1354_v38, %v1356_v41  ;;  %v1359_v51 = vrot.slane %v758_v44, 2  ;;  %v1084_v2 = vsel %vm1031_vm2, %v1082_v59, %v1083_v60  ;;  %v771_v34 = vld [vmem:[#allocation2 + $0x148] sm:$0x3]  ;;  %v12911_v36 = vld [vmem:[#allocation2 + $0x158] sm:$0xff] }
 0x160   : > { %10144 = vmatmul.mubr.msk.f32.vlgmr.msra.gmra.mrb[0].mxu0 %vm2273_vm4, %v3131_v53  ;;  %v1068_v21 = vrot.slane %v752_v18, 1  ;;  %v1349_v25 = vrot.slane %v752_v18, 2  ;;  %v774_v41 = vld [vmem:[#allocation2 + $0x160] sm:$0x3]  ;;  %v12935_v59 = vld [vmem:[#allocation8] ss:$0 sm:$0xff] }
 0x161   : > { %832 = vperm.xlu1 %11769, %v12783_v19   ;;  %v1347_v19 = vsel %vm1312_vm3, %v1344_v12, %v1346_v15  ;;  %v1088_v12 = vrot.slane %v764_v7, 1 }
 0x162   : > { %v1069_v26 = vsel %vm1031_vm2, %v1067_v20, %v1068_v21  ;;  %v1071_v27 = vsel %vm1031_vm2, %v1068_v21, %v1070_v23  ;;  %v1350_v29 = vsel %vm1312_vm3, %v1348_v24, %v1349_v25  ;;  %v1371_v20 = vrot.slane %v765_v10, 2 }
 0x163   : > { %1147 = vperm.xlu0 %11768, %v1054_v32   ;;  %v1352_v32 = vsel %vm1312_vm3, %v1349_v25, %v1351_v28  ;;  %v12900_v28 = vld [vmem:[#allocation2 + $0x138] sm:$0xff] }
 0x165   : > { %1151 = vperm.xlu1 %11769, %v1056_v43   ;;  %v757_v43 = vld [vmem:[#allocation2 + $0xd8] sm:$0xff] }
 0x166   : > { %v1077_v46 = vrot.slane %v757_v43, 1 }
 0x167   : > { %1428 = vperm.xlu0 %11768, %v1335_v47   ;;  %v1078_v47 = vrot.slane %v758_v44, 1 }
 0x169   : > { %1432 = vperm.xlu1 %11769, %v1337_v54   ;;  %v1079_v52 = vsel %vm1031_vm2, %v1077_v46, %v1078_v47  ;;  %v1361_v54 = vrot.slane %v759_v48, 2  ;;  %v12923_v46 = vld [vmem:[#allocation2 + $0x168] sm:$0xff] }
 0x16b   : > { %837 = vperm.xlu0 %11768, %v745_v49   ;;  %v1080_v49 = vrot.slane %v759_v48, 1  ;;  %v1362_v58 = vsel %vm1312_vm3, %v1359_v51, %v1361_v54 }
 0x16d   : > { %842 = vperm.xlu1 %11769, %v746_v50   ;;  %v1358_v50 = vrot.slane %v757_v43, 2  ;;  %v1081_v53 = vsel %vm1031_vm2, %v1078_v47, %v1080_v49  ;;  %v12925_v47 = vld [vmem:[#allocation2 + $0x170] sm:$0xff]  ;;  %v1100_v49 = vrot.slane %v771_v34, 1 }
 0x16f   : > { %1155 = vperm.xlu0 %11768, %v1059_v61   ;;  %v1360_v55 = vsel %vm1312_vm3, %v1358_v50, %v1359_v51  ;;  %v762_v61 = vld [vmem:[#allocation2 + $0x100] sm:$0x3]  ;;  %v1381_v50 = vrot.slane %v771_v34, 2  ;;  %v1102_v51 = vrot.slane %v12909_v35, 1 }
 0x170   : > { %v1085_v62 = vrot.slane %v762_v61, 1  ;;  %v12990_v34 = vld [vmem:[#allocation2 + $0x1a0] sm:$0xff] }
 0x171   : > { %1159 = vperm.xlu1 %11769, %v1061_v63   ;;  %v1363_v63 = vrot.slane %v760_v56, 2 }
 0x173   : > { %1436 = vperm.xlu0 %11768, %v1340_v3   ;;  %v1086_v3 = vsel %vm1031_vm2, %v1083_v60, %v1085_v62  ;;  %v12937_v60 = vld [vmem:[#allocation8 + $0x1] ss:$0 sm:$0xff] }
 0x175   : > { %1440 = vperm.xlu1 %11769, %v1342_v6   ;;  %v763_v6 = vld [vmem:[#allocation2 + $0x108] sm:$0xff] }
 0x176   : > { %v1087_v11 = vrot.slane %v763_v6, 1 }
 0x177   : > { %847 = vperm.xlu0 %11768, %v748_v4   ;;  %v1366_v4 = vrot.slane %v762_v61, 2 }
 0x178   : > { %v1089_v25 = vsel %vm1031_vm2, %v1087_v11, %v1088_v12 }
 0x179   : > { %852 = vperm.xlu1 %11769, %v749_v5   ;;  %v1365_v5 = vsel %vm1312_vm3, %v1363_v63, %v1364_v0  ;;  %v1367_v9 = vsel %vm1312_vm3, %v1364_v0, %v1366_v4  ;;  %v1107_v63 = vrot.slane %v12923_v46, 1  ;;  %v1108_v0 = vrot.slane %v12925_v47, 1 }
 0x17b   : > { %1163 = vperm.xlu0 %11768, %v1064_v13   ;;  %v12885_v13 = vld [vmem:[#allocation2 + $0x120] sm:$0xff] }
 0x17c   : > { %v1092_v21 = vrot.slane %v12885_v13, 1  ;;  %v1373_v22 = vrot.slane %v12885_v13, 2 }
 0x17d   : > { %1167 = vperm.xlu1 %11769, %v1066_v14   ;;  %v12887_v14 = vld [vmem:[#allocation2 + $0x128] sm:$0xff] }
 0x17e   : > { %v1093_v23 = vrot.slane %v12887_v14, 1  ;;  %v1374_v24 = vrot.slane %v12887_v14, 2 }
 0x17f   : > { %1444 = vperm.xlu0 %11768, %v1345_v16  }
 0x180   : > { %v12914_v37 = vsel %vm1031_vm2, %v1092_v21, %v1093_v23 }
 0x181   : > { %1448 = vperm.xlu1 %11769, %v1347_v19   ;;  %v1090_v19 = vrot.slane %v765_v10, 1 }
 0x183   : > { %857 = vperm.xlu0 %11768, %v751_v17   ;;  %v1368_v17 = vrot.slane %v763_v6, 2 }
 0x185   : > { %862 = vperm.xlu1 %11769, %v752_v18   ;;  %v1369_v18 = vrot.slane %v764_v7, 2 }
 0x187   : > { %1171 = vperm.xlu0 %11768, %v1069_v26   ;;  %v768_v26 = vld [vmem:[#allocation2 + $0x130] sm:$0x3]  ;;  %v1372_v33 = vsel %vm1312_vm3, %v1369_v18, %v1371_v20 }
 0x188   : > { %v1095_v38 = vrot.slane %v768_v26, 1 }
 0x189   : > { %1175 = vperm.xlu1 %11769, %v1071_v27  }
 0x18a   : > { %v12940_v61 = vsel %vm1031_vm2, %v1093_v23, %v1095_v38  ;;  %v12992_v38 = vld [vmem:[#allocation8 + $0x3] ss:$0 sm:$0xff] }
 0x18b   : > { %1452 = vperm.xlu0 %11768, %v1350_v29   ;;  %v12902_v29 = vld [vmem:[#allocation2 + $0x140] sm:$0xff] }
 0x18d   : > { %1456 = vperm.xlu1 %11769, %v1352_v32   ;;  %v1370_v32 = vsel %vm1312_vm3, %v1368_v17, %v1369_v18  ;;  %v12967_v18 = vld [vmem:[#allocation8 + $0x2] ss:$0 sm:$0xff] }
 0x18f   : > { %867 = vperm.xlu0 %11768, %v754_v30  }
 0x191   : > { %872 = vperm.xlu1 %11769, %v755_v31   ;;  %v1091_v31 = vsel %vm1031_vm2, %v1088_v12, %v1090_v19 }
 0x193   : > { %1179 = vperm.xlu0 %11768, %v1074_v39   ;;  %v12917_v39 = vsel %vm1312_vm3, %v1373_v22, %v1374_v24 }
 0x195   : > { %1183 = vperm.xlu1 %11769, %v1076_v40   ;;  %v1376_v40 = vrot.slane %v768_v26, 2 }
 0x197   : > { %1460 = vperm.xlu0 %11768, %v1355_v42   ;;  %v1097_v42 = vrot.slane %v12900_v28, 1  ;;  %v12943_v62 = vsel %vm1312_vm3, %v1374_v24, %v1376_v40  ;;  %v780_v24 = vld [vmem:[#allocation2 + $0x190] sm:$0x3]  ;;  %v12995_v40 = vsel %vm1031_vm2, %v1107_v63, %v1108_v0 }
 0x199   : > { %1464 = vperm.xlu1 %11769, %v1357_v45   ;;  %v1379_v45 = vrot.slane %v12902_v29, 2 }
 0x19b   : > { %877 = vperm.xlu0 %11768, %v757_v43   ;;  %v1378_v43 = vrot.slane %v12900_v28, 2  ;;  %v12965_v17 = vsel %vm1312_vm3, %v1379_v45, %v1381_v50 }
 0x19d   : > { %882 = vperm.xlu1 %11769, %v758_v44   ;;  %v1098_v44 = vrot.slane %v12902_v29, 1  ;;  %v12962_v12 = vsel %vm1312_vm3, %v1378_v43, %v1379_v45 }
 0x19f   : > { %1187 = vperm.xlu0 %11768, %v1079_v52   ;;  %v12882_v8 = vpop.permute.xlu0 %787  ;;  %v1103_v52 = vrot.slane %v12911_v36, 1  ;;  %v12956_v10 = vsel %vm1031_vm2, %v1097_v42, %v1098_v44  ;;  %v12959_v11 = vsel %vm1031_vm2, %v1098_v44, %v1100_v49  ;;  %v1679_v49 = vrot.slane %v780_v24, 1 }
 0x1a1   : > { %1191 = vperm.xlu1 %11769, %v1081_v53   ;;  %v777_v53 = vld [vmem:[#allocation2 + $0x178] sm:$0x3]  ;;  %v12970_v20 = vsel %vm1031_vm2, %v1102_v51, %v1103_v52  ;;  %v13014_v51 = vld [vmem:[#allocation8 + $0x4] ss:$0 sm:$0xff] }
 0x1a2   : > { %v1110_v4 = vrot.slane %v777_v53, 1 }
 0x1a3   : > { %1468 = vperm.xlu0 %11768, %v1360_v55   ;;  %v12889_v15 = vpop.permute.xlu1 %1115  ;;  %v12891_v16 = vpop.permute.xlu0 %792  ;;  %v1383_v55 = vrot.slane %v12909_v35, 2 }
 0x1a4   : > { %v1248_v26 = vmul.f32 %v12937_v60, %v12889_v15 }
 0x1a5   : > { %1472 = vperm.xlu1 %11769, %v1362_v58   ;;  %v1386_v58 = vrot.slane %v774_v41, 2 }
 0x1a7   : > { %887 = vperm.xlu0 %11768, %v760_v56   ;;  %v12904_v30 = vpop.permute.xlu0 %1396  ;;  %v1384_v56 = vrot.slane %v12911_v36, 2 }
 0x1a8   : > { %v1529_v42 = vmul.f32 %v12967_v18, %v12904_v30 }
 0x1a9   : > { %892 = vperm.xlu1 %11769, %v761_v57   ;;  %v1105_v57 = vrot.slane %v774_v41, 1  ;;  %v12976_v22 = vsel %vm1312_vm3, %v1383_v55, %v1384_v56  ;;  %v12979_v23 = vsel %vm1312_vm3, %v1384_v56, %v1386_v58  ;;  %v13006_v41 = vld [vmem:[#allocation2 + $0x1a8] sm:$0x3]  ;;  %v1930_v56 = vrot.slane %v12990_v34, 1 }
 0x1ab   : > { %1195 = vperm.xlu0 %11768, %v1084_v2   ;;  %v1388_v2 = vrot.slane %v12923_v46, 2  ;;  %v12973_v21 = vsel %vm1031_vm2, %v1103_v52, %v1105_v57 }
 0x1ad   : > { %1199 = vperm.xlu1 %11769, %v1086_v3   ;;  %v1389_v3 = vrot.slane %v12925_v47, 2 }
 0x1af   : > { %1476 = vperm.xlu0 %11768, %v1365_v5   ;;  %v1391_v5 = vrot.slane %v777_v53, 2  ;;  %v13001_v15 = vsel %vm1312_vm3, %v1388_v2, %v1389_v3  ;;  %v1764_v53 = vrot.slane %v780_v24, 2 }
 0x1b1   : > { %1480 = vperm.xlu1 %11769, %v1367_v9  }
 0x1b3   : > { %897 = vperm.xlu0 %11768, %v763_v6   ;;  %v12949_v6 = vld [vmem:[#allocation2 + $0x180] sm:$0xff] }
 0x1b4   : > { %v12898_v27 = vpop.permute.xlu1 %1119  ;;  %v1761_v44 = vrot.slane %v12949_v6, 2 }
 0x1b5   : > { %902 = vperm.xlu1 %11769, %v764_v7   ;;  %v12951_v7 = vld [vmem:[#allocation2 + $0x188] sm:$0xff]  ;;  %v1249_v50 = vmul.f32 %v12937_v60, %v12898_v27  ;;  %v1932_v27 = vrot.slane %v13006_v41, 1 }
 0x1b6   : > { %v1762_v45 = vrot.slane %v12951_v7, 2 }
 0x1b7   : > { %1203 = vperm.xlu0 %11768, %v1089_v25   ;;  %v951_v25 = vmul.f32 %v12935_v59, %v12882_v8  ;;  %v12998_v8 = vsel %vm1031_vm2, %v1108_v0, %v1110_v4  ;;  %v13030_v0 = vld [vmem:[#allocation8 + $0x5] ss:$0 sm:$0xff] }
 0x1b8   : > { %v12927_v48 = vpop.permute.xlu1 %1400 }
 0x1b9   : > { %1207 = vperm.xlu1 %11769, %v1091_v31   ;;  %v1676_v31 = vrot.slane %v12949_v6, 1  ;;  %v1280_v30 = vadd.f32 %v1248_v26, %v951_v25  ;;  %v1530_v63 = vmul.f32 %v12967_v18, %v12927_v48  ;;  %v13039_v25 = vsel %vm1312_vm3, %v1761_v44, %v1762_v45  ;;  %v13044_v26 = vld [vmem:[#allocation8 + $0x6] ss:$0 sm:$0xff] }
 0x1ba   : > { %v12931_v54 = vpop.permute.xlu0 %797 }
 0x1bb   : > { %1484 = vperm.xlu0 %11768, %v1370_v32   ;;  %v1677_v32 = vrot.slane %v12951_v7, 1  ;;  %v1611_v57 = vmul.f32 %v12992_v38, %v12931_v54  ;;  %v1561_v4 = vadd.f32 %v1529_v42, %v1280_v30  ;;  %v13047_v42 = vsel %vm1312_vm3, %v1762_v45, %v1764_v53  ;;  %v13060_v45 = vld [vmem:[#allocation8 + $0x7] ss:$0 sm:$0xff] }
 0x1bc   : > { %v12953_v9 = vpop.permute.xlu1 %802 }
 0x1bd   : > { %1488 = vperm.xlu1 %11769, %v1372_v33   ;;  %v12988_v33 = vld [vmem:[#allocation2 + $0x198] sm:$0xff]  ;;  %v13023_v58 = vsel %vm1031_vm2, %v1676_v31, %v1677_v32  ;;  %v13036_v24 = vsel %vm1031_vm2, %v1677_v32, %v1679_v49  ;;  %v1612_v48 = vmul.f32 %v12992_v38, %v12953_v9  ;;  %v1643_v32 = vadd.f32 %v1611_v57, %v1561_v4 }
 0x1be   : > { %v1124_v19 = vpop.permute.xlu0 %1123  ;;  %v1929_v55 = vrot.slane %v12988_v33, 1  ;;  %v2014_v2 = vrot.slane %v12988_v33, 2 }
 0x1bf   : > { %907 = vperm.xlu0 %11768, %v12885_v13   ;;  %v13004_v13 = vsel %vm1312_vm3, %v1389_v3, %v1391_v5  ;;  %v16108_v3 = vrot.slane %v12990_v34, 2  ;;  %v1250_v49 = vmul.f32 %v12937_v60, %v1124_v19 }
 0x1c0   : > { %v1128_v43 = vpop.permute.xlu1 %1127  ;;  %v13050_v30 = vsel %vm1031_vm2, %v1929_v55, %v1930_v56 }
 0x1c1   : > { %912 = vperm.xlu1 %11769, %v12887_v14   ;;  %v952_v14 = vmul.f32 %v12935_v59, %v12891_v16  ;;  %v1698_v1 = vmul.f32 %v13014_v51, %v1128_v43  ;;  %v13065_v53 = vsel %vm1312_vm3, %v2014_v2, %v16108_v3 }
 0x1c2   : > { %v1405_v52 = vpop.permute.xlu0 %1404  ;;  %16217 = vst [vmem:[#allocation38_spill] sm:$0xff] %v13065_v53 }
 0x1c3   : > { %1211 = vperm.xlu0 %11768, %v12914_v37   ;;  %v1697_v37 = vmul.f32 %v13014_v51, %v1124_v19  ;;  %v1281_v16 = vadd.f32 %v1249_v50, %v952_v14  ;;  %v1782_v44 = vmul.f32 %v13030_v0, %v1405_v52  ;;  %v13056_v50 = vsel %vm1031_vm2, %v1930_v56, %v1932_v27 }
 0x1c4   : > { %v1409_v5 = vpop.permute.xlu1 %1408  ;;  %16216 = vst [vmem:[#allocation37_spill] sm:$0xff] %v13056_v50  ;;  %v1251_v14 = vmul.f32 %v12937_v60, %v1128_v43  ;;  %v953_v19 = vmul.f32 %v12935_v59, %v12931_v54  ;;  %v954_v27 = vmul.f32 %v12935_v59, %v12953_v9 }
 0x1c5   : > { %1215 = vperm.xlu1 %11769, %v12940_v61   ;;  %v1562_v61 = vadd.f32 %v1530_v63, %v1281_v16  ;;  %v1729_v55 = vadd.f32 %v1697_v37, %v1643_v32  ;;  %v1532_v63 = vmul.f32 %v12967_v18, %v1409_v5  ;;  %v1783_v4 = vmul.f32 %v13030_v0, %v1409_v5 }
 0x1c6   : > { %v808_v31 = vpop.permute.xlu0 %807  ;;  %v1282_v16 = vadd.f32 %v1250_v49, %v953_v19  ;;  %v1283_v37 = vadd.f32 %v1251_v14, %v954_v27 }
 0x1c7   : > { %1492 = vperm.xlu0 %11768, %v12917_v39   ;;  %v1531_v39 = vmul.f32 %v12967_v18, %v1405_v52  ;;  %v1864_v56 = vmul.f32 %v13044_v26, %v808_v31  ;;  %v1644_v43 = vadd.f32 %v1612_v48, %v1562_v61  ;;  %v1814_v3 = vadd.f32 %v1782_v44, %v1729_v55  ;;  %v13080_v48 = vld [vmem:[#allocation8 + $0x8] ss:$0 sm:$0xff] }
 0x1c8   : > { %v813_v57 = vpop.permute.xlu1 %812  ;;  %v1613_v54 = vmul.f32 %v12992_v38, %v808_v31  ;;  %v2017_v61 = vrot.slane %v13006_v41, 2  ;;  %v1564_v19 = vadd.f32 %v1532_v63, %v1283_v37 }
 0x1c9   : > { %1496 = vperm.xlu1 %11769, %v12943_v62   ;;  %v1730_v32 = vadd.f32 %v1698_v1, %v1644_v43  ;;  %v1865_v9 = vmul.f32 %v13044_v26, %v813_v57  ;;  %v1563_v5 = vadd.f32 %v1531_v39, %v1282_v16  ;;  %v955_v62 = vmul.f32 %v12935_v59, %v808_v31 }
 0x1ca   : > { %v1132_v2 = vpop.permute.xlu0 %1131  ;;  %v1896_v53 = vadd.f32 %v1864_v56, %v1814_v3  ;;  %v1614_v49 = vmul.f32 %v12992_v38, %v813_v57  ;;  %v956_v3 = vmul.f32 %v12935_v59, %v813_v57  ;;  %v13101_v57 = vld [vmem:[#allocation11] ss:$0 sm:$0xff] }
 0x1cb   : > { %v1950_v52 = vmul.f32 %v13060_v45, %v1132_v2  ;;  %917 = vperm.xlu0 %11768, %v12900_v28   ;;  %v1815_v55 = vadd.f32 %v1783_v4, %v1730_v32  ;;  %v1252_v50 = vmul.f32 %v12937_v60, %v1132_v2  ;;  %v1645_v14 = vadd.f32 %v1613_v54, %v1563_v5 }
 0x1cc   : > { %v1136_v44 = vpop.permute.xlu1 %1135  ;;  %v1699_v27 = vmul.f32 %v13014_v51, %v1132_v2  ;;  %v1646_v4 = vadd.f32 %v1614_v49, %v1564_v19 }
 0x1cd   : > { %v1951_v28 = vmul.f32 %v13060_v45, %v1136_v44  ;;  %922 = vperm.xlu1 %11769, %v12902_v29   ;;  %v1982_v43 = vadd.f32 %v1950_v52, %v1896_v53  ;;  %v1897_v31 = vadd.f32 %v1865_v9, %v1815_v55  ;;  %v1253_v56 = vmul.f32 %v12937_v60, %v1136_v44  ;;  %v13097_v29 = vld [vmem:[%s16080_s2] ss:$0 sm:$0xff] }
 0x1ce   : > { %v1413_v1 = vpop.permute.xlu0 %1412  ;;  %v1700_v63 = vmul.f32 %v13014_v51, %v1136_v44  ;;  %v1731_v5 = vadd.f32 %v1699_v27, %v1645_v14 }
 0x1cf   : > { %v2035_v39 = vmul.f32 %v13080_v48, %v1413_v1  ;;  %1219 = vperm.xlu0 %11768, %v12956_v10   ;;  %v1533_v2 = vmul.f32 %v12967_v18, %v1413_v1  ;;  %v1784_v53 = vmul.f32 %v13030_v0, %v1413_v1  ;;  %v1284_v10 = vadd.f32 %v1252_v50, %v955_v62 }
 0x1d0   : > { %v1417_v54 = vpop.permute.xlu1 %1416  ;;  %v1983_v52 = vadd.f32 %v1951_v28, %v1897_v31  ;;  %v1285_v50 = vadd.f32 %v1253_v56, %v956_v3  ;;  %v1732_v62 = vadd.f32 %v1700_v63, %v1646_v4 }
 0x1d1   : > { %v2067_v16 = vadd.f32 %v2035_v39, %v1982_v43  ;;  %v1534_v37 = vmul.f32 %v12967_v18, %v1417_v54  ;;  %v2036_v32 = vmul.f32 %v13080_v48, %v1417_v54  ;;  %1223 = vperm.xlu1 %11769, %v12959_v11   ;;  %v1785_v44 = vmul.f32 %v13030_v0, %v1417_v54 }
 0x1d2   : > { %v818_v9 = vpop.permute.xlu0 %817  ;;  %v1565_v1 = vadd.f32 %v1533_v2, %v1284_v10  ;;  %v1816_v43 = vadd.f32 %v1784_v53, %v1731_v5 }
 0x1d3   : > { %v2106_v49 = vmul.f32 %v13097_v29, %v2067_v16  ;;  %v1615_v19 = vmul.f32 %v12992_v38, %v818_v9  ;;  %1500 = vperm.xlu0 %11768, %v12962_v12   ;;  %v2068_v55 = vadd.f32 %v2036_v32, %v1983_v52  ;;  %v1866_v28 = vmul.f32 %v13044_v26, %v818_v9 }
 0x1d4   : > { %v957_v11 = vmul.f32 %v12935_v59, %v818_v9  ;;  %v823_v14 = vpop.permute.xlu1 %822  ;;  %v1566_v27 = vadd.f32 %v1534_v37, %v1285_v50  ;;  %v1817_v56 = vadd.f32 %v1785_v44, %v1732_v62 }
 0x1d5   : > { %v2145_v39 = vadd.f32 %v13101_v57, %v2106_v49  ;;  %v2107_v31 = vmul.f32 %v13097_v29, %v2068_v55  ;;  %v1616_v16 = vmul.f32 %v12992_v38, %v823_v14  ;;  %v1867_v54 = vmul.f32 %v13044_v26, %v823_v14  ;;  %1504 = vperm.xlu1 %11769, %v12965_v17  }
 0x1d6   : > { %v1140_v12 = vpop.permute.xlu0 %1139  ;;  %v1647_v63 = vadd.f32 %v1615_v19, %v1565_v1  ;;  %v1898_v2 = vadd.f32 %v1866_v28, %v1816_v43  ;;  %v958_v37 = vmul.f32 %v12935_v59, %v823_v14 }
 0x1d7   : > { %vm2177_vm6 = vcmp.gt.f32.partialorder %v2145_v39, 0.0  ;;  %v2209_v3 = vmul.f32 0.01, %v2145_v39  ;;  %927 = vperm.xlu0 %11768, %v12909_v35   ;;  %v2146_v4 = vadd.f32 %v13101_v57, %v2107_v31  ;;  %v1254_v53 = vmul.f32 %v12937_v60, %v1140_v12 }
 0x1d8   : > { %v1952_v10 = vmul.f32 %v13060_v45, %v1140_v12  ;;  %v1648_v32 = vadd.f32 %v1616_v16, %v1566_v27  ;;  %v1701_v17 = vmul.f32 %v13014_v51, %v1140_v12  ;;  %v1144_v9 = vpop.permute.xlu1 %1143  ;;  %v1899_v49 = vadd.f32 %v1867_v54, %v1817_v56 }
 0x1d9   : > { %v2241_v52 = vsel %vm2177_vm6, %v2145_v39, %v2209_v3  ;;  %vm2178_vm7 = vcmp.gt.f32.partialorder %v2146_v4, 0.0  ;;  %v2210_v5 = vmul.f32 0.01, %v2146_v4  ;;  %v1255_v35 = vmul.f32 %v12937_v60, %v1144_v9  ;;  %932 = vperm.xlu1 %11769, %v12911_v36  }
 0x1da   : > { %2330 = vst.msk [vmem:[#allocation3 + $0x19] sm:$0xff] %vm2273_vm4, %v2241_v52  ;;  %v1421_v44 = vpop.permute.xlu0 %1420  ;;  %v1702_v19 = vmul.f32 %v13014_v51, %v1144_v9  ;;  %v1953_v50 = vmul.f32 %v13060_v45, %v1144_v9  ;;  %v1286_v1 = vadd.f32 %v1254_v53, %v957_v11  ;;  %v1984_v43 = vadd.f32 %v1952_v10, %v1898_v2 }
 0x1db   : > { %v1535_v62 = vmul.f32 %v12967_v18, %v1421_v44  ;;  %v1786_v55 = vmul.f32 %v13030_v0, %v1421_v44  ;;  %1227 = vperm.xlu0 %11768, %v12970_v20   ;;  %v2242_v28 = vsel %vm2178_vm7, %v2146_v4, %v2210_v5  ;;  %v2037_v39 = vmul.f32 %v13080_v48, %v1421_v44 }
 0x1dc   : > { %2331 = vst.msk [vmem:[#allocation3 + $0x21] sm:$0xff] %vm2273_vm4, %v2242_v28  ;;  %v1733_v14 = vadd.f32 %v1701_v17, %v1647_v63  ;;  %v1287_v36 = vadd.f32 %v1255_v35, %v958_v37  ;;  %v1734_v27 = vadd.f32 %v1702_v19, %v1648_v32  ;;  %v1985_v31 = vadd.f32 %v1953_v50, %v1899_v49  ;;  %v1425_v16 = vpop.permute.xlu1 %1424 }
 0x1dd   : > { %v2069_v54 = vadd.f32 %v2037_v39, %v1984_v43  ;;  %v1536_v12 = vmul.f32 %v12967_v18, %v1425_v16  ;;  %v1787_v3 = vmul.f32 %v13030_v0, %v1425_v16  ;;  %v2038_v56 = vmul.f32 %v13080_v48, %v1425_v16  ;;  %1231 = vperm.xlu1 %11769, %v12973_v21  }
 0x1de   : > { %v828_v20 = vpop.permute.xlu0 %827  ;;  %v1567_v11 = vadd.f32 %v1535_v62, %v1286_v1  ;;  %v1818_v4 = vadd.f32 %v1786_v55, %v1733_v14  ;;  %v16218_v37 = vrot.slane %v12990_v34, 2 }
 0x1df   : > { %v1617_v2 = vmul.f32 %v12992_v38, %v828_v20  ;;  %v1868_v63 = vmul.f32 %v13044_v26, %v828_v20  ;;  %1508 = vperm.xlu0 %11768, %v12976_v22   ;;  %v2108_v53 = vmul.f32 %v13097_v29, %v2069_v54  ;;  %v2070_v10 = vadd.f32 %v2038_v56, %v1985_v31 }
 0x1e0   : > { %v959_v52 = vmul.f32 %v12935_v59, %v828_v20  ;;  %v13147_v21 = vsel %vm1312_vm3, %v16218_v37, %v2017_v61  ;;  %v1568_v32 = vadd.f32 %v1536_v12, %v1287_v36  ;;  %v1819_v17 = vadd.f32 %v1787_v3, %v1734_v27  ;;  %v833_v49 = vpop.permute.xlu1 %832 }
 0x1e1   : > { %v1649_v9 = vadd.f32 %v1617_v2, %v1567_v11  ;;  %v1900_v5 = vadd.f32 %v1868_v63, %v1818_v4  ;;  %v2147_v35 = vadd.f32 %v13101_v57, %v2108_v53  ;;  %v2109_v22 = vmul.f32 %v13097_v29, %v2070_v10  ;;  %1512 = vperm.xlu1 %11769, %v12979_v23   ;;  %v2365_v31 = vld [vmem:[#allocation3 + $0x18] sm:$0xff] }
 0x1e2   : > { %v960_v44 = vmul.f32 %v12935_v59, %v833_v49  ;;  %v1618_v19 = vmul.f32 %v12992_v38, %v833_v49  ;;  %v1148_v41 = vpop.permute.xlu0 %1147  ;;  %v1869_v50 = vmul.f32 %v13044_v26, %v833_v49  ;;  %v2471_v10 = vrot.slane %v2365_v31, 1 }
 0x1e3   : > { %v1256_v61 = vmul.f32 %v12937_v60, %v1148_v41  ;;  %v1703_v62 = vmul.f32 %v13014_v51, %v1148_v41  ;;  %v1954_v55 = vmul.f32 %v13060_v45, %v1148_v41  ;;  %937 = vperm.xlu0 %11768, %v12923_v46   ;;  %vm2179_vm8 = vcmp.gt.f32.partialorder %v2147_v35, 0.0  ;;  %v2366_v4 = vld [vmem:[#allocation3 + $0x20] sm:$0xff] }
 0x1e4   : > { %v2211_v28 = vmul.f32 0.01, %v2147_v35  ;;  %v2148_v1 = vadd.f32 %v13101_v57, %v2109_v22  ;;  %v1650_v43 = vadd.f32 %v1618_v19, %v1568_v32  ;;  %v1901_v39 = vadd.f32 %v1869_v50, %v1819_v17  ;;  %v1152_v27 = vpop.permute.xlu1 %1151 }
 0x1e5   : > { %v1288_v14 = vadd.f32 %v1256_v61, %v959_v52  ;;  %v1735_v36 = vadd.f32 %v1703_v62, %v1649_v9  ;;  %v1986_v23 = vadd.f32 %v1954_v55, %v1900_v5  ;;  %v1257_v12 = vmul.f32 %v12937_v60, %v1152_v27  ;;  %942 = vperm.xlu1 %11769, %v12925_v47   ;;  %v2367_v47 = vld [vmem:[#allocation3 + $0x28] sm:$0x3] }
 0x1e6   : > { %v2243_v16 = vsel %vm2179_vm8, %v2147_v35, %v2211_v28  ;;  %vm2180_vm9 = vcmp.gt.f32.partialorder %v2148_v1, 0.0  ;;  %v2212_v54 = vmul.f32 0.01, %v2148_v1  ;;  %v1429_v3 = vpop.permute.xlu0 %1428  ;;  %v1704_v46 = vmul.f32 %v13014_v51, %v1152_v27 }
 0x1e7   : > { %2332 = vst.msk [vmem:[#allocation3 + $0x31] sm:$0xff] %vm2273_vm4, %v2243_v16  ;;  %v1955_v56 = vmul.f32 %v13060_v45, %v1152_v27  ;;  %v1537_v20 = vmul.f32 %v12967_v18, %v1429_v3  ;;  %v1788_v11 = vmul.f32 %v13030_v0, %v1429_v3  ;;  %1235 = vperm.xlu0 %11768, %v12995_v40   ;;  %v2472_v49 = vrot.slane %v2366_v4, 1 }
 0x1e8   : > { %v2244_v2 = vsel %vm2180_vm9, %v2148_v1, %v2212_v54  ;;  %v1289_v63 = vadd.f32 %v1257_v12, %v960_v44  ;;  %v2039_v53 = vmul.f32 %v13080_v48, %v1429_v3  ;;  %v1736_v52 = vadd.f32 %v1704_v46, %v1650_v43  ;;  %v1433_v9 = vpop.permute.xlu1 %1432 }
 0x1e9   : > { %2333 = vst.msk [vmem:[#allocation3 + $0x39] sm:$0xff] %vm2273_vm4, %v2244_v2  ;;  %v1987_v37 = vadd.f32 %v1955_v56, %v1901_v39  ;;  %v1569_v32 = vadd.f32 %v1537_v20, %v1288_v14  ;;  %v1820_v17 = vadd.f32 %v1788_v11, %v1735_v36  ;;  %v3132_v35 = vrot.slane %v2365_v31, 2  ;;  %1239 = vperm.xlu1 %11769, %v12998_v8  }
 0x1ea   : > { %v2071_v5 = vadd.f32 %v2039_v53, %v1986_v23  ;;  %v3133_v22 = vrot.slane %v2366_v4, 2  ;;  %v838_v40 = vpop.permute.xlu0 %837  ;;  %v1538_v44 = vmul.f32 %v12967_v18, %v1433_v9  ;;  %v1789_v19 = vmul.f32 %v13030_v0, %v1433_v9 }
 0x1eb   : > { %v2040_v41 = vmul.f32 %v13080_v48, %v1433_v9  ;;  %v2474_v50 = vrot.slane %v2367_v47, 1  ;;  %1516 = vperm.xlu0 %11768, %v13001_v15   ;;  %v13177_v62 = vsel %vm1031_vm2, %v2471_v10, %v2472_v49  ;;  %v3135_v28 = vrot.slane %v2367_v47, 2 }
 0x1ec   : > { %v2110_v61 = vmul.f32 %v13097_v29, %v2071_v5  ;;  %v13180_v55 = vsel %vm1312_vm3, %v3132_v35, %v3133_v22  ;;  %10042 = vmatprep.mubr.msk.f32.mxu1 %vm2273_vm4, %v13177_v62  ;;  %v1570_v8 = vadd.f32 %v1538_v44, %v1289_v63  ;;  %v1821_v1 = vadd.f32 %v1789_v19, %v1736_v52  ;;  %v843_v39 = vpop.permute.xlu1 %842 }
 0x1ed   : > { %16219 = vst [vmem:[#allocation39_spill] sm:$0xff] %v13180_v55  ;;  %10146 = vmatprep.mubr.msk.f32.mxu0 %vm2273_vm4, %v13180_v55  ;;  %v2072_v43 = vadd.f32 %v2040_v41, %v1987_v37  ;;  %v13188_v14 = vsel %vm1031_vm2, %v2472_v49, %v2474_v50  ;;  %v13191_v36 = vsel %vm1312_vm3, %v3133_v22, %v3135_v28 }
 0x1ee   : > { %v2149_v15 = vadd.f32 %v13101_v57, %v2110_v61  ;;  %16220 = vst [vmem:[#allocation40_spill] sm:$0xff] %v13191_v36  ;;  %v961_v23 = vmul.f32 %v12935_v59, %v838_v40  ;;  %1520 = vperm.xlu1 %11769, %v13004_v13   ;;  %v1156_v27 = vpop.permute.xlu0 %1155  ;;  %v13195_v31 = vld [vmem:[#allocation3 + $0x30] sm:$0xff]  ;;  %10043 = vmatmul.mubr.msk.f32.gmra.mrb[2].mxu1 %vm2273_vm4, %v13188_v14 }
 0x1ef   : > { %v2111_v16 = vmul.f32 %v13097_v29, %v2072_v43  ;;  %10147 = vmatmul.mubr.msk.f32.gmra.mrb[2].mxu0 %vm2273_vm4, %v13191_v36  ;;  %v1619_v54 = vmul.f32 %v12992_v38, %v838_v40  ;;  %v1870_v12 = vmul.f32 %v13044_v26, %v838_v40  ;;  %v2476_v3 = vrot.slane %v13195_v31, 1  ;;  %1597 = vperm.xlu0 %11768, %v12949_v6  }
 0x1f0   : > { %vm2181_vm10 = vcmp.gt.f32.partialorder %v2149_v15, 0.0  ;;  %v2213_v46 = vmul.f32 0.01, %v2149_v15  ;;  %v962_v13 = vmul.f32 %v12935_v59, %v843_v39  ;;  %v1620_v56 = vmul.f32 %v12992_v38, %v843_v39  ;;  %v1160_v63 = vpop.permute.xlu1 %1159  ;;  %v2369_v22 = vld [vmem:[#allocation3 + $0x38] sm:$0xff] }
 0x1f1   : > { %v2150_v20 = vadd.f32 %v13101_v57, %v2111_v16  ;;  %v1651_v11 = vadd.f32 %v1619_v54, %v1569_v32  ;;  %v1902_v4 = vadd.f32 %v1870_v12, %v1820_v17  ;;  %v1871_v2 = vmul.f32 %v13044_v26, %v843_v39 }
 0x1f2   : > { %v2245_v53 = vsel %vm2181_vm10, %v2149_v15, %v2213_v46  ;;  %v1652_v10 = vadd.f32 %v1620_v56, %v1570_v8  ;;  %v1258_v47 = vmul.f32 %v12937_v60, %v1156_v27  ;;  %v1705_v52 = vmul.f32 %v13014_v51, %v1156_v27  ;;  %1602 = vperm.xlu1 %11769, %v12951_v7   ;;  %v1437_v37 = vpop.permute.xlu0 %1436 }
 0x1f3   : > { %2334 = vst.msk [vmem:[#allocation3 + $0x49] sm:$0xff] %vm2273_vm4, %v2245_v53  ;;  %vm2182_vm11 = vcmp.gt.f32.partialorder %v2150_v20, 0.0  ;;  %v2214_v6 = vmul.f32 0.01, %v2150_v20  ;;  %v1903_v9 = vadd.f32 %v1871_v2, %v1821_v1  ;;  %v1956_v32 = vmul.f32 %v13060_v45, %v1156_v27  ;;  %1684 = vperm.xlu0 %11768, %v13023_v58   ;;  %v2370_v1 = vld [vmem:[#allocation3 + $0x40] sm:$0x3] }
 0x1f4   : > { %v1290_v17 = vadd.f32 %v1258_v47, %v961_v23  ;;  %v1737_v5 = vadd.f32 %v1705_v52, %v1651_v11  ;;  %v1259_v49 = vmul.f32 %v12937_v60, %v1160_v63  ;;  %v1706_v35 = vmul.f32 %v13014_v51, %v1160_v63  ;;  %v1441_v41 = vpop.permute.xlu1 %1440 }
 0x1f5   : > { %v2246_v40 = vsel %vm2182_vm11, %v2150_v20, %v2214_v6  ;;  %v1988_v44 = vadd.f32 %v1956_v32, %v1902_v4  ;;  %v1957_v7 = vmul.f32 %v13060_v45, %v1160_v63  ;;  %v1539_v19 = vmul.f32 %v12967_v18, %v1437_v37 }
 0x1f6   : > { %2335 = vst.msk [vmem:[#allocation3 + $0x51] sm:$0xff] %vm2273_vm4, %v2246_v40  ;;  %v1291_v50 = vadd.f32 %v1259_v49, %v962_v13  ;;  %v1738_v61 = vadd.f32 %v1706_v35, %v1652_v10  ;;  %v1790_v28 = vmul.f32 %v13030_v0, %v1437_v37  ;;  %v2041_v8 = vmul.f32 %v13080_v48, %v1437_v37  ;;  %v848_v58 = vpop.permute.xlu0 %847 }
 0x1f7   : > { %1688 = vperm.xlu1 %11769, %v13036_v24   ;;  %v1989_v43 = vadd.f32 %v1957_v7, %v1903_v9  ;;  %v1571_v39 = vadd.f32 %v1539_v19, %v1290_v17  ;;  %v2477_v15 = vrot.slane %v2369_v22, 1  ;;  %v3137_v23 = vrot.slane %v13195_v31, 2  ;;  %1769 = vperm.xlu0 %11768, %v13039_v25  }
 0x1f8   : > { %v1822_v27 = vadd.f32 %v1790_v28, %v1737_v5  ;;  %v2073_v16 = vadd.f32 %v2041_v8, %v1988_v44  ;;  %v3138_v54 = vrot.slane %v2369_v22, 2  ;;  %v1540_v12 = vmul.f32 %v12967_v18, %v1441_v41  ;;  %v853_v20 = vpop.permute.xlu1 %852 }
 0x1f9   : > { %v13228_v46 = vsel %vm1031_vm2, %v2476_v3, %v2477_v15  ;;  %v1791_v13 = vmul.f32 %v13030_v0, %v1441_v41  ;;  %v2042_v24 = vmul.f32 %v13080_v48, %v1441_v41  ;;  %v2479_v56 = vrot.slane %v2370_v1, 1 }
 0x1fa   : > { %v2112_v11 = vmul.f32 %v13097_v29, %v2073_v16  ;;  %10045 = vmatprep.mubr.msk.f32.mxu1 %vm2273_vm4, %v13228_v46  ;;  %v13236_v31 = vsel %vm1312_vm3, %v3137_v23, %v3138_v54  ;;  %v1572_v4 = vadd.f32 %v1540_v12, %v1291_v50  ;;  %v3140_v2 = vrot.slane %v2370_v1, 2  ;;  %v1164_v25 = vpop.permute.xlu0 %1163 }
 0x1fb   : > { %16221 = vst [vmem:[#allocation41_spill] sm:$0xff] %v13236_v31  ;;  %1773 = vperm.xlu1 %11769, %v13047_v42   ;;  %10149 = vmatprep.mubr.msk.f32.mxu0 %vm2273_vm4, %v13236_v31  ;;  %v1823_v3 = vadd.f32 %v1791_v13, %v1738_v61  ;;  %v2074_v63 = vadd.f32 %v2042_v24, %v1989_v43 }
 0x1fc   : > { %v13242_v53 = vsel %vm1031_vm2, %v2477_v15, %v2479_v56  ;;  %v963_v10 = vmul.f32 %v12935_v59, %v848_v58  ;;  %v2151_v47 = vadd.f32 %v13101_v57, %v2112_v11  ;;  %v13249_v52 = vsel %vm1312_vm3, %v3138_v54, %v3140_v2  ;;  %v1168_v5 = vpop.permute.xlu1 %1167  ;;  %1850 = vperm.xlu0 %11768, %v12988_v33  }
 0x1fd   : > { %10046 = vmatmul.mubr.msk.f32.gmra.mrb[4].mxu1 %vm2273_vm4, %v13242_v53  ;;  %16222 = vst [vmem:[#allocation42_spill] sm:$0xff] %v13249_v52  ;;  %v1621_v42 = vmul.f32 %v12992_v38, %v848_v58  ;;  %v1872_v37 = vmul.f32 %v13044_v26, %v848_v58  ;;  %v2113_v6 = vmul.f32 %v13097_v29, %v2074_v63  ;;  %v2371_v58 = vld [vmem:[#allocation3 + $0x48] sm:$0xff]  ;;  %v2372_v43 = vld [vmem:[#allocation3 + $0x50] sm:$0xff] }
 0x1fe   : > { %10150 = vmatmul.mubr.msk.f32.gmra.mrb[4].mxu0 %vm2273_vm4, %v13249_v52  ;;  %v964_v9 = vmul.f32 %v12935_v59, %v853_v20  ;;  %v1622_v32 = vmul.f32 %v12992_v38, %v853_v20  ;;  %v1873_v17 = vmul.f32 %v13044_v26, %v853_v20  ;;  %vm2183_vm12 = vcmp.gt.f32.partialorder %v2151_v47, 0.0  ;;  %v1445_v40 = vpop.permute.xlu0 %1444  ;;  %v16223_v20 = vld [vmem:[#allocation37_spill] sm:$0xff] }
 0x1ff   : > { %v2215_v49 = vmul.f32 0.01, %v2151_v47  ;;  %v1653_v35 = vadd.f32 %v1621_v42, %v1571_v39  ;;  %v1904_v22 = vadd.f32 %v1872_v37, %v1822_v27  ;;  %1855 = vperm.xlu1 %11769, %v12990_v34   ;;  %v2152_v44 = vadd.f32 %v13101_v57, %v2113_v6 }
 0x200   : > { %v1654_v7 = vadd.f32 %v1622_v32, %v1572_v4  ;;  %v1905_v19 = vadd.f32 %v1873_v17, %v1823_v3  ;;  %v1260_v41 = vmul.f32 %v12937_v60, %v1164_v25  ;;  %v1707_v61 = vmul.f32 %v13014_v51, %v1164_v25  ;;  %v1449_v39 = vpop.permute.xlu1 %1448  ;;  %1937 = vperm.xlu0 %11768, %v13050_v30   ;;  %v2373_v3 = vld [vmem:[#allocation3 + $0x58] sm:$0x3]  ;;  %v16224_v17 = vld [vmem:[#allocation38_spill] sm:$0xff] }
 0x201   : > { %v2247_v50 = vsel %vm2183_vm12, %v2151_v47, %v2215_v49  ;;  %v1958_v28 = vmul.f32 %v13060_v45, %v1164_v25  ;;  %v1261_v8 = vmul.f32 %v12937_v60, %v1168_v5  ;;  %vm2184_vm13 = vcmp.gt.f32.partialorder %v2152_v44, 0.0 }
 0x202   : > { %2336 = vst.msk [vmem:[#allocation3 + $0x61] sm:$0xff] %vm2273_vm4, %v2247_v50  ;;  %v2216_v33 = vmul.f32 0.01, %v2152_v44  ;;  %v1292_v1 = vadd.f32 %v1260_v41, %v963_v10  ;;  %v1708_v34 = vmul.f32 %v13014_v51, %v1168_v5  ;;  %v1739_v15 = vadd.f32 %v1707_v61, %v1653_v35  ;;  %v858_v54 = vpop.permute.xlu0 %857 }
 0x203   : > { %v1990_v23 = vadd.f32 %v1958_v28, %v1904_v22  ;;  %v1293_v27 = vadd.f32 %v1261_v8, %v964_v9  ;;  %v1959_v16 = vmul.f32 %v13060_v45, %v1168_v5  ;;  %v1541_v24 = vmul.f32 %v12967_v18, %v1445_v40  ;;  %1941 = vperm.xlu1 %11769, %v16223_v20  }
 0x204   : > { %v2248_v12 = vsel %vm2184_vm13, %v2152_v44, %v2216_v33  ;;  %v1740_v13 = vadd.f32 %v1708_v34, %v1654_v7  ;;  %v1792_v56 = vmul.f32 %v13030_v0, %v1445_v40  ;;  %v2043_v4 = vmul.f32 %v13080_v48, %v1445_v40  ;;  %v863_v42 = vpop.permute.xlu1 %862  ;;  %2022 = vperm.xlu0 %11768, %v16224_v17  }
 0x205   : > { %2337 = vst.msk [vmem:[#allocation3 + $0x69] sm:$0xff] %vm2273_vm4, %v2248_v12  ;;  %v1991_v11 = vadd.f32 %v1959_v16, %v1905_v19  ;;  %v2481_v2 = vrot.slane %v2371_v58, 1  ;;  %v2482_v25 = vrot.slane %v2372_v43, 1  ;;  %v1573_v63 = vadd.f32 %v1541_v24, %v1292_v1 }
 0x206   : > { %v1824_v10 = vadd.f32 %v1792_v56, %v1739_v15  ;;  %v3142_v30 = vrot.slane %v2371_v58, 2  ;;  %v3143_v47 = vrot.slane %v2372_v43, 2  ;;  %v2075_v37 = vadd.f32 %v2043_v4, %v1990_v23  ;;  %v1172_v5 = vpop.permute.xlu0 %1171 }
 0x207   : > { %v13276_v6 = vsel %vm1031_vm2, %v2481_v2, %v2482_v25  ;;  %v1542_v9 = vmul.f32 %v12967_v18, %v1449_v39  ;;  %v1793_v32 = vmul.f32 %v13030_v0, %v1449_v39  ;;  %v2044_v35 = vmul.f32 %v13080_v48, %v1449_v39  ;;  %2026 = vperm.xlu1 %11769, %v13147_v21  }
 0x208   : > { %10048 = vmatprep.mubr.msk.f32.mxu1 %vm2273_vm4, %v13276_v6  ;;  %v13284_v49 = vsel %vm1312_vm3, %v3142_v30, %v3143_v47  ;;  %v2484_v22 = vrot.slane %v2373_v3, 1  ;;  %v3145_v40 = vrot.slane %v2373_v3, 2  ;;  %v2114_v44 = vmul.f32 %v13097_v29, %v2075_v37  ;;  %v1176_v33 = vpop.permute.xlu1 %1175 }
 0x209   : > { %16225 = vst [vmem:[#allocation37_spill] sm:$0xff] %v13284_v49  ;;  %10152 = vmatprep.mubr.msk.f32.mxu0 %vm2273_vm4, %v13284_v49  ;;  %v1574_v7 = vadd.f32 %v1542_v9, %v1293_v27  ;;  %v1825_v19 = vadd.f32 %v1793_v32, %v1740_v13  ;;  %v965_v41 = vmul.f32 %v12935_v59, %v858_v54  ;;  %v13292_v50 = vld [vmem:[#allocation3 + $0x60] sm:$0xff] }
 0x20a   : > { %v2076_v61 = vadd.f32 %v2044_v35, %v1991_v11  ;;  %v13295_v28 = vsel %vm1031_vm2, %v2482_v25, %v2484_v22  ;;  %v13298_v8 = vsel %vm1312_vm3, %v3143_v47, %v3145_v40  ;;  %v1623_v21 = vmul.f32 %v12992_v38, %v858_v54  ;;  %v1453_v43 = vpop.permute.xlu0 %1452 }
 0x20b   : > { %16226 = vst [vmem:[#allocation38_spill] sm:$0xff] %v13298_v8  ;;  %v2153_v1 = vadd.f32 %v13101_v57, %v2114_v44  ;;  %10049 = vmatmul.mubr.msk.f32.gmra.mrb[6].mxu1 %vm2273_vm4, %v13295_v28  ;;  %10153 = vmatmul.mubr.msk.f32.gmra.mrb[6].mxu0 %vm2273_vm4, %v13298_v8  ;;  %v1874_v34 = vmul.f32 %v13044_v26, %v858_v54  ;;  %v2486_v39 = vrot.slane %v13292_v50, 1 }
 0x20c   : > { %v966_v58 = vmul.f32 %v12935_v59, %v863_v42  ;;  %v2115_v15 = vmul.f32 %v13097_v29, %v2076_v61  ;;  %v1655_v23 = vadd.f32 %v1623_v21, %v1573_v63  ;;  %v1624_v27 = vmul.f32 %v12992_v38, %v863_v42  ;;  %v1457_v4 = vpop.permute.xlu1 %1456  ;;  %v2375_v37 = vld [vmem:[#allocation3 + $0x68] sm:$0xff]  ;;  %v2376_v44 = vld [vmem:[#allocation3 + $0x70] sm:$0x3] }
 0x20d   : > { %v1875_v16 = vmul.f32 %v13044_v26, %v863_v42  ;;  %vm2185_vm14 = vcmp.gt.f32.partialorder %v2153_v1, 0.0  ;;  %v2217_v12 = vmul.f32 0.01, %v2153_v1  ;;  %v1906_v13 = vadd.f32 %v1874_v34, %v1824_v10 }
 0x20e   : > { %v1262_v24 = vmul.f32 %v12937_v60, %v1172_v5  ;;  %v2154_v56 = vadd.f32 %v13101_v57, %v2115_v15  ;;  %v1656_v54 = vadd.f32 %v1624_v27, %v1574_v7  ;;  %v1709_v11 = vmul.f32 %v13014_v51, %v1172_v5  ;;  %v868_v30 = vpop.permute.xlu0 %867 }
 0x20f   : > { %v1907_v20 = vadd.f32 %v1875_v16, %v1825_v19  ;;  %v2249_v2 = vsel %vm2185_vm14, %v2153_v1, %v2217_v12  ;;  %v1960_v3 = vmul.f32 %v13060_v45, %v1172_v5  ;;  %v1263_v63 = vmul.f32 %v12937_v60, %v1176_v33 }
 0x210   : > { %v1294_v25 = vadd.f32 %v1262_v24, %v965_v41  ;;  %2338 = vst.msk [vmem:[#allocation3 + $0x79] sm:$0xff] %vm2273_vm4, %v2249_v2  ;;  %vm2186_vm15 = vcmp.gt.f32.partialorder %v2154_v56, 0.0  ;;  %v2218_v10 = vmul.f32 0.01, %v2154_v56  ;;  %v1741_v47 = vadd.f32 %v1709_v11, %v1655_v23  ;;  %v873_v7 = vpop.permute.xlu1 %872 }
 0x211   : > { %v1710_v42 = vmul.f32 %v13014_v51, %v1176_v33  ;;  %v1992_v9 = vadd.f32 %v1960_v3, %v1906_v13  ;;  %v1295_v32 = vadd.f32 %v1263_v63, %v966_v58  ;;  %v1961_v17 = vmul.f32 %v13060_v45, %v1176_v33 }
 0x212   : > { %v1543_v35 = vmul.f32 %v12967_v18, %v1453_v43  ;;  %v2250_v22 = vsel %vm2186_vm15, %v2154_v56, %v2218_v10  ;;  %v1794_v5 = vmul.f32 %v13030_v0, %v1453_v43  ;;  %v2045_v60 = vmul.f32 %v13080_v48, %v1453_v43  ;;  %v1180_v1 = vpop.permute.xlu0 %1179 }
 0x213   : > { %v1742_v40 = vadd.f32 %v1710_v42, %v1656_v54  ;;  %2339 = vst.msk [vmem:[#allocation3 + $0x81] sm:$0xff] %vm2273_vm4, %v2250_v22  ;;  %v1993_v19 = vadd.f32 %v1961_v17, %v1907_v20  ;;  %v2487_v61 = vrot.slane %v2375_v37, 1  ;;  %v3147_v21 = vrot.slane %v13292_v50, 2 }
 0x214   : > { %v1575_v41 = vadd.f32 %v1543_v35, %v1294_v25  ;;  %v1826_v34 = vadd.f32 %v1794_v5, %v1741_v47  ;;  %v2077_v33 = vadd.f32 %v2045_v60, %v1992_v9  ;;  %v3148_v58 = vrot.slane %v2375_v37, 2  ;;  %v1184_v56 = vpop.permute.xlu1 %1183 }
 0x215   : > { %v1544_v15 = vmul.f32 %v12967_v18, %v1457_v4  ;;  %v13327_v23 = vsel %vm1031_vm2, %v2486_v39, %v2487_v61  ;;  %v1795_v43 = vmul.f32 %v13030_v0, %v1457_v4  ;;  %v2046_v27 = vmul.f32 %v13080_v48, %v1457_v4 }
 0x216   : > { %v2489_v16 = vrot.slane %v2376_v44, 1  ;;  %v2116_v12 = vmul.f32 %v13097_v29, %v2077_v33  ;;  %10051 = vmatprep.mubr.msk.f32.mxu1 %vm2273_vm4, %v13327_v23  ;;  %v13335_v50 = vsel %vm1312_vm3, %v3147_v21, %v3148_v58  ;;  %v3150_v24 = vrot.slane %v2376_v44, 2  ;;  %v1461_v11 = vpop.permute.xlu0 %1460 }
 0x217   : > { %16227 = vst [vmem:[#allocation43_spill] sm:$0xff] %v13335_v50  ;;  %v1576_v13 = vadd.f32 %v1544_v15, %v1295_v32  ;;  %10155 = vmatprep.mubr.msk.f32.mxu0 %vm2273_vm4, %v13335_v50  ;;  %v1827_v18 = vadd.f32 %v1795_v43, %v1742_v40  ;;  %v2078_v39 = vadd.f32 %v2046_v27, %v1993_v19  ;;  %v13358_v40 = vld [vmem:[#allocation8 + $0x1] ss:$0 sm:$0xff]  ;;  %v2377_v21 = vld [vmem:[#allocation3 + $0x78] sm:$0xff] }
 0x218   : > { %v13340_v54 = vsel %vm1031_vm2, %v2487_v61, %v2489_v16  ;;  %v967_v20 = vmul.f32 %v12935_v59, %v868_v30  ;;  %v2155_v4 = vadd.f32 %v13101_v57, %v2116_v12  ;;  %v13347_v2 = vsel %vm1312_vm3, %v3148_v58, %v3150_v24  ;;  %v1465_v17 = vpop.permute.xlu1 %1464 }
 0x219   : > { %10052 = vmatmul.mubr.msk.f32.gmra.mrb[8].mxu1 %vm2273_vm4, %v13340_v54  ;;  %16228 = vst [vmem:[#allocation44_spill] sm:$0xff] %v13347_v2  ;;  %v1625_v25 = vmul.f32 %v12992_v38, %v868_v30  ;;  %v1876_v3 = vmul.f32 %v13044_v26, %v868_v30  ;;  %v2117_v63 = vmul.f32 %v13097_v29, %v2078_v39 }
 0x21a   : > { %10156 = vmatmul.mubr.msk.f32.gmra.mrb[8].mxu0 %vm2273_vm4, %v13347_v2  ;;  %v968_v10 = vmul.f32 %v12935_v59, %v873_v7  ;;  %v1626_v47 = vmul.f32 %v12992_v38, %v873_v7  ;;  %v1877_v42 = vmul.f32 %v13044_v26, %v873_v7  ;;  %vm2187_vm0 = vcmp.gt.f32.partialorder %v2155_v4, 0.0  ;;  %v878_v60 = vpop.permute.xlu0 %877 }
 0x21b   : > { %v2219_v37 = vmul.f32 0.01, %v2155_v4  ;;  %v1657_v9 = vadd.f32 %v1625_v25, %v1575_v41  ;;  %v1908_v32 = vadd.f32 %v1876_v3, %v1826_v34  ;;  %v2156_v35 = vadd.f32 %v13101_v57, %v2117_v63  ;;  %v2378_v34 = vld [vmem:[#allocation3 + $0x80] sm:$0xff]  ;;  %v2379_v25 = vld [vmem:[#allocation3 + $0x88] sm:$0x3] }
 0x21c   : > { %v1658_v22 = vadd.f32 %v1626_v47, %v1576_v13  ;;  %v1909_v30 = vadd.f32 %v1877_v42, %v1827_v18  ;;  %v1264_v5 = vmul.f32 %v13358_v40, %v1180_v1  ;;  %v1711_v59 = vmul.f32 %v13014_v51, %v1180_v1  ;;  %v883_v27 = vpop.permute.xlu1 %882 }
 0x21d   : > { %v2251_v44 = vsel %vm2187_vm0, %v2155_v4, %v2219_v37  ;;  %v1962_v38 = vmul.f32 %v13060_v45, %v1180_v1  ;;  %v1265_v7 = vmul.f32 %v13358_v40, %v1184_v56  ;;  %vm2188_vm1 = vcmp.gt.f32.partialorder %v2156_v35, 0.0  ;;  %v13367_v1 = vld [vmem:[#allocation8 + $0x2] ss:$0 sm:$0xff] }
 0x21e   : > { %2340 = vst.msk [vmem:[#allocation3 + $0x91] sm:$0xff] %vm2273_vm4, %v2251_v44  ;;  %v2220_v19 = vmul.f32 0.01, %v2156_v35  ;;  %v1296_v41 = vadd.f32 %v1264_v5, %v967_v20  ;;  %v1712_v61 = vmul.f32 %v13014_v51, %v1184_v56  ;;  %v1743_v33 = vadd.f32 %v1711_v59, %v1657_v9  ;;  %v1188_v18 = vpop.permute.xlu0 %1187 }
 0x21f   : > { %v1994_v58 = vadd.f32 %v1962_v38, %v1908_v32  ;;  %v1297_v15 = vadd.f32 %v1265_v7, %v968_v10  ;;  %v1963_v43 = vmul.f32 %v13060_v45, %v1184_v56  ;;  %v1545_v13 = vmul.f32 %v13367_v1, %v1461_v11 }
 0x220   : > { %v2252_v16 = vsel %vm2188_vm1, %v2156_v35, %v2220_v19  ;;  %v1744_v12 = vadd.f32 %v1712_v61, %v1658_v22  ;;  %v1796_v24 = vmul.f32 %v13030_v0, %v1461_v11  ;;  %v2047_v39 = vmul.f32 %v13080_v48, %v1461_v11  ;;  %v1192_v9 = vpop.permute.xlu1 %1191 }
 0x221   : > { %2341 = vst.msk [vmem:[#allocation3 + $0x99] sm:$0xff] %vm2273_vm4, %v2252_v16  ;;  %v1995_v51 = vadd.f32 %v1963_v43, %v1909_v30  ;;  %v2491_v20 = vrot.slane %v2377_v21, 1  ;;  %v2492_v4 = vrot.slane %v2378_v34, 1  ;;  %v1577_v3 = vadd.f32 %v1545_v13, %v1296_v41  ;;  %v13411_v13 = vld [vmem:[#allocation8 + $0x6] ss:$0 sm:$0xff] }
 0x222   : > { %v1828_v45 = vadd.f32 %v1796_v24, %v1743_v33  ;;  %v3152_v56 = vrot.slane %v2377_v21, 2  ;;  %v3153_v63 = vrot.slane %v2378_v34, 2  ;;  %v2079_v10 = vadd.f32 %v2047_v39, %v1994_v58  ;;  %v1469_v30 = vpop.permute.xlu0 %1468 }
 0x223   : > { %v13374_v47 = vsel %vm1031_vm2, %v2491_v20, %v2492_v4  ;;  %v1546_v42 = vmul.f32 %v13367_v1, %v1465_v17  ;;  %v1797_v37 = vmul.f32 %v13030_v0, %v1465_v17  ;;  %v2048_v32 = vmul.f32 %v13080_v48, %v1465_v17  ;;  %v13387_v0 = vld [vmem:[#allocation8] ss:$0 sm:$0xff]  ;;  %v13398_v17 = vld [vmem:[#allocation8 + $0x3] ss:$0 sm:$0xff] }
 0x224   : > { %10054 = vmatprep.mubr.msk.f32.mxu1 %vm2273_vm4, %v13374_v47  ;;  %v13381_v11 = vsel %vm1312_vm3, %v3152_v56, %v3153_v63  ;;  %v2494_v35 = vrot.slane %v2379_v25, 1  ;;  %v3155_v22 = vrot.slane %v2379_v25, 2  ;;  %v2118_v5 = vmul.f32 %v13097_v29, %v2079_v10  ;;  %v13418_v56 = vld [vmem:[#allocation8 + $0x4] ss:$0 sm:$0xff] }
 0x225   : > { %16229 = vst [vmem:[#allocation45_spill] sm:$0xff] %v13381_v11  ;;  %10158 = vmatprep.mubr.msk.f32.mxu0 %vm2273_vm4, %v13381_v11  ;;  %v1578_v44 = vadd.f32 %v1546_v42, %v1297_v15  ;;  %v1829_v59 = vadd.f32 %v1797_v37, %v1744_v12  ;;  %v969_v38 = vmul.f32 %v13387_v0, %v878_v60  ;;  %v13390_v7 = vld [vmem:[#allocation3 + $0x90] sm:$0xff]  ;;  %v1473_v15 = vpop.permute.xlu1 %1472  ;;  %v13421_v42 = vld [vmem:[#allocation8 + $0x7] ss:$0 sm:$0xff] }
 0x226   : > { %v2080_v19 = vadd.f32 %v2048_v32, %v1995_v51  ;;  %v13393_v41 = vsel %vm1031_vm2, %v2492_v4, %v2494_v35  ;;  %v13396_v48 = vsel %vm1312_vm3, %v3153_v63, %v3155_v22  ;;  %v1627_v61 = vmul.f32 %v13398_v17, %v878_v60  ;;  %v13414_v51 = vpop.permute.xlu0 %887 }
 0x227   : > { %16230 = vst [vmem:[#allocation46_spill] sm:$0xff] %v13396_v48  ;;  %v2157_v21 = vadd.f32 %v13101_v57, %v2118_v5  ;;  %10055 = vmatmul.mubr.msk.f32.gmra.mrb[10].mxu1 %vm2273_vm4, %v13393_v41  ;;  %10159 = vmatmul.mubr.msk.f32.gmra.mrb[10].mxu0 %vm2273_vm4, %v13396_v48  ;;  %v1878_v34 = vmul.f32 %v13044_v26, %v878_v60  ;;  %v2496_v58 = vrot.slane %v13390_v7, 1 }
 0x228   : > { %v970_v33 = vmul.f32 %v13387_v0, %v883_v27  ;;  %v2119_v43 = vmul.f32 %v13097_v29, %v2080_v19  ;;  %v1659_v16 = vadd.f32 %v1627_v61, %v1577_v3  ;;  %v1628_v12 = vmul.f32 %v13398_v17, %v883_v27  ;;  %v2381_v5 = vld [vmem:[#allocation3 + $0x98] sm:$0xff] }
 0x229   : > { %v1879_v24 = vmul.f32 %v13411_v13, %v883_v27  ;;  %vm2189_vm5 = vcmp.gt.f32.partialorder %v2157_v21, 0.0  ;;  %v2221_v39 = vmul.f32 0.01, %v2157_v21  ;;  %v1910_v20 = vadd.f32 %v1878_v34, %v1828_v45  ;;  %v893_v32 = vpop.permute.xlu1 %892  ;;  %v13429_v34 = vld [vmem:[#allocation8 + $0x5] ss:$0 sm:$0xff] }
 0x22a   : > { %v1266_v26 = vmul.f32 %v13358_v40, %v1188_v18  ;;  %v2158_v60 = vadd.f32 %v13101_v57, %v2119_v43  ;;  %v1660_v4 = vadd.f32 %v1628_v12, %v1578_v44  ;;  %v1713_v3 = vmul.f32 %v13418_v56, %v1188_v18  ;;  %v1196_v44 = vpop.permute.xlu0 %1195  ;;  %v13432_v12 = vld [vmem:[#allocation8 + $0x8] ss:$0 sm:$0xff] }
 0x22b   : > { %v1911_v25 = vadd.f32 %v1879_v24, %v1829_v59  ;;  %v2253_v63 = vsel %vm2189_vm5, %v2157_v21, %v2221_v39  ;;  %v1964_v27 = vmul.f32 %v13421_v42, %v1188_v18  ;;  %v1267_v37 = vmul.f32 %v13358_v40, %v1192_v9  ;;  %v2382_v24 = vld [vmem:[#allocation3 + $0xa0] sm:$0x3] }
 0x22c   : > { %v1298_v10 = vadd.f32 %v1266_v26, %v969_v38  ;;  %2342 = vst.msk [vmem:[#allocation3 + $0xa9] sm:$0xff] %vm2273_vm4, %v2253_v63  ;;  %vm2190_vm6 = vcmp.gt.f32.partialorder %v2158_v60, 0.0  ;;  %v2222_v45 = vmul.f32 0.01, %v2158_v60  ;;  %v1745_v35 = vadd.f32 %v1713_v3, %v1659_v16 }
 0x22d   : > { %v1714_v22 = vmul.f32 %v13418_v56, %v1192_v9  ;;  %v1996_v59 = vadd.f32 %v1964_v27, %v1910_v20  ;;  %v1299_v19 = vadd.f32 %v1267_v37, %v970_v33  ;;  %v1965_v38 = vmul.f32 %v13421_v42, %v1192_v9  ;;  %v1200_v26 = vpop.permute.xlu1 %1199 }
 0x22e   : > { %v1547_v61 = vmul.f32 %v13367_v1, %v1469_v30  ;;  %v2254_v21 = vsel %vm2190_vm6, %v2158_v60, %v2222_v45  ;;  %v1798_v43 = vmul.f32 %v13429_v34, %v1469_v30  ;;  %v2049_v16 = vmul.f32 %v13432_v12, %v1469_v30  ;;  %v1477_v27 = vpop.permute.xlu0 %1476 }
 0x22f   : > { %v1746_v18 = vadd.f32 %v1714_v22, %v1660_v4  ;;  %2343 = vst.msk [vmem:[#allocation3 + $0xb1] sm:$0xff] %vm2273_vm4, %v2254_v21  ;;  %v1997_v39 = vadd.f32 %v1965_v38, %v1911_v25  ;;  %v2497_v33 = vrot.slane %v2381_v5, 1  ;;  %v3157_v9 = vrot.slane %v13390_v7, 2 }
 0x230   : > { %v1579_v20 = vadd.f32 %v1547_v61, %v1298_v10  ;;  %v1830_v3 = vadd.f32 %v1798_v43, %v1745_v35  ;;  %v2081_v60 = vadd.f32 %v2049_v16, %v1996_v59  ;;  %v3158_v4 = vrot.slane %v2381_v5, 2  ;;  %v13471_v43 = vld [vmem:[%s16080_s2] ss:$0 sm:$0xff] }
 0x231   : > { %v1548_v63 = vmul.f32 %v13367_v1, %v1473_v15  ;;  %v13439_v37 = vsel %vm1031_vm2, %v2496_v58, %v2497_v33  ;;  %v1799_v30 = vmul.f32 %v13429_v34, %v1473_v15  ;;  %v2050_v45 = vmul.f32 %v13432_v12, %v1473_v15 }
 0x232   : > { %v2499_v22 = vrot.slane %v2382_v24, 1  ;;  %v2120_v25 = vmul.f32 %v13097_v29, %v2081_v60  ;;  %10057 = vmatprep.mubr.msk.f32.mxu1 %vm2273_vm4, %v13439_v37  ;;  %v13447_v7 = vsel %vm1312_vm3, %v3157_v9, %v3158_v4  ;;  %v3160_v35 = vrot.slane %v2382_v24, 2  ;;  %v1481_v29 = vpop.permute.xlu1 %1480  ;;  %v13479_v60 = vld [vmem:[#allocation11] ss:$0 sm:$0xff] }
 0x233   : > { %16231 = vst [vmem:[#allocation47_spill] sm:$0xff] %v13447_v7  ;;  %v1580_v10 = vadd.f32 %v1548_v63, %v1299_v19  ;;  %10161 = vmatprep.mubr.msk.f32.mxu0 %vm2273_vm4, %v13447_v7  ;;  %v1831_v58 = vadd.f32 %v1799_v30, %v1746_v18  ;;  %v2082_v5 = vadd.f32 %v2050_v45, %v1997_v39  ;;  %v13466_v18 = vpop.permute.xlu0 %897 }
 0x234   : > { %v13452_v59 = vsel %vm1031_vm2, %v2497_v33, %v2499_v22  ;;  %v971_v15 = vmul.f32 %v13387_v0, %v13414_v51  ;;  %v2159_v38 = vadd.f32 %v13101_v57, %v2120_v25  ;;  %v13460_v19 = vsel %vm1312_vm3, %v3158_v4, %v3160_v35 }
 0x235   : > { %10058 = vmatmul.mubr.msk.f32.gmra.mrb[12].mxu1 %vm2273_vm4, %v13452_v59  ;;  %16232 = vst [vmem:[#allocation48_spill] sm:$0xff] %v13460_v19  ;;  %v1629_v61 = vmul.f32 %v13398_v17, %v13414_v51  ;;  %v1880_v21 = vmul.f32 %v13411_v13, %v13414_v51  ;;  %v2121_v57 = vmul.f32 %v13471_v43, %v2082_v5 }
 0x236   : > { %10162 = vmatmul.mubr.msk.f32.gmra.mrb[12].mxu0 %vm2273_vm4, %v13460_v19  ;;  %v972_v16 = vmul.f32 %v13387_v0, %v893_v32  ;;  %v1630_v24 = vmul.f32 %v13398_v17, %v893_v32  ;;  %v1881_v39 = vmul.f32 %v13411_v13, %v893_v32  ;;  %vm2191_vm7 = vcmp.gt.f32.partialorder %v2159_v38, 0.0  ;;  %v13483_v22 = vpop.permute.xlu1 %902 }
 0x237   : > { %v2223_v51 = vmul.f32 0.01, %v2159_v38  ;;  %v1661_v33 = vadd.f32 %v1629_v61, %v1579_v20  ;;  %v1912_v9 = vadd.f32 %v1880_v21, %v1830_v3  ;;  %v2160_v4 = vadd.f32 %v13479_v60, %v2121_v57  ;;  %v13488_v19 = vpop.permute.xlu0 %1203  ;;  %v2384_v61 = vld [vmem:[#allocation3 + $0xb0] sm:$0xff] }
 0x238   : > { %v1662_v63 = vadd.f32 %v1630_v24, %v1580_v10  ;;  %v1913_v30 = vadd.f32 %v1881_v39, %v1831_v58  ;;  %v1268_v45 = vmul.f32 %v13358_v40, %v1196_v44  ;;  %v1715_v35 = vmul.f32 %v13418_v56, %v1196_v44  ;;  %v2383_v58 = vld [vmem:[#allocation3 + $0xa8] sm:$0xff] }
 0x239   : > { %v2255_v25 = vsel %vm2191_vm7, %v2159_v38, %v2223_v51  ;;  %v1966_v5 = vmul.f32 %v13421_v42, %v1196_v44  ;;  %v1269_v32 = vmul.f32 %v13358_v40, %v1200_v26  ;;  %vm2192_vm8 = vcmp.gt.f32.partialorder %v2160_v4, 0.0 }
 0x23a   : > { %2344 = vst.msk [vmem:[#allocation3 + $0xc1] sm:$0xff] %vm2273_vm4, %v2255_v25  ;;  %v2224_v20 = vmul.f32 0.01, %v2160_v4  ;;  %v1300_v3 = vadd.f32 %v1268_v45, %v971_v15  ;;  %v1716_v10 = vmul.f32 %v13418_v56, %v1200_v26  ;;  %v1747_v21 = vadd.f32 %v1715_v35, %v1661_v33  ;;  %v13495_v48 = vpop.permute.xlu1 %1207  ;;  %v2385_v33 = vld [vmem:[#allocation3 + $0xb8] sm:$0x3] }
 0x23b   : > { %v1998_v57 = vadd.f32 %v1966_v5, %v1912_v9  ;;  %v1301_v38 = vadd.f32 %v1269_v32, %v972_v16  ;;  %v1967_v24 = vmul.f32 %v13421_v42, %v1200_v26  ;;  %v1549_v51 = vmul.f32 %v13367_v1, %v1477_v27  ;;  %v13499_v9 = vpop.permute.xlu0 %1484 }
 0x23c   : > { %v2256_v39 = vsel %vm2192_vm8, %v2160_v4, %v2224_v20  ;;  %v1748_v44 = vadd.f32 %v1716_v10, %v1662_v63  ;;  %v1800_v7 = vmul.f32 %v13429_v34, %v1477_v27  ;;  %v2051_v45 = vmul.f32 %v13432_v12, %v1477_v27 }
 0x23d   : > { %2345 = vst.msk [vmem:[#allocation3 + $0xc9] sm:$0xff] %vm2273_vm4, %v2256_v39  ;;  %v1999_v15 = vadd.f32 %v1967_v24, %v1913_v30  ;;  %v2501_v25 = vrot.slane %v2383_v58, 1  ;;  %v2502_v11 = vrot.slane %v2384_v61, 1  ;;  %v1581_v16 = vadd.f32 %v1549_v51, %v1300_v3 }
 0x23e   : > { %v1832_v26 = vadd.f32 %v1800_v7, %v1747_v21  ;;  %v3162_v4 = vrot.slane %v2383_v58, 2  ;;  %v3163_v63 = vrot.slane %v2384_v61, 2  ;;  %v2083_v35 = vadd.f32 %v2051_v45, %v1998_v57  ;;  %v13512_v10 = vpop.permute.xlu1 %1488 }
 0x23f   : > { %v13502_v5 = vsel %vm1031_vm2, %v2501_v25, %v2502_v11  ;;  %v1550_v32 = vmul.f32 %v13367_v1, %v1481_v29  ;;  %v1801_v20 = vmul.f32 %v13429_v34, %v1481_v29  ;;  %v2052_v30 = vmul.f32 %v13432_v12, %v1481_v29  ;;  %v13521_v39 = vpop.permute.xlu0 %907 }
 0x240   : > { %10060 = vmatprep.mubr.msk.f32.mxu1 %vm2273_vm4, %v13502_v5  ;;  %v13509_v27 = vsel %vm1312_vm3, %v3162_v4, %v3163_v63  ;;  %v2504_v3 = vrot.slane %v2385_v33, 1  ;;  %v3165_v7 = vrot.slane %v2385_v33, 2  ;;  %v2122_v58 = vmul.f32 %v13471_v43, %v2083_v35 }
 0x241   : > { %16233 = vst [vmem:[#allocation49_spill] sm:$0xff] %v13509_v27  ;;  %10164 = vmatprep.mubr.msk.f32.mxu0 %vm2273_vm4, %v13509_v27  ;;  %v1582_v61 = vadd.f32 %v1550_v32, %v1301_v38  ;;  %v1833_v21 = vadd.f32 %v1801_v20, %v1748_v44  ;;  %v973_v57 = vmul.f32 %v13387_v0, %v13466_v18  ;;  %v13519_v24 = vld [vmem:[#allocation3 + $0xc0] sm:$0xff] }
 0x242   : > { %v2084_v51 = vadd.f32 %v2052_v30, %v1999_v15  ;;  %v13524_v29 = vsel %vm1031_vm2, %v2502_v11, %v2504_v3  ;;  %v13527_v45 = vsel %vm1312_vm3, %v3163_v63, %v3165_v7  ;;  %v1631_v25 = vmul.f32 %v13398_v17, %v13466_v18  ;;  %v13546_v32 = vpop.permute.xlu1 %912 }
 0x243   : > { %16234 = vst [vmem:[#allocation50_spill] sm:$0xff] %v13524_v29  ;;  %16235 = vst [vmem:[#allocation51_spill] sm:$0xff] %v13527_v45  ;;  %v2161_v38 = vadd.f32 %v13479_v60, %v2122_v58  ;;  %10061 = vmatmul.mubr.msk.f32.gmra.mrb[14].mxu1 %vm2273_vm4, %v13524_v29  ;;  %10165 = vmatmul.mubr.msk.f32.gmra.mrb[14].mxu0 %vm2273_vm4, %v13527_v45  ;;  %v1882_v44 = vmul.f32 %v13411_v13, %v13466_v18  ;;  %v2506_v15 = vrot.slane %v13519_v24, 1  ;;  %v13550_v3 = vpop.permute.xlu0 %1211 }
 0x244   : > { %v974_v11 = vmul.f32 %v13387_v0, %v13483_v22  ;;  %v2123_v33 = vmul.f32 %v13471_v43, %v2084_v51  ;;  %v1663_v4 = vadd.f32 %v1631_v25, %v1581_v16  ;;  %v1632_v63 = vmul.f32 %v13398_v17, %v13483_v22 }
 0x245   : > { %v1883_v35 = vmul.f32 %v13411_v13, %v13483_v22  ;;  %vm2193_vm9 = vcmp.gt.f32.partialorder %v2161_v38, 0.0  ;;  %v2225_v20 = vmul.f32 0.01, %v2161_v38  ;;  %v1914_v30 = vadd.f32 %v1882_v44, %v1832_v26 }
 0x246   : > { %v1270_v18 = vmul.f32 %v13358_v40, %v13488_v19  ;;  %v2162_v7 = vadd.f32 %v13479_v60, %v2123_v33  ;;  %v1664_v58 = vadd.f32 %v1632_v63, %v1582_v61  ;;  %v1717_v51 = vmul.f32 %v13418_v56, %v13488_v19  ;;  %v13564_v33 = vpop.permute.xlu1 %1215 }
 0x247   : > { %v1915_v16 = vadd.f32 %v1883_v35, %v1833_v21  ;;  %v2257_v25 = vsel %vm2193_vm9, %v2161_v38, %v2225_v20  ;;  %v1968_v22 = vmul.f32 %v13421_v42, %v13488_v19  ;;  %v1271_v26 = vmul.f32 %v13358_v40, %v13495_v48  ;;  %v13562_v21 = vld [vmem:[#allocation3 + $0xc8] sm:$0xff]  ;;  %v13570_v35 = vpop.permute.xlu0 %1492 }
 0x248   : > { %v1302_v45 = vadd.f32 %v1270_v18, %v973_v57  ;;  %2346 = vst.msk [vmem:[#allocation3 + $0xd9] sm:$0xff] %vm2273_vm4, %v2257_v25  ;;  %vm2194_vm10 = vcmp.gt.f32.partialorder %v2162_v7, 0.0  ;;  %v2226_v44 = vmul.f32 0.01, %v2162_v7  ;;  %v1749_v27 = vadd.f32 %v1717_v51, %v1663_v4  ;;  %v2388_v25 = vld [vmem:[#allocation3 + $0xd0] sm:$0x3] }
 0x249   : > { %v1718_v61 = vmul.f32 %v13418_v56, %v13495_v48  ;;  %v2000_v38 = vadd.f32 %v1968_v22, %v1914_v30  ;;  %v1303_v57 = vadd.f32 %v1271_v26, %v974_v11  ;;  %v1969_v19 = vmul.f32 %v13421_v42, %v13495_v48 }
 0x24a   : > { %v1551_v63 = vmul.f32 %v13367_v1, %v13499_v9  ;;  %v2258_v20 = vsel %vm2194_vm10, %v2162_v7, %v2226_v44  ;;  %v1802_v4 = vmul.f32 %v13429_v34, %v13499_v9  ;;  %v2053_v51 = vmul.f32 %v13432_v12, %v13499_v9  ;;  %v13582_v44 = vpop.permute.xlu1 %1496 }
 0x24b   : > { %v1750_v18 = vadd.f32 %v1718_v61, %v1664_v58  ;;  %2347 = vst.msk [vmem:[#allocation3 + $0xe1] sm:$0xff] %vm2273_vm4, %v2258_v20  ;;  %v2001_v11 = vadd.f32 %v1969_v19, %v1915_v16  ;;  %v2507_v48 = vrot.slane %v13562_v21, 1  ;;  %v3167_v22 = vrot.slane %v13519_v24, 2  ;;  %v13591_v24 = vpop.permute.xlu0 %917 }
 0x24c   : > { %v1583_v30 = vadd.f32 %v1551_v63, %v1302_v45  ;;  %v1834_v26 = vadd.f32 %v1802_v4, %v1749_v27  ;;  %v2085_v2 = vadd.f32 %v2053_v51, %v2000_v38  ;;  %v3168_v7 = vrot.slane %v13562_v21, 2 }
 0x24d   : > { %v1552_v58 = vmul.f32 %v13367_v1, %v13512_v10  ;;  %v13585_v9 = vsel %vm1031_vm2, %v2506_v15, %v2507_v48  ;;  %v1803_v16 = vmul.f32 %v13429_v34, %v13512_v10  ;;  %v2054_v45 = vmul.f32 %v13432_v12, %v13512_v10 }
 0x24e   : > { %16236 = vst [vmem:[#allocation52_spill] sm:$0xff] %v13585_v9  ;;  %v2509_v61 = vrot.slane %v2388_v25, 1  ;;  %v2124_v27 = vmul.f32 %v13471_v43, %v2085_v2  ;;  %10063 = vmatprep.mubr.msk.f32.mxu1 %vm2273_vm4, %v13585_v9  ;;  %v13597_v38 = vsel %vm1312_vm3, %v3167_v22, %v3168_v7  ;;  %v3170_v15 = vrot.slane %v2388_v25, 2  ;;  %v13616_v25 = vpop.permute.xlu1 %922 }
 0x24f   : > { %16237 = vst [vmem:[#allocation53_spill] sm:$0xff] %v13597_v38  ;;  %v1584_v19 = vadd.f32 %v1552_v58, %v1303_v57  ;;  %10167 = vmatprep.mubr.msk.f32.mxu0 %vm2273_vm4, %v13597_v38  ;;  %v1835_v63 = vadd.f32 %v1803_v16, %v1750_v18  ;;  %v2086_v20 = vadd.f32 %v2054_v45, %v2001_v11  ;;  %v13627_v58 = vpop.permute.xlu0 %1219 }
 0x250   : > { %v13602_v10 = vsel %vm1031_vm2, %v2507_v48, %v2509_v61  ;;  %v975_v4 = vmul.f32 %v13387_v0, %v13521_v39  ;;  %v2163_v2 = vadd.f32 %v13479_v60, %v2124_v27  ;;  %v13610_v51 = vsel %vm1312_vm3, %v3168_v7, %v3170_v15 }
 0x251   : > { %16238 = vst [vmem:[#allocation54_spill] sm:$0xff] %v13602_v10  ;;  %10064 = vmatmul.mubr.msk.f32.gmra.mrb[16].mxu1 %vm2273_vm4, %v13602_v10  ;;  %16239 = vst [vmem:[#allocation55_spill] sm:$0xff] %v13610_v51  ;;  %v1633_v57 = vmul.f32 %v13398_v17, %v13521_v39  ;;  %v1884_v18 = vmul.f32 %v13411_v13, %v13521_v39  ;;  %v2125_v11 = vmul.f32 %v13471_v43, %v2086_v20 }
 0x252   : > { %10168 = vmatmul.mubr.msk.f32.gmra.mrb[16].mxu0 %vm2273_vm4, %v13610_v51  ;;  %v976_v48 = vmul.f32 %v13387_v0, %v13546_v32  ;;  %v1634_v22 = vmul.f32 %v13398_v17, %v13546_v32  ;;  %v1885_v7 = vmul.f32 %v13411_v13, %v13546_v32  ;;  %vm2195_vm11 = vcmp.gt.f32.partialorder %v2163_v2, 0.0  ;;  %v13638_v8 = vpop.permute.xlu1 %1223 }
 0x253   : > { %v2227_v39 = vmul.f32 0.01, %v2163_v2  ;;  %v1665_v16 = vadd.f32 %v1633_v57, %v1583_v30  ;;  %v1916_v45 = vadd.f32 %v1884_v18, %v1834_v26  ;;  %v2164_v61 = vadd.f32 %v13479_v60, %v2125_v11  ;;  %v13647_v57 = vpop.permute.xlu0 %1500 }
 0x254   : > { %v1666_v27 = vadd.f32 %v1634_v22, %v1584_v19  ;;  %v1917_v15 = vadd.f32 %v1885_v7, %v1835_v63  ;;  %v1272_v20 = vmul.f32 %v13358_v40, %v13550_v3  ;;  %v1719_v38 = vmul.f32 %v13418_v56, %v13550_v3  ;;  %v13643_v63 = vld [vmem:[#allocation3 + $0xd8] sm:$0xff] }
 0x255   : > { %v2259_v51 = vsel %vm2195_vm11, %v2163_v2, %v2227_v39  ;;  %v1970_v32 = vmul.f32 %v13421_v42, %v13550_v3  ;;  %v1273_v50 = vmul.f32 %v13358_v40, %v13564_v33  ;;  %vm2196_vm12 = vcmp.gt.f32.partialorder %v2164_v61, 0.0  ;;  %v13645_v2 = vld [vmem:[#allocation3 + $0xe0] sm:$0xff] }
 0x256   : > { %2348 = vst.msk [vmem:[#allocation3 + $0xf1] sm:$0xff] %vm2273_vm4, %v2259_v51  ;;  %v2228_v30 = vmul.f32 0.01, %v2164_v61  ;;  %v1304_v26 = vadd.f32 %v1272_v20, %v975_v4  ;;  %v1720_v19 = vmul.f32 %v13418_v56, %v13564_v33  ;;  %v1751_v3 = vadd.f32 %v1719_v38, %v1665_v16 }
 0x257   : > { %v2002_v18 = vadd.f32 %v1970_v32, %v1916_v45  ;;  %v1305_v11 = vadd.f32 %v1273_v50, %v976_v48  ;;  %v1971_v22 = vmul.f32 %v13421_v42, %v13564_v33  ;;  %v1553_v4 = vmul.f32 %v13367_v1, %v13570_v35  ;;  %v2391_v48 = vld [vmem:[#allocation3 + $0xe8] sm:$0x3]  ;;  %v13660_v33 = vpop.permute.xlu1 %1504  ;;  %v13664_v32 = vpop.permute.xlu0 %927 }
 0x258   : > { %v2260_v7 = vsel %vm2196_vm12, %v2164_v61, %v2228_v30  ;;  %v1752_v51 = vadd.f32 %v1720_v19, %v1666_v27  ;;  %v1804_v39 = vmul.f32 %v13429_v34, %v13570_v35  ;;  %v2055_v49 = vmul.f32 %v13432_v12, %v13570_v35 }
 0x259   : > { %2349 = vst.msk [vmem:[#allocation3 + $0xf9] sm:$0xff] %vm2273_vm4, %v2260_v7  ;;  %v2003_v20 = vadd.f32 %v1971_v22, %v1917_v15  ;;  %v2511_v38 = vrot.slane %v13643_v63, 1  ;;  %v2512_v50 = vrot.slane %v13645_v2, 1  ;;  %v1585_v16 = vadd.f32 %v1553_v4, %v1304_v26 }
 0x25a   : > { %v1836_v45 = vadd.f32 %v1804_v39, %v1751_v3  ;;  %v3172_v61 = vrot.slane %v13643_v63, 2  ;;  %v3173_v27 = vrot.slane %v13645_v2, 2  ;;  %v2087_v30 = vadd.f32 %v2055_v49, %v2002_v18 }
 0x25b   : > { %v13667_v15 = vsel %vm1031_vm2, %v2511_v38, %v2512_v50  ;;  %v1554_v35 = vmul.f32 %v13367_v1, %v13582_v44  ;;  %v1805_v19 = vmul.f32 %v13429_v34, %v13582_v44  ;;  %v2056_v3 = vmul.f32 %v13432_v12, %v13582_v44  ;;  %v13687_v52 = vpop.permute.xlu1 %932 }
 0x25c   : > { %16240 = vst [vmem:[#allocation56_spill] sm:$0xff] %v13667_v15  ;;  %10066 = vmatprep.mubr.msk.f32.mxu1 %vm2273_vm4, %v13667_v15  ;;  %v13676_v26 = vsel %vm1312_vm3, %v3172_v61, %v3173_v27  ;;  %v2514_v22 = vrot.slane %v2391_v48, 1  ;;  %v3175_v49 = vrot.slane %v2391_v48, 2  ;;  %v2126_v18 = vmul.f32 %v13471_v43, %v2087_v30  ;;  %v13697_v30 = vpop.permute.xlu0 %1227 }
 0x25d   : > { %16241 = vst [vmem:[#allocation57_spill] sm:$0xff] %v13676_v26  ;;  %10170 = vmatprep.mubr.msk.f32.mxu0 %vm2273_vm4, %v13676_v26  ;;  %v1586_v7 = vadd.f32 %v1554_v35, %v1305_v11  ;;  %v1837_v4 = vadd.f32 %v1805_v19, %v1752_v51  ;;  %v977_v39 = vmul.f32 %v13387_v0, %v13591_v24  ;;  %v13685_v38 = vld [vmem:[#allocation3 + $0xf0] sm:$0xff]  ;;  %vm5315_vm12 = vcmask 261120  }
 0x25e   : > { %v2088_v61 = vadd.f32 %v2056_v3, %v2003_v20  ;;  %v13690_v31 = vsel %vm1031_vm2, %v2512_v50, %v2514_v22  ;;  %v13693_v44 = vsel %vm1312_vm3, %v3173_v27, %v3175_v49  ;;  %v1635_v48 = vmul.f32 %v13398_v17, %v13591_v24 }
 0x25f   : > { %16242 = vst [vmem:[#allocation58_spill] sm:$0xff] %v13690_v31  ;;  %16243 = vst [vmem:[#allocation59_spill] sm:$0xff] %v13693_v44  ;;  %v2165_v11 = vadd.f32 %v13479_v60, %v2126_v18  ;;  %10067 = vmatmul.mubr.msk.f32.gmra.mrb[18].mxu1 %vm2273_vm4, %v13690_v31  ;;  %10171 = vmatmul.mubr.msk.f32.gmra.mrb[18].mxu0 %vm2273_vm4, %v13693_v44  ;;  %v1886_v51 = vmul.f32 %v13411_v13, %v13591_v24  ;;  %v2516_v50 = vrot.slane %v13685_v38, 1  ;;  %v13716_v18 = vpop.permute.xlu1 %1231 }
 0x260   : > { %v978_v20 = vmul.f32 %v13387_v0, %v13616_v25  ;;  %v2127_v27 = vmul.f32 %v13471_v43, %v2088_v61  ;;  %v1667_v35 = vadd.f32 %v1635_v48, %v1585_v16  ;;  %v1636_v19 = vmul.f32 %v13398_v17, %v13616_v25  ;;  %v13721_v61 = vpop.permute.xlu0 %1508  ;;  %v2394_v15 = vld [vmem:[#allocation3 + $0x100] sm:$0x3] }
 0x261   : > { %v1887_v3 = vmul.f32 %v13411_v13, %v13616_v25  ;;  %vm2197_vm13 = vcmp.gt.f32.partialorder %v2165_v11, 0.0  ;;  %v2229_v22 = vmul.f32 0.01, %v2165_v11  ;;  %v1918_v49 = vadd.f32 %v1886_v51, %v1836_v45 }
 0x262   : > { %v1274_v24 = vmul.f32 %v13358_v40, %v13627_v58  ;;  %v2166_v44 = vadd.f32 %v13479_v60, %v2127_v27  ;;  %v1668_v26 = vadd.f32 %v1636_v19, %v1586_v7  ;;  %v1721_v16 = vmul.f32 %v13418_v56, %v13627_v58 }
 0x263   : > { %v1919_v36 = vadd.f32 %v1887_v3, %v1837_v4  ;;  %v2261_v48 = vsel %vm2197_vm13, %v2165_v11, %v2229_v22  ;;  %v1972_v25 = vmul.f32 %v13421_v42, %v13627_v58  ;;  %v1275_v45 = vmul.f32 %v13358_v40, %v13638_v8  ;;  %v13730_v4 = vld [vmem:[#allocation3 + $0xf8] sm:$0xff]  ;;  %v9038_v11 = vld [vmem:[%s16082_s4 + $0x30] sm:$0xff]  ;;  %v13742_v22 = vpop.permute.xlu1 %1512 }
 0x264   : > { %v1306_v55 = vadd.f32 %v1274_v24, %v977_v39  ;;  %2350 = vst.msk [vmem:[#allocation3 + $0x109] sm:$0xff] %vm2273_vm4, %v2261_v48  ;;  %vm2198_vm14 = vcmp.gt.f32.partialorder %v2166_v44, 0.0  ;;  %v2230_v51 = vmul.f32 0.01, %v2166_v44  ;;  %v1753_v27 = vadd.f32 %v1721_v16, %v1667_v35  ;;  %v9039_v35 = vld [vmem:[%s16082_s4 + $0x38] sm:$0xff] }
 0x265   : > { %v1722_v7 = vmul.f32 %v13418_v56, %v13638_v8  ;;  %v2004_v19 = vadd.f32 %v1972_v25, %v1918_v49  ;;  %v1307_v3 = vadd.f32 %v1275_v45, %v978_v20  ;;  %v1973_v39 = vmul.f32 %v13421_v42, %v13638_v8  ;;  %v13748_v49 = vpop.permute.xlu0 %937 }
 0x266   : > { %v1555_v58 = vmul.f32 %v13367_v1, %v13647_v57  ;;  %v2262_v24 = vsel %vm2198_vm14, %v2166_v44, %v2230_v51  ;;  %v1806_v20 = vmul.f32 %v13429_v34, %v13647_v57  ;;  %v2057_v8 = vmul.f32 %v13432_v12, %v13647_v57 }
 0x267   : > { %v1754_v16 = vadd.f32 %v1722_v7, %v1668_v26  ;;  %2351 = vst.msk [vmem:[#allocation3 + $0x111] sm:$0xff] %vm2273_vm4, %v2262_v24  ;;  %v2005_v48 = vadd.f32 %v1973_v39, %v1919_v36  ;;  %v2517_v45 = vrot.slane %v13730_v4, 1  ;;  %v3177_v31 = vrot.slane %v13685_v38, 2  ;;  %v13763_v39 = vpop.permute.xlu1 %942 }
 0x268   : > { %v1587_v25 = vadd.f32 %v1555_v58, %v1306_v55  ;;  %v1838_v10 = vadd.f32 %v1806_v20, %v1753_v27  ;;  %v2089_v44 = vadd.f32 %v2057_v8, %v2004_v19  ;;  %v3178_v26 = vrot.slane %v13730_v4, 2 }
 0x269   : > { %v10982_v51 = vpack.c.bf16 %v9039_v35, %v9038_v11  ;;  %v13755_v7 = vsel %vm1031_vm2, %v2516_v50, %v2517_v45  ;;  %v1556_v57 = vmul.f32 %v13367_v1, %v13660_v33  ;;  %v1807_v36 = vmul.f32 %v13429_v34, %v13660_v33  ;;  %v13771_v11 = vpop.permute.xlu0 %1235 }
 0x26a   : > { %16244 = vst [vmem:[#allocation60_spill] sm:$0xff] %v13755_v7  ;;  %v2058_v55 = vmul.f32 %v13432_v12, %v13660_v33  ;;  %v2128_v27 = vmul.f32 %v13471_v43, %v2089_v44  ;;  %10069 = vmatprep.mubr.msk.f32.mxu1 %vm2273_vm4, %v13755_v7  ;;  %v13769_v19 = vsel %vm1312_vm3, %v3177_v31, %v3178_v26  ;;  %v2519_v50 = vrot.slane %v2394_v15, 1 }
 0x26b   : > { %16245 = vst [vmem:[#allocation61_spill] sm:$0xff] %v13769_v19  ;;  %10983 = vmatprep.subr.bf16.mxu0 %v10982_v51  ;;  %v3180_v58 = vrot.slane %v2394_v15, 2  ;;  %10173 = vmatprep.mubr.msk.f32.mxu0 %vm2273_vm4, %v13769_v19  ;;  %v1588_v33 = vadd.f32 %v1556_v57, %v1307_v3  ;;  %v1839_v35 = vadd.f32 %v1807_v36, %v1754_v16  ;;  %v13775_v20 = vld [vmem:[#allocation3 + $0x108] sm:$0xff] }
 0x26c   : > { %10985 = vmatpush3.bf16.msra.mxu0 %v10982_v51  ;;  %v2090_v24 = vadd.f32 %v2058_v55, %v2005_v48  ;;  %v2167_v8 = vadd.f32 %v13479_v60, %v2128_v27  ;;  %v13779_v44 = vsel %vm1031_vm2, %v2517_v45, %v2519_v50  ;;  %v979_v15 = vmul.f32 %v13387_v0, %v13664_v32  ;;  %v13796_v45 = vpop.permute.xlu1 %1239 }
 0x26d   : > { %16246 = vst [vmem:[#allocation62_spill] sm:$0xff] %v13779_v44  ;;  %v13782_v31 = vsel %vm1312_vm3, %v3178_v26, %v3180_v58  ;;  %10070 = vmatmul.mubr.msk.f32.gmra.mrb[20].mxu1 %vm2273_vm4, %v13779_v44  ;;  %v1637_v3 = vmul.f32 %v13398_v17, %v13664_v32  ;;  %v1888_v16 = vmul.f32 %v13411_v13, %v13664_v32  ;;  %v2521_v48 = vrot.slane %v13775_v20, 1  ;;  %v13802_v36 = vpop.permute.xlu0 %1516 }
 0x26e   : > { %16247 = vst [vmem:[#allocation63_spill] sm:$0xff] %v13782_v31  ;;  %v2129_v7 = vmul.f32 %v13471_v43, %v2090_v24  ;;  %10174 = vmatmul.mubr.msk.f32.gmra.mrb[20].mxu0 %vm2273_vm4, %v13782_v31  ;;  %vm2199_vm15 = vcmp.gt.f32.partialorder %v2167_v8, 0.0  ;;  %v2231_v26 = vmul.f32 0.01, %v2167_v8  ;;  %v980_v51 = vmul.f32 %v13387_v0, %v13687_v52 }
 0x26f   : > { %v1638_v57 = vmul.f32 %v13398_v17, %v13687_v52  ;;  %v1669_v27 = vadd.f32 %v1637_v3, %v1587_v25  ;;  %v1920_v50 = vadd.f32 %v1888_v16, %v1838_v10  ;;  %v1889_v32 = vmul.f32 %v13411_v13, %v13687_v52  ;;  %v13820_v3 = vld [vmem:[#allocation3 + $0x110] sm:$0xff] }
 0x270   : > { %v2168_v55 = vadd.f32 %v13479_v60, %v2129_v7  ;;  %v2263_v58 = vsel %vm2199_vm15, %v2167_v8, %v2231_v26  ;;  %v1276_v31 = vmul.f32 %v13358_v40, %v13697_v30  ;;  %v1723_v19 = vmul.f32 %v13418_v56, %v13697_v30  ;;  %v13814_v10 = vpop.permute.xlu1 %1520 }
 0x271   : > { %v1670_v24 = vadd.f32 %v1638_v57, %v1588_v33  ;;  %2352 = vst.msk [vmem:[#allocation3 + $0x121] sm:$0xff] %vm2273_vm4, %v2263_v58  ;;  %v1921_v9 = vadd.f32 %v1889_v32, %v1839_v35  ;;  %v1974_v25 = vmul.f32 %v13421_v42, %v13697_v30  ;;  %v1277_v33 = vmul.f32 %v13358_v40, %v13716_v18  ;;  %v13826_v57 = vpop.permute.xlu0 %1597 }
 0x272   : > { %vm2200_vm0 = vcmp.gt.f32.partialorder %v2168_v55, 0.0  ;;  %v2232_v44 = vmul.f32 0.01, %v2168_v55  ;;  %v1308_v7 = vadd.f32 %v1276_v31, %v979_v15  ;;  %v1755_v52 = vadd.f32 %v1723_v19, %v1669_v27 }
 0x273   : > { %v1724_v8 = vmul.f32 %v13418_v56, %v13716_v18  ;;  %v2006_v26 = vadd.f32 %v1974_v25, %v1920_v50  ;;  %v1975_v35 = vmul.f32 %v13421_v42, %v13716_v18  ;;  %v1557_v30 = vmul.f32 %v13367_v1, %v13721_v61 }
 0x274   : > { %v2264_v16 = vsel %vm2200_vm0, %v2168_v55, %v2232_v44  ;;  %v1309_v19 = vadd.f32 %v1277_v33, %v980_v51  ;;  %v1808_v15 = vmul.f32 %v13429_v34, %v13721_v61  ;;  %v2059_v27 = vmul.f32 %v13432_v12, %v13721_v61  ;;  %v2397_v44 = vld [vmem:[#allocation3 + $0x118] sm:$0x3]  ;;  %v13835_v58 = vpop.permute.xlu1 %1602 }
 0x275   : > { %2353 = vst.msk [vmem:[#allocation3 + $0x129] sm:$0xff] %vm2273_vm4, %v2264_v16  ;;  %v1756_v31 = vadd.f32 %v1724_v8, %v1670_v24  ;;  %v2007_v55 = vadd.f32 %v1975_v35, %v1921_v9  ;;  %v1589_v50 = vadd.f32 %v1557_v30, %v1308_v7  ;;  %v2522_v18 = vrot.slane %v13820_v3, 1 }
 0x276   : > { %v3182_v32 = vrot.slane %v13775_v20, 2  ;;  %v1840_v25 = vadd.f32 %v1808_v15, %v1755_v52  ;;  %v2091_v29 = vadd.f32 %v2059_v27, %v2006_v26  ;;  %v3183_v51 = vrot.slane %v13820_v3, 2 }
 0x277   : > { %v1558_v24 = vmul.f32 %v13367_v1, %v13742_v22  ;;  %v13841_v33 = vsel %vm1031_vm2, %v2521_v48, %v2522_v18  ;;  %v1809_v9 = vmul.f32 %v13429_v34, %v13742_v22  ;;  %v2060_v61 = vmul.f32 %v13432_v12, %v13742_v22 }
 0x278   : > { %16248 = vst [vmem:[#allocation64_spill] sm:$0xff] %v13841_v33  ;;  %v2524_v7 = vrot.slane %v2397_v44, 1  ;;  %v2130_v8 = vmul.f32 %v13471_v43, %v2091_v29  ;;  %10072 = vmatprep.mubr.msk.f32.mxu1 %vm2273_vm4, %v13841_v33  ;;  %v13851_v52 = vsel %vm1312_vm3, %v3182_v32, %v3183_v51  ;;  %v3185_v26 = vrot.slane %v2397_v44, 2  ;;  %v13860_v29 = vpop.permute.xlu0 %1684 }
 0x279   : > { %16249 = vst [vmem:[#allocation65_spill] sm:$0xff] %v13851_v52  ;;  %v1590_v16 = vadd.f32 %v1558_v24, %v1309_v19  ;;  %10176 = vmatprep.mubr.msk.f32.mxu0 %vm2273_vm4, %v13851_v52  ;;  %v1841_v48 = vadd.f32 %v1809_v9, %v1756_v31  ;;  %v2092_v35 = vadd.f32 %v2060_v61, %v2007_v55  ;;  %vm5430_vm15 = vcmask 257026  }
 0x27a   : > { %v13856_v30 = vsel %vm1031_vm2, %v2522_v18, %v2524_v7  ;;  %v981_v22 = vmul.f32 %v13387_v0, %v13748_v49  ;;  %v2169_v15 = vadd.f32 %v13479_v60, %v2130_v8  ;;  %v13866_v19 = vsel %vm1312_vm3, %v3183_v51, %v3185_v26  ;;  %v13881_v51 = vpop.permute.xlu1 %1688 }
 0x27b   : > { %16250 = vst [vmem:[#allocation66_spill] sm:$0xff] %v13856_v30  ;;  %10073 = vmatmul.mubr.msk.f32.gmra.mrb[22].mxu1 %vm2273_vm4, %v13856_v30  ;;  %16251 = vst [vmem:[#allocation67_spill] sm:$0xff] %v13866_v19  ;;  %v1639_v31 = vmul.f32 %v13398_v17, %v13748_v49  ;;  %v1890_v27 = vmul.f32 %v13411_v13, %v13748_v49  ;;  %v2131_v44 = vmul.f32 %v13471_v43, %v2092_v35  ;;  %vm5495_vm0 = vcmask 259076  }
 0x27c   : > { %10177 = vmatmul.mubr.msk.f32.gmra.mrb[22].mxu0 %vm2273_vm4, %v13866_v19  ;;  %v982_v55 = vmul.f32 %v13387_v0, %v13763_v39  ;;  %v1640_v18 = vmul.f32 %v13398_v17, %v13763_v39  ;;  %v1891_v32 = vmul.f32 %v13411_v13, %v13763_v39  ;;  %vm2201_vm1 = vcmp.gt.f32.partialorder %v2169_v15, 0.0 }
 0x27d   : > { %v2233_v24 = vmul.f32 0.01, %v2169_v15  ;;  %v1671_v9 = vadd.f32 %v1639_v31, %v1589_v50  ;;  %v1922_v49 = vadd.f32 %v1890_v27, %v1840_v25  ;;  %v2170_v61 = vadd.f32 %v13479_v60, %v2131_v44  ;;  %v13899_v31 = vpop.permute.xlu0 %1769 }
 0x27e   : > { %v1672_v7 = vadd.f32 %v1640_v18, %v1590_v16  ;;  %v1923_v8 = vadd.f32 %v1891_v32, %v1841_v48  ;;  %v1278_v26 = vmul.f32 %v13358_v40, %v13771_v11  ;;  %v1725_v35 = vmul.f32 %v13418_v56, %v13771_v11  ;;  %v13895_v48 = vld [vmem:[#allocation3 + $0x120] sm:$0xff] }
 0x27f   : > { %v2265_v0 = vsel %vm2201_vm1, %v2169_v15, %v2233_v24  ;;  %v1976_v39 = vmul.f32 %v13421_v42, %v13771_v11  ;;  %v1279_v19 = vmul.f32 %v13358_v40, %v13796_v45  ;;  %vm2202_vm5 = vcmp.gt.f32.partialorder %v2170_v61, 0.0  ;;  %v13897_v15 = vld [vmem:[#allocation3 + $0x128] sm:$0xff] }
 0x280   : > { %2354 = vst.msk [vmem:[#allocation3 + $0x139] sm:$0xff] %vm2273_vm4, %v2265_v0  ;;  %v2234_v50 = vmul.f32 0.01, %v2170_v61  ;;  %v1310_v25 = vadd.f32 %v1278_v26, %v981_v22  ;;  %v1726_v16 = vmul.f32 %v13418_v56, %v13796_v45  ;;  %v1757_v27 = vadd.f32 %v1725_v35, %v1671_v9  ;;  %v13907_v26 = vpop.permute.xlu1 %1773 }
 0x281   : > { %v2008_v44 = vadd.f32 %v1976_v39, %v1922_v49  ;;  %v1311_v11 = vadd.f32 %v1279_v19, %v982_v55  ;;  %v1977_v40 = vmul.f32 %v13421_v42, %v13796_v45  ;;  %v1559_v22 = vmul.f32 %v13367_v1, %v13802_v36  ;;  %v2400_v55 = vld [vmem:[#allocation3 + $0x130] sm:$0x3] }
 0x282   : > { %v2266_v18 = vsel %vm2202_vm5, %v2170_v61, %v2234_v50  ;;  %v1758_v32 = vadd.f32 %v1726_v16, %v1672_v7  ;;  %v1810_v24 = vmul.f32 %v13429_v34, %v13802_v36  ;;  %v2061_v9 = vmul.f32 %v13432_v12, %v13802_v36 }
 0x283   : > { %2355 = vst.msk [vmem:[#allocation3 + $0x141] sm:$0xff] %vm2273_vm4, %v2266_v18  ;;  %v2009_v0 = vadd.f32 %v1977_v40, %v1923_v8  ;;  %v2526_v19 = vrot.slane %v13895_v48, 1  ;;  %v2527_v45 = vrot.slane %v13897_v15, 1  ;;  %v1591_v49 = vadd.f32 %v1559_v22, %v1310_v25  ;;  %v1851_v40 = vpop.permute.xlu0 %1850 }
 0x284   : > { %v1842_v61 = vadd.f32 %v1810_v24, %v1757_v27  ;;  %v3187_v7 = vrot.slane %v13895_v48, 2  ;;  %v3188_v35 = vrot.slane %v13897_v15, 2  ;;  %v2093_v39 = vadd.f32 %v2061_v9, %v2008_v44 }
 0x285   : > { %v13917_v50 = vsel %vm1031_vm2, %v2526_v19, %v2527_v45  ;;  %v1560_v8 = vmul.f32 %v13367_v1, %v13814_v10  ;;  %v1811_v36 = vmul.f32 %v13429_v34, %v13814_v10  ;;  %v2062_v16 = vmul.f32 %v13432_v12, %v13814_v10 }
 0x286   : > { %16252 = vst [vmem:[#allocation68_spill] sm:$0xff] %v13917_v50  ;;  %10075 = vmatprep.mubr.msk.f32.mxu1 %vm2273_vm4, %v13917_v50  ;;  %v13926_v25 = vsel %vm1312_vm3, %v3187_v7, %v3188_v35  ;;  %v2529_v27 = vrot.slane %v2400_v55, 1  ;;  %v3190_v44 = vrot.slane %v2400_v55, 2  ;;  %v2132_v18 = vmul.f32 %v13471_v43, %v2093_v39  ;;  %v1856_v39 = vpop.permute.xlu1 %1855 }
 0x287   : > { %16253 = vst [vmem:[#allocation69_spill] sm:$0xff] %v13926_v25  ;;  %10179 = vmatprep.mubr.msk.f32.mxu0 %vm2273_vm4, %v13926_v25  ;;  %v1592_v1 = vadd.f32 %v1560_v8, %v1311_v11  ;;  %v1843_v22 = vadd.f32 %v1811_v36, %v1758_v32  ;;  %v1641_v24 = vmul.f32 %v13398_v17, %v13826_v57  ;;  %v13935_v9 = vld [vmem:[#allocation3 + $0x138] sm:$0xff]  ;;  %vm5560_vm5 = vcmask 261126  }
 0x288   : > { %v2094_v19 = vadd.f32 %v2062_v16, %v2009_v0  ;;  %v13938_v7 = vsel %vm1031_vm2, %v2527_v45, %v2529_v27  ;;  %v13941_v10 = vsel %vm1312_vm3, %v3188_v35, %v3190_v44  ;;  %v1892_v55 = vmul.f32 %v13411_v13, %v13826_v57 }
 0x289   : > { %16254 = vst [vmem:[#allocation70_spill] sm:$0xff] %v13938_v7  ;;  %16255 = vst [vmem:[#allocation71_spill] sm:$0xff] %v13941_v10  ;;  %v2171_v25 = vadd.f32 %v13479_v60, %v2132_v18  ;;  %10076 = vmatmul.mubr.msk.f32.gmra.mrb[24].mxu1 %vm2273_vm4, %v13938_v7  ;;  %10180 = vmatmul.mubr.msk.f32.gmra.mrb[24].mxu0 %vm2273_vm4, %v13941_v10  ;;  %v1673_v11 = vadd.f32 %v1641_v24, %v1591_v49  ;;  %v2531_v0 = vrot.slane %v13935_v9, 1  ;;  %v1938_v24 = vpop.permute.xlu0 %1937 }
 0x28a   : > { %v1642_v32 = vmul.f32 %v13398_v17, %v13835_v58  ;;  %v2133_v45 = vmul.f32 %v13471_v43, %v2094_v19  ;;  %v1924_v35 = vadd.f32 %v1892_v55, %v1842_v61  ;;  %v1893_v57 = vmul.f32 %v13411_v13, %v13835_v58  ;;  %v13963_v61 = vld [vmem:[#allocation3 + $0x140] sm:$0xff] }
 0x28b   : > { %v1727_v8 = vmul.f32 %v13418_v56, %v13860_v29  ;;  %vm2203_vm6 = vcmp.gt.f32.partialorder %v2171_v25, 0.0  ;;  %v2235_v36 = vmul.f32 0.01, %v2171_v25  ;;  %v1978_v49 = vmul.f32 %v13421_v42, %v13860_v29 }
 0x28c   : > { %v1674_v16 = vadd.f32 %v1642_v32, %v1592_v1  ;;  %v2172_v27 = vadd.f32 %v13479_v60, %v2133_v45  ;;  %v1925_v17 = vadd.f32 %v1893_v57, %v1843_v22  ;;  %v1728_v18 = vmul.f32 %v13418_v56, %v13881_v51  ;;  %v2403_v56 = vld [vmem:[#allocation3 + $0x148] sm:$0x3] }
 0x28d   : > { %v1759_v44 = vadd.f32 %v1727_v8, %v1673_v11  ;;  %v2267_v13 = vsel %vm2203_vm6, %v2171_v25, %v2235_v36  ;;  %v2010_v58 = vadd.f32 %v1978_v49, %v1924_v35  ;;  %v1979_v19 = vmul.f32 %v13421_v42, %v13881_v51  ;;  %v1942_v11 = vpop.permute.xlu1 %1941 }
 0x28e   : > { %v1812_v1 = vmul.f32 %v13429_v34, %v13899_v31  ;;  %2356 = vst.msk [vmem:[#allocation3 + $0x151] sm:$0xff] %vm2273_vm4, %v2267_v13  ;;  %vm2204_vm7 = vcmp.gt.f32.partialorder %v2172_v27, 0.0  ;;  %v2236_v29 = vmul.f32 0.01, %v2172_v27  ;;  %v1760_v22 = vadd.f32 %v1728_v18, %v1674_v16  ;;  %v2023_v13 = vpop.permute.xlu0 %2022 }
 0x28f   : > { %v2063_v55 = vmul.f32 %v13432_v12, %v13899_v31  ;;  %v2011_v32 = vadd.f32 %v1979_v19, %v1925_v17  ;;  %v2532_v25 = vrot.slane %v13963_v61, 1  ;;  %v3192_v35 = vrot.slane %v13935_v9, 2 }
 0x290   : > { %v1844_v45 = vadd.f32 %v1812_v1, %v1759_v44  ;;  %v2268_v42 = vsel %vm2204_vm7, %v2172_v27, %v2236_v29  ;;  %v3193_v57 = vrot.slane %v13963_v61, 2  ;;  %v1813_v8 = vmul.f32 %v13429_v34, %v13907_v26  ;;  %v11781_v34 = vld [vmem:[#allocation8 + $0x6] ss:$0 sm:$0xff]  ;;  %v11782_v1 = vld [vmem:[#allocation8 + $0x7] ss:$0 sm:$0xff] }
 0x291   : > { %v2095_v51 = vadd.f32 %v2063_v55, %v2010_v58  ;;  %2357 = vst.msk [vmem:[#allocation3 + $0x159] sm:$0xff] %vm2273_vm4, %v2268_v42  ;;  %v13979_v36 = vsel %vm1031_vm2, %v2531_v0, %v2532_v25  ;;  %v2064_v31 = vmul.f32 %v13432_v12, %v13907_v26  ;;  %v2534_v16 = vrot.slane %v2403_v56, 1  ;;  %v2416_v55 = vld [vmem:[%s16082_s4] sm:$0xff] }
 0x292   : > { %16256 = vst [vmem:[#allocation72_spill] sm:$0xff] %v13979_v36  ;;  %v3195_v49 = vrot.slane %v2403_v56, 2  ;;  %10078 = vmatprep.mubr.msk.f32.mxu1 %vm2273_vm4, %v13979_v36  ;;  %v13987_v27 = vsel %vm1312_vm3, %v3192_v35, %v3193_v57  ;;  %v1845_v44 = vadd.f32 %v1813_v8, %v1760_v22  ;;  %v1894_v18 = vmul.f32 %v11781_v34, %v1851_v40  ;;  %v2027_v22 = vpop.permute.xlu1 %2026  ;;  %v11783_v35 = vld [vmem:[#allocation8 + $0x8] ss:$0 sm:$0xff] }
 0x293   : > { %v2134_v17 = vmul.f32 %v13471_v43, %v2095_v51  ;;  %16257 = vst [vmem:[#allocation73_spill] sm:$0xff] %v13987_v27  ;;  %10182 = vmatprep.mubr.msk.f32.mxu0 %vm2273_vm4, %v13987_v27  ;;  %v2096_v0 = vadd.f32 %v2064_v31, %v2011_v32  ;;  %v13992_v12 = vsel %vm1031_vm2, %v2532_v25, %v2534_v16  ;;  %vm5421_vm7 = vcmask 253952  }
 0x294   : > { %16258 = vst [vmem:[#allocation74_spill] sm:$0xff] %v13992_v12  ;;  %v13995_v26 = vsel %vm1312_vm3, %v3193_v57, %v3195_v49  ;;  %v1895_v58 = vmul.f32 %v11781_v34, %v1856_v39  ;;  %10079 = vmatmul.mubr.msk.f32.gmra.mrb[26].mxu1 %vm2273_vm4, %v13992_v12  ;;  %v1926_v40 = vadd.f32 %v1894_v18, %v1844_v45  ;;  %v2417_v39 = vld [vmem:[%s16082_s4 + $0x8] sm:$0xff] }
 0x295   : > { %v2173_v19 = vadd.f32 %v13479_v60, %v2134_v17  ;;  %10183 = vmatmul.mubr.msk.f32.gmra.mrb[26].mxu0 %vm2273_vm4, %v13995_v26  ;;  %v1980_v29 = vmul.f32 %v11782_v1, %v1938_v24  ;;  %v2135_v56 = vmul.f32 %v13471_v43, %v2096_v0  ;;  %v1981_v25 = vmul.f32 %v11782_v1, %v1942_v11  ;;  %v14009_v51 = vld [vmem:[#allocation3 + $0x150] sm:$0xff]  ;;  %v9073_v45 = vld [vmem:[%s16082_s4 + $0x48] sm:$0xff] }
 0x296   : > { %v1927_v32 = vadd.f32 %v1895_v58, %v1845_v44  ;;  %v2065_v42 = vmul.f32 %v11783_v35, %v2023_v13  ;;  %v9072_v24 = vld [vmem:[%s16082_s4 + $0x40] sm:$0xff]  ;;  %v2536_v31 = vrot.slane %v14009_v51, 1  ;;  %v3197_v49 = vrot.slane %v14009_v51, 2 }
 0x297   : > { %vm2205_vm8 = vcmp.gt.f32.partialorder %v2173_v19, 0.0  ;;  %v2237_v57 = vmul.f32 0.01, %v2173_v19  ;;  %v2012_v8 = vadd.f32 %v1980_v29, %v1926_v40  ;;  %v2174_v16 = vadd.f32 %v13479_v60, %v2135_v56 }
 0x298   : > { %v2013_v11 = vadd.f32 %v1981_v25, %v1927_v32  ;;  %v2066_v17 = vmul.f32 %v11783_v35, %v2027_v22  ;;  %v14020_v18 = vld [vmem:[#allocation3 + $0x158] sm:$0xff]  ;;  %v2406_v13 = vld [vmem:[#allocation3 + $0x160] sm:$0x3]  ;;  %v10974_v0 = vpack.c.bf16 %v2417_v39, %v2416_v55  ;;  %v14022_v58 = vpack.c.bf16 %v9073_v45, %v9072_v24 }
 0x299   : > { %v2269_v44 = vsel %vm2205_vm8, %v2173_v19, %v2237_v57  ;;  %v2097_v34 = vadd.f32 %v2065_v42, %v2012_v8  ;;  %vm2206_vm9 = vcmp.gt.f32.partialorder %v2174_v16, 0.0  ;;  %v2238_v40 = vmul.f32 0.01, %v2174_v16  ;;  %v11785_v57 = vld [vmem:[#allocation11] ss:$0 sm:$0xff] }
 0x29a   : > { %2358 = vst.msk [vmem:[#allocation3 + $0x169] sm:$0xff] %vm2273_vm4, %v2269_v44  ;;  %v2537_v1 = vrot.slane %v14020_v18, 1  ;;  %v3198_v29 = vrot.slane %v14020_v18, 2  ;;  %v2098_v32 = vadd.f32 %v2066_v17, %v2013_v11  ;;  %v2539_v22 = vrot.slane %v2406_v13, 1  ;;  %10975 = vmatprep.subr.bf16.mxu1 %v10974_v0  ;;  %10987 = vmatprep.subr.bf16.mxu0 %v14022_v58 }
 0x29b   : > { %v2136_v56 = vmul.f32 %v13471_v43, %v2097_v34  ;;  %v3200_v19 = vrot.slane %v2406_v13, 2  ;;  %v2270_v25 = vsel %vm2206_vm9, %v2174_v16, %v2238_v40  ;;  %10977 = vmatpush3.bf16.msra.mxu1 %v10974_v0  ;;  %v11784_v43 = vld [vmem:[%s16080_s2] ss:$0 sm:$0xff] }
 0x29c   : > { %v14030_v55 = vsel %vm1031_vm2, %v2536_v31, %v2537_v1  ;;  %v14033_v39 = vsel %vm1312_vm3, %v3197_v49, %v3198_v29  ;;  %2359 = vst.msk [vmem:[#allocation3 + $0x171] sm:$0xff] %vm2273_vm4, %v2270_v25  ;;  %v2137_v42 = vmul.f32 %v11784_v43, %v2098_v32  ;;  %v14045_v24 = vsel %vm1031_vm2, %v2537_v1, %v2539_v22  ;;  %v9106_v25 = vld [vmem:[%s16082_s4 + $0x50] sm:$0xff]  ;;  %v11786_v43 = vld [vmem:[#allocation3 + $0x18] sm:$0xff] }
 0x29d   : > { %16259 = vst [vmem:[#allocation75_spill] sm:$0xff] %v14030_v55  ;;  %16260 = vst [vmem:[#allocation76_spill] sm:$0xff] %v14033_v39  ;;  %v2175_v35 = vadd.f32 %v13479_v60, %v2136_v56  ;;  %10081 = vmatprep.mubr.msk.f32.mxu1 %vm2273_vm4, %v14030_v55  ;;  %10185 = vmatprep.mubr.msk.f32.mxu0 %vm2273_vm4, %v14033_v39  ;;  %v14050_v45 = vsel %vm1312_vm3, %v3198_v29, %v3200_v19 }
 0x29e   : > { %16261 = vst [vmem:[#allocation77_spill] sm:$0xff] %v14045_v24  ;;  %10082 = vmatmul.mubr.msk.f32.gmra.mrb[28].mxu1 %vm2273_vm4, %v14045_v24  ;;  %16262 = vst [vmem:[#allocation78_spill] sm:$0xff] %v14050_v45  ;;  %v2176_v8 = vadd.f32 %v11785_v57, %v2137_v42  ;;  %10186 = vmatmul.mubr.msk.f32.gmra.mrb[28].mxu0 %vm2273_vm4, %v14050_v45  ;;  %v11787_v42 = vld [vmem:[#allocation3] sm:$0xff]  ;;  %v11788_v57 = vld [vmem:[#allocation3 + $0x8] sm:$0xff] }
 0x29f   : > { %vm2207_vm10 = vcmp.gt.f32.partialorder %v2175_v35, 0.0  ;;  %v2239_v60 = vmul.f32 0.01, %v2175_v35 }
 0x2a0   : > { %vm2208_vm11 = vcmp.gt.f32.partialorder %v2176_v8, 0.0  ;;  %v2240_v16 = vmul.f32 0.01, %v2176_v8 }
 0x2a1   : > { %v2271_v31 = vsel %vm2207_vm10, %v2175_v35, %v2239_v60  ;;  %v14054_v11 = vld [vmem:[#allocation3 + $0x168] sm:$0xff] }
 0x2a2   : > { %2360 = vst.msk [vmem:[#allocation3 + $0x181] sm:$0xff] %vm2273_vm4, %v2271_v31  ;;  %v2272_v49 = vsel %vm2208_vm11, %v2176_v8, %v2240_v16  ;;  %v2541_v44 = vrot.slane %v14054_v11, 1  ;;  %v3202_v34 = vrot.slane %v14054_v11, 2  ;;  %v9107_v35 = vld [vmem:[%s16082_s4 + $0x58] sm:$0xff]  ;;  %v11789_v8 = vld [vmem:[#allocation3 + $0x20] sm:$0xff]  ;;  %v14098_v31 = vld [vmem:[#allocation3 + $0x30] sm:$0xff] }
 0x2a3   : > { %2361 = vst.msk [vmem:[#allocation3 + $0x189] sm:$0xff] %vm2273_vm4, %v2272_v49  ;;  %v14058_v17 = vld [vmem:[#allocation3 + $0x170] sm:$0xff]  ;;  %v2409_v13 = vld [vmem:[#allocation3 + $0x178] sm:$0x3]  ;;  %v14092_v60 = vpack.c.bf16 %v9107_v35, %v9106_v25  ;;  %v14170_v35 = vld [vmem:[#allocation3 + $0xc0] sm:$0xff] }
 0x2a4   : > { %v2542_v0 = vrot.slane %v14058_v17, 1  ;;  %v3203_v40 = vrot.slane %v14058_v17, 2  ;;  %v2544_v1 = vrot.slane %v2409_v13, 1  ;;  %v3205_v29 = vrot.slane %v2409_v13, 2  ;;  %v14104_v16 = vld [vmem:[#allocation3 + $0x38] sm:$0xff]  ;;  %v14116_v49 = vld [vmem:[#allocation3 + $0x50] sm:$0xff] }
 0x2a5   : > { %v14134_v13 = vld [vmem:[#allocation3 + $0x78] sm:$0xff]  ;;  %v14164_v25 = vld [vmem:[#allocation3 + $0xb0] sm:$0xff] }
 0x2a6   : > { %v14065_v56 = vsel %vm1031_vm2, %v2541_v44, %v2542_v0  ;;  %v14068_v32 = vsel %vm1312_vm3, %v3202_v34, %v3203_v40  ;;  %v14071_v22 = vsel %vm1031_vm2, %v2542_v0, %v2544_v1  ;;  %v14074_v19 = vsel %vm1312_vm3, %v3203_v40, %v3205_v29  ;;  %v14122_v44 = vld [vmem:[#allocation3 + $0x60] sm:$0xff]  ;;  %v14128_v34 = vld [vmem:[#allocation3 + $0x68] sm:$0xff]  ;;  %v14146_v40 = vld [vmem:[#allocation3 + $0x90] sm:$0xff] }
 0x2a7   : > { %16263 = vst [vmem:[#allocation79_spill] sm:$0xff] %v14065_v56  ;;  %16264 = vst [vmem:[#allocation80_spill] sm:$0xff] %v14071_v22  ;;  %10084 = vmatprep.mubr.msk.f32.mxu1 %vm2273_vm4, %v14065_v56  ;;  %10188 = vmatprep.mubr.msk.f32.mxu0 %vm2273_vm4, %v14068_v32  ;;  %v14140_v0 = vld [vmem:[#allocation3 + $0x80] sm:$0xff]  ;;  %v14152_v1 = vld [vmem:[#allocation3 + $0x98] sm:$0xff] }
 0x2a8   : > { %10085 = vmatmul.mubr.msk.f32.gmra.mrb[30].mxu1 %vm2273_vm4, %v14071_v22  ;;  %10189 = vmatmul.mubr.msk.f32.gmra.mrb[30].mxu0 %vm2273_vm4, %v14074_v19  ;;  %v14158_v29 = vld [vmem:[#allocation3 + $0xa8] sm:$0xff] }
 0x2a9   : > { %10195 = vmatprep.mubr.msk.f32.mxu0 %vm2273_vm4, %v11786_v43  ;;  %10091 = vmatprep.mubr.msk.f32.mxu1 %vm2273_vm4, %v11787_v42  ;;  %v16267_v42 = vld [vmem:[#allocation54_spill] sm:$0xff] }
 0x2ac   : > { %10092 = vmatmul.mubr.msk.f32.vlgmr.msra.gmra.mrb[0].mxu1 %vm2273_vm4, %v11788_v57  ;;  %10196 = vmatmul.mubr.msk.f32.vlgmr.msra.gmra.mrb[0].mxu0 %vm2273_vm4, %v11789_v8  ;;  %v16269_v57 = vld [vmem:[#allocation58_spill] sm:$0xff] }
 0x2ad   : > { %10989 = vmatpush3.bf16.msra.mxu0 %v14022_v58  ;;  %10094 = vmatprep.mubr.msk.f32.mxu1 %vm2273_vm4, %v11786_v43  ;;  %v14110_v58 = vld [vmem:[#allocation3 + $0x48] sm:$0xff] }
 0x2ae   : > { %10198 = vmatprep.mubr.msk.f32.mxu0 %vm2273_vm4, %v14098_v31  ;;  %10991 = vmatprep.subr.bf16.mxu0 %v14092_v60 }
 0x2b0   : > { %10095 = vmatmul.mubr.msk.f32.gmra.mrb[2].mxu1 %vm2273_vm4, %v11789_v8  ;;  %10199 = vmatmul.mubr.msk.f32.gmra.mrb[2].mxu0 %vm2273_vm4, %v14104_v16  ;;  %v16270_v8 = vld [vmem:[#allocation60_spill] sm:$0xff] }
 0x2b1   : > { %10097 = vmatprep.mubr.msk.f32.mxu1 %vm2273_vm4, %v14098_v31  ;;  %10201 = vmatprep.mubr.msk.f32.mxu0 %vm2273_vm4, %v14110_v58 }
 0x2b4   : > { %10098 = vmatmul.mubr.msk.f32.gmra.mrb[4].mxu1 %vm2273_vm4, %v14104_v16  ;;  %10202 = vmatmul.mubr.msk.f32.gmra.mrb[4].mxu0 %vm2273_vm4, %v14116_v49 }
 0x2b5   : > { %10100 = vmatprep.mubr.msk.f32.mxu1 %vm2273_vm4, %v14110_v58  ;;  %10204 = vmatprep.mubr.msk.f32.mxu0 %vm2273_vm4, %v14122_v44 }
 0x2b8   : > { %10101 = vmatmul.mubr.msk.f32.gmra.mrb[6].mxu1 %vm2273_vm4, %v14116_v49  ;;  %10205 = vmatmul.mubr.msk.f32.gmra.mrb[6].mxu0 %vm2273_vm4, %v14128_v34 }
 0x2b9   : > { %10103 = vmatprep.mubr.msk.f32.mxu1 %vm2273_vm4, %v14122_v44  ;;  %10207 = vmatprep.mubr.msk.f32.mxu0 %vm2273_vm4, %v14134_v13 }
 0x2bc   : > { %10104 = vmatmul.mubr.msk.f32.gmra.mrb[8].mxu1 %vm2273_vm4, %v14128_v34  ;;  %10208 = vmatmul.mubr.msk.f32.gmra.mrb[8].mxu0 %vm2273_vm4, %v14140_v0 }
 0x2bd   : > { %10106 = vmatprep.mubr.msk.f32.mxu1 %vm2273_vm4, %v14134_v13  ;;  %10210 = vmatprep.mubr.msk.f32.mxu0 %vm2273_vm4, %v14146_v40 }
 0x2c0   : > { %10107 = vmatmul.mubr.msk.f32.gmra.mrb[10].mxu1 %vm2273_vm4, %v14140_v0  ;;  %10211 = vmatmul.mubr.msk.f32.gmra.mrb[10].mxu0 %vm2273_vm4, %v14152_v1 }
 0x2c1   : > { %10109 = vmatprep.mubr.msk.f32.mxu1 %vm2273_vm4, %v14146_v40  ;;  %10213 = vmatprep.mubr.msk.f32.mxu0 %vm2273_vm4, %v14158_v29 }
 0x2c4   : > { %10110 = vmatmul.mubr.msk.f32.gmra.mrb[12].mxu1 %vm2273_vm4, %v14152_v1  ;;  %10214 = vmatmul.mubr.msk.f32.gmra.mrb[12].mxu0 %vm2273_vm4, %v14164_v25 }
 0x2c5   : > { %10112 = vmatprep.mubr.msk.f32.mxu1 %vm2273_vm4, %v14158_v29  ;;  %10216 = vmatprep.mubr.msk.f32.mxu0 %vm2273_vm4, %v14170_v35 }
 0x2c8   : > { %10113 = vmatmul.mubr.msk.f32.gmra.mrb[14].mxu1 %vm2273_vm4, %v14164_v25  ;;  %10217 = vmatmul.mubr.msk.f32.gmra.mrb[14].mxu0 %vm2273_vm4, %v13562_v21 }
 0x2c9   : > { %10115 = vmatprep.mubr.msk.f32.mxu1 %vm2273_vm4, %v14170_v35  ;;  %10219 = vmatprep.mubr.msk.f32.mxu0 %vm2273_vm4, %v13643_v63 }
 0x2cc   : > { %10116 = vmatmul.mubr.msk.f32.gmra.mrb[16].mxu1 %vm2273_vm4, %v13562_v21  ;;  %10220 = vmatmul.mubr.msk.f32.gmra.mrb[16].mxu0 %vm2273_vm4, %v13645_v2  ;;  %v14234_v21 = vld [vmem:[#allocation3 + $0x180] sm:$0xff] }
 0x2cd   : > { %10118 = vmatprep.mubr.msk.f32.mxu1 %vm2273_vm4, %v13643_v63  ;;  %10222 = vmatprep.mubr.msk.f32.mxu0 %vm2273_vm4, %v13685_v38  ;;  %v14240_v63 = vld [vmem:[#allocation3 + $0x188] sm:$0xff] }
 0x2d0   : > { %10119 = vmatmul.mubr.msk.f32.gmra.mrb[18].mxu1 %vm2273_vm4, %v13645_v2  ;;  %10223 = vmatmul.mubr.msk.f32.gmra.mrb[18].mxu0 %vm2273_vm4, %v13730_v4  ;;  %v9140_v2 = vld [vmem:[%s16082_s4 + $0x60] sm:$0xff] }
 0x2d1   : > { %10121 = vmatprep.mubr.msk.f32.mxu1 %vm2273_vm4, %v13685_v38  ;;  %10225 = vmatprep.mubr.msk.f32.mxu0 %vm2273_vm4, %v13775_v20  ;;  %v9141_v38 = vld [vmem:[%s16082_s4 + $0x68] sm:$0xff] }
 0x2d2   : > { %v10994_v43 = vpack.c.bf16 %v9141_v38, %v9140_v2  ;;  %v16271_v2 = vld [vmem:[#allocation62_spill] sm:$0xff]  ;;  %v3799_v38 = vrot.slane %v14240_v63, 1 }
 0x2d4   : > { %10122 = vmatmul.mubr.msk.f32.gmra.mrb[20].mxu1 %vm2273_vm4, %v13730_v4  ;;  %10226 = vmatmul.mubr.msk.f32.gmra.mrb[20].mxu0 %vm2273_vm4, %v13820_v3 }
 0x2d5   : > { %10124 = vmatprep.mubr.msk.f32.mxu1 %vm2273_vm4, %v13775_v20  ;;  %10228 = vmatprep.mubr.msk.f32.mxu0 %vm2273_vm4, %v13895_v48 }
 0x2d8   : > { %10125 = vmatmul.mubr.msk.f32.gmra.mrb[22].mxu1 %vm2273_vm4, %v13820_v3  ;;  %10229 = vmatmul.mubr.msk.f32.gmra.mrb[22].mxu0 %vm2273_vm4, %v13897_v15 }
 0x2d9   : > { %10127 = vmatprep.mubr.msk.f32.mxu1 %vm2273_vm4, %v13895_v48  ;;  %10231 = vmatprep.mubr.msk.f32.mxu0 %vm2273_vm4, %v13935_v9 }
 0x2dc   : > { %10128 = vmatmul.mubr.msk.f32.gmra.mrb[24].mxu1 %vm2273_vm4, %v13897_v15  ;;  %10232 = vmatmul.mubr.msk.f32.gmra.mrb[24].mxu0 %vm2273_vm4, %v13963_v61 }
 0x2dd   : > { %10130 = vmatprep.mubr.msk.f32.mxu1 %vm2273_vm4, %v13935_v9  ;;  %10234 = vmatprep.mubr.msk.f32.mxu0 %vm2273_vm4, %v14009_v51 }
 0x2e0   : > { %10131 = vmatmul.mubr.msk.f32.gmra.mrb[26].mxu1 %vm2273_vm4, %v13963_v61  ;;  %10235 = vmatmul.mubr.msk.f32.gmra.mrb[26].mxu0 %vm2273_vm4, %v14020_v18 }
 0x2e1   : > { %10133 = vmatprep.mubr.msk.f32.mxu1 %vm2273_vm4, %v14009_v51  ;;  %10237 = vmatprep.mubr.msk.f32.mxu0 %vm2273_vm4, %v14054_v11 }
 0x2e4   : > { %10134 = vmatmul.mubr.msk.f32.gmra.mrb[28].mxu1 %vm2273_vm4, %v14020_v18  ;;  %10238 = vmatmul.mubr.msk.f32.gmra.mrb[28].mxu0 %vm2273_vm4, %v14058_v17 }
 0x2e5   : > { %10136 = vmatprep.mubr.msk.f32.mxu1 %vm2273_vm4, %v14054_v11  ;;  %10240 = vmatprep.mubr.msk.f32.mxu0 %vm2273_vm4, %v14234_v21 }
 0x2e8   : > { %10137 = vmatmul.mubr.msk.f32.gmra.mrb[30].mxu1 %vm2273_vm4, %v14058_v17  ;;  %10241 = vmatmul.mubr.msk.f32.gmra.mrb[30].mxu0 %vm2273_vm4, %v14240_v63 }
 0x2e9   : > { %10247 = vmatprep.mubr.msk.f32.mxu0 %vm2273_vm4, %v13177_v62  ;;  %v16265_v62 = vld [vmem:[#allocation50_spill] sm:$0xff] }
 0x2ec   : > { %10248 = vmatmul.mubr.msk.f32.vlgmr.msra.gmra.mrb[0].mxu0 %vm2273_vm4, %v13188_v14  ;;  %v16266_v14 = vld [vmem:[#allocation52_spill] sm:$0xff] }
 0x2ed   : > { %10993 = vmatpush3.bf16.msra.mxu0 %v14092_v60  ;;  %10250 = vmatprep.mubr.msk.f32.mxu0 %vm2273_vm4, %v13228_v46  ;;  %v16268_v60 = vld [vmem:[#allocation56_spill] sm:$0xff] }
 0x2ee   : > { %10995 = vmatprep.subr.bf16.mxu0 %v10994_v43 }
 0x2f0   : > { %10251 = vmatmul.mubr.msk.f32.gmra.mrb[2].mxu0 %vm2273_vm4, %v13242_v53 }
 0x2f1   : > { %10253 = vmatprep.mubr.msk.f32.mxu0 %vm2273_vm4, %v13276_v6 }
 0x2f4   : > { %10254 = vmatmul.mubr.msk.f32.gmra.mrb[4].mxu0 %vm2273_vm4, %v13295_v28 }
 0x2f5   : > { %10256 = vmatprep.mubr.msk.f32.mxu0 %vm2273_vm4, %v13327_v23 }
 0x2f8   : > { %10257 = vmatmul.mubr.msk.f32.gmra.mrb[6].mxu0 %vm2273_vm4, %v13340_v54 }
 0x2f9   : > { %10259 = vmatprep.mubr.msk.f32.mxu0 %vm2273_vm4, %v13374_v47 }
 0x2fc   : > { %10260 = vmatmul.mubr.msk.f32.gmra.mrb[8].mxu0 %vm2273_vm4, %v13393_v41 }
 0x2fd   : > { %10262 = vmatprep.mubr.msk.f32.mxu0 %vm2273_vm4, %v13439_v37 }
 0x300   : > { %10263 = vmatmul.mubr.msk.f32.gmra.mrb[10].mxu0 %vm2273_vm4, %v13452_v59 }
 0x301   : > { %10265 = vmatprep.mubr.msk.f32.mxu0 %vm2273_vm4, %v13502_v5 }
 0x304   : > { %10266 = vmatmul.mubr.msk.f32.gmra.mrb[12].mxu0 %vm2273_vm4, %v16265_v62 }
 0x305   : > { %10268 = vmatprep.mubr.msk.f32.mxu0 %vm2273_vm4, %v16266_v14 }
 0x308   : > { %10269 = vmatmul.mubr.msk.f32.gmra.mrb[14].mxu0 %vm2273_vm4, %v16267_v42 }
 0x309   : > { %10271 = vmatprep.mubr.msk.f32.mxu0 %vm2273_vm4, %v16268_v60 }
 0x30c   : > { %10272 = vmatmul.mubr.msk.f32.gmra.mrb[16].mxu0 %vm2273_vm4, %v16269_v57 }
 0x30d   : > { %10274 = vmatprep.mubr.msk.f32.mxu0 %vm2273_vm4, %v16270_v8 }
 0x310   : > { %10275 = vmatmul.mubr.msk.f32.gmra.mrb[18].mxu0 %vm2273_vm4, %v16271_v2 }
 0x311   : > { %10277 = vmatprep.mubr.msk.f32.mxu0 %vm2273_vm4, %v13841_v33  ;;  %v16279_v33 = vld [vmem:[#allocation38_spill] sm:$0xff] }
 0x314   : > { %10278 = vmatmul.mubr.msk.f32.gmra.mrb[20].mxu0 %vm2273_vm4, %v13856_v30  ;;  %v2412_v30 = vld [vmem:[#allocation3 + $0x190] sm:$0x3] }
 0x315   : > { %10280 = vmatprep.mubr.msk.f32.mxu0 %vm2273_vm4, %v13917_v50  ;;  %v3801_v50 = vrot.slane %v2412_v30, 1 }
 0x318   : > { %10281 = vmatmul.mubr.msk.f32.gmra.mrb[22].mxu0 %vm2273_vm4, %v13938_v7  ;;  %v3798_v7 = vrot.slane %v14234_v21, 1 }
 0x319   : > { %10283 = vmatprep.mubr.msk.f32.mxu0 %vm2273_vm4, %v13979_v36  ;;  %v16275_v36 = vld [vmem:[#allocation40_spill] sm:$0xff] }
 0x31c   : > { %10284 = vmatmul.mubr.msk.f32.gmra.mrb[24].mxu0 %vm2273_vm4, %v13992_v12  ;;  %v14316_v12 = vsel %vm1031_vm2, %v3798_v7, %v3799_v38 }
 0x31d   : > { %10286 = vmatprep.mubr.msk.f32.mxu0 %vm2273_vm4, %v14030_v55  ;;  %16272 = vst [vmem:[#allocation50_spill] sm:$0xff] %v14316_v12  ;;  %v14321_v55 = vsel %vm1031_vm2, %v3799_v38, %v3801_v50  ;;  %v16276_v50 = vld [vmem:[#allocation41_spill] sm:$0xff]  ;;  %v16277_v38 = vld [vmem:[#allocation42_spill] sm:$0xff] }
 0x31e   : > { %16273 = vst [vmem:[#allocation52_spill] sm:$0xff] %v14321_v55 }
 0x320   : > { %10287 = vmatmul.mubr.msk.f32.gmra.mrb[26].mxu0 %vm2273_vm4, %v14045_v24  ;;  %v9174_v24 = vld [vmem:[%s16082_s4 + $0x70] sm:$0xff] }
 0x321   : > { %10289 = vmatprep.mubr.msk.f32.mxu0 %vm2273_vm4, %v14065_v56  ;;  %v9175_v56 = vld [vmem:[%s16082_s4 + $0x78] sm:$0xff] }
 0x322   : > { %v10998_v7 = vpack.c.bf16 %v9175_v56, %v9174_v24  ;;  %v16281_v24 = vld [vmem:[#allocation44_spill] sm:$0xff]  ;;  %v16283_v56 = vld [vmem:[#allocation46_spill] sm:$0xff] }
 0x324   : > { %10290 = vmatmul.mubr.msk.f32.gmra.mrb[28].mxu0 %vm2273_vm4, %v14071_v22  ;;  %v16274_v22 = vld [vmem:[#allocation39_spill] sm:$0xff] }
 0x325   : > { %10292 = vmatprep.mubr.msk.f32.mxu0 %vm2273_vm4, %v14316_v12  ;;  %v16278_v12 = vld [vmem:[#allocation37_spill] sm:$0xff] }
 0x328   : > { %10293 = vmatmul.mubr.msk.f32.gmra.mrb[30].mxu0 %vm2273_vm4, %v14321_v55  ;;  %v16280_v55 = vld [vmem:[#allocation43_spill] sm:$0xff] }
 0x329   : > { %10299 = vmatprep.mubr.msk.f32.mxu0 %vm2273_vm4, %v16274_v22  ;;  %v16284_v22 = vld [vmem:[#allocation47_spill] sm:$0xff] }
 0x32c   : > { %10300 = vmatmul.mubr.msk.f32.vlgmr.msra.gmra.mrb[0].mxu0 %vm2273_vm4, %v16275_v36  ;;  %v16282_v36 = vld [vmem:[#allocation45_spill] sm:$0xff] }
 0x32d   : > { %10997 = vmatpush3.bf16.msra.mxu0 %v10994_v43  ;;  %10302 = vmatprep.mubr.msk.f32.mxu0 %vm2273_vm4, %v16276_v50  ;;  %v16285_v43 = vld [vmem:[#allocation48_spill] sm:$0xff] }
 0x32e   : > { %10999 = vmatprep.subr.bf16.mxu0 %v10998_v7 }
 0x330   : > { %10303 = vmatmul.mubr.msk.f32.gmra.mrb[2].mxu0 %vm2273_vm4, %v16277_v38 }
 0x331   : > { %10305 = vmatprep.mubr.msk.f32.mxu0 %vm2273_vm4, %v16278_v12  ;;  %v16286_v12 = vld [vmem:[#allocation49_spill] sm:$0xff] }
 0x334   : > { %10306 = vmatmul.mubr.msk.f32.gmra.mrb[4].mxu0 %vm2273_vm4, %v16279_v33  ;;  %v16287_v33 = vld [vmem:[#allocation51_spill] sm:$0xff] }
 0x335   : > { %10308 = vmatprep.mubr.msk.f32.mxu0 %vm2273_vm4, %v16280_v55  ;;  %v16288_v55 = vld [vmem:[#allocation53_spill] sm:$0xff] }
 0x338   : > { %10309 = vmatmul.mubr.msk.f32.gmra.mrb[6].mxu0 %vm2273_vm4, %v16281_v24  ;;  %v16289_v24 = vld [vmem:[#allocation55_spill] sm:$0xff] }
 0x339   : > { %10311 = vmatprep.mubr.msk.f32.mxu0 %vm2273_vm4, %v16282_v36  ;;  %v16290_v36 = vld [vmem:[#allocation57_spill] sm:$0xff] }
 0x33c   : > { %10312 = vmatmul.mubr.msk.f32.gmra.mrb[8].mxu0 %vm2273_vm4, %v16283_v56  ;;  %v16291_v56 = vld [vmem:[#allocation59_spill] sm:$0xff] }
 0x33d   : > { %10314 = vmatprep.mubr.msk.f32.mxu0 %vm2273_vm4, %v16284_v22  ;;  %v16292_v22 = vld [vmem:[#allocation61_spill] sm:$0xff] }
 0x340   : > { %10315 = vmatmul.mubr.msk.f32.gmra.mrb[10].mxu0 %vm2273_vm4, %v16285_v43  ;;  %v16293_v43 = vld [vmem:[#allocation63_spill] sm:$0xff] }
 0x341   : > { %10317 = vmatprep.mubr.msk.f32.mxu0 %vm2273_vm4, %v16286_v12 }
 0x344   : > { %10318 = vmatmul.mubr.msk.f32.gmra.mrb[12].mxu0 %vm2273_vm4, %v16287_v33  ;;  %v16294_v33 = vld [vmem:[#allocation67_spill] sm:$0xff] }
 0x345   : > { %10320 = vmatprep.mubr.msk.f32.mxu0 %vm2273_vm4, %v16288_v55  ;;  %v16295_v55 = vld [vmem:[#allocation69_spill] sm:$0xff] }
 0x348   : > { %10321 = vmatmul.mubr.msk.f32.gmra.mrb[14].mxu0 %vm2273_vm4, %v16289_v24 }
 0x349   : > { %10323 = vmatprep.mubr.msk.f32.mxu0 %vm2273_vm4, %v16290_v36 }
 0x34c   : > { %10324 = vmatmul.mubr.msk.f32.gmra.mrb[16].mxu0 %vm2273_vm4, %v16291_v56 }
 0x34d   : > { %10326 = vmatprep.mubr.msk.f32.mxu0 %vm2273_vm4, %v16292_v22 }
 0x350   : > { %10327 = vmatmul.mubr.msk.f32.gmra.mrb[18].mxu0 %vm2273_vm4, %v16293_v43 }
 0x351   : > { %10329 = vmatprep.mubr.msk.f32.mxu0 %vm2273_vm4, %v13851_v52  ;;  %v4068_v52 = vrot.slane %v14240_v63, 2 }
 0x354   : > { %10330 = vmatmul.mubr.msk.f32.gmra.mrb[20].mxu0 %vm2273_vm4, %v16294_v33 }
 0x355   : > { %10332 = vmatprep.mubr.msk.f32.mxu0 %vm2273_vm4, %v16295_v55  ;;  %v4067_v55 = vrot.slane %v14234_v21, 2 }
 0x358   : > { %10333 = vmatmul.mubr.msk.f32.gmra.mrb[22].mxu0 %vm2273_vm4, %v13941_v10  ;;  %v4070_v10 = vrot.slane %v2412_v30, 2  ;;  %v9209_v30 = vld [vmem:[%s16082_s4 + $0x88] sm:$0xff] }
 0x359   : > { %10335 = vmatprep.mubr.msk.f32.mxu0 %vm2273_vm4, %v13987_v27  ;;  %v14394_v27 = vsel %vm1312_vm3, %v4067_v55, %v4068_v52 }
 0x35c   : > { %10336 = vmatmul.mubr.msk.f32.gmra.mrb[24].mxu0 %vm2273_vm4, %v13995_v26 }
 0x35d   : > { %10338 = vmatprep.mubr.msk.f32.mxu0 %vm2273_vm4, %v14033_v39  ;;  %v14399_v39 = vsel %vm1312_vm3, %v4068_v52, %v4070_v10 }
 0x360   : > { %10339 = vmatmul.mubr.msk.f32.gmra.mrb[26].mxu0 %vm2273_vm4, %v14050_v45  ;;  %v9208_v45 = vld [vmem:[%s16082_s4 + $0x80] sm:$0xff] }
 0x361   : > { %10341 = vmatprep.mubr.msk.f32.mxu0 %vm2273_vm4, %v14068_v32  ;;  %v14411_v55 = vpack.c.bf16 %v9209_v30, %v9208_v45 }
 0x364   : > { %10342 = vmatmul.mubr.msk.f32.gmra.mrb[28].mxu0 %vm2273_vm4, %v14074_v19 }
 0x365   : > { %10344 = vmatprep.mubr.msk.f32.mxu0 %vm2273_vm4, %v14394_v27 }
 0x368   : > { %10345 = vmatmul.mubr.msk.f32.gmra.mrb[30].mxu0 %vm2273_vm4, %v14399_v39 }
 0x369   : > { %10351 = vmatprep.mubr.msk.f32.mxu0 %vm2273_vm4, %v14098_v31 }
 0x36c   : > { %10352 = vmatmul.mubr.msk.f32.vlgmr.msra.gmra.mrb[0].mxu0 %vm2273_vm4, %v14104_v16  ;;  %v11803_v16 = vld [vmem:[#allocation3 + $0xc8] sm:$0xff] }
 0x36d   : > { %11001 = vmatpush3.bf16.msra.mxu0 %v10998_v7  ;;  %10354 = vmatprep.mubr.msk.f32.mxu0 %vm2273_vm4, %v14110_v58  ;;  %v11804_v58 = vld [vmem:[#allocation3 + $0xd8] sm:$0xff] }
 0x36e   : > { %11003 = vmatprep.subr.bf16.mxu0 %v14411_v55 }
 0x370   : > { %10355 = vmatmul.mubr.msk.f32.gmra.mrb[2].mxu0 %vm2273_vm4, %v14116_v49 }
 0x371   : > { %10357 = vmatprep.mubr.msk.f32.mxu0 %vm2273_vm4, %v14122_v44 }
 0x374   : > { %10358 = vmatmul.mubr.msk.f32.gmra.mrb[4].mxu0 %vm2273_vm4, %v14128_v34  ;;  %v11805_v34 = vld [vmem:[#allocation3 + $0xe0] sm:$0xff] }
 0x375   : > { %10360 = vmatprep.mubr.msk.f32.mxu0 %vm2273_vm4, %v14134_v13  ;;  %v11806_v13 = vld [vmem:[#allocation3 + $0xf0] sm:$0xff] }
 0x378   : > { %10361 = vmatmul.mubr.msk.f32.gmra.mrb[6].mxu0 %vm2273_vm4, %v14140_v0 }
 0x379   : > { %10363 = vmatprep.mubr.msk.f32.mxu0 %vm2273_vm4, %v14146_v40 }
 0x37c   : > { %10364 = vmatmul.mubr.msk.f32.gmra.mrb[8].mxu0 %vm2273_vm4, %v14152_v1 }
 0x37d   : > { %10366 = vmatprep.mubr.msk.f32.mxu0 %vm2273_vm4, %v14158_v29 }
 0x37f   : > { %v14434_v52 = vpop.f32.mrb[0].mxu1 }
 0x380   : > { %10367 = vmatmul.mubr.msk.f32.gmra.mrb[10].mxu0 %vm2273_vm4, %v14164_v25  ;;  %v14438_v10 = vpop.f32.mrb[1].mxu1 }
 0x381   : > { %10369 = vmatprep.mubr.msk.f32.mxu0 %vm2273_vm4, %v14170_v35 }
 0x383   : > { %v14442_v45 = vpop.f32.mrb[2].mxu1 }
 0x384   : > { %v14444_v31 = vpop.f32.mrb[3].mxu1  ;;  %10370 = vmatmul.mubr.msk.f32.gmra.mrb[12].mxu0 %vm2273_vm4, %v11803_v16 }
 0x385   : > { %10372 = vmatprep.mubr.msk.f32.mxu0 %vm2273_vm4, %v11804_v58 }
 0x387   : > { %v14448_v49 = vpop.f32.mrb[4].mxu1 }
 0x388   : > { %v14450_v44 = vpop.f32.mrb[5].mxu1  ;;  %10373 = vmatmul.mubr.msk.f32.gmra.mrb[14].mxu0 %vm2273_vm4, %v11805_v34 }
 0x389   : > { %10375 = vmatprep.mubr.msk.f32.mxu0 %vm2273_vm4, %v11806_v13 }
 0x38b   : > { %v14454_v0 = vpop.f32.mrb[6].mxu1 }
 0x38c   : > { %v14456_v40 = vpop.f32.mrb[7].mxu1  ;;  %10376 = vmatmul.mubr.msk.f32.gmra.mrb[16].mxu0 %vm2273_vm4, %v13730_v4 }
 0x38d   : > { %10378 = vmatprep.mubr.msk.f32.mxu0 %vm2273_vm4, %v13775_v20 }
 0x38f   : > { %v14462_v1 = vpop.f32.mrb[8].mxu1 }
 0x390   : > { %v14464_v29 = vpop.f32.mrb[9].mxu1  ;;  %10379 = vmatmul.mubr.msk.f32.gmra.mrb[18].mxu0 %vm2273_vm4, %v13820_v3 }
 0x391   : > { %10381 = vmatprep.mubr.msk.f32.mxu0 %vm2273_vm4, %v13895_v48 }
 0x393   : > { %v14470_v25 = vpop.f32.mrb[10].mxu1 }
 0x394   : > { %v14472_v35 = vpop.f32.mrb[11].mxu1  ;;  %10382 = vmatmul.mubr.msk.f32.gmra.mrb[20].mxu0 %vm2273_vm4, %v13897_v15 }
 0x395   : > { %10384 = vmatprep.mubr.msk.f32.mxu0 %vm2273_vm4, %v13935_v9 }
 0x397   : > { %v14478_v4 = vpop.f32.mrb[12].mxu1 }
 0x398   : > { %v14480_v20 = vpop.f32.mrb[13].mxu1  ;;  %10385 = vmatmul.mubr.msk.f32.gmra.mrb[22].mxu0 %vm2273_vm4, %v13963_v61  ;;  %v14502_v61 = vld [vmem:[#allocation3 + $0x198] sm:$0xff] }
 0x399   : > { %10387 = vmatprep.mubr.msk.f32.mxu0 %vm2273_vm4, %v14009_v51 }
 0x39b   : > { %v14486_v3 = vpop.f32.mrb[14].mxu1 }
 0x39c   : > { %v14488_v48 = vpop.f32.mrb[15].mxu1  ;;  %10388 = vmatmul.mubr.msk.f32.gmra.mrb[24].mxu0 %vm2273_vm4, %v14020_v18  ;;  %v14512_v18 = vld [vmem:[#allocation3 + $0x1a0] sm:$0xff] }
 0x39d   : > { %10390 = vmatprep.mubr.msk.f32.mxu0 %vm2273_vm4, %v14054_v11 }
 0x39f   : > { %v14494_v15 = vpop.f32.mrb[16].mxu1 }
 0x3a0   : > { %v14496_v9 = vpop.f32.mrb[17].mxu1  ;;  %10391 = vmatmul.mubr.msk.f32.gmra.mrb[26].mxu0 %vm2273_vm4, %v14058_v17 }
 0x3a1   : > { %10393 = vmatprep.mubr.msk.f32.mxu0 %vm2273_vm4, %v14234_v21 }
 0x3a3   : > { %v14504_v51 = vpop.f32.mrb[18].mxu1 }
 0x3a4   : > { %v14506_v7 = vpop.f32.mrb[19].mxu1  ;;  %10394 = vmatmul.mubr.msk.f32.gmra.mrb[28].mxu0 %vm2273_vm4, %v14240_v63 }
 0x3a5   : > { %10396 = vmatprep.mubr.msk.f32.mxu0 %vm2273_vm4, %v14502_v61 }
 0x3a7   : > { %v14514_v11 = vpop.f32.mrb[20].mxu1 }
 0x3a8   : > { %v14516_v17 = vpop.f32.mrb[21].mxu1  ;;  %10397 = vmatmul.mubr.msk.f32.gmra.mrb[30].mxu0 %vm2273_vm4, %v14512_v18 }
 0x3a9   : > { %10403 = vmatprep.mubr.msk.f32.mxu0 %vm2273_vm4, %v13228_v46 }
 0x3ab   : > { %v14522_v21 = vpop.f32.mrb[22].mxu1 }
 0x3ac   : > { %v14524_v30 = vpop.f32.mrb[23].mxu1  ;;  %10404 = vmatmul.mubr.msk.f32.vlgmr.msra.gmra.mrb[0].mxu0 %vm2273_vm4, %v13242_v53 }
 0x3ad   : > { %11005 = vmatpush3.bf16.msra.mxu0 %v14411_v55  ;;  %10406 = vmatprep.mubr.msk.f32.mxu0 %vm2273_vm4, %v13276_v6  ;;  %v16314_v55 = vld [vmem:[#allocation50_spill] sm:$0xff] }
 0x3af   : > { %v14531_v63 = vpop.f32.mrb[24].mxu1 }
 0x3b0   : > { %16296 = vst [vmem:[#allocation54_spill] sm:$0xff] %v14531_v63  ;;  %v14533_v16 = vpop.f32.mrb[25].mxu1  ;;  %10407 = vmatmul.mubr.msk.f32.gmra.mrb[2].mxu0 %vm2273_vm4, %v13295_v28 }
 0x3b1   : > { %16297 = vst [vmem:[#allocation56_spill] sm:$0xff] %v14533_v16  ;;  %10409 = vmatprep.mubr.msk.f32.mxu0 %vm2273_vm4, %v13327_v23 }
 0x3b3   : > { %v14539_v46 = vpop.f32.mrb[26].mxu1 }
 0x3b4   : > { %16298 = vst [vmem:[#allocation58_spill] sm:$0xff] %v14539_v46  ;;  %v14541_v58 = vpop.f32.mrb[27].mxu1  ;;  %10410 = vmatmul.mubr.msk.f32.gmra.mrb[4].mxu0 %vm2273_vm4, %v13340_v54  ;;  %v16304_v54 = vld [vmem:[#allocation64_spill] sm:$0xff] }
 0x3b5   : > { %16299 = vst [vmem:[#allocation60_spill] sm:$0xff] %v14541_v58  ;;  %10412 = vmatprep.mubr.msk.f32.mxu0 %vm2273_vm4, %v13374_v47  ;;  %v16305_v47 = vld [vmem:[#allocation66_spill] sm:$0xff] }
 0x3b7   : > { %v14547_v53 = vpop.f32.mrb[28].mxu1 }
 0x3b8   : > { %16300 = vst [vmem:[#allocation62_spill] sm:$0xff] %v14547_v53  ;;  %v14549_v6 = vpop.f32.mrb[29].mxu1  ;;  %10413 = vmatmul.mubr.msk.f32.gmra.mrb[6].mxu0 %vm2273_vm4, %v13393_v41  ;;  %v16306_v41 = vld [vmem:[#allocation68_spill] sm:$0xff] }
 0x3b9   : > { %16301 = vst [vmem:[#allocation39_spill] sm:$0xff] %v14549_v6  ;;  %10415 = vmatprep.mubr.msk.f32.mxu0 %vm2273_vm4, %v13439_v37  ;;  %v16307_v37 = vld [vmem:[#allocation70_spill] sm:$0xff] }
 0x3bb   : > { %v14555_v28 = vpop.f32.mrb[30].mxu1 }
 0x3bc   : > { %16302 = vst [vmem:[#allocation40_spill] sm:$0xff] %v14555_v28  ;;  %v14557_v23 = vpop.f32.mrb[31].mxu1  ;;  %10416 = vmatmul.mubr.msk.f32.gmra.mrb[8].mxu0 %vm2273_vm4, %v13452_v59  ;;  %v16308_v59 = vld [vmem:[#allocation72_spill] sm:$0xff] }
 0x3bd   : > { %16303 = vst [vmem:[#allocation41_spill] sm:$0xff] %v14557_v23  ;;  %10418 = vmatprep.mubr.msk.f32.mxu0 %vm2273_vm4, %v13502_v5  ;;  %v16309_v5 = vld [vmem:[#allocation74_spill] sm:$0xff] }
 0x3c0   : > { %10419 = vmatmul.mubr.msk.f32.gmra.mrb[10].mxu0 %vm2273_vm4, %v16265_v62  ;;  %v16310_v62 = vld [vmem:[#allocation75_spill] sm:$0xff] }
 0x3c1   : > { %10421 = vmatprep.mubr.msk.f32.mxu0 %vm2273_vm4, %v16266_v14  ;;  %v16311_v14 = vld [vmem:[#allocation77_spill] sm:$0xff] }
 0x3c4   : > { %10422 = vmatmul.mubr.msk.f32.gmra.mrb[12].mxu0 %vm2273_vm4, %v16267_v42  ;;  %v16312_v42 = vld [vmem:[#allocation79_spill] sm:$0xff] }
 0x3c5   : > { %10424 = vmatprep.mubr.msk.f32.mxu0 %vm2273_vm4, %v16268_v60  ;;  %v4603_v60 = vrot.slane %v14502_v61, 1 }
 0x3c8   : > { %10425 = vmatmul.mubr.msk.f32.gmra.mrb[14].mxu0 %vm2273_vm4, %v16269_v57  ;;  %v4604_v57 = vrot.slane %v14512_v18, 1 }
 0x3c9   : > { %10427 = vmatprep.mubr.msk.f32.mxu0 %vm2273_vm4, %v16270_v8  ;;  %v2415_v8 = vld [vmem:[#allocation3 + $0x1a8] sm:$0x3] }
 0x3ca   : > { %v4606_v34 = vrot.slane %v2415_v8, 1  ;;  %v4605_v13 = vsel %vm1031_vm2, %v4603_v60, %v4604_v57  ;;  %v16325_v60 = vld [vmem:[#allocation53_spill] sm:$0xff] }
 0x3cc   : > { %10428 = vmatmul.mubr.msk.f32.gmra.mrb[16].mxu0 %vm2273_vm4, %v16271_v2  ;;  %v16313_v2 = vld [vmem:[#allocation80_spill] sm:$0xff] }
 0x3cd   : > { %10430 = vmatprep.mubr.msk.f32.mxu0 %vm2273_vm4, %v16304_v54  ;;  %v16315_v54 = vld [vmem:[#allocation52_spill] sm:$0xff] }
 0x3d0   : > { %10431 = vmatmul.mubr.msk.f32.gmra.mrb[18].mxu0 %vm2273_vm4, %v16305_v47  ;;  %v4607_v47 = vsel %vm1031_vm2, %v4604_v57, %v4606_v34  ;;  %v16327_v57 = vld [vmem:[#allocation69_spill] sm:$0xff] }
 0x3d1   : > { %10433 = vmatprep.mubr.msk.f32.mxu0 %vm2273_vm4, %v16306_v41  ;;  %v16316_v41 = vld [vmem:[#allocation37_spill] sm:$0xff] }
 0x3d4   : > { %10434 = vmatmul.mubr.msk.f32.gmra.mrb[20].mxu0 %vm2273_vm4, %v16307_v37  ;;  %v16317_v37 = vld [vmem:[#allocation38_spill] sm:$0xff] }
 0x3d5   : > { %10436 = vmatprep.mubr.msk.f32.mxu0 %vm2273_vm4, %v16308_v59  ;;  %v16318_v59 = vld [vmem:[#allocation43_spill] sm:$0xff] }
 0x3d8   : > { %10437 = vmatmul.mubr.msk.f32.gmra.mrb[22].mxu0 %vm2273_vm4, %v16309_v5  ;;  %v16319_v5 = vld [vmem:[#allocation44_spill] sm:$0xff] }
 0x3d9   : > { %10439 = vmatprep.mubr.msk.f32.mxu0 %vm2273_vm4, %v16310_v62  ;;  %v16320_v62 = vld [vmem:[#allocation45_spill] sm:$0xff] }
 0x3dc   : > { %10440 = vmatmul.mubr.msk.f32.gmra.mrb[24].mxu0 %vm2273_vm4, %v16311_v14  ;;  %v16321_v14 = vld [vmem:[#allocation46_spill] sm:$0xff] }
 0x3dd   : > { %10442 = vmatprep.mubr.msk.f32.mxu0 %vm2273_vm4, %v16312_v42  ;;  %v16324_v42 = vld [vmem:[#allocation51_spill] sm:$0xff] }
 0x3e0   : > { %10443 = vmatmul.mubr.msk.f32.gmra.mrb[26].mxu0 %vm2273_vm4, %v16313_v2 }
 0x3e1   : > { %10445 = vmatprep.mubr.msk.f32.mxu0 %vm2273_vm4, %v16314_v55 }
 0x3e4   : > { %10446 = vmatmul.mubr.msk.f32.gmra.mrb[28].mxu0 %vm2273_vm4, %v16315_v54 }
 0x3e5   : > { %10448 = vmatprep.mubr.msk.f32.mxu0 %vm2273_vm4, %v4605_v13  ;;  %v14713_v13 = vld [vmem:[#allocation13] ss:$0 sm:$0xff] }
 0x3e8   : > { %10449 = vmatmul.mubr.msk.f32.gmra.mrb[30].mxu0 %vm2273_vm4, %v4607_v47 }
 0x3e9   : > { %10455 = vmatprep.mubr.msk.f32.mxu0 %vm2273_vm4, %v16276_v50  ;;  %v16322_v50 = vld [vmem:[#allocation47_spill] sm:$0xff] }
 0x3ec   : > { %10456 = vmatmul.mubr.msk.f32.vlgmr.msra.gmra.mrb[0].mxu0 %vm2273_vm4, %v16277_v38  ;;  %v16323_v38 = vld [vmem:[#allocation48_spill] sm:$0xff] }
 0x3ed   : > { %10458 = vmatprep.mubr.msk.f32.mxu0 %vm2273_vm4, %v16316_v41 }
 0x3f0   : > { %10459 = vmatmul.mubr.msk.f32.gmra.mrb[2].mxu0 %vm2273_vm4, %v16317_v37 }
 0x3f1   : > { %10461 = vmatprep.mubr.msk.f32.mxu0 %vm2273_vm4, %v16318_v59 }
 0x3f4   : > { %10462 = vmatmul.mubr.msk.f32.gmra.mrb[4].mxu0 %vm2273_vm4, %v16319_v5 }
 0x3f5   : > { %10464 = vmatprep.mubr.msk.f32.mxu0 %vm2273_vm4, %v16320_v62  ;;  %v14716_v62 = vld [vmem:[#allocation14] ss:$0 sm:$0xff] }
 0x3f8   : > { %10465 = vmatmul.mubr.msk.f32.gmra.mrb[6].mxu0 %vm2273_vm4, %v16321_v14 }
 0x3f9   : > { %10467 = vmatprep.mubr.msk.f32.mxu0 %vm2273_vm4, %v16322_v50 }
 0x3fc   : > { %10468 = vmatmul.mubr.msk.f32.gmra.mrb[8].mxu0 %vm2273_vm4, %v16323_v38 }
 0x3fd   : > { %10470 = vmatprep.mubr.msk.f32.mxu0 %vm2273_vm4, %v16286_v12  ;;  %v16326_v12 = vld [vmem:[#allocation65_spill] sm:$0xff] }
 0x400   : > { %10471 = vmatmul.mubr.msk.f32.gmra.mrb[10].mxu0 %vm2273_vm4, %v16324_v42 }
 0x401   : > { %10473 = vmatprep.mubr.msk.f32.mxu0 %vm2273_vm4, %v16325_v60 }
 0x404   : > { %10474 = vmatmul.mubr.msk.f32.gmra.mrb[12].mxu0 %vm2273_vm4, %v16289_v24  ;;  %v16328_v24 = vld [vmem:[#allocation71_spill] sm:$0xff] }
 0x405   : > { %10476 = vmatprep.mubr.msk.f32.mxu0 %vm2273_vm4, %v16290_v36  ;;  %v16329_v36 = vld [vmem:[#allocation73_spill] sm:$0xff] }
 0x408   : > { %10477 = vmatmul.mubr.msk.f32.gmra.mrb[14].mxu0 %vm2273_vm4, %v16291_v56  ;;  %v16330_v56 = vld [vmem:[#allocation76_spill] sm:$0xff] }
 0x409   : > { %10479 = vmatprep.mubr.msk.f32.mxu0 %vm2273_vm4, %v16292_v22  ;;  %v16331_v22 = vld [vmem:[#allocation78_spill] sm:$0xff] }
 0x40c   : > { %10480 = vmatmul.mubr.msk.f32.gmra.mrb[16].mxu0 %vm2273_vm4, %v16293_v43  ;;  %v4873_v43 = vrot.slane %v14512_v18, 2  ;;  %v5985_v18 = vld [vmem:[#allocation16 + $0x30] sm:$0xff] }
 0x40d   : > { %10482 = vmatprep.mubr.msk.f32.mxu0 %vm2273_vm4, %v16326_v12 }
 0x410   : > { %10483 = vmatmul.mubr.msk.f32.gmra.mrb[18].mxu0 %vm2273_vm4, %v16294_v33  ;;  %v4872_v33 = vrot.slane %v14502_v61, 2  ;;  %v16332_v61 = vmov 0.0  }
 0x411   : > { %10485 = vmatprep.mubr.msk.f32.mxu0 %vm2273_vm4, %v16327_v57  ;;  %5889 = vst.msk [vmem:[#allocation5] sm:$0xff] %vm5315_vm12, %v16332_v61  ;;  %5891 = vst.msk [vmem:[#allocation5 + $0x10] sm:$0xff] %vm5315_vm12, %v16332_v61 }
 0x412   : > { %v4874_v2 = vsel %vm1312_vm3, %v4872_v33, %v4873_v43  ;;  %5893 = vst.msk [vmem:[#allocation5 + $0x20] sm:$0xff] %vm5315_vm12, %v16332_v61  ;;  %5895 = vst.msk [vmem:[#allocation5 + $0x30] sm:$0xff] %vm5315_vm12, %v16332_v61 }
 0x413   : > { %5897 = vst.msk [vmem:[#allocation5 + $0x40] sm:$0xff] %vm5315_vm12, %v16332_v61  ;;  %5899 = vst.msk [vmem:[#allocation5 + $0x50] sm:$0xff] %vm5315_vm12, %v16332_v61 }
 0x414   : > { %10486 = vmatmul.mubr.msk.f32.gmra.mrb[20].mxu0 %vm2273_vm4, %v16328_v24  ;;  %5901 = vst.msk [vmem:[#allocation5 + $0x60] sm:$0xff] %vm5315_vm12, %v16332_v61  ;;  %5903 = vst.msk [vmem:[#allocation5 + $0x70] sm:$0xff] %vm5315_vm12, %v16332_v61 }
 0x415   : > { %10488 = vmatprep.mubr.msk.f32.mxu0 %vm2273_vm4, %v16329_v36  ;;  %5905 = vst.msk [vmem:[#allocation5 + $0x80] sm:$0xff] %vm5315_vm12, %v16332_v61  ;;  %5907 = vst.msk [vmem:[#allocation5 + $0x90] sm:$0xff] %vm5315_vm12, %v16332_v61 }
 0x418   : > { %10489 = vmatmul.mubr.msk.f32.gmra.mrb[22].mxu0 %vm2273_vm4, %v13995_v26  ;;  %v4875_v26 = vrot.slane %v2415_v8, 2  ;;  %v5986_v8 = vld [vmem:[#allocation16 + $0x38] sm:$0xff]  ;;  %v5918_v54 = vld [vmem:[#allocation5] sm:$0xff] }
 0x419   : > { %10491 = vmatprep.mubr.msk.f32.mxu0 %vm2273_vm4, %v16330_v56  ;;  %v11010_v55 = vpack.c.bf16 %v5986_v8, %v5985_v18  ;;  %v5958_v59 = vrot.slane %v5918_v54, 1 }
 0x41c   : > { %10492 = vmatmul.mubr.msk.f32.gmra.mrb[24].mxu0 %vm2273_vm4, %v16331_v22 }
 0x41d   : > { %10494 = vmatprep.mubr.msk.f32.mxu0 %vm2273_vm4, %v14068_v32  ;;  %v4876_v32 = vsel %vm1312_vm3, %v4873_v43, %v4875_v26 }
 0x420   : > { %10495 = vmatmul.mubr.msk.f32.gmra.mrb[26].mxu0 %vm2273_vm4, %v14074_v19 }
 0x421   : > { %10497 = vmatprep.mubr.msk.f32.mxu0 %vm2273_vm4, %v14394_v27  ;;  %v5983_v27 = vld [vmem:[#allocation16 + $0x20] sm:$0xff] }
 0x424   : > { %10498 = vmatmul.mubr.msk.f32.gmra.mrb[28].mxu0 %vm2273_vm4, %v14399_v39  ;;  %v5984_v39 = vld [vmem:[#allocation16 + $0x28] sm:$0xff] }
 0x425   : > { %10500 = vmatprep.mubr.msk.f32.mxu0 %vm2273_vm4, %v4874_v2  ;;  %v11006_v19 = vpack.c.bf16 %v5984_v39, %v5983_v27 }
 0x427   : > { %11007 = vmatprep.subr.bf16.mxu1 %v11006_v19 }
 0x428   : > { %10501 = vmatmul.mubr.msk.f32.gmra.mrb[30].mxu0 %vm2273_vm4, %v4876_v32  ;;  %vm5364_vm4 = vcmask 254976   ;;  %11009 = vmatpush3.bf16.msra.mxu1 %v11006_v19 }
 0x429   : > { %5890 = vst.msk [vmem:[#allocation5 + $0x8] sm:$0x3] %vm5364_vm4, %v16332_v61  ;;  %5892 = vst.msk [vmem:[#allocation5 + $0x18] sm:$0x3] %vm5364_vm4, %v16332_v61  ;;  %11011 = vmatprep.subr.bf16.mxu1 %v11010_v55 }
 0x42a   : > { %5894 = vst.msk [vmem:[#allocation5 + $0x28] sm:$0x3] %vm5364_vm4, %v16332_v61  ;;  %5896 = vst.msk [vmem:[#allocation5 + $0x38] sm:$0x3] %vm5364_vm4, %v16332_v61 }
 0x42b   : > { %5898 = vst.msk [vmem:[#allocation5 + $0x48] sm:$0x3] %vm5364_vm4, %v16332_v61  ;;  %5900 = vst.msk [vmem:[#allocation5 + $0x58] sm:$0x3] %vm5364_vm4, %v16332_v61 }
 0x42c   : > { %5902 = vst.msk [vmem:[#allocation5 + $0x68] sm:$0x3] %vm5364_vm4, %v16332_v61  ;;  %5904 = vst.msk [vmem:[#allocation5 + $0x78] sm:$0x3] %vm5364_vm4, %v16332_v61  ;;  %11013 = vmatpush3.bf16.msra.mxu1 %v11010_v55 }
 0x42d   : > { %5906 = vst.msk [vmem:[#allocation5 + $0x88] sm:$0x3] %vm5364_vm4, %v16332_v61  ;;  %5908 = vst.msk [vmem:[#allocation5 + $0x98] sm:$0x3] %vm5364_vm4, %v16332_v61 }
 0x430   : > { %v5919_v47 = vld [vmem:[#allocation5 + $0x8] sm:$0x3] }
 0x431   : > { %v5959_v5 = vrot.slane %v5919_v47, 1 }
 0x433   : > { %v5960_v38 = vsel %vm1031_vm2, %v5958_v59, %v5959_v5 }
 0x434   : > { %10511 = vmatprep.mubr.msk.f32.mxu1 %vm5315_vm12, %v5960_v38 }
 0x4bf   : > { %v10457_v34 = vpop.f32.mrb[0].mxu0 }
 0x4c0   : > { %v11246_v41 = vadd.f32 %v10457_v34, %v14434_v52  ;;  %v4950_v37 = vpop.f32.mrb[1].mxu0 }
 0x4c1   : > { %v11247_v14 = vadd.f32 %v4950_v37, %v14438_v10 }
 0x4c2   : > { %v5149_v50 = vmul.f32 %v11246_v41, %v14713_v13 }
 0x4c3   : > { %v5148_v42 = vmul.f32 %v11247_v14, %v14713_v13  ;;  %v10460_v60 = vpop.f32.mrb[2].mxu0 }
 0x4c4   : > { %v5188_v12 = vadd.f32 %v14716_v62, %v5149_v50  ;;  %v11248_v52 = vadd.f32 %v10460_v60, %v14442_v45  ;;  %v4960_v57 = vpop.f32.mrb[3].mxu0 }
 0x4c5   : > { %v5187_v24 = vadd.f32 %v14716_v62, %v5148_v42  ;;  %v11249_v36 = vadd.f32 %v4960_v57, %v14444_v31 }
 0x4c6   : > { %vm5220_vm13 = vcmp.gt.f32.partialorder %v5188_v12, 0.0  ;;  %v5252_v10 = vmul.f32 0.01, %v5188_v12  ;;  %v5151_v56 = vmul.f32 %v11248_v52, %v14713_v13 }
 0x4c7   : > { %v5251_v22 = vmul.f32 0.01, %v5187_v24  ;;  %v5150_v33 = vmul.f32 %v11249_v36, %v14713_v13  ;;  %v10463_v43 = vpop.f32.mrb[4].mxu0  ;;  %vm5219_vm14 = vcmp.gt.f32.partialorder %v5187_v24, 0.0 }
 0x4c8   : > { %v5190_v26 = vadd.f32 %v14716_v62, %v5151_v56  ;;  %v11250_v2 = vadd.f32 %v10463_v43, %v14448_v49  ;;  %v4970_v45 = vpop.f32.mrb[5].mxu0  ;;  %v5284_v32 = vsel %vm5220_vm13, %v5188_v12, %v5252_v10 }
 0x4c9   : > { %v5189_v27 = vadd.f32 %v14716_v62, %v5150_v33  ;;  %v11251_v31 = vadd.f32 %v4970_v45, %v14450_v44  ;;  %v5283_v18 = vsel %vm5219_vm14, %v5187_v24, %v5251_v22  ;;  %v5319_v49 = vsel %vm5315_vm12, %v5284_v32, -inf }
 0x4ca   : > { %vm5222_vm1 = vcmp.gt.f32.partialorder %v5190_v26, 0.0  ;;  %v5254_v39 = vmul.f32 0.01, %v5190_v26  ;;  %v5153_v19 = vmul.f32 %v11250_v2, %v14713_v13  ;;  %v5316_v50 = vsel %vm5315_vm12, %v5283_v18, -inf }
 0x4cb   : > { %vm5221_vm6 = vcmp.gt.f32.partialorder %v5189_v27, 0.0  ;;  %v5253_v8 = vmul.f32 0.01, %v5189_v27  ;;  %v5152_v55 = vmul.f32 %v11251_v31, %v14713_v13  ;;  %v10466_v34 = vpop.f32.mrb[6].mxu0 }
 0x4cc   : > { %v5286_v54 = vsel %vm5222_vm1, %v5190_v26, %v5254_v39  ;;  %v14737_v47 = vadd.f32 %v14716_v62, %v5153_v19  ;;  %v11252_v41 = vadd.f32 %v10466_v34, %v14454_v0  ;;  %v4980_v44 = vpop.f32.mrb[7].mxu0 }
 0x4cd   : > { %v5320_v37 = vsel %vm5315_vm12, %v5286_v54, -inf  ;;  %v5285_v59 = vsel %vm5221_vm6, %v5189_v27, %v5253_v8  ;;  %v14742_v5 = vadd.f32 %v14716_v62, %v5152_v55  ;;  %v14745_v14 = vadd.f32 %v4980_v44, %v14456_v40 }
 0x4ce   : > { %v5321_v38 = vmax.f32 %v5319_v49, %v5320_v37  ;;  %v5317_v42 = vsel %vm5315_vm12, %v5285_v59, -inf  ;;  %v14750_v12 = vmul.f32 0.01, %v14737_v47  ;;  %v14756_v52 = vmul.f32 %v11252_v41, %v14713_v13 }
 0x4cf   : > { %v5318_v60 = vmax.f32 %v5316_v50, %v5317_v42  ;;  %v14753_v0 = vmul.f32 0.01, %v14742_v5  ;;  %v14758_v57 = vpop.f32.mrb[8].mxu0  ;;  %vm5224_vm8 = vcmp.gt.f32.partialorder %v14737_v47, 0.0  ;;  %vm5223_vm9 = vcmp.gt.f32.partialorder %v14742_v5, 0.0 }
 0x4d0   : > { %v5625_v40 = vsel %vm5364_vm4, %v5321_v38, -inf  ;;  %v5689_v24 = vsel %vm5430_vm15, %v5321_v38, -inf  ;;  %v5753_v36 = vsel %vm5495_vm0, %v5321_v38, -inf  ;;  %v5817_v10 = vsel %vm5560_vm5, %v5321_v38, -inf  ;;  %v14764_v56 = vpop.f32.mrb[9].mxu0 }
 0x4d1   : > { %v5626_v22 = vrot.slane %v5625_v40, 4  ;;  %v5690_v33 = vrot.slane %v5689_v24, 4  ;;  %v5754_v43 = vrot.slane %v5753_v36, 4  ;;  %v5818_v26 = vrot.slane %v5817_v10, 4 }
 0x4d2   : > { %v5365_v2 = vsel %vm5364_vm4, %v5318_v60, -inf  ;;  %v5431_v45 = vsel %vm5430_vm15, %v5318_v60, -inf  ;;  %v5496_v32 = vsel %vm5495_vm0, %v5318_v60, -inf  ;;  %v5561_v27 = vsel %vm5560_vm5, %v5318_v60, -inf }
 0x4d3   : > { %v5627_v31 = vmax.f32 %v5625_v40, %v5626_v22  ;;  %v5691_v39 = vmax.f32 %v5689_v24, %v5690_v33  ;;  %v5755_v19 = vmax.f32 %v5753_v36, %v5754_v43  ;;  %v5819_v18 = vmax.f32 %v5817_v10, %v5818_v26  ;;  %v14771_v8 = vpop.f32.mrb[10].mxu0 }
 0x4d4   : > { %v5366_v55 = vrot.slane %v5365_v2, 4  ;;  %v5432_v34 = vrot.slane %v5431_v45, 4  ;;  %v5497_v49 = vrot.slane %v5496_v32, 4  ;;  %v5562_v54 = vrot.slane %v5561_v27, 4  ;;  %v14774_v41 = vpop.f32.mrb[11].mxu0 }
 0x4d5   : > { %v5628_v44 = vrot.slane %v5627_v31, 2  ;;  %v5692_v37 = vrot.slane %v5691_v39, 2  ;;  %v5756_v59 = vrot.slane %v5755_v19, 2  ;;  %v5820_v50 = vrot.slane %v5819_v18, 2 }
 0x4d6   : > { %v5367_v38 = vmax.f32 %v5365_v2, %v5366_v55  ;;  %v5433_v42 = vmax.f32 %v5431_v45, %v5432_v34  ;;  %v5498_v60 = vmax.f32 %v5496_v32, %v5497_v49  ;;  %v5563_v40 = vmax.f32 %v5561_v27, %v5562_v54 }
 0x4d7   : > { %v5629_v24 = vmax.f32 %v5627_v31, %v5628_v44  ;;  %v5693_v36 = vmax.f32 %v5691_v39, %v5692_v37  ;;  %v5757_v10 = vmax.f32 %v5755_v19, %v5756_v59  ;;  %v5821_v22 = vmax.f32 %v5819_v18, %v5820_v50  ;;  %v10475_v33 = vpop.f32.mrb[12].mxu0 }
 0x4d8   : > { %v5368_v43 = vrot.slane %v5367_v38, 2  ;;  %v5434_v26 = vrot.slane %v5433_v42, 2  ;;  %v5499_v61 = vrot.slane %v5498_v60, 2  ;;  %v5564_v23 = vrot.slane %v5563_v40, 2  ;;  %v5010_v28 = vpop.f32.mrb[13].mxu0 }
 0x4d9   : > { %v5630_v6 = vrot.slane %v5629_v24, 1  ;;  %v5694_v53 = vrot.slane %v5693_v36, 1  ;;  %v5758_v58 = vrot.slane %v5757_v10, 1  ;;  %v5822_v46 = vrot.slane %v5821_v22, 1 }
 0x4da   : > { %v5369_v16 = vmax.f32 %v5367_v38, %v5368_v43  ;;  %v5435_v63 = vmax.f32 %v5433_v42, %v5434_v26  ;;  %v5500_v2 = vmax.f32 %v5498_v60, %v5499_v61  ;;  %v5565_v45 = vmax.f32 %v5563_v40, %v5564_v23 }
 0x4db   : > { %v5631_v32 = vmax.f32 %v5629_v24, %v5630_v6  ;;  %v5695_v27 = vmax.f32 %v5693_v36, %v5694_v53  ;;  %v5759_v31 = vmax.f32 %v5757_v10, %v5758_v58  ;;  %v5823_v39 = vmax.f32 %v5821_v22, %v5822_v46  ;;  %v14776_v19 = vpop.f32.mrb[14].mxu0 }
 0x4dc   : > { %v5370_v18 = vrot.slane %v5369_v16, 1  ;;  %v5436_v55 = vrot.slane %v5435_v63, 1  ;;  %v5501_v34 = vrot.slane %v5500_v2, 1  ;;  %v5566_v49 = vrot.slane %v5565_v45, 1  ;;  %v14778_v54 = vpop.f32.mrb[15].mxu0 }
 0x4dd   : > { %5681 = vst.msk [vmem:[#allocation4 + $0x4] sm:$0x1] %vm5421_vm7, %v5631_v32  ;;  %5745 = vst.msk [vmem:[#allocation4 + $0x5] sm:$0x1] %vm5421_vm7, %v5695_v27  ;;  %v5288_v46 = vsel %vm5224_vm8, %v14737_v47, %v14750_v12  ;;  %v5194_v58 = vadd.f32 %v14716_v62, %v14756_v52  ;;  %v5154_v53 = vmul.f32 %v14745_v14, %v14713_v13 }
 0x4de   : > { %5809 = vst.msk [vmem:[#allocation4 + $0x6] sm:$0x1] %vm5421_vm7, %v5759_v31  ;;  %5873 = vst.msk [vmem:[#allocation4 + $0x7] sm:$0x1] %vm5421_vm7, %v5823_v39  ;;  %v5371_v6 = vmax.f32 %v5369_v16, %v5370_v18  ;;  %v5437_v23 = vmax.f32 %v5435_v63, %v5436_v55  ;;  %v5502_v61 = vmax.f32 %v5500_v2, %v5501_v34  ;;  %v5325_v37 = vsel %vm5315_vm12, %v5288_v46, -inf }
 0x4df   : > { %v5567_v44 = vmax.f32 %v5565_v45, %v5566_v49  ;;  %v5287_v59 = vsel %vm5223_vm9, %v14742_v5, %v14753_v0  ;;  %vm5226_vm10 = vcmp.gt.f32.partialorder %v5194_v58, 0.0  ;;  %v5258_v50 = vmul.f32 0.01, %v5194_v58  ;;  %v14797_v47 = vpop.f32.mrb[16].mxu0 }
 0x4e0   : > { %5422 = vst.msk [vmem:[#allocation4] sm:$0x1] %vm5421_vm7, %v5371_v6  ;;  %5487 = vst.msk [vmem:[#allocation4 + $0x1] sm:$0x1] %vm5421_vm7, %v5437_v23  ;;  %v5193_v63 = vadd.f32 %v14716_v62, %v5154_v53  ;;  %v11254_v16 = vadd.f32 %v14758_v57, %v14462_v1  ;;  %v11255_v5 = vadd.f32 %v14764_v56, %v14464_v29  ;;  %v14810_v12 = vpop.f32.mrb[17].mxu0  ;;  %v5322_v57 = vsel %vm5315_vm12, %v5287_v59, -inf }
 0x4e1   : > { %5552 = vst.msk [vmem:[#allocation4 + $0x2] sm:$0x1] %vm5421_vm7, %v5502_v61  ;;  %5617 = vst.msk [vmem:[#allocation4 + $0x3] sm:$0x1] %vm5421_vm7, %v5567_v44  ;;  %v11256_v14 = vadd.f32 %v14771_v8, %v14470_v25  ;;  %v5290_v0 = vsel %vm5226_vm10, %v5194_v58, %v5258_v50  ;;  %v11257_v52 = vadd.f32 %v14774_v41, %v14472_v35 }
 0x4e2   : > { %v11258_v38 = vadd.f32 %v10475_v33, %v14478_v4  ;;  %v14816_v42 = vadd.f32 %v5010_v28, %v14480_v20  ;;  %v5326_v60 = vsel %vm5315_vm12, %v5290_v0, -inf  ;;  %vm5225_vm11 = vcmp.gt.f32.partialorder %v5193_v63, 0.0 }
 0x4e3   : > { %v5257_v1 = vmul.f32 0.01, %v5193_v63  ;;  %v5157_v29 = vmul.f32 %v11254_v16, %v14713_v13  ;;  %v5327_v25 = vmax.f32 %v5325_v37, %v5326_v60  ;;  %v5156_v56 = vmul.f32 %v11255_v5, %v14713_v13  ;;  %v14825_v35 = vpop.f32.mrb[18].mxu0 }
 0x4e4   : > { %v14823_v8 = vmul.f32 %v11256_v14, %v14713_v13  ;;  %v14829_v28 = vmul.f32 %v11257_v52, %v14713_v13  ;;  %v14832_v41 = vmul.f32 %v11258_v38, %v14713_v13  ;;  %v14834_v40 = vpop.f32.mrb[19].mxu0 }
 0x4e5   : > { %v5289_v4 = vsel %vm5225_vm11, %v5193_v63, %v5257_v1  ;;  %v5196_v20 = vadd.f32 %v14716_v62, %v5157_v29  ;;  %v5632_v24 = vsel %vm5364_vm4, %v5327_v25, -inf  ;;  %v5696_v36 = vsel %vm5430_vm15, %v5327_v25, -inf }
 0x4e6   : > { %v5760_v10 = vsel %vm5495_vm0, %v5327_v25, -inf  ;;  %v5824_v22 = vsel %vm5560_vm5, %v5327_v25, -inf  ;;  %v5633_v33 = vrot.slane %v5632_v24, 4  ;;  %v5697_v43 = vrot.slane %v5696_v36, 4 }
 0x4e7   : > { %v5761_v26 = vrot.slane %v5760_v10, 4  ;;  %v5825_v2 = vrot.slane %v5824_v22, 4  ;;  %v5323_v45 = vsel %vm5315_vm12, %v5289_v4, -inf  ;;  %vm5228_vm13 = vcmp.gt.f32.partialorder %v5196_v20, 0.0  ;;  %v14844_v31 = vpop.f32.mrb[20].mxu0 }
 0x4e8   : > { %v5260_v32 = vmul.f32 0.01, %v5196_v20  ;;  %v14842_v27 = vadd.f32 %v14716_v62, %v5156_v56  ;;  %v5881_v39 = vld [vmem:[#allocation4] sm:$0xff]  ;;  %v5634_v18 = vmax.f32 %v5632_v24, %v5633_v33  ;;  %v5698_v55 = vmax.f32 %v5696_v36, %v5697_v43  ;;  %v14846_v46 = vpop.f32.mrb[21].mxu0 }
 0x4e9   : > { %v5762_v34 = vmax.f32 %v5760_v10, %v5761_v26  ;;  %v5826_v49 = vmax.f32 %v5824_v22, %v5825_v2  ;;  %5910 = vst.msk [vmem:[#allocation5 + $0x11] sm:$0xff] %vm5315_vm12, %v5881_v39  ;;  %v5324_v58 = vmax.f32 %v5322_v57, %v5323_v45 }
 0x4ea   : > { %v5292_v53 = vsel %vm5228_vm13, %v5196_v20, %v5260_v32  ;;  %vm5227_vm14 = vcmp.gt.f32.partialorder %v14842_v27, 0.0  ;;  %v5259_v6 = vmul.f32 0.01, %v14842_v27  ;;  %v5635_v23 = vrot.slane %v5634_v18, 2 }
 0x4eb   : > { %v5699_v61 = vrot.slane %v5698_v55, 2  ;;  %v5763_v44 = vrot.slane %v5762_v34, 2  ;;  %v5827_v37 = vrot.slane %v5826_v49, 2  ;;  %v5372_v59 = vsel %vm5364_vm4, %v5324_v58, -inf  ;;  %v14855_v5 = vpop.f32.mrb[22].mxu0 }
 0x4ec   : > { %v5438_v50 = vsel %vm5430_vm15, %v5324_v58, -inf  ;;  %v5503_v63 = vsel %vm5495_vm0, %v5324_v58, -inf  ;;  %v5568_v16 = vsel %vm5560_vm5, %v5324_v58, -inf  ;;  %v5636_v14 = vmax.f32 %v5634_v18, %v5635_v23  ;;  %v14857_v60 = vpop.f32.mrb[23].mxu0 }
 0x4ed   : > { %v5700_v0 = vmax.f32 %v5698_v55, %v5699_v61  ;;  %v5764_v52 = vmax.f32 %v5762_v34, %v5763_v44  ;;  %v5828_v38 = vmax.f32 %v5826_v49, %v5827_v37  ;;  %v5373_v1 = vrot.slane %v5372_v59, 4 }
 0x4ee   : > { %v5439_v29 = vrot.slane %v5438_v50, 4  ;;  %v5504_v57 = vrot.slane %v5503_v63, 4  ;;  %v5569_v25 = vrot.slane %v5568_v16, 4  ;;  %v5637_v56 = vrot.slane %v5636_v14, 1 }
 0x4ef   : > { %v5701_v4 = vrot.slane %v5700_v0, 1  ;;  %v5765_v20 = vrot.slane %v5764_v52, 1  ;;  %v5829_v24 = vrot.slane %v5828_v38, 1  ;;  %v5374_v36 = vmax.f32 %v5372_v59, %v5373_v1  ;;  %v14859_v43 = vpop.f32.mrb[24].mxu0 }
 0x4f0   : > { %v5440_v10 = vmax.f32 %v5438_v50, %v5439_v29  ;;  %v5505_v22 = vmax.f32 %v5503_v63, %v5504_v57  ;;  %v5570_v33 = vmax.f32 %v5568_v16, %v5569_v25  ;;  %v5638_v26 = vmax.f32 %v5636_v14, %v5637_v56  ;;  %v14861_v39 = vpop.f32.mrb[25].mxu0 }
 0x4f1   : > { %v5702_v2 = vmax.f32 %v5700_v0, %v5701_v4  ;;  %v5766_v45 = vmax.f32 %v5764_v52, %v5765_v20  ;;  %v5830_v32 = vmax.f32 %v5828_v38, %v5829_v24  ;;  %v5375_v18 = vrot.slane %v5374_v36, 2 }
 0x4f2   : > { %v5441_v55 = vrot.slane %v5440_v10, 2  ;;  %v5506_v34 = vrot.slane %v5505_v22, 2  ;;  %v5571_v49 = vrot.slane %v5570_v33, 2  ;;  %5682 = vst.msk [vmem:[#allocation4 + $0xc] sm:$0x1] %vm5421_vm7, %v5638_v26  ;;  %v5331_v58 = vsel %vm5315_vm12, %v5292_v53, -inf }
 0x4f3   : > { %5746 = vst.msk [vmem:[#allocation4 + $0xd] sm:$0x1] %vm5421_vm7, %v5702_v2  ;;  %5810 = vst.msk [vmem:[#allocation4 + $0xe] sm:$0x1] %vm5421_vm7, %v5766_v45  ;;  %v5198_v23 = vadd.f32 %v14716_v62, %v14823_v8  ;;  %v5197_v61 = vadd.f32 %v14716_v62, %v14829_v28  ;;  %v5160_v44 = vmul.f32 %v14816_v42, %v14713_v13  ;;  %v14874_v16 = vpop.f32.mrb[26].mxu0 }
 0x4f4   : > { %5874 = vst.msk [vmem:[#allocation4 + $0xf] sm:$0x1] %vm5421_vm7, %v5830_v32  ;;  %v5376_v37 = vmax.f32 %v5374_v36, %v5375_v18  ;;  %v5442_v59 = vmax.f32 %v5440_v10, %v5441_v55  ;;  %v5507_v50 = vmax.f32 %v5505_v22, %v5506_v34  ;;  %v5572_v63 = vmax.f32 %v5570_v33, %v5571_v49  ;;  %v14879_v8 = vpop.f32.mrb[27].mxu0 }
 0x4f5   : > { %v5291_v14 = vsel %vm5227_vm14, %v14842_v27, %v5259_v6  ;;  %vm5230_vm1 = vcmp.gt.f32.partialorder %v5198_v23, 0.0  ;;  %v5262_v53 = vmul.f32 0.01, %v5198_v23  ;;  %vm5229_vm6 = vcmp.gt.f32.partialorder %v5197_v61, 0.0 }
 0x4f6   : > { %v5377_v0 = vrot.slane %v5376_v37, 1  ;;  %v5443_v28 = vrot.slane %v5442_v59, 1  ;;  %v5508_v52 = vrot.slane %v5507_v50, 1  ;;  %v5573_v38 = vrot.slane %v5572_v63, 1 }
 0x4f7   : > { %v5294_v42 = vsel %vm5230_vm1, %v5198_v23, %v5262_v53  ;;  %v5261_v1 = vmul.f32 0.01, %v5197_v61  ;;  %v5200_v29 = vadd.f32 %v14716_v62, %v14832_v41  ;;  %v14884_v57 = vadd.f32 %v14716_v62, %v5160_v44  ;;  %v14886_v4 = vpop.f32.mrb[28].mxu0 }
 0x4f8   : > { %v5378_v25 = vmax.f32 %v5376_v37, %v5377_v0  ;;  %v5444_v56 = vmax.f32 %v5442_v59, %v5443_v28  ;;  %v5509_v27 = vmax.f32 %v5507_v50, %v5508_v52  ;;  %v5574_v6 = vmax.f32 %v5572_v63, %v5573_v38  ;;  %v14890_v10 = vpop.f32.mrb[29].mxu0 }
 0x4f9   : > { %v5332_v20 = vsel %vm5315_vm12, %v5294_v42, -inf  ;;  %v5293_v24 = vsel %vm5229_vm6, %v5197_v61, %v5261_v1  ;;  %vm5232_vm8 = vcmp.gt.f32.partialorder %v5200_v29, 0.0  ;;  %v5264_v36 = vmul.f32 0.01, %v5200_v29 }
 0x4fa   : > { %5423 = vst.msk [vmem:[#allocation4 + $0x8] sm:$0x1] %vm5421_vm7, %v5378_v25  ;;  %5488 = vst.msk [vmem:[#allocation4 + $0x9] sm:$0x1] %vm5421_vm7, %v5444_v56  ;;  %v5328_v41 = vsel %vm5315_vm12, %v5291_v14, -inf  ;;  %v5333_v22 = vmax.f32 %v5331_v58, %v5332_v20  ;;  %v5329_v33 = vsel %vm5315_vm12, %v5293_v24, -inf  ;;  %v14905_v32 = vadd.f32 %v14776_v19, %v14486_v3 }
 0x4fb   : > { %5553 = vst.msk [vmem:[#allocation4 + $0xa] sm:$0x1] %vm5421_vm7, %v5509_v27  ;;  %5618 = vst.msk [vmem:[#allocation4 + $0xb] sm:$0x1] %vm5421_vm7, %v5574_v6  ;;  %v14899_v26 = vmul.f32 0.01, %v14884_v57  ;;  %v5330_v2 = vmax.f32 %v5328_v41, %v5329_v33  ;;  %v14901_v45 = vsel %vm5232_vm8, %v5200_v29, %v5264_v36  ;;  %v14909_v18 = vadd.f32 %v14778_v54, %v14488_v48 }
 0x4fc   : > { %v5639_v55 = vsel %vm5364_vm4, %v5333_v22, -inf  ;;  %v5703_v34 = vsel %vm5430_vm15, %v5333_v22, -inf  ;;  %v5767_v49 = vsel %vm5495_vm0, %v5333_v22, -inf  ;;  %v5831_v58 = vsel %vm5560_vm5, %v5333_v22, -inf  ;;  %v14915_v23 = vpop.f32.mrb[30].mxu0 }
 0x4fd   : > { %16333 = vst [vmem:[#allocation42_spill] sm:$0xff] %v14915_v23  ;;  %v5640_v61 = vrot.slane %v5639_v55, 4  ;;  %v5704_v44 = vrot.slane %v5703_v34, 4  ;;  %v5768_v37 = vrot.slane %v5767_v49, 4  ;;  %v5832_v59 = vrot.slane %v5831_v58, 4  ;;  %v14917_v3 = vpop.f32.mrb[31].mxu0 }
 0x4fe   : > { %16334 = vst [vmem:[#allocation49_spill] sm:$0xff] %v14917_v3  ;;  %v5379_v19 = vsel %vm5364_vm4, %v5330_v2, -inf  ;;  %v5445_v48 = vsel %vm5430_vm15, %v5330_v2, -inf  ;;  %v5510_v54 = vsel %vm5495_vm0, %v5330_v2, -inf  ;;  %v5575_v50 = vsel %vm5560_vm5, %v5330_v2, -inf }
 0x4ff   : > { %v5641_v63 = vmax.f32 %v5639_v55, %v5640_v61  ;;  %v5705_v14 = vmax.f32 %v5703_v34, %v5704_v44  ;;  %v5769_v53 = vmax.f32 %v5767_v49, %v5768_v37  ;;  %v5833_v0 = vmax.f32 %v5831_v58, %v5832_v59 }
 0x500   : > { %v5380_v28 = vrot.slane %v5379_v19, 4  ;;  %v5446_v52 = vrot.slane %v5445_v48, 4  ;;  %v5511_v38 = vrot.slane %v5510_v54, 4  ;;  %v5576_v42 = vrot.slane %v5575_v50, 4 }
 0x501   : > { %vm5231_vm9 = vcmp.gt.f32.partialorder %v14884_v57, 0.0  ;;  %v5642_v1 = vrot.slane %v5641_v63, 2  ;;  %v5706_v29 = vrot.slane %v5705_v14, 2  ;;  %v5770_v25 = vrot.slane %v5769_v53, 2 }
 0x502   : > { %v5834_v56 = vrot.slane %v5833_v0, 2  ;;  %v5882_v27 = vld [vmem:[#allocation4 + $0x8] sm:$0xff]  ;;  %v5381_v6 = vmax.f32 %v5379_v19, %v5380_v28  ;;  %v5447_v20 = vmax.f32 %v5445_v48, %v5446_v52  ;;  %v5512_v24 = vmax.f32 %v5510_v54, %v5511_v38 }
 0x503   : > { %v5577_v36 = vmax.f32 %v5575_v50, %v5576_v42  ;;  %5911 = vst.msk [vmem:[#allocation5 + $0x21] sm:$0xff] %vm5315_vm12, %v5882_v27  ;;  %v5643_v41 = vmax.f32 %v5641_v63, %v5642_v1  ;;  %v5707_v22 = vmax.f32 %v5705_v14, %v5706_v29  ;;  %v5771_v33 = vmax.f32 %v5769_v53, %v5770_v25 }
 0x504   : > { %v5835_v2 = vmax.f32 %v5833_v0, %v5834_v56  ;;  %v5382_v55 = vrot.slane %v5381_v6, 2  ;;  %v5448_v34 = vrot.slane %v5447_v20, 2  ;;  %v5513_v49 = vrot.slane %v5512_v24, 2 }
 0x505   : > { %v5578_v58 = vrot.slane %v5577_v36, 2  ;;  %v5644_v61 = vrot.slane %v5643_v41, 1  ;;  %v5708_v44 = vrot.slane %v5707_v22, 1  ;;  %v5772_v37 = vrot.slane %v5771_v33, 1 }
 0x506   : > { %v5836_v59 = vrot.slane %v5835_v2, 1  ;;  %v5383_v3 = vmax.f32 %v5381_v6, %v5382_v55  ;;  %v5449_v23 = vmax.f32 %v5447_v20, %v5448_v34  ;;  %v5514_v19 = vmax.f32 %v5512_v24, %v5513_v49 }
 0x507   : > { %v5579_v48 = vmax.f32 %v5577_v36, %v5578_v58  ;;  %v5645_v54 = vmax.f32 %v5643_v41, %v5644_v61  ;;  %v5709_v50 = vmax.f32 %v5707_v22, %v5708_v44  ;;  %v5773_v28 = vmax.f32 %v5771_v33, %v5772_v37 }
 0x508   : > { %v5837_v52 = vmax.f32 %v5835_v2, %v5836_v59  ;;  %v5384_v63 = vrot.slane %v5383_v3, 1  ;;  %v5450_v14 = vrot.slane %v5449_v23, 1  ;;  %v5515_v53 = vrot.slane %v5514_v19, 1 }
 0x509   : > { %v5580_v0 = vrot.slane %v5579_v48, 1  ;;  %5683 = vst.msk [vmem:[#allocation4 + $0x14] sm:$0x1] %vm5421_vm7, %v5645_v54  ;;  %5747 = vst.msk [vmem:[#allocation4 + $0x15] sm:$0x1] %vm5421_vm7, %v5709_v50  ;;  %v5337_v38 = vsel %vm5315_vm12, %v14901_v45, -inf  ;;  %v5163_v42 = vmul.f32 %v14905_v32, %v14713_v13  ;;  %v5162_v1 = vmul.f32 %v14909_v18, %v14713_v13 }
 0x50a   : > { %5811 = vst.msk [vmem:[#allocation4 + $0x16] sm:$0x1] %vm5421_vm7, %v5773_v28  ;;  %5875 = vst.msk [vmem:[#allocation4 + $0x17] sm:$0x1] %vm5421_vm7, %v5837_v52  ;;  %v5385_v29 = vmax.f32 %v5383_v3, %v5384_v63  ;;  %v5451_v25 = vmax.f32 %v5449_v23, %v5450_v14  ;;  %v5516_v56 = vmax.f32 %v5514_v19, %v5515_v53 }
 0x50b   : > { %v5581_v27 = vmax.f32 %v5579_v48, %v5580_v0  ;;  %v5295_v6 = vsel %vm5231_vm9, %v14884_v57, %v14899_v26  ;;  %v5202_v20 = vadd.f32 %v14716_v62, %v5163_v42  ;;  %v5201_v24 = vadd.f32 %v14716_v62, %v5162_v1 }
 0x50c   : > { %v11262_v45 = vadd.f32 %v14797_v47, %v14494_v15  ;;  %5424 = vst.msk [vmem:[#allocation4 + $0x10] sm:$0x1] %vm5421_vm7, %v5385_v29  ;;  %5489 = vst.msk [vmem:[#allocation4 + $0x11] sm:$0x1] %vm5421_vm7, %v5451_v25  ;;  %v11263_v32 = vadd.f32 %v14810_v12, %v14496_v9  ;;  %v11264_v57 = vadd.f32 %v14825_v35, %v14504_v51  ;;  %v5334_v51 = vsel %vm5315_vm12, %v5295_v6, -inf }
 0x50d   : > { %5554 = vst.msk [vmem:[#allocation4 + $0x12] sm:$0x1] %vm5421_vm7, %v5516_v56  ;;  %5619 = vst.msk [vmem:[#allocation4 + $0x13] sm:$0x1] %vm5421_vm7, %v5581_v27  ;;  %v11265_v26 = vadd.f32 %v14834_v40, %v14506_v7  ;;  %v11266_v15 = vadd.f32 %v14844_v31, %v14514_v11  ;;  %vm5234_vm10 = vcmp.gt.f32.partialorder %v5202_v20, 0.0  ;;  %vm5233_vm11 = vcmp.gt.f32.partialorder %v5201_v24, 0.0 }
 0x50e   : > { %v5266_v47 = vmul.f32 0.01, %v5202_v20  ;;  %v5265_v18 = vmul.f32 0.01, %v5201_v24  ;;  %v5165_v23 = vmul.f32 %v11262_v45, %v14713_v13  ;;  %v5164_v3 = vmul.f32 %v11263_v32, %v14713_v13 }
 0x50f   : > { %v5167_v36 = vmul.f32 %v11264_v57, %v14713_v13  ;;  %v5166_v9 = vmul.f32 %v11265_v26, %v14713_v13  ;;  %v14962_v7 = vadd.f32 %v14846_v46, %v14516_v17  ;;  %v14973_v2 = vmul.f32 %v11266_v15, %v14713_v13 }
 0x510   : > { %v5298_v12 = vsel %vm5234_vm10, %v5202_v20, %v5266_v47  ;;  %v5297_v35 = vsel %vm5233_vm11, %v5201_v24, %v5265_v18  ;;  %v14967_v31 = vadd.f32 %v14716_v62, %v5165_v23  ;;  %v14970_v41 = vadd.f32 %v14716_v62, %v5164_v3 }
 0x511   : > { %v5338_v11 = vsel %vm5315_vm12, %v5298_v12, -inf  ;;  %v5335_v40 = vsel %vm5315_vm12, %v5297_v35, -inf  ;;  %v14982_v46 = vadd.f32 %v14716_v62, %v5167_v36  ;;  %v14985_v34 = vadd.f32 %v14716_v62, %v5166_v9 }
 0x512   : > { %v5339_v22 = vmax.f32 %v5337_v38, %v5338_v11  ;;  %v5336_v33 = vmax.f32 %v5334_v51, %v5335_v40  ;;  %v14976_v55 = vmul.f32 0.01, %v14967_v31  ;;  %v14979_v17 = vmul.f32 0.01, %v14970_v41 }
 0x513   : > { %vm5236_vm13 = vcmp.gt.f32.partialorder %v14967_v31, 0.0  ;;  %vm5235_vm14 = vcmp.gt.f32.partialorder %v14970_v41, 0.0  ;;  %vm5238_vm1 = vcmp.gt.f32.partialorder %v14982_v46, 0.0  ;;  %vm5237_vm6 = vcmp.gt.f32.partialorder %v14985_v34, 0.0 }
 0x514   : > { %v5646_v49 = vsel %vm5364_vm4, %v5339_v22, -inf  ;;  %v5710_v58 = vsel %vm5430_vm15, %v5339_v22, -inf  ;;  %v5774_v61 = vsel %vm5495_vm0, %v5339_v22, -inf  ;;  %v5838_v44 = vsel %vm5560_vm5, %v5339_v22, -inf  ;;  %v5883_v37 = vld [vmem:[#allocation4 + $0x10] sm:$0xff] }
 0x515   : > { %v5647_v59 = vrot.slane %v5646_v49, 4  ;;  %v5711_v19 = vrot.slane %v5710_v58, 4  ;;  %v5775_v48 = vrot.slane %v5774_v61, 4  ;;  %v5839_v54 = vrot.slane %v5838_v44, 4  ;;  %5912 = vst.msk [vmem:[#allocation5 + $0x31] sm:$0xff] %vm5315_vm12, %v5883_v37 }
 0x516   : > { %v5386_v50 = vsel %vm5364_vm4, %v5336_v33, -inf  ;;  %v5452_v28 = vsel %vm5430_vm15, %v5336_v33, -inf  ;;  %v5517_v52 = vsel %vm5495_vm0, %v5336_v33, -inf  ;;  %v5582_v63 = vsel %vm5560_vm5, %v5336_v33, -inf }
 0x517   : > { %v5648_v14 = vmax.f32 %v5646_v49, %v5647_v59  ;;  %v5712_v53 = vmax.f32 %v5710_v58, %v5711_v19  ;;  %v5776_v0 = vmax.f32 %v5774_v61, %v5775_v48  ;;  %v5840_v38 = vmax.f32 %v5838_v44, %v5839_v54 }
 0x518   : > { %v5387_v42 = vrot.slane %v5386_v50, 4  ;;  %v5453_v1 = vrot.slane %v5452_v28, 4  ;;  %v5518_v29 = vrot.slane %v5517_v52, 4  ;;  %v5583_v25 = vrot.slane %v5582_v63, 4 }
 0x519   : > { %v5649_v56 = vrot.slane %v5648_v14, 2  ;;  %v5713_v27 = vrot.slane %v5712_v53, 2  ;;  %v5777_v6 = vrot.slane %v5776_v0, 2  ;;  %v5841_v20 = vrot.slane %v5840_v38, 2 }
 0x51a   : > { %v5388_v24 = vmax.f32 %v5386_v50, %v5387_v42  ;;  %v5454_v45 = vmax.f32 %v5452_v28, %v5453_v1  ;;  %v5519_v32 = vmax.f32 %v5517_v52, %v5518_v29  ;;  %v5584_v57 = vmax.f32 %v5582_v63, %v5583_v25 }
 0x51b   : > { %v5650_v26 = vmax.f32 %v5648_v14, %v5649_v56  ;;  %v5714_v15 = vmax.f32 %v5712_v53, %v5713_v27  ;;  %v5778_v47 = vmax.f32 %v5776_v0, %v5777_v6  ;;  %v5842_v18 = vmax.f32 %v5840_v38, %v5841_v20  ;;  %v16335_v56 = vld [vmem:[#allocation54_spill] sm:$0xff] }
 0x51c   : > { %v5389_v23 = vrot.slane %v5388_v24, 2  ;;  %v5455_v3 = vrot.slane %v5454_v45, 2  ;;  %v5520_v36 = vrot.slane %v5519_v32, 2  ;;  %v5585_v9 = vrot.slane %v5584_v57, 2 }
 0x51d   : > { %v5651_v51 = vrot.slane %v5650_v26, 1  ;;  %v5715_v12 = vrot.slane %v5714_v15, 1  ;;  %v5779_v35 = vrot.slane %v5778_v47, 1  ;;  %v5843_v11 = vrot.slane %v5842_v18, 1 }
 0x51e   : > { %v5390_v40 = vmax.f32 %v5388_v24, %v5389_v23  ;;  %v5456_v22 = vmax.f32 %v5454_v45, %v5455_v3  ;;  %v5521_v33 = vmax.f32 %v5519_v32, %v5520_v36  ;;  %v5586_v49 = vmax.f32 %v5584_v57, %v5585_v9 }
 0x51f   : > { %v5652_v58 = vmax.f32 %v5650_v26, %v5651_v51  ;;  %v5716_v61 = vmax.f32 %v5714_v15, %v5715_v12  ;;  %v5780_v44 = vmax.f32 %v5778_v47, %v5779_v35  ;;  %v5844_v37 = vmax.f32 %v5842_v18, %v5843_v11 }
 0x520   : > { %v5391_v59 = vrot.slane %v5390_v40, 1  ;;  %v5457_v19 = vrot.slane %v5456_v22, 1  ;;  %v5522_v48 = vrot.slane %v5521_v33, 1  ;;  %v5587_v54 = vrot.slane %v5586_v49, 1 }
 0x521   : > { %5684 = vst.msk [vmem:[#allocation4 + $0x1c] sm:$0x1] %vm5421_vm7, %v5652_v58  ;;  %5748 = vst.msk [vmem:[#allocation4 + $0x1d] sm:$0x1] %vm5421_vm7, %v5716_v61  ;;  %v5300_v50 = vsel %vm5236_vm13, %v14967_v31, %v14976_v55  ;;  %v5299_v28 = vsel %vm5235_vm14, %v14970_v41, %v14979_v17  ;;  %v5270_v52 = vmul.f32 0.01, %v14982_v46  ;;  %v5208_v55 = vadd.f32 %v14716_v62, %v14973_v2 }
 0x522   : > { %5812 = vst.msk [vmem:[#allocation4 + $0x1e] sm:$0x1] %vm5421_vm7, %v5780_v44  ;;  %5876 = vst.msk [vmem:[#allocation4 + $0x1f] sm:$0x1] %vm5421_vm7, %v5844_v37  ;;  %v5392_v63 = vmax.f32 %v5390_v40, %v5391_v59  ;;  %v5458_v14 = vmax.f32 %v5456_v22, %v5457_v19  ;;  %v5523_v53 = vmax.f32 %v5521_v33, %v5522_v48  ;;  %v5343_v38 = vsel %vm5315_vm12, %v5300_v50, -inf }
 0x523   : > { %v5588_v0 = vmax.f32 %v5586_v49, %v5587_v54  ;;  %v5340_v42 = vsel %vm5315_vm12, %v5299_v28, -inf  ;;  %v5302_v1 = vsel %vm5238_vm1, %v14982_v46, %v5270_v52  ;;  %v5269_v41 = vmul.f32 0.01, %v14985_v34 }
 0x524   : > { %5425 = vst.msk [vmem:[#allocation4 + $0x18] sm:$0x1] %vm5421_vm7, %v5392_v63  ;;  %5490 = vst.msk [vmem:[#allocation4 + $0x19] sm:$0x1] %vm5421_vm7, %v5458_v14  ;;  %v5344_v31 = vsel %vm5315_vm12, %v5302_v1, -inf  ;;  %v5168_v17 = vmul.f32 %v14962_v7, %v14713_v13  ;;  %v11268_v29 = vadd.f32 %v14855_v5, %v14522_v21  ;;  %v15030_v25 = vadd.f32 %v14857_v60, %v14524_v30 }
 0x525   : > { %5555 = vst.msk [vmem:[#allocation4 + $0x1a] sm:$0x1] %vm5421_vm7, %v5523_v53  ;;  %5620 = vst.msk [vmem:[#allocation4 + $0x1b] sm:$0x1] %vm5421_vm7, %v5588_v0  ;;  %v5345_v46 = vmax.f32 %v5343_v38, %v5344_v31  ;;  %v15034_v27 = vadd.f32 %v14859_v43, %v16335_v56  ;;  %v5301_v6 = vsel %vm5237_vm6, %v14985_v34, %v5269_v41  ;;  %vm5240_vm8 = vcmp.gt.f32.partialorder %v5208_v55, 0.0 }
 0x526   : > { %v5272_v20 = vmul.f32 0.01, %v5208_v55  ;;  %v5207_v2 = vadd.f32 %v14716_v62, %v5168_v17  ;;  %v5341_v43 = vsel %vm5315_vm12, %v5301_v6, -inf  ;;  %v5171_v36 = vmul.f32 %v11268_v29, %v14713_v13  ;;  %v15057_v56 = vld [vmem:[#allocation14] ss:$0 sm:$0xff] }
 0x527   : > { %v5653_v7 = vsel %vm5364_vm4, %v5345_v46, -inf  ;;  %v5717_v24 = vsel %vm5430_vm15, %v5345_v46, -inf  ;;  %v5781_v21 = vsel %vm5495_vm0, %v5345_v46, -inf  ;;  %v5845_v5 = vsel %vm5560_vm5, %v5345_v46, -inf }
 0x528   : > { %v5654_v30 = vrot.slane %v5653_v7, 4  ;;  %v5718_v60 = vrot.slane %v5717_v24, 4  ;;  %v5782_v45 = vrot.slane %v5781_v21, 4  ;;  %v5846_v32 = vrot.slane %v5845_v5, 4 }
 0x529   : > { %v5304_v57 = vsel %vm5240_vm8, %v5208_v55, %v5272_v20  ;;  %vm5239_vm9 = vcmp.gt.f32.partialorder %v5207_v2, 0.0  ;;  %v5271_v34 = vmul.f32 0.01, %v5207_v2  ;;  %v5342_v18 = vmax.f32 %v5340_v42, %v5341_v43  ;;  %v15060_v20 = vld [vmem:[#allocation13] ss:$0 sm:$0xff] }
 0x52a   : > { %v5655_v26 = vmax.f32 %v5653_v7, %v5654_v30  ;;  %v5719_v15 = vmax.f32 %v5717_v24, %v5718_v60  ;;  %v5783_v62 = vmax.f32 %v5781_v21, %v5782_v45  ;;  %v5847_v47 = vmax.f32 %v5845_v5, %v5846_v32 }
 0x52b   : > { %v15044_v23 = vsel %vm5315_vm12, %v5304_v57, -inf  ;;  %v5303_v3 = vsel %vm5239_vm9, %v5207_v2, %v5271_v34  ;;  %v5393_v40 = vsel %vm5364_vm4, %v5342_v18, -inf  ;;  %v5459_v22 = vsel %vm5430_vm15, %v5342_v18, -inf }
 0x52c   : > { %v5884_v9 = vld [vmem:[#allocation4 + $0x18] sm:$0xff]  ;;  %v5656_v51 = vrot.slane %v5655_v26, 2  ;;  %v5720_v12 = vrot.slane %v5719_v15, 2  ;;  %v5784_v35 = vrot.slane %v5783_v62, 2  ;;  %v5848_v11 = vrot.slane %v5847_v47, 2 }
 0x52d   : > { %5913 = vst.msk [vmem:[#allocation5 + $0x41] sm:$0xff] %vm5315_vm12, %v5884_v9  ;;  %v5524_v33 = vsel %vm5495_vm0, %v5342_v18, -inf  ;;  %v5589_v49 = vsel %vm5560_vm5, %v5342_v18, -inf  ;;  %v5394_v13 = vrot.slane %v5393_v40, 4  ;;  %v5460_v59 = vrot.slane %v5459_v22, 4 }
 0x52e   : > { %v5657_v58 = vmax.f32 %v5655_v26, %v5656_v51  ;;  %v5721_v61 = vmax.f32 %v5719_v15, %v5720_v12  ;;  %v5785_v44 = vmax.f32 %v5783_v62, %v5784_v35  ;;  %v5849_v37 = vmax.f32 %v5847_v47, %v5848_v11  ;;  %v15068_v15 = vld [vmem:[#allocation5 + $0x10] sm:$0xff]  ;;  %v16336_v35 = vld [vmem:[#allocation56_spill] sm:$0xff] }
 0x52f   : > { %v5525_v19 = vrot.slane %v5524_v33, 4  ;;  %v5590_v48 = vrot.slane %v5589_v49, 4  ;;  %v5395_v63 = vmax.f32 %v5393_v40, %v5394_v13  ;;  %v5461_v14 = vmax.f32 %v5459_v22, %v5460_v59 }
 0x530   : > { %v5658_v54 = vrot.slane %v5657_v58, 1  ;;  %v5722_v50 = vrot.slane %v5721_v61, 1  ;;  %v5786_v28 = vrot.slane %v5785_v44, 1  ;;  %v5850_v52 = vrot.slane %v5849_v37, 1 }
 0x531   : > { %v5526_v53 = vmax.f32 %v5524_v33, %v5525_v19  ;;  %v5591_v0 = vmax.f32 %v5589_v49, %v5590_v48  ;;  %v5396_v41 = vrot.slane %v5395_v63, 2  ;;  %v5462_v55 = vrot.slane %v5461_v14, 2 }
 0x532   : > { %v5659_v38 = vmax.f32 %v5657_v58, %v5658_v54  ;;  %v5723_v42 = vmax.f32 %v5721_v61, %v5722_v50  ;;  %v5787_v1 = vmax.f32 %v5785_v44, %v5786_v28  ;;  %v5851_v31 = vmax.f32 %v5849_v37, %v5850_v52  ;;  %v16337_v44 = vld [vmem:[#allocation58_spill] sm:$0xff] }
 0x533   : > { %v5527_v17 = vrot.slane %v5526_v53, 2  ;;  %v5592_v46 = vrot.slane %v5591_v0, 2  ;;  %v5346_v29 = vsel %vm5315_vm12, %v5303_v3, -inf  ;;  %v5210_v6 = vadd.f32 %v15057_v56, %v5171_v36 }
 0x534   : > { %5685 = vst.msk [vmem:[#allocation4 + $0x24] sm:$0x1] %vm5421_vm7, %v5659_v38  ;;  %5749 = vst.msk [vmem:[#allocation4 + $0x25] sm:$0x1] %vm5421_vm7, %v5723_v42  ;;  %v5170_v2 = vmul.f32 %v15060_v20, %v15030_v25  ;;  %v5173_v7 = vmul.f32 %v15060_v20, %v15034_v27  ;;  %v5397_v24 = vmax.f32 %v5395_v63, %v5396_v41  ;;  %v15070_v27 = vld [vmem:[#allocation5 + $0x18] sm:$0x3] }
 0x535   : > { %5813 = vst.msk [vmem:[#allocation4 + $0x26] sm:$0x1] %vm5421_vm7, %v5787_v1  ;;  %5877 = vst.msk [vmem:[#allocation4 + $0x27] sm:$0x1] %vm5421_vm7, %v5851_v31  ;;  %v5463_v21 = vmax.f32 %v5461_v14, %v5462_v55  ;;  %v5528_v5 = vmax.f32 %v5526_v53, %v5527_v17  ;;  %v5593_v30 = vmax.f32 %v5591_v0, %v5592_v46  ;;  %vm5242_vm10 = vcmp.gt.f32.partialorder %v5210_v6, 0.0 }
 0x536   : > { %v5274_v60 = vmul.f32 0.01, %v5210_v6  ;;  %v5209_v45 = vadd.f32 %v15057_v56, %v5170_v2  ;;  %v5212_v32 = vadd.f32 %v15057_v56, %v5173_v7  ;;  %v5398_v43 = vrot.slane %v5397_v24, 1 }
 0x537   : > { %v5464_v57 = vrot.slane %v5463_v21, 1  ;;  %v5529_v34 = vrot.slane %v5528_v5, 1  ;;  %v5594_v26 = vrot.slane %v5593_v30, 1  ;;  %v11271_v11 = vadd.f32 %v14861_v39, %v16336_v35 }
 0x538   : > { %v5306_v25 = vsel %vm5242_vm10, %v5210_v6, %v5274_v60  ;;  %vm5241_vm11 = vcmp.gt.f32.partialorder %v5209_v45, 0.0  ;;  %v5273_v62 = vmul.f32 0.01, %v5209_v45  ;;  %vm5244_vm13 = vcmp.gt.f32.partialorder %v5212_v32, 0.0 }
 0x539   : > { %v5399_v47 = vmax.f32 %v5397_v24, %v5398_v43  ;;  %v5465_v18 = vmax.f32 %v5463_v21, %v5464_v57  ;;  %v5530_v3 = vmax.f32 %v5528_v5, %v5529_v34  ;;  %v5595_v36 = vmax.f32 %v5593_v30, %v5594_v26 }
 0x53a   : > { %v5350_v9 = vsel %vm5315_vm12, %v5306_v25, -inf  ;;  %v5305_v51 = vsel %vm5241_vm11, %v5209_v45, %v5273_v62  ;;  %v5276_v12 = vmul.f32 0.01, %v5212_v32  ;;  %v5961_v33 = vrot.slane %v15068_v15, 1 }
 0x53b   : > { %5426 = vst.msk [vmem:[#allocation4 + $0x20] sm:$0x1] %vm5421_vm7, %v5399_v47  ;;  %5491 = vst.msk [vmem:[#allocation4 + $0x21] sm:$0x1] %vm5421_vm7, %v5465_v18  ;;  %v5351_v40 = vmax.f32 %v15044_v23, %v5350_v9  ;;  %v5347_v22 = vsel %vm5315_vm12, %v5305_v51, -inf  ;;  %v5962_v49 = vrot.slane %v15070_v27, 1  ;;  %v5172_v39 = vmul.f32 %v15060_v20, %v11271_v11 }
 0x53c   : > { %5556 = vst.msk [vmem:[#allocation4 + $0x22] sm:$0x1] %vm5421_vm7, %v5530_v3  ;;  %5621 = vst.msk [vmem:[#allocation4 + $0x23] sm:$0x1] %vm5421_vm7, %v5595_v36  ;;  %v5348_v58 = vmax.f32 %v5346_v29, %v5347_v22  ;;  %v5308_v61 = vsel %vm5244_vm13, %v5212_v32, %v5276_v12  ;;  %v15087_v37 = vadd.f32 %v14874_v16, %v16337_v44 }
 0x53d   : > { %v5660_v13 = vsel %vm5364_vm4, %v5351_v40, -inf  ;;  %v5724_v59 = vsel %vm5430_vm15, %v5351_v40, -inf  ;;  %v5788_v23 = vsel %vm5495_vm0, %v5351_v40, -inf  ;;  %v5852_v19 = vsel %vm5560_vm5, %v5351_v40, -inf }
 0x53e   : > { %v5661_v48 = vrot.slane %v5660_v13, 4  ;;  %v5725_v54 = vrot.slane %v5724_v59, 4  ;;  %v5789_v50 = vrot.slane %v5788_v23, 4  ;;  %v5853_v28 = vrot.slane %v5852_v19, 4 }
 0x53f   : > { %v5400_v52 = vsel %vm5364_vm4, %v5348_v58, -inf  ;;  %v5466_v63 = vsel %vm5430_vm15, %v5348_v58, -inf  ;;  %v5531_v14 = vsel %vm5495_vm0, %v5348_v58, -inf  ;;  %v5596_v16 = vsel %vm5560_vm5, %v5348_v58, -inf }
 0x540   : > { %v5662_v53 = vmax.f32 %v5660_v13, %v5661_v48  ;;  %v5726_v0 = vmax.f32 %v5724_v59, %v5725_v54  ;;  %v5790_v38 = vmax.f32 %v5788_v23, %v5789_v50  ;;  %v5854_v42 = vmax.f32 %v5852_v19, %v5853_v28  ;;  %v15113_v54 = vld [vmem:[#allocation5 + $0x20] sm:$0xff]  ;;  %v15115_v50 = vld [vmem:[#allocation5 + $0x28] sm:$0x3] }
 0x541   : > { %v5401_v1 = vrot.slane %v5400_v52, 4  ;;  %v5467_v31 = vrot.slane %v5466_v63, 4  ;;  %v5532_v41 = vrot.slane %v5531_v14, 4  ;;  %v5597_v55 = vrot.slane %v5596_v16, 4 }
 0x542   : > { %v5663_v17 = vrot.slane %v5662_v53, 2  ;;  %v5727_v46 = vrot.slane %v5726_v0, 2  ;;  %v5791_v29 = vrot.slane %v5790_v38, 2  ;;  %v5855_v6 = vrot.slane %v5854_v42, 2 }
 0x543   : > { %v5885_v2 = vld [vmem:[#allocation4 + $0x20] sm:$0xff]  ;;  %v5402_v7 = vmax.f32 %v5400_v52, %v5401_v1  ;;  %v5468_v24 = vmax.f32 %v5466_v63, %v5467_v31  ;;  %v5533_v21 = vmax.f32 %v5531_v14, %v5532_v41  ;;  %v5598_v5 = vmax.f32 %v5596_v16, %v5597_v55  ;;  %v15133_v41 = vld [vmem:[#allocation5 + $0x30] sm:$0xff] }
 0x544   : > { %5914 = vst.msk [vmem:[#allocation5 + $0x51] sm:$0xff] %vm5315_vm12, %v5885_v2  ;;  %v5664_v30 = vmax.f32 %v5662_v53, %v5663_v17  ;;  %v5728_v60 = vmax.f32 %v5726_v0, %v5727_v46  ;;  %v5792_v45 = vmax.f32 %v5790_v38, %v5791_v29  ;;  %v5856_v32 = vmax.f32 %v5854_v42, %v5855_v6  ;;  %v16340_v53 = vld [vmem:[#allocation39_spill] sm:$0xff]  ;;  %v16341_v6 = vld [vmem:[#allocation40_spill] sm:$0xff]  ;;  %v16342_v2 = vld [vmem:[#allocation42_spill] sm:$0xff] }
 0x545   : > { %v5403_v43 = vrot.slane %v5402_v7, 2  ;;  %v5469_v57 = vrot.slane %v5468_v24, 2  ;;  %v5534_v34 = vrot.slane %v5533_v21, 2  ;;  %v5599_v26 = vrot.slane %v5598_v5, 2 }
 0x546   : > { %v5665_v25 = vrot.slane %v5664_v30, 1  ;;  %v5729_v62 = vrot.slane %v5728_v60, 1  ;;  %v5793_v47 = vrot.slane %v5792_v45, 1  ;;  %v5857_v18 = vrot.slane %v5856_v32, 1 }
 0x547   : > { %v5404_v3 = vmax.f32 %v5402_v7, %v5403_v43  ;;  %v5470_v36 = vmax.f32 %v5468_v24, %v5469_v57  ;;  %v5535_v9 = vmax.f32 %v5533_v21, %v5534_v34  ;;  %v5600_v51 = vmax.f32 %v5598_v5, %v5599_v26  ;;  %v16343_v24 = vld [vmem:[#allocation41_spill] sm:$0xff] }
 0x548   : > { %v5666_v12 = vmax.f32 %v5664_v30, %v5665_v25  ;;  %v5730_v35 = vmax.f32 %v5728_v60, %v5729_v62  ;;  %v5794_v11 = vmax.f32 %v5792_v45, %v5793_v47  ;;  %v5858_v40 = vmax.f32 %v5856_v32, %v5857_v18  ;;  %v16344_v21 = vld [vmem:[#allocation49_spill] sm:$0xff] }
 0x549   : > { %v5405_v22 = vrot.slane %v5404_v3, 1  ;;  %v5471_v58 = vrot.slane %v5470_v36, 1  ;;  %v5536_v44 = vrot.slane %v5535_v9, 1  ;;  %v5601_v13 = vrot.slane %v5600_v51, 1 }
 0x54a   : > { %5686 = vst.msk [vmem:[#allocation4 + $0x2c] sm:$0x1] %vm5421_vm7, %v5666_v12  ;;  %5750 = vst.msk [vmem:[#allocation4 + $0x2d] sm:$0x1] %vm5421_vm7, %v5730_v35  ;;  %v5355_v59 = vsel %vm5315_vm12, %v5308_v61, -inf  ;;  %v5211_v23 = vadd.f32 %v15057_v56, %v5172_v39  ;;  %v15109_v19 = vsel %vm1031_vm2, %v5961_v33, %v5962_v49  ;;  %v5175_v48 = vmul.f32 %v15060_v20, %v15087_v37  ;;  %v16338_v33 = vld [vmem:[#allocation60_spill] sm:$0xff] }
 0x54b   : > { %5814 = vst.msk [vmem:[#allocation4 + $0x2e] sm:$0x1] %vm5421_vm7, %v5794_v11  ;;  %5878 = vst.msk [vmem:[#allocation4 + $0x2f] sm:$0x1] %vm5421_vm7, %v5858_v40  ;;  %v5406_v28 = vmax.f32 %v5404_v3, %v5405_v22  ;;  %v5472_v52 = vmax.f32 %v5470_v36, %v5471_v58  ;;  %v5537_v63 = vmax.f32 %v5535_v9, %v5536_v44  ;;  %10512 = vmatmul.mubr.msk.f32.vlgmr.msra.gmra.mrb[32].mxu1 %vm5315_vm12, %v15109_v19  ;;  %v16339_v37 = vld [vmem:[#allocation62_spill] sm:$0xff] }
 0x54c   : > { %v5602_v61 = vmax.f32 %v5600_v51, %v5601_v13  ;;  %vm5243_vm14 = vcmp.gt.f32.partialorder %v5211_v23, 0.0  ;;  %v5275_v39 = vmul.f32 0.01, %v5211_v23  ;;  %v5214_v14 = vadd.f32 %v15057_v56, %v5175_v48  ;;  %v15160_v48 = vld [vmem:[#allocation5 + $0x38] sm:$0x3] }
 0x54d   : > { %v11273_v49 = vadd.f32 %v14879_v8, %v16338_v33  ;;  %5427 = vst.msk [vmem:[#allocation4 + $0x28] sm:$0x1] %vm5421_vm7, %v5406_v28  ;;  %5492 = vst.msk [vmem:[#allocation4 + $0x29] sm:$0x1] %vm5421_vm7, %v5472_v52  ;;  %v11274_v16 = vadd.f32 %v14886_v4, %v16339_v37  ;;  %v11275_v0 = vadd.f32 %v14890_v10, %v16340_v53  ;;  %v5964_v38 = vrot.slane %v15113_v54, 1 }
 0x54e   : > { %5557 = vst.msk [vmem:[#allocation4 + $0x2a] sm:$0x1] %vm5421_vm7, %v5537_v63  ;;  %5622 = vst.msk [vmem:[#allocation4 + $0x2b] sm:$0x1] %vm5421_vm7, %v5602_v61  ;;  %v5965_v42 = vrot.slane %v15115_v50, 1  ;;  %v5307_v1 = vsel %vm5243_vm14, %v5211_v23, %v5275_v39  ;;  %vm5246_vm1 = vcmp.gt.f32.partialorder %v5214_v14, 0.0  ;;  %v11276_v7 = vadd.f32 %v16342_v2, %v16341_v6 }
 0x54f   : > { %v5278_v8 = vmul.f32 0.01, %v5214_v14  ;;  %v5174_v31 = vmul.f32 %v15060_v20, %v11273_v49  ;;  %v5352_v55 = vsel %vm5315_vm12, %v5307_v1, -inf  ;;  %v5177_v17 = vmul.f32 %v15060_v20, %v11274_v16 }
 0x550   : > { %v5176_v4 = vmul.f32 %v15060_v20, %v11275_v0  ;;  %v15139_v46 = vsel %vm1031_vm2, %v5964_v38, %v5965_v42  ;;  %v11277_v5 = vadd.f32 %v16344_v21, %v16343_v24  ;;  %v5967_v32 = vrot.slane %v15133_v41, 1  ;;  %v15173_v21 = vld [vmem:[#allocation5 + $0x40] sm:$0xff] }
 0x551   : > { %v5310_v10 = vsel %vm5246_vm1, %v5214_v14, %v5278_v8  ;;  %v5213_v29 = vadd.f32 %v15057_v56, %v5174_v31  ;;  %10514 = vmatprep.mubr.msk.f32.mxu1 %vm5315_vm12, %v15139_v46  ;;  %v5216_v60 = vadd.f32 %v15057_v56, %v5177_v17  ;;  %v5179_v34 = vmul.f32 %v15060_v20, %v11276_v7 }
 0x552   : > { %v5356_v30 = vsel %vm5315_vm12, %v5310_v10, -inf  ;;  %v5215_v45 = vadd.f32 %v15057_v56, %v5176_v4  ;;  %v5178_v16 = vmul.f32 %v15060_v20, %v11277_v5  ;;  %v5968_v53 = vrot.slane %v15160_v48, 1 }
 0x553   : > { %v5357_v43 = vmax.f32 %v5355_v59, %v5356_v30  ;;  %vm5245_vm6 = vcmp.gt.f32.partialorder %v5213_v29, 0.0  ;;  %v5277_v57 = vmul.f32 0.01, %v5213_v29  ;;  %vm5248_vm8 = vcmp.gt.f32.partialorder %v5216_v60, 0.0 }
 0x554   : > { %v5280_v26 = vmul.f32 0.01, %v5216_v60  ;;  %vm5247_vm9 = vcmp.gt.f32.partialorder %v5215_v45, 0.0  ;;  %v5279_v25 = vmul.f32 0.01, %v5215_v45  ;;  %v5218_v58 = vadd.f32 %v15057_v56, %v5179_v34 }
 0x555   : > { %v5667_v62 = vsel %vm5364_vm4, %v5357_v43, -inf  ;;  %v5731_v47 = vsel %vm5430_vm15, %v5357_v43, -inf  ;;  %v5795_v18 = vsel %vm5495_vm0, %v5357_v43, -inf  ;;  %v5859_v3 = vsel %vm5560_vm5, %v5357_v43, -inf  ;;  %v5886_v36 = vld [vmem:[#allocation4 + $0x28] sm:$0xff] }
 0x556   : > { %v5668_v9 = vrot.slane %v5667_v62, 4  ;;  %v5732_v51 = vrot.slane %v5731_v47, 4  ;;  %v5796_v12 = vrot.slane %v5795_v18, 4  ;;  %v5860_v35 = vrot.slane %v5859_v3, 4  ;;  %5915 = vst.msk [vmem:[#allocation5 + $0x61] sm:$0xff] %vm5315_vm12, %v5886_v36 }
 0x557   : > { %v5309_v11 = vsel %vm5245_vm6, %v5213_v29, %v5277_v57  ;;  %v5312_v40 = vsel %vm5248_vm8, %v5216_v60, %v5280_v26  ;;  %v5311_v22 = vsel %vm5247_vm9, %v5215_v45, %v5279_v25  ;;  %vm5250_vm10 = vcmp.gt.f32.partialorder %v5218_v58, 0.0  ;;  %v15175_v25 = vld [vmem:[#allocation5 + $0x48] sm:$0x3] }
 0x558   : > { %v5669_v44 = vmax.f32 %v5667_v62, %v5668_v9  ;;  %v5733_v13 = vmax.f32 %v5731_v47, %v5732_v51  ;;  %v5797_v59 = vmax.f32 %v5795_v18, %v5796_v12  ;;  %v5861_v23 = vmax.f32 %v5859_v3, %v5860_v35  ;;  %v15191_v35 = vld [vmem:[#allocation5 + $0x50] sm:$0xff] }
 0x559   : > { %v5353_v28 = vsel %vm5315_vm12, %v5309_v11, -inf  ;;  %v5361_v52 = vsel %vm5315_vm12, %v5312_v40, -inf  ;;  %v15165_v63 = vsel %vm5315_vm12, %v5311_v22, -inf  ;;  %v5282_v37 = vmul.f32 0.01, %v5218_v58 }
 0x55a   : > { %v5670_v61 = vrot.slane %v5669_v44, 2  ;;  %v5734_v39 = vrot.slane %v5733_v13, 2  ;;  %v5798_v14 = vrot.slane %v5797_v59, 2  ;;  %v5862_v33 = vrot.slane %v5861_v23, 2 }
 0x55b   : > { %v5354_v49 = vmax.f32 %v5352_v55, %v5353_v28  ;;  %v5314_v62 = vsel %vm5250_vm10, %v5218_v58, %v5282_v37  ;;  %v5217_v47 = vadd.f32 %v15057_v56, %v5178_v16  ;;  %v15186_v18 = vsel %vm1031_vm2, %v5967_v32, %v5968_v53  ;;  %v15201_v37 = vld [vmem:[#allocation5 + $0x58] sm:$0x3] }
 0x55c   : > { %v5671_v0 = vmax.f32 %v5669_v44, %v5670_v61  ;;  %v5735_v38 = vmax.f32 %v5733_v13, %v5734_v39  ;;  %v5799_v42 = vmax.f32 %v5797_v59, %v5798_v14  ;;  %v5863_v1 = vmax.f32 %v5861_v23, %v5862_v33  ;;  %10515 = vmatmul.mubr.msk.f32.gmra.mrb[34].mxu1 %vm5315_vm12, %v15186_v18  ;;  %v5938_v61 = vld [vmem:[#allocation16] sm:$0xff] }
 0x55d   : > { %v5407_v8 = vsel %vm5364_vm4, %v5354_v49, -inf  ;;  %v5473_v31 = vsel %vm5430_vm15, %v5354_v49, -inf  ;;  %v5538_v17 = vsel %vm5495_vm0, %v5354_v49, -inf  ;;  %v5603_v4 = vsel %vm5560_vm5, %v5354_v49, -inf }
 0x55e   : > { %v5672_v10 = vrot.slane %v5671_v0, 1  ;;  %v5736_v29 = vrot.slane %v5735_v38, 1  ;;  %v5800_v55 = vrot.slane %v5799_v42, 1  ;;  %v5864_v6 = vrot.slane %v5863_v1, 1 }
 0x55f   : > { %v5408_v2 = vrot.slane %v5407_v8, 4  ;;  %v5474_v20 = vrot.slane %v5473_v31, 4  ;;  %v5539_v7 = vrot.slane %v5538_v17, 4  ;;  %v5604_v24 = vrot.slane %v5603_v4, 4 }
 0x560   : > { %v5673_v5 = vmax.f32 %v5671_v0, %v5672_v10  ;;  %v5737_v30 = vmax.f32 %v5735_v38, %v5736_v29  ;;  %v5801_v60 = vmax.f32 %v5799_v42, %v5800_v55  ;;  %v5865_v45 = vmax.f32 %v5863_v1, %v5864_v6  ;;  %v5939_v38 = vld [vmem:[#allocation16 + $0x8] sm:$0xff]  ;;  %v15207_v42 = vld [vmem:[#allocation5 + $0x60] sm:$0xff]  ;;  %v5941_v10 = vld [vmem:[#allocation16 + $0x18] sm:$0xff] }
 0x561   : > { %v5409_v43 = vmax.f32 %v5407_v8, %v5408_v2  ;;  %v5475_v57 = vmax.f32 %v5473_v31, %v5474_v20  ;;  %v5540_v34 = vmax.f32 %v5538_v17, %v5539_v7  ;;  %v5605_v26 = vmax.f32 %v5603_v4, %v5604_v24  ;;  %v5940_v4 = vld [vmem:[#allocation16 + $0x10] sm:$0xff]  ;;  %v15209_v20 = vld [vmem:[#allocation5 + $0x68] sm:$0x3] }
 0x562   : > { %5687 = vst.msk [vmem:[#allocation4 + $0x34] sm:$0x1] %vm5421_vm7, %v5673_v5  ;;  %5751 = vst.msk [vmem:[#allocation4 + $0x35] sm:$0x1] %vm5421_vm7, %v5737_v30  ;;  %v5970_v3 = vrot.slane %v15173_v21, 1  ;;  %v5362_v11 = vsel %vm5315_vm12, %v5314_v62, -inf  ;;  %v11014_v5 = vpack.c.bf16 %v5939_v38, %v5938_v61 }
 0x563   : > { %5815 = vst.msk [vmem:[#allocation4 + $0x36] sm:$0x1] %vm5421_vm7, %v5801_v60  ;;  %5879 = vst.msk [vmem:[#allocation4 + $0x37] sm:$0x1] %vm5421_vm7, %v5865_v45  ;;  %v5410_v36 = vrot.slane %v5409_v43, 2  ;;  %v5476_v9 = vrot.slane %v5475_v57, 2  ;;  %v5363_v13 = vmax.f32 %v5361_v52, %v5362_v11 }
 0x564   : > { %v5541_v51 = vrot.slane %v5540_v34, 2  ;;  %v5606_v12 = vrot.slane %v5605_v26, 2  ;;  %vm5249_vm11 = vcmp.gt.f32.partialorder %v5217_v47, 0.0  ;;  %v5281_v56 = vmul.f32 0.01, %v5217_v47  ;;  %11015 = vmatprep.subr.bf16.mxu1 %v11014_v5  ;;  %v6254_v38 = vld [vmem:[#allocation16 + $0x40] sm:$0xff] }
 0x565   : > { %v5971_v40 = vrot.slane %v15175_v25, 1  ;;  %v5411_v22 = vmax.f32 %v5409_v43, %v5410_v36  ;;  %v5477_v32 = vmax.f32 %v5475_v57, %v5476_v9  ;;  %v5973_v28 = vrot.slane %v15191_v35, 1  ;;  %11017 = vmatpush3.bf16.msra.mxu1 %v11014_v5 }
 0x566   : > { %v5542_v58 = vmax.f32 %v5540_v34, %v5541_v51  ;;  %v5607_v44 = vmax.f32 %v5605_v26, %v5606_v12  ;;  %v5313_v59 = vsel %vm5249_vm11, %v5217_v47, %v5281_v56  ;;  %v5674_v16 = vsel %vm5364_vm4, %v5363_v13, -inf }
 0x567   : > { %v15196_v23 = vsel %vm1031_vm2, %v5970_v3, %v5971_v40  ;;  %v5412_v39 = vrot.slane %v5411_v22, 1  ;;  %v5478_v14 = vrot.slane %v5477_v32, 1  ;;  %v5738_v52 = vsel %vm5430_vm15, %v5363_v13, -inf }
 0x568   : > { %v5543_v33 = vrot.slane %v5542_v58, 1  ;;  %v5608_v49 = vrot.slane %v5607_v44, 1  ;;  %10517 = vmatprep.mubr.msk.f32.mxu1 %vm5315_vm12, %v15196_v23  ;;  %v5802_v53 = vsel %vm5495_vm0, %v5363_v13, -inf  ;;  %v5866_v0 = vsel %vm5560_vm5, %v5363_v13, -inf }
 0x569   : > { %v5413_v1 = vmax.f32 %v5411_v22, %v5412_v39  ;;  %v5479_v8 = vmax.f32 %v5477_v32, %v5478_v14  ;;  %v5675_v29 = vrot.slane %v5674_v16, 4  ;;  %v5739_v55 = vrot.slane %v5738_v52, 4 }
 0x56a   : > { %v5544_v31 = vmax.f32 %v5542_v58, %v5543_v33  ;;  %v5609_v17 = vmax.f32 %v5607_v44, %v5608_v49  ;;  %v5803_v6 = vrot.slane %v5802_v53, 4  ;;  %v5867_v2 = vrot.slane %v5866_v0, 4 }
 0x56b   : > { %5428 = vst.msk [vmem:[#allocation4 + $0x30] sm:$0x1] %vm5421_vm7, %v5413_v1  ;;  %5493 = vst.msk [vmem:[#allocation4 + $0x31] sm:$0x1] %vm5421_vm7, %v5479_v8  ;;  %v5359_v7 = vsel %vm5315_vm12, %v5313_v59, -inf  ;;  %v5974_v24 = vrot.slane %v15201_v37, 1  ;;  %v5676_v60 = vmax.f32 %v5674_v16, %v5675_v29  ;;  %v5740_v45 = vmax.f32 %v5738_v52, %v5739_v55 }
 0x56c   : > { %5558 = vst.msk [vmem:[#allocation4 + $0x32] sm:$0x1] %vm5421_vm7, %v5544_v31  ;;  %5623 = vst.msk [vmem:[#allocation4 + $0x33] sm:$0x1] %vm5421_vm7, %v5609_v17  ;;  %v5976_v30 = vrot.slane %v15207_v42, 1  ;;  %v5804_v43 = vmax.f32 %v5802_v53, %v5803_v6  ;;  %v5868_v57 = vmax.f32 %v5866_v0, %v5867_v2  ;;  %v5360_v34 = vmax.f32 %v15165_v63, %v5359_v7  ;;  %v6255_v1 = vld [vmem:[#allocation16 + $0x48] sm:$0xff] }
 0x56d   : > { %v15220_v26 = vsel %vm1031_vm2, %v5973_v28, %v5974_v24  ;;  %v5977_v62 = vrot.slane %v15209_v20, 1  ;;  %v11018_v47 = vpack.c.bf16 %v5941_v10, %v5940_v4  ;;  %v5677_v3 = vrot.slane %v5676_v60, 2 }
 0x56e   : > { %v5741_v36 = vrot.slane %v5740_v45, 2  ;;  %v5805_v9 = vrot.slane %v5804_v43, 2  ;;  %v5869_v51 = vrot.slane %v5868_v57, 2  ;;  %10518 = vmatmul.mubr.msk.f32.gmra.mrb[36].mxu1 %vm5315_vm12, %v15220_v26  ;;  %v5414_v12 = vsel %vm5364_vm4, %v5360_v34, -inf }
 0x56f   : > { %v5480_v11 = vsel %vm5430_vm15, %v5360_v34, -inf  ;;  %v5545_v63 = vsel %vm5495_vm0, %v5360_v34, -inf  ;;  %v5610_v56 = vsel %vm5560_vm5, %v5360_v34, -inf  ;;  %v5678_v40 = vmax.f32 %v5676_v60, %v5677_v3  ;;  %11019 = vmatprep.subr.bf16.mxu1 %v11018_v47 }
 0x570   : > { %v5742_v22 = vmax.f32 %v5740_v45, %v5741_v36  ;;  %v5806_v32 = vmax.f32 %v5804_v43, %v5805_v9  ;;  %v5870_v58 = vmax.f32 %v5868_v57, %v5869_v51  ;;  %v5415_v44 = vrot.slane %v5414_v12, 4  ;;  %11021 = vmatpush3.bf16.msra.mxu1 %v11018_v47 }
 0x571   : > { %v5481_v13 = vrot.slane %v5480_v11, 4  ;;  %v5546_v59 = vrot.slane %v5545_v63, 4  ;;  %v5611_v28 = vrot.slane %v5610_v56, 4  ;;  %v5679_v61 = vrot.slane %v5678_v40, 1 }
 0x572   : > { %v5743_v39 = vrot.slane %v5742_v22, 1  ;;  %v5807_v14 = vrot.slane %v5806_v32, 1  ;;  %v5871_v33 = vrot.slane %v5870_v58, 1  ;;  %v5416_v16 = vmax.f32 %v5414_v12, %v5415_v44  ;;  %v6389_v44 = vld [vmem:[#allocation16 + $0x68] sm:$0xff] }
 0x573   : > { %v5887_v49 = vld [vmem:[#allocation4 + $0x30] sm:$0xff]  ;;  %v5482_v52 = vmax.f32 %v5480_v11, %v5481_v13  ;;  %v5547_v53 = vmax.f32 %v5545_v63, %v5546_v59  ;;  %v5612_v0 = vmax.f32 %v5610_v56, %v5611_v28  ;;  %v5680_v8 = vmax.f32 %v5678_v40, %v5679_v61  ;;  %v6257_v40 = vld [vmem:[#allocation16 + $0x58] sm:$0xff]  ;;  %v11810_v61 = vld [vmem:[#allocation5 + $0x8] sm:$0x3] }
 0x574   : > { %5916 = vst.msk [vmem:[#allocation5 + $0x71] sm:$0xff] %vm5315_vm12, %v5887_v49  ;;  %v5744_v31 = vmax.f32 %v5742_v22, %v5743_v39  ;;  %v5808_v17 = vmax.f32 %v5806_v32, %v5807_v14  ;;  %v5872_v4 = vmax.f32 %v5870_v58, %v5871_v33  ;;  %v5417_v10 = vrot.slane %v5416_v16, 2  ;;  %v6256_v56 = vld [vmem:[#allocation16 + $0x50] sm:$0xff]  ;;  %v11809_v22 = vld [vmem:[#allocation5] sm:$0xff] }
 0x575   : > { %v5483_v29 = vrot.slane %v5482_v52, 2  ;;  %v5548_v55 = vrot.slane %v5547_v53, 2  ;;  %v5613_v6 = vrot.slane %v5612_v0, 2  ;;  %5688 = vst.msk [vmem:[#allocation4 + $0x3c] sm:$0x1] %vm5421_vm7, %v5680_v8  ;;  %v15235_v2 = vsel %vm1031_vm2, %v5976_v30, %v5977_v62  ;;  %v6388_v58 = vld [vmem:[#allocation16 + $0x60] sm:$0xff] }
 0x576   : > { %5752 = vst.msk [vmem:[#allocation4 + $0x3d] sm:$0x1] %vm5421_vm7, %v5744_v31  ;;  %5816 = vst.msk [vmem:[#allocation4 + $0x3e] sm:$0x1] %vm5421_vm7, %v5808_v17  ;;  %v11022_v7 = vpack.c.bf16 %v6255_v1, %v6254_v38  ;;  %v5418_v24 = vmax.f32 %v5416_v16, %v5417_v10  ;;  %10520 = vmatprep.mubr.msk.f32.mxu1 %vm5315_vm12, %v15235_v2  ;;  %v11026_v32 = vpack.c.bf16 %v6257_v40, %v6256_v56  ;;  %v6390_v16 = vld [vmem:[#allocation16 + $0x70] sm:$0xff]  ;;  %v6514_v17 = vld [vmem:[#allocation16 + $0x88] sm:$0xff] }
 0x577   : > { %5880 = vst.msk [vmem:[#allocation4 + $0x3f] sm:$0x1] %vm5421_vm7, %v5872_v4  ;;  %v5484_v5 = vmax.f32 %v5482_v52, %v5483_v29  ;;  %v5549_v60 = vmax.f32 %v5547_v53, %v5548_v55  ;;  %v5614_v45 = vmax.f32 %v5612_v0, %v5613_v6  ;;  %v11030_v59 = vpack.c.bf16 %v6389_v44, %v6388_v58  ;;  %v6391_v52 = vld [vmem:[#allocation16 + $0x78] sm:$0xff]  ;;  %v6758_v58 = vld [vmem:[#allocation16 + $0xd0] sm:$0xff] }
 0x578   : > { %11023 = vmatprep.subr.bf16.mxu1 %v11022_v7  ;;  %v5419_v43 = vrot.slane %v5418_v24, 1  ;;  %v6229_v28 = vrot.slane %v11809_v22, 2  ;;  %v6230_v39 = vrot.slane %v11810_v61, 2  ;;  %v6232_v33 = vrot.slane %v15068_v15, 2  ;;  %v6759_v44 = vld [vmem:[#allocation16 + $0xd8] sm:$0xff] }
 0x579   : > { %v5485_v57 = vrot.slane %v5484_v5, 1  ;;  %v5550_v34 = vrot.slane %v5549_v60, 1  ;;  %v5615_v47 = vrot.slane %v5614_v45, 1  ;;  %v6233_v49 = vrot.slane %v15070_v27, 2  ;;  %v6513_v27 = vld [vmem:[#allocation16 + $0x80] sm:$0xff] }
 0x57a   : > { %v5420_v9 = vmax.f32 %v5418_v24, %v5419_v43  ;;  %v6231_v14 = vsel %vm1312_vm3, %v6229_v28, %v6230_v39  ;;  %v6235_v53 = vrot.slane %v15113_v54, 2  ;;  %v6236_v0 = vrot.slane %v15115_v50, 2  ;;  %v6515_v43 = vld [vmem:[#allocation16 + $0x90] sm:$0xff]  ;;  %v6882_v28 = vld [vmem:[#allocation16 + $0xe8] sm:$0xff] }
 0x57b   : > { %v15239_v3 = vld [vmem:[#allocation5 + $0x70] sm:$0xff]  ;;  %v15241_v36 = vld [vmem:[#allocation5 + $0x78] sm:$0x3]  ;;  %v5486_v30 = vmax.f32 %v5484_v5, %v5485_v57  ;;  %v5551_v62 = vmax.f32 %v5549_v60, %v5550_v34  ;;  %v5616_v51 = vmax.f32 %v5614_v45, %v5615_v47  ;;  %v11034_v38 = vpack.c.bf16 %v6391_v52, %v6390_v16  ;;  %v6636_v47 = vld [vmem:[#allocation16 + $0xa0] sm:$0xff] }
 0x57c   : > { %v5979_v12 = vrot.slane %v15239_v3, 1  ;;  %v5980_v11 = vrot.slane %v15241_v36, 1  ;;  %5429 = vst.msk [vmem:[#allocation4 + $0x38] sm:$0x1] %vm5421_vm7, %v5420_v9  ;;  %v15277_v1 = vsel %vm1312_vm3, %v6232_v33, %v6233_v49  ;;  %v6238_v8 = vrot.slane %v15133_v41, 2  ;;  %v6516_v57 = vld [vmem:[#allocation16 + $0x98] sm:$0xff] }
 0x57d   : > { %5494 = vst.msk [vmem:[#allocation4 + $0x39] sm:$0x1] %vm5421_vm7, %v5486_v30  ;;  %5559 = vst.msk [vmem:[#allocation4 + $0x3a] sm:$0x1] %vm5421_vm7, %v5551_v62  ;;  %v6239_v31 = vrot.slane %v15160_v48, 2  ;;  %v15284_v4 = vsel %vm1312_vm3, %v6235_v53, %v6236_v0  ;;  %v6241_v50 = vrot.slane %v15173_v21, 2  ;;  %v11038_v29 = vpack.c.bf16 %v6514_v17, %v6513_v27 }
 0x57e   : > { %5624 = vst.msk [vmem:[#allocation4 + $0x3b] sm:$0x1] %vm5421_vm7, %v5616_v51  ;;  %v15250_v63 = vsel %vm1031_vm2, %v5979_v12, %v5980_v11  ;;  %v6242_v10 = vrot.slane %v15175_v25, 2  ;;  %v6244_v55 = vrot.slane %v15191_v35, 2  ;;  %v6245_v6 = vrot.slane %v15201_v37, 2  ;;  %v6638_v30 = vld [vmem:[#allocation16 + $0xb0] sm:$0xff] }
 0x57f   : > { %10521 = vmatmul.mubr.msk.f32.gmra.mrb[38].mxu1 %vm5315_vm12, %v15250_v63  ;;  %v15291_v48 = vsel %vm1312_vm3, %v6238_v8, %v6239_v31  ;;  %v6247_v25 = vrot.slane %v15207_v42, 2  ;;  %v6248_v24 = vrot.slane %v15209_v20, 2  ;;  %v6250_v37 = vrot.slane %v15239_v3, 2  ;;  %v6639_v62 = vld [vmem:[#allocation16 + $0xb8] sm:$0xff]  ;;  %v6756_v12 = vld [vmem:[#allocation16 + $0xc0] sm:$0xff]  ;;  %v6757_v11 = vld [vmem:[#allocation16 + $0xc8] sm:$0xff] }
 0x580   : > { %10531 = vmatprep.mubr.msk.f32.mxu1 %vm5315_vm12, %v11809_v22  ;;  %v15305_v5 = vsel %vm1312_vm3, %v6244_v55, %v6245_v6  ;;  %v6251_v60 = vrot.slane %v15241_v36, 2  ;;  %v11042_v34 = vpack.c.bf16 %v6516_v57, %v6515_v43  ;;  %v6637_v36 = vld [vmem:[#allocation16 + $0xa8] sm:$0xff]  ;;  %v11050_v51 = vpack.c.bf16 %v6639_v62, %v6638_v30  ;;  %v6883_v49 = vld [vmem:[#allocation16 + $0xf0] sm:$0xff]  ;;  %v6884_v16 = vld [vmem:[#allocation16 + $0xf8] sm:$0xff] }
 0x581   : > { %v15312_v45 = vsel %vm1312_vm3, %v6247_v25, %v6248_v24  ;;  %v11046_v9 = vpack.c.bf16 %v6637_v36, %v6636_v47  ;;  %v11054_v56 = vpack.c.bf16 %v6757_v11, %v6756_v12  ;;  %v11066_v52 = vpack.c.bf16 %v6884_v16, %v6883_v49  ;;  %v7004_v53 = vld [vmem:[#allocation16 + $0x100] sm:$0xff]  ;;  %v7005_v0 = vld [vmem:[#allocation16 + $0x108] sm:$0xff]  ;;  %v9320_v27 = vld [vmem:[%s16088_s10 + $0x50] sm:$0xff] }
 0x582   : > { %v15317_v20 = vsel %vm1312_vm3, %v6250_v37, %v6251_v60  ;;  %vm7177_vm4 = vcmask 523264   ;;  %vm7179_vm15 = vcmask 517120   ;;  %v9319_v8 = vld [vmem:[%s16088_s10 + $0x48] sm:$0xff]  ;;  %v9321_v17 = vld [vmem:[%s16088_s10 + $0x58] sm:$0xff]  ;;  %v9316_v43 = vld [vmem:[#allocation17] ss:$0 sm:$0xff] }
 0x583   : > { %10532 = vmatmul.mubr.msk.f32.vlgmr.msra.gmra.mrb[32].mxu1 %vm5315_vm12, %v15068_v15  ;;  %v9325_v55 = vld [vmem:[%s16088_s10 + $0x78] sm:$0xff]  ;;  %v7229_v37 = vld [vmem:[%s16088_s10 + $0x8] sm:$0xff]  ;;  %vm8507_vm9 = vcmask 1041408   ;;  %vm8540_vm10 = vcmask 1043458   ;;  %vm8573_vm11 = vcmask 1045508  }
 0x584   : > { %11025 = vmatpush3.bf16.msra.mxu1 %v11022_v7  ;;  %10534 = vmatprep.mubr.msk.f32.mxu1 %vm5315_vm12, %v15113_v54  ;;  %v15298_v7 = vsel %vm1312_vm3, %v6241_v50, %v6242_v10  ;;  %v9322_v50 = vld [vmem:[%s16088_s10 + $0x60] sm:$0xff]  ;;  %v9323_v10 = vld [vmem:[%s16088_s10 + $0x68] sm:$0xff] }
 0x585   : > { %v5888_v13 = vld [vmem:[#allocation4 + $0x38] sm:$0xff]  ;;  %11027 = vmatprep.subr.bf16.mxu1 %v11026_v32 }
 0x586   : > { %5917 = vst.msk [vmem:[#allocation5 + $0x81] sm:$0xff] %vm5315_vm12, %v5888_v13  ;;  %v11058_v13 = vpack.c.bf16 %v6759_v44, %v6758_v58 }
 0x587   : > { %10535 = vmatmul.mubr.msk.f32.gmra.mrb[34].mxu1 %vm5315_vm12, %v15133_v41 }
 0x588   : > { %10537 = vmatprep.mubr.msk.f32.mxu1 %vm5315_vm12, %v15173_v21  ;;  %11029 = vmatpush3.bf16.msra.mxu1 %v11026_v32 }
 0x589   : > { %11031 = vmatprep.subr.bf16.mxu1 %v11030_v59 }
 0x58b   : > { %10538 = vmatmul.mubr.msk.f32.gmra.mrb[36].mxu1 %vm5315_vm12, %v15191_v35 }
 0x58c   : > { %10540 = vmatprep.mubr.msk.f32.mxu1 %vm5315_vm12, %v15207_v42 }
 0x58d   : > { %v5935_v40 = vld [vmem:[#allocation5 + $0x88] sm:$0x3] }
 0x58e   : > { %v6510_v22 = vrot.slane %v5935_v40, 1 }
 0x58f   : > { %10541 = vmatmul.mubr.msk.f32.gmra.mrb[38].mxu1 %vm5315_vm12, %v15239_v3 }
 0x590   : > { %10551 = vmatprep.mubr.msk.f32.mxu1 %vm5315_vm12, %v6231_v14  ;;  %v6633_v14 = vrot.slane %v5935_v40, 2 }
 0x593   : > { %10552 = vmatmul.mubr.msk.f32.vlgmr.msra.gmra.mrb[32].mxu1 %vm5315_vm12, %v15277_v1 }
 0x594   : > { %11033 = vmatpush3.bf16.msra.mxu1 %v11030_v59  ;;  %10554 = vmatprep.mubr.msk.f32.mxu1 %vm5315_vm12, %v15284_v4  ;;  %v6881_v59 = vld [vmem:[#allocation16 + $0xe0] sm:$0xff] }
 0x595   : > { %11035 = vmatprep.subr.bf16.mxu1 %v11034_v38  ;;  %v11062_v61 = vpack.c.bf16 %v6882_v28, %v6881_v59 }
 0x597   : > { %10555 = vmatmul.mubr.msk.f32.gmra.mrb[34].mxu1 %vm5315_vm12, %v15291_v48 }
 0x598   : > { %10557 = vmatprep.mubr.msk.f32.mxu1 %vm5315_vm12, %v15298_v7  ;;  %11037 = vmatpush3.bf16.msra.mxu1 %v11034_v38  ;;  %v11070_v38 = vpack.c.bf16 %v7005_v0, %v7004_v53 }
 0x599   : > { %11039 = vmatprep.subr.bf16.mxu1 %v11038_v29 }
 0x59b   : > { %10558 = vmatmul.mubr.msk.f32.gmra.mrb[36].mxu1 %vm5315_vm12, %v15305_v5 }
 0x59c   : > { %10560 = vmatprep.mubr.msk.f32.mxu1 %vm5315_vm12, %v15312_v45 }
 0x59f   : > { %10561 = vmatmul.mubr.msk.f32.gmra.mrb[38].mxu1 %vm5315_vm12, %v15317_v20 }
 0x5a0   : > { %10571 = vmatprep.mubr.msk.f32.mxu1 %vm5315_vm12, %v15068_v15  ;;  %v5934_v15 = vld [vmem:[#allocation5 + $0x80] sm:$0xff] }
 0x5a1   : > { %v6632_v39 = vrot.slane %v5934_v15, 2 }
 0x5a3   : > { %10572 = vmatmul.mubr.msk.f32.vlgmr.msra.gmra.mrb[32].mxu1 %vm5315_vm12, %v15113_v54  ;;  %v6634_v33 = vsel %vm1312_vm3, %v6632_v39, %v6633_v14 }
 0x5a4   : > { %11041 = vmatpush3.bf16.msra.mxu1 %v11038_v29  ;;  %10574 = vmatprep.mubr.msk.f32.mxu1 %vm5315_vm12, %v15133_v41  ;;  %v11086_v29 = vpack.c.bf16 %v9323_v10, %v9322_v50 }
 0x5a5   : > { %11043 = vmatprep.subr.bf16.mxu1 %v11042_v34 }
 0x5a7   : > { %10575 = vmatmul.mubr.msk.f32.gmra.mrb[34].mxu1 %vm5315_vm12, %v15173_v21 }
 0x5a8   : > { %10577 = vmatprep.mubr.msk.f32.mxu1 %vm5315_vm12, %v15191_v35  ;;  %11045 = vmatpush3.bf16.msra.mxu1 %v11042_v34  ;;  %v9317_v34 = vld [vmem:[#allocation19] ss:$0 sm:$0xff] }
 0x5a9   : > { %11047 = vmatprep.subr.bf16.mxu1 %v11046_v9 }
 0x5ab   : > { %10578 = vmatmul.mubr.msk.f32.gmra.mrb[36].mxu1 %vm5315_vm12, %v15207_v42 }
 0x5ac   : > { %10580 = vmatprep.mubr.msk.f32.mxu1 %vm5315_vm12, %v15239_v3 }
 0x5af   : > { %10581 = vmatmul.mubr.msk.f32.gmra.mrb[38].mxu1 %vm5315_vm12, %v5934_v15 }
 0x5b0   : > { %10591 = vmatprep.mubr.msk.f32.mxu1 %vm5315_vm12, %v15109_v19  ;;  %v6509_v19 = vrot.slane %v5934_v15, 1 }
 0x5b2   : > { %v6511_v32 = vsel %vm1031_vm2, %v6509_v19, %v6510_v22 }
 0x5b3   : > { %10592 = vmatmul.mubr.msk.f32.vlgmr.msra.gmra.mrb[32].mxu1 %vm5315_vm12, %v15139_v46 }
 0x5b4   : > { %11049 = vmatpush3.bf16.msra.mxu1 %v11046_v9  ;;  %10594 = vmatprep.mubr.msk.f32.mxu1 %vm5315_vm12, %v15186_v18 }
 0x5b5   : > { %11051 = vmatprep.subr.bf16.mxu1 %v11050_v51 }
 0x5b7   : > { %10595 = vmatmul.mubr.msk.f32.gmra.mrb[34].mxu1 %vm5315_vm12, %v15196_v23 }
 0x5b8   : > { %10597 = vmatprep.mubr.msk.f32.mxu1 %vm5315_vm12, %v15220_v26  ;;  %11053 = vmatpush3.bf16.msra.mxu1 %v11050_v51 }
 0x5b9   : > { %11055 = vmatprep.subr.bf16.mxu1 %v11054_v56 }
 0x5bb   : > { %10598 = vmatmul.mubr.msk.f32.gmra.mrb[36].mxu1 %vm5315_vm12, %v15235_v2 }
 0x5bc   : > { %10600 = vmatprep.mubr.msk.f32.mxu1 %vm5315_vm12, %v15250_v63 }
 0x5bf   : > { %10601 = vmatmul.mubr.msk.f32.gmra.mrb[38].mxu1 %vm5315_vm12, %v6511_v32 }
 0x5c0   : > { %10611 = vmatprep.mubr.msk.f32.mxu1 %vm5315_vm12, %v15277_v1  ;;  %v7007_v1 = vld [vmem:[#allocation16 + $0x118] sm:$0xff] }
 0x5c3   : > { %10612 = vmatmul.mubr.msk.f32.vlgmr.msra.gmra.mrb[32].mxu1 %vm5315_vm12, %v15284_v4 }
 0x5c4   : > { %11057 = vmatpush3.bf16.msra.mxu1 %v11054_v56  ;;  %10614 = vmatprep.mubr.msk.f32.mxu1 %vm5315_vm12, %v15291_v48 }
 0x5c5   : > { %11059 = vmatprep.subr.bf16.mxu1 %v11058_v13 }
 0x5c7   : > { %10615 = vmatmul.mubr.msk.f32.gmra.mrb[34].mxu1 %vm5315_vm12, %v15298_v7 }
 0x5c8   : > { %10617 = vmatprep.mubr.msk.f32.mxu1 %vm5315_vm12, %v15305_v5  ;;  %11061 = vmatpush3.bf16.msra.mxu1 %v11058_v13 }
 0x5c9   : > { %11063 = vmatprep.subr.bf16.mxu1 %v11062_v61 }
 0x5cb   : > { %10618 = vmatmul.mubr.msk.f32.gmra.mrb[36].mxu1 %vm5315_vm12, %v15312_v45 }
 0x5cc   : > { %10620 = vmatprep.mubr.msk.f32.mxu1 %vm5315_vm12, %v15317_v20 }
 0x5cf   : > { %10621 = vmatmul.mubr.msk.f32.gmra.mrb[38].mxu1 %vm5315_vm12, %v6634_v33 }
 0x5d0   : > { %10631 = vmatprep.mubr.msk.f32.mxu1 %vm5315_vm12, %v15113_v54  ;;  %v5936_v54 = vld [vmem:[#allocation5 + $0x90] sm:$0xff] }
 0x5d3   : > { %10632 = vmatmul.mubr.msk.f32.vlgmr.msra.gmra.mrb[32].mxu1 %vm5315_vm12, %v15133_v41  ;;  %v7006_v41 = vld [vmem:[#allocation16 + $0x110] sm:$0xff] }
 0x5d4   : > { %11065 = vmatpush3.bf16.msra.mxu1 %v11062_v61  ;;  %10634 = vmatprep.mubr.msk.f32.mxu1 %vm5315_vm12, %v15173_v21  ;;  %v11074_v21 = vpack.c.bf16 %v7007_v1, %v7006_v41  ;;  %v7230_v1 = vld [vmem:[%s16088_s10 + $0x10] sm:$0xff] }
 0x5d5   : > { %11067 = vmatprep.subr.bf16.mxu1 %v11066_v52 }
 0x5d7   : > { %10635 = vmatmul.mubr.msk.f32.gmra.mrb[34].mxu1 %vm5315_vm12, %v15191_v35  ;;  %v5937_v35 = vld [vmem:[#allocation5 + $0x98] sm:$0x3] }
 0x5d8   : > { %10637 = vmatprep.mubr.msk.f32.mxu1 %vm5315_vm12, %v15207_v42  ;;  %11069 = vmatpush3.bf16.msra.mxu1 %v11066_v52  ;;  %v6877_v42 = vrot.slane %v5936_v54, 1 }
 0x5d9   : > { %11071 = vmatprep.subr.bf16.mxu1 %v11070_v38 }
 0x5db   : > { %10638 = vmatmul.mubr.msk.f32.gmra.mrb[36].mxu1 %vm5315_vm12, %v15239_v3  ;;  %v6878_v3 = vrot.slane %v5937_v35, 1 }
 0x5dc   : > { %10640 = vmatprep.mubr.msk.f32.mxu1 %vm5315_vm12, %v5934_v15 }
 0x5df   : > { %10641 = vmatmul.mubr.msk.f32.gmra.mrb[38].mxu1 %vm5315_vm12, %v5936_v54 }
 0x5e0   : > { %10651 = vmatprep.mubr.msk.f32.mxu1 %vm5315_vm12, %v15139_v46  ;;  %v6879_v46 = vsel %vm1031_vm2, %v6877_v42, %v6878_v3 }
 0x5e3   : > { %10652 = vmatmul.mubr.msk.f32.vlgmr.msra.gmra.mrb[32].mxu1 %vm5315_vm12, %v15186_v18  ;;  %v7000_v18 = vrot.slane %v5936_v54, 2 }
 0x5e4   : > { %11073 = vmatpush3.bf16.msra.mxu1 %v11070_v38  ;;  %10654 = vmatprep.mubr.msk.f32.mxu1 %vm5315_vm12, %v15196_v23  ;;  %v7001_v23 = vrot.slane %v5937_v35, 2 }
 0x5e5   : > { %11075 = vmatprep.subr.bf16.mxu1 %v11074_v21 }
 0x5e7   : > { %10655 = vmatmul.mubr.msk.f32.gmra.mrb[34].mxu1 %vm5315_vm12, %v15220_v26  ;;  %v7002_v26 = vsel %vm1312_vm3, %v7000_v18, %v7001_v23 }
 0x5e8   : > { %10657 = vmatprep.mubr.msk.f32.mxu1 %vm5315_vm12, %v15235_v2  ;;  %11077 = vmatpush3.bf16.msra.mxu1 %v11074_v21  ;;  %v16345_v2 = vmov 0.0  }
 0x5e9   : > { %7183 = vst.msk [vmem:[#allocation6 + $0x20] sm:$0xff] %vm7177_vm4, %v16345_v2  ;;  %7178 = vst.msk [vmem:[#allocation6] sm:$0xff] %vm7177_vm4, %v16345_v2 }
 0x5ea   : > { %7184 = vst.msk [vmem:[#allocation6 + $0x28] sm:$0x3] %vm7179_vm15, %v16345_v2  ;;  %7180 = vst.msk [vmem:[#allocation6 + $0x8] sm:$0x3] %vm7179_vm15, %v16345_v2 }
 0x5eb   : > { %10658 = vmatmul.mubr.msk.f32.gmra.mrb[36].mxu1 %vm5315_vm12, %v15250_v63  ;;  %7181 = vst.msk [vmem:[#allocation6 + $0x10] sm:$0xff] %vm7177_vm4, %v16345_v2  ;;  %7185 = vst.msk [vmem:[#allocation6 + $0x30] sm:$0xff] %vm7177_vm4, %v16345_v2  ;;  %v9318_v63 = vld [vmem:[%s16088_s10 + $0x40] sm:$0xff] }
 0x5ec   : > { %10660 = vmatprep.mubr.msk.f32.mxu1 %vm5315_vm12, %v6511_v32  ;;  %7182 = vst.msk [vmem:[#allocation6 + $0x18] sm:$0x3] %vm7179_vm15, %v16345_v2  ;;  %7186 = vst.msk [vmem:[#allocation6 + $0x38] sm:$0x3] %vm7179_vm15, %v16345_v2  ;;  %v11078_v31 = vpack.c.bf16 %v9319_v8, %v9318_v63 }
 0x5ed   : > { %7187 = vst.msk [vmem:[#allocation6 + $0x40] sm:$0xff] %vm7177_vm4, %v16345_v2  ;;  %7189 = vst.msk [vmem:[#allocation6 + $0x50] sm:$0xff] %vm7177_vm4, %v16345_v2 }
 0x5ee   : > { %7188 = vst.msk [vmem:[#allocation6 + $0x48] sm:$0x3] %vm7179_vm15, %v16345_v2  ;;  %7190 = vst.msk [vmem:[#allocation6 + $0x58] sm:$0x3] %vm7179_vm15, %v16345_v2  ;;  %11079 = vmatprep.subr.bf16.mxu1 %v11078_v31 }
 0x5ef   : > { %10661 = vmatmul.mubr.msk.f32.gmra.mrb[38].mxu1 %vm5315_vm12, %v6879_v46  ;;  %7191 = vst.msk [vmem:[#allocation6 + $0x60] sm:$0xff] %vm7177_vm4, %v16345_v2  ;;  %7193 = vst.msk [vmem:[#allocation6 + $0x70] sm:$0xff] %vm7177_vm4, %v16345_v2  ;;  %v7231_v46 = vld [vmem:[%s16088_s10 + $0x18] sm:$0xff] }
 0x5f0   : > { %10671 = vmatprep.mubr.msk.f32.mxu1 %vm5315_vm12, %v15284_v4  ;;  %7192 = vst.msk [vmem:[#allocation6 + $0x68] sm:$0x3] %vm7179_vm15, %v16345_v2  ;;  %7194 = vst.msk [vmem:[#allocation6 + $0x78] sm:$0x3] %vm7179_vm15, %v16345_v2  ;;  %v11082_v4 = vpack.c.bf16 %v9321_v17, %v9320_v27  ;;  %v15476_v6 = vld [vmem:[#allocation6] sm:$0xff]  ;;  %v11098_v10 = vpack.c.bf16 %v7231_v46, %v7230_v1  ;;  %v9348_v1 = vld [vmem:[%s16088_s10 + $0xb0] sm:$0xff] }
 0x5f1   : > { %7195 = vst.msk [vmem:[#allocation6 + $0x80] sm:$0xff] %vm7177_vm4, %v16345_v2  ;;  %7197 = vst.msk [vmem:[#allocation6 + $0x90] sm:$0xff] %vm7177_vm4, %v16345_v2  ;;  %v15478_v25 = vld [vmem:[#allocation6 + $0x8] sm:$0x3]  ;;  %v7252_v24 = vrot.slane %v15476_v6, 1  ;;  %v7527_v46 = vrot.slane %v15476_v6, 2 }
 0x5f2   : > { %7196 = vst.msk [vmem:[#allocation6 + $0x88] sm:$0x3] %vm7179_vm15, %v16345_v2  ;;  %7198 = vst.msk [vmem:[#allocation6 + $0x98] sm:$0x3] %vm7179_vm15, %v16345_v2  ;;  %v7253_v60 = vrot.slane %v15478_v25, 1 }
 0x5f3   : > { %10672 = vmatmul.mubr.msk.f32.vlgmr.msra.gmra.mrb[32].mxu1 %vm5315_vm12, %v15291_v48  ;;  %v9324_v48 = vld [vmem:[%s16088_s10 + $0x70] sm:$0xff] }
 0x5f4   : > { %10674 = vmatprep.mubr.msk.f32.mxu1 %vm5315_vm12, %v15298_v7  ;;  %11081 = vmatpush3.bf16.msra.mxu1 %v11078_v31  ;;  %v11090_v7 = vpack.c.bf16 %v9325_v55, %v9324_v48 }
 0x5f5   : > { %11083 = vmatprep.subr.bf16.mxu1 %v11082_v4 }
 0x5f7   : > { %10675 = vmatmul.mubr.msk.f32.gmra.mrb[34].mxu1 %vm5315_vm12, %v15305_v5  ;;  %v7228_v5 = vld [vmem:[%s16088_s10] sm:$0xff] }
 0x5f8   : > { %10677 = vmatprep.mubr.msk.f32.mxu1 %vm5315_vm12, %v15312_v45  ;;  %11085 = vmatpush3.bf16.msra.mxu1 %v11082_v4  ;;  %v15488_v45 = vpack.c.bf16 %v7229_v37, %v7228_v5  ;;  %v7233_v5 = vld [vmem:[%s16088_s10 + $0x28] sm:$0xff] }
 0x5f9   : > { %11087 = vmatprep.subr.bf16.mxu1 %v11086_v29 }
 0x5fb   : > { %10678 = vmatmul.mubr.msk.f32.gmra.mrb[36].mxu1 %vm5315_vm12, %v15317_v20  ;;  %v7254_v20 = vsel %vm1031_vm2, %v7252_v24, %v7253_v60 }
 0x5fc   : > { %10680 = vmatprep.mubr.msk.f32.mxu1 %vm5315_vm12, %v6634_v33  ;;  %11089 = vmatpush3.bf16.msra.mxu1 %v11086_v29  ;;  %v7232_v29 = vld [vmem:[%s16088_s10 + $0x20] sm:$0xff] }
 0x5fd   : > { %11091 = vmatprep.subr.bf16.mxu1 %v11090_v7 }
 0x5ff   : > { %10681 = vmatmul.mubr.msk.f32.gmra.mrb[38].mxu1 %vm5315_vm12, %v7002_v26 }
 0x600   : > { %11093 = vmatpush3.bf16.msra.mxu1 %v11090_v7  ;;  %10699 = vmatprep.mubr.msk.f32.mxu1 %vm7177_vm4, %v7254_v20 }
 0x601   : > { %11095 = vmatprep.subr.bf16.mxu1 %v15488_v45 }
 0x6c6   : > { %v10673_v57 = vpop.f32.mrb[32].mxu1 }
 0x6c7   : > { %v7131_v47 = vmul.f32 %v10673_v57, %v9316_v43  ;;  %v7076_v36 = vpop.f32.mrb[33].mxu1 }
 0x6c8   : > { %v7130_v9 = vmul.f32 %v9316_v43, %v7076_v36 }
 0x6c9   : > { %v7146_v15 = vadd.f32 %v9317_v34, %v7131_v47 }
 0x6ca   : > { %v7145_v30 = vadd.f32 %v9317_v34, %v7130_v9  ;;  %v10676_v62 = vpop.f32.mrb[34].mxu1  ;;  %v11102_v9 = vpack.c.bf16 %v7233_v5, %v7232_v29 }
 0x6cb   : > { %vm7154_vm12 = vcmp.gt.f32.partialorder %v7146_v15, 0.0  ;;  %v7162_v51 = vmul.f32 0.01, %v7146_v15  ;;  %v7133_v12 = vmul.f32 %v10676_v62, %v9316_v43  ;;  %v7086_v11 = vpop.f32.mrb[35].mxu1 }
 0x6cc   : > { %vm7153_vm0 = vcmp.gt.f32.partialorder %v7145_v30, 0.0  ;;  %v7161_v56 = vmul.f32 0.01, %v7145_v30  ;;  %v7132_v40 = vmul.f32 %v9316_v43, %v7086_v11 }
 0x6cd   : > { %v7170_v19 = vsel %vm7154_vm12, %v7146_v15, %v7162_v51  ;;  %v7148_v22 = vadd.f32 %v9317_v34, %v7133_v12  ;;  %v7234_v15 = vld [vmem:[%s16088_s10 + $0x30] sm:$0xff] }
 0x6ce   : > { %7201 = vst.msk [vmem:[#allocation6 + $0x21] sm:$0xff] %vm7177_vm4, %v7170_v19  ;;  %v7169_v32 = vsel %vm7153_vm0, %v7145_v30, %v7161_v56  ;;  %v7147_v58 = vadd.f32 %v9317_v34, %v7132_v40  ;;  %v10679_v44 = vpop.f32.mrb[36].mxu1 }
 0x6cf   : > { %7200 = vst.msk [vmem:[#allocation6 + $0x11] sm:$0xff] %vm7177_vm4, %v7169_v32  ;;  %vm7156_vm5 = vcmp.gt.f32.partialorder %v7148_v22, 0.0  ;;  %v7164_v13 = vmul.f32 0.01, %v7148_v22  ;;  %v7135_v59 = vmul.f32 %v10679_v44, %v9316_v43  ;;  %v7096_v28 = vpop.f32.mrb[37].mxu1 }
 0x6d0   : > { %vm7155_vm7 = vcmp.gt.f32.partialorder %v7147_v58, 0.0  ;;  %v7163_v61 = vmul.f32 0.01, %v7147_v58  ;;  %v7134_v39 = vmul.f32 %v9316_v43, %v7096_v28 }
 0x6d1   : > { %v7172_v14 = vsel %vm7156_vm5, %v7148_v22, %v7164_v13  ;;  %v7150_v33 = vadd.f32 %v9317_v34, %v7135_v59  ;;  %v9342_v13 = vld [vmem:[%s16088_s10 + $0x80] sm:$0xff]  ;;  %v9343_v59 = vld [vmem:[%s16088_s10 + $0x88] sm:$0xff] }
 0x6d2   : > { %7203 = vst.msk [vmem:[#allocation6 + $0x41] sm:$0xff] %vm7177_vm4, %v7172_v14  ;;  %v7171_v49 = vsel %vm7155_vm7, %v7147_v58, %v7163_v61  ;;  %v7149_v16 = vadd.f32 %v9317_v34, %v7134_v39  ;;  %v10682_v52 = vpop.f32.mrb[38].mxu1 }
 0x6d3   : > { %7202 = vst.msk [vmem:[#allocation6 + $0x31] sm:$0xff] %vm7177_vm4, %v7171_v49  ;;  %vm7158_vm13 = vcmp.gt.f32.partialorder %v7150_v33, 0.0  ;;  %v7166_v53 = vmul.f32 0.01, %v7150_v33  ;;  %v7137_v0 = vmul.f32 %v10682_v52, %v9316_v43  ;;  %v7106_v38 = vpop.f32.mrb[39].mxu1  ;;  %v11110_v49 = vpack.c.bf16 %v9343_v59, %v9342_v13  ;;  %v9344_v52 = vld [vmem:[%s16088_s10 + $0x90] sm:$0xff] }
 0x6d4   : > { %vm7157_vm14 = vcmp.gt.f32.partialorder %v7149_v16, 0.0  ;;  %v7165_v54 = vmul.f32 0.01, %v7149_v16  ;;  %v7136_v41 = vmul.f32 %v9316_v43, %v7106_v38  ;;  %v9346_v38 = vld [vmem:[%s16088_s10 + $0xa0] sm:$0xff] }
 0x6d5   : > { %v7174_v21 = vsel %vm7158_vm13, %v7150_v33, %v7166_v53  ;;  %v7152_v35 = vadd.f32 %v9317_v34, %v7137_v0  ;;  %v15500_v42 = vld [vmem:[#allocation6 + $0x20] sm:$0xff]  ;;  %v15502_v3 = vld [vmem:[#allocation6 + $0x28] sm:$0x3]  ;;  %v9345_v53 = vld [vmem:[%s16088_s10 + $0x98] sm:$0xff] }
 0x6d6   : > { %7205 = vst.msk [vmem:[#allocation6 + $0x61] sm:$0xff] %vm7177_vm4, %v7174_v21  ;;  %v7173_v18 = vsel %vm7157_vm14, %v7149_v16, %v7165_v54  ;;  %v7151_v23 = vadd.f32 %v9317_v34, %v7136_v41  ;;  %v15508_v26 = vld [vmem:[#allocation6 + $0x10] sm:$0xff]  ;;  %v15510_v63 = vld [vmem:[#allocation6 + $0x18] sm:$0x3]  ;;  %v7258_v8 = vrot.slane %v15500_v42, 1  ;;  %v7259_v31 = vrot.slane %v15502_v3, 1 }
 0x6d7   : > { %7204 = vst.msk [vmem:[#allocation6 + $0x51] sm:$0xff] %vm7177_vm4, %v7173_v18  ;;  %vm7160_vm1 = vcmp.gt.f32.partialorder %v7152_v35, 0.0  ;;  %v7168_v27 = vmul.f32 0.01, %v7152_v35  ;;  %v7255_v17 = vrot.slane %v15508_v26, 1  ;;  %v7256_v4 = vrot.slane %v15510_v63, 1 }
 0x6d8   : > { %vm7159_vm6 = vcmp.gt.f32.partialorder %v7151_v23, 0.0  ;;  %v7167_v50 = vmul.f32 0.01, %v7151_v23  ;;  %v15534_v60 = vsel %vm1031_vm2, %v7258_v8, %v7259_v31  ;;  %v11114_v0 = vpack.c.bf16 %v9345_v53, %v9344_v52  ;;  %v9347_v54 = vld [vmem:[%s16088_s10 + $0xa8] sm:$0xff]  ;;  %v9349_v21 = vld [vmem:[%s16088_s10 + $0xb8] sm:$0xff]  ;;  %v9374_v59 = vld [vmem:[%s16088_s10 + $0x100] sm:$0xff] }
 0x6d9   : > { %v7176_v48 = vsel %vm7160_vm1, %v7152_v35, %v7168_v27  ;;  %v15521_v55 = vsel %vm1031_vm2, %v7255_v17, %v7256_v4  ;;  %v15523_v7 = vld [vmem:[#allocation6 + $0x40] sm:$0xff]  ;;  %v15525_v24 = vld [vmem:[#allocation6 + $0x48] sm:$0x3]  ;;  %v11118_v41 = vpack.c.bf16 %v9347_v54, %v9346_v38  ;;  %v11122_v35 = vpack.c.bf16 %v9349_v21, %v9348_v1  ;;  %v9360_v17 = vld [vmem:[%s16088_s10 + $0xd0] sm:$0xff] }
 0x6da   : > { %7207 = vst.msk [vmem:[#allocation6 + $0x81] sm:$0xff] %vm7177_vm4, %v7176_v48  ;;  %v7175_v37 = vsel %vm7159_vm6, %v7151_v23, %v7167_v50  ;;  %10700 = vmatmul.mubr.msk.f32.vlgmr.msra.gmra.mrb[40].mxu1 %vm7177_vm4, %v15521_v55  ;;  %v15536_v20 = vld [vmem:[#allocation6 + $0x30] sm:$0xff]  ;;  %v15538_v43 = vld [vmem:[#allocation6 + $0x38] sm:$0x3]  ;;  %v7264_v57 = vrot.slane %v15523_v7, 1  ;;  %v7265_v34 = vrot.slane %v15525_v24, 1 }
 0x6db   : > { %7206 = vst.msk [vmem:[#allocation6 + $0x71] sm:$0xff] %vm7177_vm4, %v7175_v37  ;;  %11097 = vmatpush3.bf16.msra.mxu1 %v15488_v45  ;;  %10702 = vmatprep.mubr.msk.f32.mxu1 %vm7177_vm4, %v15534_v60  ;;  %v7261_v47 = vrot.slane %v15536_v20, 1  ;;  %v7262_v36 = vrot.slane %v15538_v43, 1  ;;  %v7235_v45 = vld [vmem:[%s16088_s10 + $0x38] sm:$0xff]  ;;  %v7528_v18 = vrot.slane %v15478_v25, 2  ;;  %v9358_v23 = vld [vmem:[%s16088_s10 + $0xc0] sm:$0xff] }
 0x6dc   : > { %11099 = vmatprep.subr.bf16.mxu1 %v11098_v10  ;;  %v15564_v12 = vsel %vm1031_vm2, %v7264_v57, %v7265_v34  ;;  %v11106_v58 = vpack.c.bf16 %v7235_v45, %v7234_v15  ;;  %v9359_v8 = vld [vmem:[%s16088_s10 + $0xc8] sm:$0xff]  ;;  %v7530_v25 = vrot.slane %v15508_v26, 2  ;;  %v7531_v27 = vrot.slane %v15510_v63, 2  ;;  %v9361_v4 = vld [vmem:[%s16088_s10 + $0xd8] sm:$0xff]  ;;  %v9362_v37 = vld [vmem:[%s16088_s10 + $0xe0] sm:$0xff] }
 0x6dd   : > { %v15552_v30 = vsel %vm1031_vm2, %v7261_v47, %v7262_v36  ;;  %v15554_v62 = vld [vmem:[#allocation6 + $0x60] sm:$0xff]  ;;  %v15556_v51 = vld [vmem:[#allocation6 + $0x68] sm:$0x3]  ;;  %v11126_v31 = vpack.c.bf16 %v9359_v8, %v9358_v23  ;;  %v7533_v50 = vrot.slane %v15500_v42, 2  ;;  %v11130_v63 = vpack.c.bf16 %v9361_v4, %v9360_v17  ;;  %v9364_v45 = vld [vmem:[%s16088_s10 + $0xf0] sm:$0xff] }
 0x6de   : > { %10703 = vmatmul.mubr.msk.f32.gmra.mrb[42].mxu1 %vm7177_vm4, %v15552_v30  ;;  %v15566_v11 = vld [vmem:[#allocation6 + $0x50] sm:$0xff]  ;;  %v15568_v56 = vld [vmem:[#allocation6 + $0x58] sm:$0x3]  ;;  %v7270_v40 = vrot.slane %v15554_v62, 1  ;;  %v7271_v19 = vrot.slane %v15556_v51, 1  ;;  %v15658_v29 = vsel %vm1312_vm3, %v7530_v25, %v7531_v27  ;;  %v7536_v48 = vrot.slane %v15536_v20, 2 }
 0x6df   : > { %11101 = vmatpush3.bf16.msra.mxu1 %v11098_v10  ;;  %10705 = vmatprep.mubr.msk.f32.mxu1 %vm7177_vm4, %v15564_v12  ;;  %v7267_v22 = vrot.slane %v15566_v11, 1  ;;  %v7268_v32 = vrot.slane %v15568_v56, 1  ;;  %v7534_v10 = vrot.slane %v15502_v3, 2  ;;  %v7537_v5 = vrot.slane %v15538_v43, 2  ;;  %v9363_v3 = vld [vmem:[%s16088_s10 + $0xe8] sm:$0xff]  ;;  %v9377_v52 = vld [vmem:[%s16088_s10 + $0x118] sm:$0xff] }
 0x6e0   : > { %11103 = vmatprep.subr.bf16.mxu1 %v11102_v9  ;;  %v15588_v28 = vsel %vm1031_vm2, %v7270_v40, %v7271_v19  ;;  %v7539_v34 = vrot.slane %v15523_v7, 2  ;;  %v7540_v47 = vrot.slane %v15525_v24, 2  ;;  %v11134_v43 = vpack.c.bf16 %v9363_v3, %v9362_v37  ;;  %v9365_v24 = vld [vmem:[%s16088_s10 + $0xf8] sm:$0xff]  ;;  %v9379_v38 = vld [vmem:[%s16088_s10 + $0x128] sm:$0xff]  ;;  %v9390_v21 = vld [vmem:[%s16088_s10 + $0x140] sm:$0xff] }
 0x6e1   : > { %v15577_v44 = vsel %vm1031_vm2, %v7267_v22, %v7268_v32  ;;  %v15671_v57 = vsel %vm1312_vm3, %v7533_v50, %v7534_v10  ;;  %v15678_v36 = vsel %vm1312_vm3, %v7536_v48, %v7537_v5  ;;  %v7543_v15 = vrot.slane %v15568_v56, 2  ;;  %v9392_v23 = vld [vmem:[%s16088_s10 + $0x150] sm:$0xff]  ;;  %v9393_v8 = vld [vmem:[%s16088_s10 + $0x158] sm:$0xff]  ;;  %v9395_v25 = vld [vmem:[%s16088_s10 + $0x168] sm:$0xff] }
 0x6e2   : > { %10706 = vmatmul.mubr.msk.f32.gmra.mrb[44].mxu1 %vm7177_vm4, %v15577_v44  ;;  %v15590_v61 = vld [vmem:[#allocation6 + $0x70] sm:$0xff]  ;;  %v15592_v39 = vld [vmem:[#allocation6 + $0x78] sm:$0x3]  ;;  %v15691_v40 = vsel %vm1312_vm3, %v7539_v34, %v7540_v47  ;;  %v7545_v19 = vrot.slane %v15554_v62, 2  ;;  %v7546_v22 = vrot.slane %v15556_v51, 2  ;;  %v11138_v56 = vpack.c.bf16 %v9365_v24, %v9364_v45  ;;  %v9375_v51 = vld [vmem:[%s16088_s10 + $0x108] sm:$0xff] }
 0x6e3   : > { %11105 = vmatpush3.bf16.msra.mxu1 %v11102_v9  ;;  %10708 = vmatprep.mubr.msk.f32.mxu1 %vm7177_vm4, %v15588_v28  ;;  %v7273_v14 = vrot.slane %v15590_v61, 1  ;;  %v7274_v33 = vrot.slane %v15592_v39, 1  ;;  %v7542_v9 = vrot.slane %v15566_v11, 2  ;;  %v7549_v13 = vrot.slane %v15592_v39, 2  ;;  %v9397_v17 = vld [vmem:[%s16088_s10 + $0x178] sm:$0xff]  ;;  %v9406_v48 = vld [vmem:[%s16088_s10 + $0x180] sm:$0xff] }
 0x6e4   : > { %11107 = vmatprep.subr.bf16.mxu1 %v11106_v58  ;;  %v11142_v39 = vpack.c.bf16 %v9375_v51, %v9374_v59  ;;  %v7225_v4 = vld [vmem:[#allocation6 + $0x88] sm:$0x3]  ;;  %v9408_v34 = vld [vmem:[%s16088_s10 + $0x190] sm:$0xff]  ;;  %v9409_v47 = vld [vmem:[%s16088_s10 + $0x198] sm:$0xff]  ;;  %vm8643_vm14 = vcmask 1043456   ;;  %vm8745_vm1 = vcmask 73728  }
 0x6e5   : > { %v15599_v16 = vsel %vm1031_vm2, %v7273_v14, %v7274_v33  ;;  %v15698_v32 = vsel %vm1312_vm3, %v7542_v9, %v7543_v15  ;;  %v15711_v14 = vsel %vm1312_vm3, %v7545_v19, %v7546_v22  ;;  %v9407_v5 = vld [vmem:[%s16088_s10 + $0x188] sm:$0xff]  ;;  %v9410_v9 = vld [vmem:[%s16088_s10 + $0x1a0] sm:$0xff]  ;;  %v9413_v24 = vld [vmem:[%s16088_s10 + $0x1b8] sm:$0xff] }
 0x6e6   : > { %10709 = vmatmul.mubr.msk.f32.gmra.mrb[46].mxu1 %vm7177_vm4, %v15599_v16  ;;  %v11174_v37 = vpack.c.bf16 %v9407_v5, %v9406_v48  ;;  %v9411_v15 = vld [vmem:[%s16088_s10 + $0x1a8] sm:$0xff]  ;;  %v8668_v48 = vld [vmem:[%s16091_s13 + $0x50] sm:$0xff]  ;;  %v8669_v5 = vld [vmem:[%s16091_s13 + $0x58] sm:$0xff] }
 0x6e7   : > { %11109 = vmatpush3.bf16.msra.mxu1 %v11106_v58  ;;  %10727 = vmatprep.mubr.msk.f32.mxu1 %vm7177_vm4, %v15476_v6  ;;  %v7529_v6 = vsel %vm1312_vm3, %v7527_v46, %v7528_v18  ;;  %v7548_v58 = vrot.slane %v15590_v61, 2  ;;  %v15758_v18 = vld [vmem:[#allocation6 + $0x80] sm:$0xff]  ;;  %v11182_v45 = vpack.c.bf16 %v9411_v15, %v9410_v9  ;;  %v8673_v9 = vld [vmem:[%s16091_s13 + $0x78] sm:$0xff] }
 0x6e8   : > { %11111 = vmatprep.subr.bf16.mxu1 %v11110_v49  ;;  %v7815_v10 = vrot.slane %v15758_v18, 1  ;;  %v7942_v22 = vrot.slane %v15758_v18, 2 }
 0x6e9   : > { %v15716_v33 = vsel %vm1312_vm3, %v7548_v58, %v7549_v13  ;;  %v9422_v58 = vld [vmem:[%s16088_s10 + $0x1c0] sm:$0xff]  ;;  %v9423_v13 = vld [vmem:[%s16088_s10 + $0x1c8] sm:$0xff] }
 0x6ea   : > { %10728 = vmatmul.mubr.msk.f32.vlgmr.msra.gmra.mrb[40].mxu1 %vm7177_vm4, %v15508_v26  ;;  %v11190_v59 = vpack.c.bf16 %v9423_v13, %v9422_v58 }
 0x6eb   : > { %11113 = vmatpush3.bf16.msra.mxu1 %v11110_v49  ;;  %10730 = vmatprep.mubr.msk.f32.mxu1 %vm7177_vm4, %v15500_v42  ;;  %v9376_v49 = vld [vmem:[%s16088_s10 + $0x110] sm:$0xff] }
 0x6ec   : > { %11115 = vmatprep.subr.bf16.mxu1 %v11114_v0  ;;  %v11146_v53 = vpack.c.bf16 %v9377_v52, %v9376_v49  ;;  %v9425_v49 = vld [vmem:[%s16088_s10 + $0x1d8] sm:$0xff] }
 0x6ee   : > { %10731 = vmatmul.mubr.msk.f32.gmra.mrb[42].mxu1 %vm7177_vm4, %v15536_v20 }
 0x6ef   : > { %11117 = vmatpush3.bf16.msra.mxu1 %v11114_v0  ;;  %10733 = vmatprep.mubr.msk.f32.mxu1 %vm7177_vm4, %v15523_v7  ;;  %v9378_v0 = vld [vmem:[%s16088_s10 + $0x120] sm:$0xff] }
 0x6f0   : > { %11119 = vmatprep.subr.bf16.mxu1 %v11118_v41  ;;  %v11150_v54 = vpack.c.bf16 %v9379_v38, %v9378_v0  ;;  %v9427_v0 = vld [vmem:[%s16088_s10 + $0x1e8] sm:$0xff] }
 0x6f2   : > { %10734 = vmatmul.mubr.msk.f32.gmra.mrb[44].mxu1 %vm7177_vm4, %v15566_v11 }
 0x6f3   : > { %11121 = vmatpush3.bf16.msra.mxu1 %v11118_v41  ;;  %10736 = vmatprep.mubr.msk.f32.mxu1 %vm7177_vm4, %v15554_v62  ;;  %v9381_v41 = vld [vmem:[%s16088_s10 + $0x138] sm:$0xff] }
 0x6f4   : > { %11123 = vmatprep.subr.bf16.mxu1 %v11122_v35 }
 0x6f6   : > { %10737 = vmatmul.mubr.msk.f32.gmra.mrb[46].mxu1 %vm7177_vm4, %v15590_v61 }
 0x6f7   : > { %11125 = vmatpush3.bf16.msra.mxu1 %v11122_v35  ;;  %10755 = vmatprep.mubr.msk.f32.mxu1 %vm7177_vm4, %v7529_v6  ;;  %v9391_v35 = vld [vmem:[%s16088_s10 + $0x148] sm:$0xff]  ;;  %v11162_v6 = vpack.c.bf16 %v9393_v8, %v9392_v23  ;;  %v9445_v23 = vld [vmem:[%s16088_s10 + $0x238] sm:$0xff] }
 0x6f8   : > { %11127 = vmatprep.subr.bf16.mxu1 %v11126_v31  ;;  %v11158_v46 = vpack.c.bf16 %v9391_v35, %v9390_v21  ;;  %v9442_v21 = vld [vmem:[%s16088_s10 + $0x220] sm:$0xff]  ;;  %v9443_v35 = vld [vmem:[%s16088_s10 + $0x228] sm:$0xff] }
 0x6fa   : > { %10756 = vmatmul.mubr.msk.f32.vlgmr.msra.gmra.mrb[40].mxu1 %vm7177_vm4, %v15658_v29 }
 0x6fb   : > { %11129 = vmatpush3.bf16.msra.mxu1 %v11126_v31  ;;  %10758 = vmatprep.mubr.msk.f32.mxu1 %vm7177_vm4, %v15671_v57  ;;  %v9394_v31 = vld [vmem:[%s16088_s10 + $0x160] sm:$0xff] }
 0x6fc   : > { %11131 = vmatprep.subr.bf16.mxu1 %v11130_v63  ;;  %v11166_v27 = vpack.c.bf16 %v9395_v25, %v9394_v31  ;;  %v8662_v25 = vld [vmem:[%s16091_s13 + $0x20] sm:$0xff] }
 0x6fe   : > { %10759 = vmatmul.mubr.msk.f32.gmra.mrb[42].mxu1 %vm7177_vm4, %v15678_v36 }
 0x6ff   : > { %11133 = vmatpush3.bf16.msra.mxu1 %v11130_v63  ;;  %10761 = vmatprep.mubr.msk.f32.mxu1 %vm7177_vm4, %v15691_v40  ;;  %v7816_v63 = vrot.slane %v7225_v4, 1 }
 0x700   : > { %11135 = vmatprep.subr.bf16.mxu1 %v11134_v43 }
 0x701   : > { %v15802_v3 = vsel %vm1031_vm2, %v7815_v10, %v7816_v63  ;;  %v8667_v10 = vld [vmem:[%s16091_s13 + $0x48] sm:$0xff] }
 0x702   : > { %10762 = vmatmul.mubr.msk.f32.gmra.mrb[44].mxu1 %vm7177_vm4, %v15698_v32 }
 0x703   : > { %11137 = vmatpush3.bf16.msra.mxu1 %v11134_v43  ;;  %10764 = vmatprep.mubr.msk.f32.mxu1 %vm7177_vm4, %v15711_v14  ;;  %v11178_v43 = vpack.c.bf16 %v9409_v47, %v9408_v34  ;;  %v8671_v34 = vld [vmem:[%s16091_s13 + $0x68] sm:$0xff] }
 0x704   : > { %11139 = vmatprep.subr.bf16.mxu1 %v11138_v56 }
 0x706   : > { %10765 = vmatmul.mubr.msk.f32.gmra.mrb[46].mxu1 %vm7177_vm4, %v15716_v33 }
 0x707   : > { %11141 = vmatpush3.bf16.msra.mxu1 %v11138_v56  ;;  %10783 = vmatprep.mubr.msk.f32.mxu1 %vm7177_vm4, %v15508_v26  ;;  %v9380_v26 = vld [vmem:[%s16088_s10 + $0x130] sm:$0xff]  ;;  %v7943_v56 = vrot.slane %v7225_v4, 2 }
 0x708   : > { %11143 = vmatprep.subr.bf16.mxu1 %v11142_v39  ;;  %v11154_v1 = vpack.c.bf16 %v9381_v41, %v9380_v26  ;;  %v9439_v26 = vld [vmem:[%s16088_s10 + $0x208] sm:$0xff]  ;;  %v9440_v41 = vld [vmem:[%s16088_s10 + $0x210] sm:$0xff] }
 0x709   : > { %v15846_v51 = vsel %vm1312_vm3, %v7942_v22, %v7943_v56 }
 0x70a   : > { %10784 = vmatmul.mubr.msk.f32.vlgmr.msra.gmra.mrb[40].mxu1 %vm7177_vm4, %v15500_v42 }
 0x70b   : > { %11145 = vmatpush3.bf16.msra.mxu1 %v11142_v39  ;;  %10786 = vmatprep.mubr.msk.f32.mxu1 %vm7177_vm4, %v15536_v20  ;;  %v9424_v39 = vld [vmem:[%s16088_s10 + $0x1d0] sm:$0xff] }
 0x70c   : > { %11147 = vmatprep.subr.bf16.mxu1 %v11146_v53  ;;  %v11194_v52 = vpack.c.bf16 %v9425_v49, %v9424_v39 }
 0x70e   : > { %10787 = vmatmul.mubr.msk.f32.gmra.mrb[42].mxu1 %vm7177_vm4, %v15523_v7 }
 0x70f   : > { %11149 = vmatpush3.bf16.msra.mxu1 %v11146_v53  ;;  %10789 = vmatprep.mubr.msk.f32.mxu1 %vm7177_vm4, %v15566_v11  ;;  %v9426_v53 = vld [vmem:[%s16088_s10 + $0x1e0] sm:$0xff] }
 0x710   : > { %11151 = vmatprep.subr.bf16.mxu1 %v11150_v54  ;;  %v11198_v38 = vpack.c.bf16 %v9427_v0, %v9426_v53 }
 0x712   : > { %10790 = vmatmul.mubr.msk.f32.gmra.mrb[44].mxu1 %vm7177_vm4, %v15554_v62 }
 0x713   : > { %11153 = vmatpush3.bf16.msra.mxu1 %v11150_v54  ;;  %10792 = vmatprep.mubr.msk.f32.mxu1 %vm7177_vm4, %v15590_v61  ;;  %v9429_v54 = vld [vmem:[%s16088_s10 + $0x1f8] sm:$0xff] }
 0x714   : > { %11155 = vmatprep.subr.bf16.mxu1 %v11154_v1 }
 0x716   : > { %10793 = vmatmul.mubr.msk.f32.gmra.mrb[46].mxu1 %vm7177_vm4, %v15758_v18 }
 0x717   : > { %11157 = vmatpush3.bf16.msra.mxu1 %v11154_v1  ;;  %10811 = vmatprep.mubr.msk.f32.mxu1 %vm7177_vm4, %v15521_v55  ;;  %v9396_v55 = vld [vmem:[%s16088_s10 + $0x170] sm:$0xff]  ;;  %v9441_v1 = vld [vmem:[%s16088_s10 + $0x218] sm:$0xff] }
 0x718   : > { %11159 = vmatprep.subr.bf16.mxu1 %v11158_v46  ;;  %v11170_v50 = vpack.c.bf16 %v9397_v17, %v9396_v55  ;;  %v8664_v17 = vld [vmem:[%s16091_s13 + $0x30] sm:$0xff] }
 0x71a   : > { %10812 = vmatmul.mubr.msk.f32.vlgmr.msra.gmra.mrb[40].mxu1 %vm7177_vm4, %v15534_v60 }
 0x71b   : > { %11161 = vmatpush3.bf16.msra.mxu1 %v11158_v46  ;;  %10814 = vmatprep.mubr.msk.f32.mxu1 %vm7177_vm4, %v15552_v30  ;;  %v11214_v46 = vpack.c.bf16 %v9443_v35, %v9442_v21 }
 0x71c   : > { %11163 = vmatprep.subr.bf16.mxu1 %v11162_v6 }
 0x71e   : > { %10815 = vmatmul.mubr.msk.f32.gmra.mrb[42].mxu1 %vm7177_vm4, %v15564_v12 }
 0x71f   : > { %11165 = vmatpush3.bf16.msra.mxu1 %v11162_v6  ;;  %10817 = vmatprep.mubr.msk.f32.mxu1 %vm7177_vm4, %v15577_v44 }
 0x720   : > { %11167 = vmatprep.subr.bf16.mxu1 %v11166_v27 }
 0x722   : > { %10818 = vmatmul.mubr.msk.f32.gmra.mrb[44].mxu1 %vm7177_vm4, %v15588_v28 }
 0x723   : > { %11169 = vmatpush3.bf16.msra.mxu1 %v11166_v27  ;;  %10820 = vmatprep.mubr.msk.f32.mxu1 %vm7177_vm4, %v15599_v16  ;;  %v8663_v27 = vld [vmem:[%s16091_s13 + $0x28] sm:$0xff] }
 0x724   : > { %11171 = vmatprep.subr.bf16.mxu1 %v11170_v50  ;;  %v11229_v55 = vpack.c.bf16 %v8663_v27, %v8662_v25 }
 0x726   : > { %10821 = vmatmul.mubr.msk.f32.gmra.mrb[46].mxu1 %vm7177_vm4, %v15802_v3 }
 0x727   : > { %11173 = vmatpush3.bf16.msra.mxu1 %v11170_v50  ;;  %10839 = vmatprep.mubr.msk.f32.mxu1 %vm7177_vm4, %v15658_v29  ;;  %v9412_v29 = vld [vmem:[%s16088_s10 + $0x1b0] sm:$0xff]  ;;  %v8666_v50 = vld [vmem:[%s16091_s13 + $0x40] sm:$0xff] }
 0x728   : > { %11175 = vmatprep.subr.bf16.mxu1 %v11174_v37  ;;  %v11186_v19 = vpack.c.bf16 %v9413_v24, %v9412_v29  ;;  %v11235_v63 = vpack.c.bf16 %v8667_v10, %v8666_v50  ;;  %v15990_v24 = vld [vmem:[#allocation22] ss:$0 sm:$0xff] }
 0x72a   : > { %10840 = vmatmul.mubr.msk.f32.vlgmr.msra.gmra.mrb[40].mxu1 %vm7177_vm4, %v15671_v57 }
 0x72b   : > { %11177 = vmatpush3.bf16.msra.mxu1 %v11174_v37  ;;  %10842 = vmatprep.mubr.msk.f32.mxu1 %vm7177_vm4, %v15678_v36  ;;  %v11238_v37 = vpack.c.bf16 %v8669_v5, %v8668_v48 }
 0x72c   : > { %11179 = vmatprep.subr.bf16.mxu1 %v11178_v43 }
 0x72e   : > { %10843 = vmatmul.mubr.msk.f32.gmra.mrb[42].mxu1 %vm7177_vm4, %v15691_v40 }
 0x72f   : > { %11181 = vmatpush3.bf16.msra.mxu1 %v11178_v43  ;;  %10845 = vmatprep.mubr.msk.f32.mxu1 %vm7177_vm4, %v15698_v32  ;;  %v8672_v43 = vld [vmem:[%s16091_s13 + $0x70] sm:$0xff] }
 0x730   : > { %11183 = vmatprep.subr.bf16.mxu1 %v11182_v45  ;;  %v11244_v15 = vpack.c.bf16 %v8673_v9, %v8672_v43 }
 0x732   : > { %10846 = vmatmul.mubr.msk.f32.gmra.mrb[44].mxu1 %vm7177_vm4, %v15711_v14 }
 0x733   : > { %11185 = vmatpush3.bf16.msra.mxu1 %v11182_v45  ;;  %10848 = vmatprep.mubr.msk.f32.mxu1 %vm7177_vm4, %v15716_v33  ;;  %v15988_v45 = vld [vmem:[#allocation20] ss:$0 sm:$0xff] }
 0x734   : > { %11187 = vmatprep.subr.bf16.mxu1 %v11186_v19 }
 0x736   : > { %10849 = vmatmul.mubr.msk.f32.gmra.mrb[46].mxu1 %vm7177_vm4, %v15846_v51 }
 0x737   : > { %11189 = vmatpush3.bf16.msra.mxu1 %v11186_v19  ;;  %10867 = vmatprep.mubr.msk.f32.mxu1 %vm7177_vm4, %v15500_v42  ;;  %v9428_v42 = vld [vmem:[%s16088_s10 + $0x1f0] sm:$0xff] }
 0x738   : > { %11191 = vmatprep.subr.bf16.mxu1 %v11190_v59 }
 0x73a   : > { %10868 = vmatmul.mubr.msk.f32.vlgmr.msra.gmra.mrb[40].mxu1 %vm7177_vm4, %v15536_v20  ;;  %v11202_v20 = vpack.c.bf16 %v9429_v54, %v9428_v42 }
 0x73b   : > { %11193 = vmatpush3.bf16.msra.mxu1 %v11190_v59  ;;  %10870 = vmatprep.mubr.msk.f32.mxu1 %vm7177_vm4, %v15523_v7  ;;  %v9438_v7 = vld [vmem:[%s16088_s10 + $0x200] sm:$0xff] }
 0x73c   : > { %11195 = vmatprep.subr.bf16.mxu1 %v11194_v52 }
 0x73e   : > { %10871 = vmatmul.mubr.msk.f32.gmra.mrb[42].mxu1 %vm7177_vm4, %v15566_v11  ;;  %v7226_v11 = vld [vmem:[#allocation6 + $0x90] sm:$0xff] }
 0x73f   : > { %11197 = vmatpush3.bf16.msra.mxu1 %v11194_v52  ;;  %10873 = vmatprep.mubr.msk.f32.mxu1 %vm7177_vm4, %v15554_v62  ;;  %v11206_v62 = vpack.c.bf16 %v9439_v26, %v9438_v7  ;;  %v8195_v8 = vrot.slane %v7226_v11, 1 }
 0x740   : > { %11199 = vmatprep.subr.bf16.mxu1 %v11198_v38 }
 0x742   : > { %10874 = vmatmul.mubr.msk.f32.gmra.mrb[44].mxu1 %vm7177_vm4, %v15590_v61  ;;  %v11210_v61 = vpack.c.bf16 %v9441_v1, %v9440_v41 }
 0x743   : > { %11201 = vmatpush3.bf16.msra.mxu1 %v11198_v38  ;;  %10876 = vmatprep.mubr.msk.f32.mxu1 %vm7177_vm4, %v15758_v18  ;;  %v9444_v18 = vld [vmem:[%s16088_s10 + $0x230] sm:$0xff] }
 0x744   : > { %11203 = vmatprep.subr.bf16.mxu1 %v11202_v20 }
 0x746   : > { %10877 = vmatmul.mubr.msk.f32.gmra.mrb[46].mxu1 %vm7177_vm4, %v7226_v11 }
 0x747   : > { %11205 = vmatpush3.bf16.msra.mxu1 %v11202_v20  ;;  %10895 = vmatprep.mubr.msk.f32.mxu1 %vm7177_vm4, %v15534_v60  ;;  %v7227_v60 = vld [vmem:[#allocation6 + $0x98] sm:$0x3] }
 0x748   : > { %11207 = vmatprep.subr.bf16.mxu1 %v11206_v62 }
 0x74a   : > { %10896 = vmatmul.mubr.msk.f32.vlgmr.msra.gmra.mrb[40].mxu1 %vm7177_vm4, %v15552_v30  ;;  %v8196_v30 = vrot.slane %v7227_v60, 1 }
 0x74b   : > { %11209 = vmatpush3.bf16.msra.mxu1 %v11206_v62  ;;  %10898 = vmatprep.mubr.msk.f32.mxu1 %vm7177_vm4, %v15564_v12  ;;  %v11218_v12 = vpack.c.bf16 %v9445_v23, %v9444_v18 }
 0x74c   : > { %11211 = vmatprep.subr.bf16.mxu1 %v11210_v61  ;;  %v8197_v6 = vsel %vm1031_vm2, %v8195_v8, %v8196_v30  ;;  %vm12163_vm2 = vmmov 0  }
 0x74e   : > { %10899 = vmatmul.mubr.msk.f32.gmra.mrb[42].mxu1 %vm7177_vm4, %v15577_v44  ;;  %v8322_v44 = vrot.slane %v7226_v11, 2 }
 0x74f   : > { %11213 = vmatpush3.bf16.msra.mxu1 %v11210_v61  ;;  %10901 = vmatprep.mubr.msk.f32.mxu1 %vm7177_vm4, %v15588_v28  ;;  %v8323_v28 = vrot.slane %v7227_v60, 2 }
 0x750   : > { %11215 = vmatprep.subr.bf16.mxu1 %v11214_v46 }
 0x752   : > { %10902 = vmatmul.mubr.msk.f32.gmra.mrb[44].mxu1 %vm7177_vm4, %v15599_v16  ;;  %v8324_v16 = vsel %vm1312_vm3, %v8322_v44, %v8323_v28 }
 0x753   : > { %11217 = vmatpush3.bf16.msra.mxu1 %v11214_v46  ;;  %10904 = vmatprep.mubr.msk.f32.mxu1 %vm7177_vm4, %v15802_v3  ;;  %v8670_v3 = vld [vmem:[%s16091_s13 + $0x60] sm:$0xff] }
 0x754   : > { %11219 = vmatprep.subr.bf16.mxu1 %v11218_v12  ;;  %v11241_v47 = vpack.c.bf16 %v8671_v34, %v8670_v3 }
 0x756   : > { %10905 = vmatmul.mubr.msk.f32.gmra.mrb[46].mxu1 %vm7177_vm4, %v8197_v6 }
 0x757   : > { %11221 = vmatpush3.bf16.msra.mxu1 %v11218_v12  ;;  %10923 = vmatprep.mubr.msk.f32.mxu1 %vm7177_vm4, %v15671_v57  ;;  %v8658_v57 = vld [vmem:[%s16091_s13] sm:$0xff] }
 0x75a   : > { %10924 = vmatmul.mubr.msk.f32.vlgmr.msra.gmra.mrb[40].mxu1 %vm7177_vm4, %v15678_v36  ;;  %v8659_v36 = vld [vmem:[%s16091_s13 + $0x8] sm:$0xff] }
 0x75b   : > { %10926 = vmatprep.mubr.msk.f32.mxu1 %vm7177_vm4, %v15691_v40  ;;  %v8660_v40 = vld [vmem:[%s16091_s13 + $0x10] sm:$0xff] }
 0x75e   : > { %10927 = vmatmul.mubr.msk.f32.gmra.mrb[42].mxu1 %vm7177_vm4, %v15698_v32  ;;  %v12162_v32 = vmov 0.0|0.0  }
 0x75f   : > { %10929 = vmatprep.mubr.msk.f32.mxu1 %vm7177_vm4, %v15711_v14  ;;  %11222 = vmatprep.subr.bf16.mxu1 %v12162_v32  ;;  %v11223_v14 = vpack.c.bf16 %v8659_v36, %v8658_v57 }
 0x761   : > { %11224 = vmatpush3.bf16.msra.mxu1 %v11223_v14 }
 0x762   : > { %10930 = vmatmul.mubr.msk.f32.gmra.mrb[44].mxu1 %vm7177_vm4, %v15716_v33  ;;  %v8661_v33 = vld [vmem:[%s16091_s13 + $0x18] sm:$0xff]  ;;  %11225 = vmatprep.subr.bf16.mxu1 %v12162_v32 }
 0x763   : > { %10932 = vmatprep.mubr.msk.f32.mxu1 %vm7177_vm4, %v15846_v51  ;;  %v11226_v31 = vpack.c.bf16 %v8661_v33, %v8660_v40 }
 0x765   : > { %11227 = vmatpush3.bf16.msra.mxu1 %v11226_v31 }
 0x766   : > { %10933 = vmatmul.mubr.msk.f32.gmra.mrb[46].mxu1 %vm7177_vm4, %v8324_v16  ;;  %11228 = vmatprep.subr.bf16.mxu1 %v12162_v32  ;;  %vm8606_vm4 = vcmask 1047558  }
 0x767   : > { %10967 = vmatprep.mubr.msk.f32.mxu1 %vm12163_vm2, %v16345_v2  ;;  %v8665_v2 = vld [vmem:[%s16091_s13 + $0x38] sm:$0xff] }
 0x768   : > { %v11232_v4 = vpack.c.bf16 %v8665_v2, %v8664_v17 }
 0x769   : > { %11230 = vmatpush3.bf16.msra.mxu1 %v11229_v55 }
 0x76a   : > { %11231 = vmatprep.subr.bf16.mxu1 %v12162_v32 }
 0x76d   : > { %11233 = vmatpush3.bf16.msra.mxu1 %v11232_v4 }
 0x76e   : > { %11234 = vmatprep.subr.bf16.mxu1 %v12162_v32 }
 0x771   : > { %11236 = vmatpush3.bf16.msra.mxu1 %v11235_v63 }
 0x772   : > { %11237 = vmatprep.subr.bf16.mxu1 %v12162_v32 }
 0x775   : > { %11239 = vmatpush3.bf16.msra.mxu1 %v11238_v37 }
 0x776   : > { %11240 = vmatprep.subr.bf16.mxu1 %v12162_v32 }
 0x779   : > { %11242 = vmatpush3.bf16.msra.mxu1 %v11241_v47 }
 0x77a   : > { %11243 = vmatprep.subr.bf16.mxu1 %v12162_v32 }
 0x77d   : > { %11245 = vmatpush3.bf16.msra.mxu1 %v11244_v15 }
 0x82d   : > { %v10925_v29 = vpop.f32.mrb[40].mxu1 }
 0x82e   : > { %v8457_v19 = vmul.f32 %v10925_v29, %v15988_v45  ;;  %v8402_v22 = vpop.f32.mrb[41].mxu1 }
 0x82f   : > { %v8456_v56 = vmul.f32 %v15988_v45, %v8402_v22 }
 0x830   : > { %v8472_v58 = vadd.f32 %v15990_v24, %v8457_v19 }
 0x831   : > { %v8471_v13 = vadd.f32 %v15990_v24, %v8456_v56  ;;  %v10928_v59 = vpop.f32.mrb[42].mxu1 }
 0x832   : > { %vm8480_vm3 = vcmp.gt.f32.partialorder %v8472_v58, 0.0  ;;  %v8488_v51 = vmul.f32 0.01, %v8472_v58  ;;  %v8459_v39 = vmul.f32 %v10928_v59, %v15988_v45  ;;  %v8412_v49 = vpop.f32.mrb[43].mxu1 }
 0x833   : > { %vm8479_vm8 = vcmp.gt.f32.partialorder %v8471_v13, 0.0  ;;  %v8487_v52 = vmul.f32 0.01, %v8471_v13  ;;  %v8458_v53 = vmul.f32 %v15988_v45, %v8412_v49 }
 0x834   : > { %v8496_v0 = vsel %vm8480_vm3, %v8472_v58, %v8488_v51  ;;  %v8474_v38 = vadd.f32 %v15990_v24, %v8459_v39 }
 0x835   : > { %v8495_v42 = vsel %vm8479_vm8, %v8471_v13, %v8487_v52  ;;  %v8473_v54 = vadd.f32 %v15990_v24, %v8458_v53  ;;  %v10931_v20 = vpop.f32.mrb[44].mxu1 }
 0x836   : > { %v8503_v7 = vmax.f32 %v8495_v42, %v8496_v0  ;;  %v8490_v26 = vmul.f32 0.01, %v8474_v38  ;;  %v8461_v11 = vmul.f32 %v10931_v20, %v15988_v45  ;;  %v8422_v62 = vpop.f32.mrb[45].mxu1  ;;  %vm8482_vm15 = vcmp.gt.f32.partialorder %v8474_v38, 0.0 }
 0x837   : > { %vm8481_vm12 = vcmp.gt.f32.partialorder %v8473_v54, 0.0  ;;  %v8489_v41 = vmul.f32 0.01, %v8473_v54  ;;  %v8460_v1 = vmul.f32 %v15988_v45, %v8422_v62 }
 0x838   : > { %v8508_v61 = vsel %vm8507_vm9, %v8503_v7, -inf  ;;  %v8541_v21 = vsel %vm8540_vm10, %v8503_v7, -inf  ;;  %v8574_v35 = vsel %vm8573_vm11, %v8503_v7, -inf  ;;  %v8607_v46 = vsel %vm8606_vm4, %v8503_v7, -inf }
 0x839   : > { %v8509_v60 = vrot.slane %v8508_v61, 4  ;;  %v8542_v18 = vrot.slane %v8541_v21, 4  ;;  %v8575_v23 = vrot.slane %v8574_v35, 4  ;;  %v8608_v8 = vrot.slane %v8607_v46, 4  ;;  %v10934_v30 = vpop.f32.mrb[46].mxu1 }
 0x83a   : > { %v8498_v12 = vsel %vm8482_vm15, %v8474_v38, %v8490_v26  ;;  %v8497_v6 = vsel %vm8481_vm12, %v8473_v54, %v8489_v41  ;;  %v8476_v44 = vadd.f32 %v15990_v24, %v8461_v11  ;;  %v8475_v28 = vadd.f32 %v15990_v24, %v8460_v1  ;;  %v8432_v16 = vpop.f32.mrb[47].mxu1 }
 0x83b   : > { %v8510_v57 = vmax.f32 %v8508_v61, %v8509_v60  ;;  %v8543_v36 = vmax.f32 %v8541_v21, %v8542_v18  ;;  %v8576_v40 = vmax.f32 %v8574_v35, %v8575_v23  ;;  %v8609_v32 = vmax.f32 %v8607_v46, %v8608_v8 }
 0x83c   : > { %v8504_v14 = vmax.f32 %v8497_v6, %v8498_v12  ;;  %vm8484_vm0 = vcmp.gt.f32.partialorder %v8476_v44, 0.0  ;;  %v8492_v33 = vmul.f32 0.01, %v8476_v44  ;;  %vm8483_vm5 = vcmp.gt.f32.partialorder %v8475_v28, 0.0 }
 0x83d   : > { %v8511_v31 = vrot.slane %v8510_v57, 2  ;;  %v8544_v25 = vrot.slane %v8543_v36, 2  ;;  %v8577_v27 = vrot.slane %v8576_v40, 2  ;;  %v8610_v55 = vrot.slane %v8609_v32, 2 }
 0x83e   : > { %v8515_v17 = vsel %vm8507_vm9, %v8504_v14, -inf  ;;  %v8548_v2 = vsel %vm8540_vm10, %v8504_v14, -inf  ;;  %v8581_v4 = vsel %vm8573_vm11, %v8504_v14, -inf  ;;  %v8614_v50 = vsel %vm8606_vm4, %v8504_v14, -inf }
 0x83f   : > { %v8512_v10 = vmax.f32 %v8510_v57, %v8511_v31  ;;  %v8545_v63 = vmax.f32 %v8543_v36, %v8544_v25  ;;  %v8578_v48 = vmax.f32 %v8576_v40, %v8577_v27  ;;  %v8611_v5 = vmax.f32 %v8609_v32, %v8610_v55 }
 0x840   : > { %v8516_v37 = vrot.slane %v8515_v17, 4  ;;  %v8549_v3 = vrot.slane %v8548_v2, 4  ;;  %v8582_v34 = vrot.slane %v8581_v4, 4  ;;  %v8615_v47 = vrot.slane %v8614_v50, 4 }
 0x841   : > { %v8513_v43 = vrot.slane %v8512_v10, 1  ;;  %v8546_v9 = vrot.slane %v8545_v63, 1  ;;  %v8579_v15 = vrot.slane %v8578_v48, 1  ;;  %v8612_v29 = vrot.slane %v8611_v5, 1 }
 0x842   : > { %v8517_v19 = vmax.f32 %v8515_v17, %v8516_v37  ;;  %v8550_v22 = vmax.f32 %v8548_v2, %v8549_v3  ;;  %v8583_v56 = vmax.f32 %v8581_v4, %v8582_v34  ;;  %v8616_v58 = vmax.f32 %v8614_v50, %v8615_v47 }
 0x843   : > { %v8514_v13 = vmax.f32 %v8512_v10, %v8513_v43  ;;  %v8547_v59 = vmax.f32 %v8545_v63, %v8546_v9  ;;  %v8580_v51 = vmax.f32 %v8578_v48, %v8579_v15  ;;  %v8613_v39 = vmax.f32 %v8611_v5, %v8612_v29 }
 0x844   : > { %v8518_v49 = vrot.slane %v8517_v19, 2  ;;  %v8551_v52 = vrot.slane %v8550_v22, 2  ;;  %v8584_v53 = vrot.slane %v8583_v56, 2  ;;  %v8617_v0 = vrot.slane %v8616_v58, 2 }
 0x845   : > { %8536 = vst [vmem:[#allocation7] sm:$0x1] %v8514_v13  ;;  %8569 = vst [vmem:[#allocation7 + $0x1] sm:$0x1] %v8547_v59  ;;  %v8500_v38 = vsel %vm8484_vm0, %v8476_v44, %v8492_v33  ;;  %v8491_v42 = vmul.f32 0.01, %v8475_v28  ;;  %v8463_v54 = vmul.f32 %v10934_v30, %v15988_v45  ;;  %v8462_v20 = vmul.f32 %v15988_v45, %v8432_v16 }
 0x846   : > { %8602 = vst [vmem:[#allocation7 + $0x2] sm:$0x1] %v8580_v51  ;;  %8635 = vst [vmem:[#allocation7 + $0x3] sm:$0x1] %v8613_v39  ;;  %v8519_v7 = vmax.f32 %v8517_v19, %v8518_v49  ;;  %v8552_v26 = vmax.f32 %v8550_v22, %v8551_v52  ;;  %v8585_v11 = vmax.f32 %v8583_v56, %v8584_v53 }
 0x847   : > { %v8618_v62 = vmax.f32 %v8616_v58, %v8617_v0  ;;  %v8499_v41 = vsel %vm8483_vm5, %v8475_v28, %v8491_v42  ;;  %v8478_v1 = vadd.f32 %v15990_v24, %v8463_v54  ;;  %v8477_v61 = vadd.f32 %v15990_v24, %v8462_v20 }
 0x848   : > { %v8520_v21 = vrot.slane %v8519_v7, 1  ;;  %v8553_v35 = vrot.slane %v8552_v26, 1  ;;  %v8586_v46 = vrot.slane %v8585_v11, 1  ;;  %v8505_v18 = vmax.f32 %v8499_v41, %v8500_v38 }
 0x849   : > { %v8619_v60 = vrot.slane %v8618_v62, 1  ;;  %vm8486_vm7 = vcmp.gt.f32.partialorder %v8478_v1, 0.0  ;;  %v8494_v23 = vmul.f32 0.01, %v8478_v1  ;;  %vm8485_vm13 = vcmp.gt.f32.partialorder %v8477_v61, 0.0 }
 0x84a   : > { %v8521_v8 = vmax.f32 %v8519_v7, %v8520_v21  ;;  %v8554_v45 = vmax.f32 %v8552_v26, %v8553_v35  ;;  %v8587_v30 = vmax.f32 %v8585_v11, %v8586_v46  ;;  %v8522_v6 = vsel %vm8507_vm9, %v8505_v18, -inf }
 0x84b   : > { %v8620_v12 = vmax.f32 %v8618_v62, %v8619_v60  ;;  %v8555_v44 = vsel %vm8540_vm10, %v8505_v18, -inf  ;;  %v8588_v28 = vsel %vm8573_vm11, %v8505_v18, -inf  ;;  %v8621_v24 = vsel %vm8606_vm4, %v8505_v18, -inf }
 0x84c   : > { %8537 = vst [vmem:[#allocation7 + $0x4] sm:$0x1] %v8521_v8  ;;  %8570 = vst [vmem:[#allocation7 + $0x5] sm:$0x1] %v8554_v45  ;;  %v8523_v16 = vrot.slane %v8522_v6, 4  ;;  %v8556_v57 = vrot.slane %v8555_v44, 4  ;;  %v8502_v32 = vsel %vm8486_vm7, %v8478_v1, %v8494_v23 }
 0x84d   : > { %8603 = vst [vmem:[#allocation7 + $0x6] sm:$0x1] %v8587_v30  ;;  %8636 = vst [vmem:[#allocation7 + $0x7] sm:$0x1] %v8620_v12  ;;  %v8589_v36 = vrot.slane %v8588_v28, 4  ;;  %v8622_v40 = vrot.slane %v8621_v24, 4 }
 0x84e   : > { %v8493_v14 = vmul.f32 0.01, %v8477_v61  ;;  %v8524_v33 = vmax.f32 %v8522_v6, %v8523_v16  ;;  %v8557_v31 = vmax.f32 %v8555_v44, %v8556_v57  ;;  %v8639_v45 = vld [vmem:[#allocation7] sm:$0xf] }
 0x84f   : > { %v8590_v25 = vmax.f32 %v8588_v28, %v8589_v36  ;;  %v8623_v27 = vmax.f32 %v8621_v24, %v8622_v40  ;;  %v8644_v6 = vsel %vm8643_vm14, %v8639_v45, 0.0 }
 0x850   : > { %v8501_v55 = vsel %vm8485_vm13, %v8477_v61, %v8493_v14  ;;  %v8525_v17 = vrot.slane %v8524_v33, 2  ;;  %v8558_v2 = vrot.slane %v8557_v31, 2 }
 0x851   : > { %v8591_v4 = vrot.slane %v8590_v25, 2  ;;  %v8624_v50 = vrot.slane %v8623_v27, 2  ;;  %v8506_v10 = vmax.f32 %v8501_v55, %v8502_v32  ;;  %v8674_v55 = vld [vmem:[%s16347_s28] sm:$0x1] }
 0x852   : > { %v8526_v63 = vmax.f32 %v8524_v33, %v8525_v17  ;;  %v8559_v48 = vmax.f32 %v8557_v31, %v8558_v2 }
 0x853   : > { %v8592_v5 = vmax.f32 %v8590_v25, %v8591_v4  ;;  %v8625_v37 = vmax.f32 %v8623_v27, %v8624_v50  ;;  %v8529_v3 = vsel %vm8507_vm9, %v8506_v10, -inf  ;;  %v8562_v34 = vsel %vm8540_vm10, %v8506_v10, -inf }
 0x854   : > { %v8595_v47 = vsel %vm8573_vm11, %v8506_v10, -inf  ;;  %v8628_v43 = vsel %vm8606_vm4, %v8506_v10, -inf  ;;  %v8527_v9 = vrot.slane %v8526_v63, 1  ;;  %v8560_v15 = vrot.slane %v8559_v48, 1  ;;  %v8640_v8 = vld [vmem:[#allocation7 + $0x4] sm:$0xf] }
 0x855   : > { %v8593_v29 = vrot.slane %v8592_v5, 1  ;;  %v8626_v19 = vrot.slane %v8625_v37, 1  ;;  %v8530_v22 = vrot.slane %v8529_v3, 4  ;;  %v8563_v56 = vrot.slane %v8562_v34, 4 }
 0x856   : > { %v8596_v58 = vrot.slane %v8595_v47, 4  ;;  %v8629_v13 = vrot.slane %v8628_v43, 4  ;;  %v8528_v59 = vmax.f32 %v8526_v63, %v8527_v9  ;;  %v8561_v51 = vmax.f32 %v8559_v48, %v8560_v15 }
 0x857   : > { %v8594_v39 = vmax.f32 %v8592_v5, %v8593_v29  ;;  %v8627_v49 = vmax.f32 %v8625_v37, %v8626_v19  ;;  %v8531_v52 = vmax.f32 %v8529_v3, %v8530_v22  ;;  %v8564_v53 = vmax.f32 %v8562_v34, %v8563_v56 }
 0x858   : > { %v8597_v0 = vmax.f32 %v8595_v47, %v8596_v58  ;;  %v8630_v38 = vmax.f32 %v8628_v43, %v8629_v13  ;;  %8538 = vst [vmem:[#allocation7 + $0x8] sm:$0x1] %v8528_v59  ;;  %8571 = vst [vmem:[#allocation7 + $0x9] sm:$0x1] %v8561_v51  ;;  %v8645_v12 = vsel %vm8643_vm14, %v8640_v8, 0.0 }
 0x859   : > { %8604 = vst [vmem:[#allocation7 + $0xa] sm:$0x1] %v8594_v39  ;;  %8637 = vst [vmem:[#allocation7 + $0xb] sm:$0x1] %v8627_v49  ;;  %v8532_v42 = vrot.slane %v8531_v52, 2  ;;  %v8565_v54 = vrot.slane %v8564_v53, 2  ;;  %v8646_v28 = vadd.f32 %v8645_v12, %v8644_v6 }
 0x85a   : > { %v8598_v20 = vrot.slane %v8597_v0, 2  ;;  %v8631_v7 = vrot.slane %v8630_v38, 2 }
 0x85b   : > { %v8533_v26 = vmax.f32 %v8531_v52, %v8532_v42  ;;  %v8566_v11 = vmax.f32 %v8564_v53, %v8565_v54 }
 0x85c   : > { %v8599_v62 = vmax.f32 %v8597_v0, %v8598_v20  ;;  %v8632_v41 = vmax.f32 %v8630_v38, %v8631_v7 }
 0x85d   : > { %v8534_v1 = vrot.slane %v8533_v26, 1  ;;  %v8567_v61 = vrot.slane %v8566_v11, 1 }
 0x85e   : > { %v8600_v21 = vrot.slane %v8599_v62, 1  ;;  %v8633_v35 = vrot.slane %v8632_v41, 1 }
 0x85f   : > { %v8535_v46 = vmax.f32 %v8533_v26, %v8534_v1  ;;  %v8568_v60 = vmax.f32 %v8566_v11, %v8567_v61 }
 0x860   : > { %v8601_v18 = vmax.f32 %v8599_v62, %v8600_v21  ;;  %v8634_v23 = vmax.f32 %v8632_v41, %v8633_v35  ;;  %v8641_v30 = vld [vmem:[#allocation7 + $0x8] sm:$0xf] }
 0x861   : > { %8539 = vst [vmem:[#allocation7 + $0xc] sm:$0x1] %v8535_v46  ;;  %8572 = vst [vmem:[#allocation7 + $0xd] sm:$0x1] %v8568_v60  ;;  %v8647_v44 = vsel %vm8643_vm14, %v8641_v30, 0.0 }
 0x862   : > { %8605 = vst [vmem:[#allocation7 + $0xe] sm:$0x1] %v8601_v18  ;;  %8638 = vst [vmem:[#allocation7 + $0xf] sm:$0x1] %v8634_v23  ;;  %v8648_v16 = vadd.f32 %v8647_v44, %v8646_v28 }
 0x869   : > { %v8642_v24 = vld [vmem:[#allocation7 + $0xc] sm:$0xf] }
 0x86a   : > { %v8649_v57 = vsel %vm8643_vm14, %v8642_v24, 0.0 }
 0x86b   : > { %v8650_v36 = vadd.f32 %v8649_v57, %v8648_v16 }
 0x86d   : > { %v8651_v40 = vrot.slane %v8650_v36, 4 }
 0x86f   : > { %v8652_v32 = vadd.f32 %v8651_v40, %v8650_v36 }
 0x871   : > { %v8653_v14 = vrot.slane %v8652_v32, 2 }
 0x873   : > { %v8654_v33 = vadd.f32 %v8653_v14, %v8652_v32 }
 0x875   : > { %v8655_v31 = vrot.slane %v8654_v33, 1 }
 0x877   : > { %v8656_v25 = vadd.f32 %v8655_v31, %v8654_v33 }
 0x879   : > { %v8657_v27 = vmul.f32 0.0625, %v8656_v25 }
 0x87b   : > { %10968 = vmatmul.mubr.f32.vlgmr.msra.gmra.mrb[48].mxu1 %v8657_v27 }
 0x94e   : > { %v8741_v17 = vpop.f32.mrb[48].mxu1 }
 0x94f   : > { %v8742_v2 = vadd.f32 %v8741_v17, %v8674_v55  ;;  %v10969_v4 = vpop.f32.mrb[49].mxu1 }
 0x951   : > { %8746 = vst.msk [vmem:[%s603_s26] sm:$0x1] %vm8745_vm1, %v8742_v2 }
 0x952   : > { %12076 = shalt.err (!%p12073_p9)
}
 0x953   : > { %s12077_s16 = scalar_lea.hbm %s16036_s20, 16  ;;  %s12081_s6 = scalar_lea.hbm %s16349_s15, 32 }
 0x954   : > { %p12078_p12 = scmp.ne.s32.totalorder %s16036_s20, %s12077_s16  ;;  %p12082_p3 = scmp.lt.u32.totalorder %s16036_s20, %s16349_s15 }
 0x955   : > { %p12083_p4 = scmp.lt.u32.totalorder %s12081_s6, %s12077_s16  ;;  %p12085_p8 = scmp.lt.u32.totalorder %s12077_s16, %s16036_s20 }
 0x956   : > { %p12079_p10 = pnand %p12078_p12, %p16350_p11 }
 0x957   : > { %p12084_p7 = por %p12083_p4, %p12082_p3 }
 0x958   : > { %p12080_p2 = pneg %p12079_p10 }
 0x959   : > { %p12086_p13 = por %p12085_p8, %p12084_p7 }
 0x95b   : > { %p12087_p1 = pnand %p12086_p13, %p12080_p2 }
 0x95d   : > { %12090 = shalt.err (!%p12087_p1)
}
 0x95e   : > { %11666 = dma.vmem_to_hbm [thread:$0]  (%p16350_p11), %s16038_s23, 16, %s16036_s20, %s8748_s27  }
 0x95f PF: > { %s16351_s30 = sld [smem:[#allocation32_spill]]  ;;  %s16352_s26 = sld [smem:[#allocation30_spill]] }
 0x960   : > { %s16353_s8 = sld [smem:[#allocation36_spill]] }
 0x965   : > { %p11718_p0 = scmp.ge.s32.totalorder %s16351_s30, 2  ;;  %s8772_s25 = sand.u32 1, %s16352_s26  }
 0x966   : > { %p16354_p6 = scmp.ne.s32.totalorder %s16353_s8, 0  ;;  %s8773_s18 = scalar_lea.sflag [#allocation10], %s8772_s25 }
 0x968   : > { %p11697_p5 = pnand %p11718_p0, %p16354_p6 }
 0x96a   : > { %12128 = dma.done.wait (!%p11697_p5), %s8773_s18, 16  }
 0x96b   : > { %12130 = vsyncadd (!%p11697_p5), %s8773_s18, 4294967280  ;;  %s16355_s21 = sld [smem:[#allocation33_spill]]  ;;  %s16356_s22 = sld [smem:[#allocation31_spill]] }
 0x96c   : > { %s16357_s20 = sld [smem:[#allocation34_spill]]  ;;  %s16358_s18 = smov %s12137_s19 }
 0x971   : > { %p30_p9 = scmp.ge.s32.totalorder %s16355_s21, 4   ;;  %s16359_s19 = smov %s16356_s22 }
 0x973   :  { %32 = sbr.rel (!%p30_p9) target bundleno = 15 (0xf), region = 188 }
 0x97a   :  { %8777 = vsyncpa [#allocation9], 1 }
 0x97b   :  { %8779 = vsyncpa [#allocation9 + $0x1], 1 }
 0x97c   :  { %8780 = vsyncpa [#allocation12], 1 }
 0x97d   :  { %8781 = vsyncpa [#allocation15], 1 }
 0x97e   :  { %8782 = vsyncpa [#allocation18], 1 }
 0x97f   :  { %8783 = vsyncpa [#allocation21], 1 }
 0x980   :  { %8784 = vsyncpa [#allocation10], 1 }
 0x981   :  { %8786 = vsyncpa [#allocation10 + $0x1], 1 }

</bundles_post_ra>
